<compile_context>
chip_gen: v7x
topology: tpu7x:2x2x1
jax: 0.10.0
libtpu: 0.0.40
codegen_flags: <defaults>
</compile_context>

<pallas_src>
import functools

import jax
import jax.numpy as jnp
from jax.experimental import pallas as pl
from jax.experimental.pallas import tpu as pltpu

LEAKY_SLOPE = 0.2
BN_EPS = 1e-5


# ---------------------------------------------------------------------------
# Pallas kernel: fused conv (as matmul) + optional BatchNorm + activation
# ---------------------------------------------------------------------------

def _conv_block_kernel(*refs, gather, has_bn, activation):
    """Fused discriminator block.

    gather=True : refs = (xs_ref, w_ref, [gamma_ref, beta_ref,] o_ref)
        xs_ref: [Bb, OH+1, OW+1, 4*Cin] space-to-depth packed padded input
                (channel block t = 2*row_parity + col_parity). The 16 (kh,kw)
                conv taps are gathered as 4 contiguous shifted windows
                (dh, dw in {0,1}) concatenated along channels: im2col is fused
                in VMEM instead of materialized in HBM.
    gather=False: refs = (cols_ref [M, K], w_ref, ..., o_ref)  (tiny layers).
    w_ref: [K, Cout]   gamma/beta: [1, Cout]   o_ref: [M_block, Cout]
    """
    if has_bn:
        x_ref, w_ref, gamma_ref, beta_ref, o_ref = refs
    else:
        x_ref, w_ref, o_ref = refs

    if gather:
        bb, ohp, owp, c4 = x_ref.shape
        oh, ow = ohp - 1, owp - 1
        parts = []
        for dh in (0, 1):
            for dw in (0, 1):
                p = x_ref[:, dh:dh + oh, dw:dw + ow, :]      # [Bb,OH,OW,4Cin]
                parts.append(p.reshape(bb * oh * ow, c4))    # OW % 8 == 0 here
        cols = jnp.concatenate(parts, axis=-1)               # [M, 16*Cin]
    else:
        cols = x_ref[...]

    # Single MXU matmul over the whole K = kH*kW*Cin dimension.
    y = jnp.dot(cols, w_ref[...], preferred_element_type=jnp.float32)

    if has_bn:
        m = y.shape[0]
        # Training-mode BN: biased batch stats in a single pass (sum and
        # sum-of-squares), normalization via rsqrt (EUP slot).
        s = jnp.sum(y, axis=0, keepdims=True)
        ss = jnp.sum(y * y, axis=0, keepdims=True)
        mean = s * (1.0 / m)
        var = ss * (1.0 / m) - mean * mean
        scale = gamma_ref[...] * jax.lax.rsqrt(var + BN_EPS)
        shift = beta_ref[...] - mean * scale
        y = y * scale + shift

    if activation == "leaky_relu":
        y = jnp.where(y > 0, y, LEAKY_SLOPE * y)
    elif activation == "sigmoid":
        y = jax.nn.sigmoid(y)

    # TODO(synk): stores stay channel-minor (Cout = 16..128); packing to a
    # lane-dense [B*OH, OW*Cout] slab needs an in-kernel minor-dim relayout
    # and is skipped at these sizes (bf16 activations likewise left out to
    # keep the f32 reference tolerance).
    o_ref[...] = y.astype(o_ref.dtype)


# ---------------------------------------------------------------------------
# XLA-side glue (input-sized repacks only; no im2col blow-up for big layers)
# ---------------------------------------------------------------------------

def _space_to_depth_pad(x):
    """[B,H,W,C] NHWC -> [B, H/2+1, W/2+1, 4C] with
    out[b, i, j, (2p+q)*C + c] == pad(x)[b, 2i+p, 2j+q, c]  (zero pad of 1)."""
    b, h, w, c = x.shape
    xp = jnp.pad(x, ((0, 0), (1, 1), (1, 1), (0, 0)))
    ohp, owp = h // 2 + 1, w // 2 + 1
    xs = xp.reshape(b, ohp, 2, owp, 2, c).transpose(0, 1, 3, 2, 4, 5)
    return xs.reshape(b, ohp, owp, 4 * c)


def _weights_for_gather(w):
    """[4,4,Cin,Cout] -> [16*Cin, Cout] with row order (dh, dw, p, q, cin),
    matching the kernel's channel-concat of the 4 shifted windows."""
    _, _, cin, cout = w.shape
    wr = w.reshape(2, 2, 2, 2, cin, cout)      # (dh, p, dw, q, cin, cout)
    wr = wr.transpose(0, 2, 1, 3, 4, 5)        # (dh, dw, p, q, cin, cout)
    return wr.reshape(16 * cin, cout)


def _im2col(x, k, stride, pad):
    """Classic XLA-side im2col; only used for the tiny OW<8 layer."""
    b, h, w, c = x.shape
    xp = jnp.pad(x, ((0, 0), (pad, pad), (pad, pad), (0, 0)))
    oh = (h + 2 * pad - k) // stride + 1
    ow = (w + 2 * pad - k) // stride + 1
    patches = []
    for i in range(k):
        for j in range(k):
            patches.append(
                xp[:, i:i + stride * oh:stride, j:j + stride * ow:stride, :])
    cols = jnp.concatenate(patches, axis=-1)    # (kh, kw, cin) channel order
    return cols.reshape(b * oh * ow, k * k * c)


def conv4x4_s2_layer(x, w, *, gamma=None, beta=None, activation="leaky_relu"):
    """One block: Conv2d(k=4, s=2, p=1, bias=False) [+ BatchNorm2d(train)]
    + activation, as ONE pallas_call. x: [B,H,W,Cin] NHWC."""
    b, h, wid, cin = x.shape
    oh, ow = h // 2, wid // 2
    cout = w.shape[-1]
    has_bn = gamma is not None
    out_shape = jax.ShapeDtypeStruct((b * oh * ow, cout), jnp.float32)

    if ow % 8 == 0:
        # Fused in-kernel im2col path.
        xs = _space_to_depth_pad(x)                   # [B, OH+1, OW+1, 4*Cin]
        wmat = _weights_for_gather(w)                 # [16*Cin, Cout]
        kernel = functools.partial(_conv_block_kernel, gather=True,
                                   has_bn=has_bn, activation=activation)
        if has_bn:
            # Whole-batch statistics -> single fused invocation, all in VMEM.
            out = pl.pallas_call(kernel, out_shape=out_shape)(
                xs, wmat, gamma.reshape(1, cout), beta.reshape(1, cout))
        else:
            # No cross-batch coupling: grid over batch, "parallel" so blocks
            # pipeline and can split across TensorCores (v7x megacore).
            out = pl.pallas_call(
                kernel,
                out_shape=out_shape,
                grid=(b,),
                in_specs=[
                    pl.BlockSpec((1, oh + 1, ow + 1, 4 * cin),
                                 lambda i: (i, 0, 0, 0)),
                    pl.BlockSpec((16 * cin, cout), lambda i: (0, 0)),
                ],
                out_specs=pl.BlockSpec((oh * ow, cout), lambda i: (i, 0)),
                compiler_params=pltpu.CompilerParams(
                    dimension_semantics=("parallel",)),
            )(xs, wmat)
    else:
        # Tiny spatial size (OW < 8 sublanes): build the small patch matrix in
        # XLA and run the same fused matmul+BN+act kernel on 2-D inputs.
        cols = _im2col(x, 4, 2, 1)                    # [M, 16*Cin]
        wmat = w.reshape(16 * cin, cout)              # (kh, kw, cin) order
        kernel = functools.partial(_conv_block_kernel, gather=False,
                                   has_bn=has_bn, activation=activation)
        args = (cols, wmat)
        if has_bn:
            args = args + (gamma.reshape(1, cout), beta.reshape(1, cout))
        out = pl.pallas_call(kernel, out_shape=out_shape)(*args)

    return out.reshape(b, oh, ow, cout)


# ---------------------------------------------------------------------------
# Parameters + forward (mirrors WGAN_Discriminator.forward, noise_adding=False)
# ---------------------------------------------------------------------------

def init_params(key, channels, hidden_dim):
    layer_dims = [
        (channels, hidden_dim),
        (hidden_dim, hidden_dim * 2),
        (hidden_dim * 2, hidden_dim * 4),
        (hidden_dim * 4, hidden_dim * 8),
        (hidden_dim * 8, 1),
    ]
    params = []
    for cin, cout in layer_dims:
        key, sub = jax.random.split(key)
        params.append({
            "w": jax.random.normal(sub, (4, 4, cin, cout), jnp.float32) * 0.02,
            "gamma": jnp.ones((cout,), jnp.float32),   # BN default init
            "beta": jnp.zeros((cout,), jnp.float32),
        })
    return params


def wgan_discriminator_forward(params, x_nchw):
    x = jnp.transpose(x_nchw, (0, 2, 3, 1)).astype(jnp.float32)  # NCHW -> NHWC
    # layer 1: conv + LeakyReLU (no BN), gridded over batch
    x = conv4x4_s2_layer(x, params[0]["w"], activation="leaky_relu")
    # layers 2-4: conv + BN(train stats) + LeakyReLU, one fused pallas_call each
    for i in (1, 2, 3):
        x = conv4x4_s2_layer(x, params[i]["w"],
                             gamma=params[i]["gamma"], beta=params[i]["beta"])
    # layer 5: Conv2d(k=4, s=1, p=0, Cout=1) on the 4x4 map + Sigmoid
    # == [B, 2048] @ [2048, 1]; left to XLA (1-lane output is a poor Pallas fit).
    b = x.shape[0]
    logits = jnp.dot(x.reshape(b, -1), params[4]["w"].reshape(-1, 1))
    return jax.nn.sigmoid(logits).reshape(b)          # Rearrange('b 1 1 1 -> b')


# ---------------------------------------------------------------------------
# Pure-JAX reference (for correctness check)
# ---------------------------------------------------------------------------

def reference_forward(params, x_nchw):
    x = jnp.transpose(x_nchw, (0, 2, 3, 1)).astype(jnp.float32)

    def conv(x, w, s, p):
        return jax.lax.conv_general_dilated(
            x, w, (s, s), ((p, p), (p, p)),
            dimension_numbers=("NHWC", "HWIO", "NHWC"))

    def bn(x, gamma, beta, eps=BN_EPS):
        mean = jnp.mean(x, axis=(0, 1, 2), keepdims=True)
        var = jnp.mean(jnp.square(x - mean), axis=(0, 1, 2), keepdims=True)
        return (x - mean) / jnp.sqrt(var + eps) * gamma + beta

    leaky = lambda y: jnp.where(y > 0, y, LEAKY_SLOPE * y)

    x = leaky(conv(x, params[0]["w"], 2, 1))
    for i in (1, 2, 3):
        x = leaky(bn(conv(x, params[i]["w"], 2, 1),
                     params[i]["gamma"], params[i]["beta"]))
    x = jax.nn.sigmoid(conv(x, params[4]["w"], 1, 0))
    return x.reshape(x.shape[0])


# ---------------------------------------------------------------------------

if __name__ == "__main__":
    BATCH, CHANNELS, HW, HIDDEN = 2, 4, 64, 16  # 64x64 needed to reach 1x1 output

    key = jax.random.PRNGKey(0)
    k_params, k_x = jax.random.split(key)
    params = init_params(k_params, CHANNELS, HIDDEN)
    x = jax.random.normal(k_x, (BATCH, CHANNELS, HW, HW), jnp.float32)  # NCHW

    fwd = jax.jit(wgan_discriminator_forward)
    out = jax.block_until_ready(fwd(params, x))

    ref = jax.block_until_ready(reference_forward(params, x))
    assert out.shape == (BATCH,), out.shape
    assert jnp.allclose(out, ref, atol=2e-4, rtol=2e-4), (out, ref)

    print("KERNEL_OK")
</pallas_src>

<mosaic_0001>
module attributes {stable_mosaic.version = 11 : i64} {
  func.func @_conv_block_kernel(%arg0: i32, %arg1: memref<1x33x33x16xf32, #tpu.memory_space<vmem>>, %arg2: memref<64x16xf32, #tpu.memory_space<vmem>>, %arg3: memref<1024x16xf32, #tpu.memory_space<vmem>>) attributes {dimension_semantics = [#tpu.dimension_semantics<parallel>], iteration_bounds = array<i64: 2>, scalar_prefetch = 0 : i64, scratch_operands = 0 : i64, tpu.core_type = #tpu.core_type<tc>, window_params = [{transform_indices = @transform_0, window_bounds = array<i64: 1, 33, 33, 16>}, {pipeline_mode = #tpu.pipeline_mode<synchronous>, transform_indices = @transform_1, window_bounds = array<i64: 64, 16>}, {transform_indices = @transform_2, window_bounds = array<i64: 1024, 16>}]} {
    %c0 = arith.constant 0 : index
    %c0_0 = arith.constant 0 : index
    %c0_1 = arith.constant 0 : index
    %c0_2 = arith.constant 0 : index
    %0 = vector.load %arg1[%c0, %c0_0, %c0_1, %c0_2] : memref<1x33x33x16xf32, #tpu.memory_space<vmem>>, vector<1x32x32x16xf32>
    %1 = vector.shape_cast %0 : vector<1x32x32x16xf32> to vector<1024x16xf32>
    %c0_3 = arith.constant 0 : index
    %c0_4 = arith.constant 0 : index
    %c1 = arith.constant 1 : index
    %c0_5 = arith.constant 0 : index
    %2 = vector.load %arg1[%c0_3, %c0_4, %c1, %c0_5] : memref<1x33x33x16xf32, #tpu.memory_space<vmem>>, vector<1x32x32x16xf32>
    %3 = vector.shape_cast %2 : vector<1x32x32x16xf32> to vector<1024x16xf32>
    %c0_6 = arith.constant 0 : index
    %c1_7 = arith.constant 1 : index
    %c0_8 = arith.constant 0 : index
    %c0_9 = arith.constant 0 : index
    %4 = vector.load %arg1[%c0_6, %c1_7, %c0_8, %c0_9] : memref<1x33x33x16xf32, #tpu.memory_space<vmem>>, vector<1x32x32x16xf32>
    %5 = vector.shape_cast %4 : vector<1x32x32x16xf32> to vector<1024x16xf32>
    %c0_10 = arith.constant 0 : index
    %c1_11 = arith.constant 1 : index
    %c1_12 = arith.constant 1 : index
    %c0_13 = arith.constant 0 : index
    %6 = vector.load %arg1[%c0_10, %c1_11, %c1_12, %c0_13] : memref<1x33x33x16xf32, #tpu.memory_space<vmem>>, vector<1x32x32x16xf32>
    %7 = vector.shape_cast %6 : vector<1x32x32x16xf32> to vector<1024x16xf32>
    %8 = tpu.concatenate %1, %3, %5, %7 in 1 : vector<1024x16xf32>, vector<1024x16xf32>, vector<1024x16xf32>, vector<1024x16xf32> -> vector<1024x64xf32>
    %c0_14 = arith.constant 0 : index
    %c0_15 = arith.constant 0 : index
    %9 = vector.load %arg2[%c0_14, %c0_15] : memref<64x16xf32, #tpu.memory_space<vmem>>, vector<64x16xf32>
    %cst = arith.constant dense<0.000000e+00> : vector<1024x16xf32>
    %10 = tpu.matmul %8, %9, %cst {dimension_numbers = #tpu.dot_dimension_numbers<[1], [0], [0], [1], [0, 0, 1, 1], [], []>} : vector<1024x64xf32>, vector<64x16xf32>, vector<1024x16xf32> -> vector<1024x16xf32>
    %cst_16 = arith.constant 0.000000e+00 : f32
    %11 = vector.broadcast %cst_16 : f32 to vector<1024x16xf32>
    %12 = arith.cmpf ogt, %10, %11 : vector<1024x16xf32>
    %cst_17 = arith.constant 2.000000e-01 : f32
    %13 = vector.broadcast %cst_17 : f32 to vector<1024x16xf32>
    %14 = arith.mulf %13, %10 : vector<1024x16xf32>
    %15 = arith.select %12, %10, %14 : vector<1024x16xi1>, vector<1024x16xf32>
    %c0_18 = arith.constant 0 : index
    %c0_19 = arith.constant 0 : index
    %16 = vector.load %arg3[%c0_18, %c0_19] : memref<1024x16xf32, #tpu.memory_space<vmem>>, vector<1024x16xf32>
    tpu.vector_store %arg3[%c0_18, %c0_19], %15 {strides = array<i32>} : memref<1024x16xf32, #tpu.memory_space<vmem>>, vector<1024x16xf32>,
    return
  }
  func.func @transform_0(%arg0: i32) -> (i32, i32, i32, i32) {
    %c0_i32 = arith.constant 0 : i32
    %c0_i32_0 = arith.constant 0 : i32
    %c0_i32_1 = arith.constant 0 : i32
    %c0_i32_2 = arith.constant 0 : i32
    return %arg0, %c0_i32, %c0_i32_0, %c0_i32_1 : i32, i32, i32, i32
  }
  func.func @transform_1(%arg0: i32) -> (i32, i32) {
    %c0_i32 = arith.constant 0 : i32
    %c0_i32_0 = arith.constant 0 : i32
    %c0_i32_1 = arith.constant 0 : i32
    return %c0_i32, %c0_i32_0 : i32, i32
  }
  func.func @transform_2(%arg0: i32) -> (i32, i32) {
    %c0_i32 = arith.constant 0 : i32
    %c0_i32_0 = arith.constant 0 : i32
    return %arg0, %c0_i32 : i32, i32
  }
}

module attributes {stable_mosaic.version = 11 : i64} {
  func.func @_conv_block_kernel(%arg0: memref<2x17x17x64xf32, #tpu.memory_space<vmem>>, %arg1: memref<256x32xf32, #tpu.memory_space<vmem>>, %arg2: memref<1x32xf32, #tpu.memory_space<vmem>>, %arg3: memref<1x32xf32, #tpu.memory_space<vmem>>, %arg4: memref<512x32xf32, #tpu.memory_space<vmem>>) attributes {dimension_semantics = [], scalar_prefetch = 0 : i64, scratch_operands = 0 : i64, tpu.core_type = #tpu.core_type<tc>} {
    %c0 = arith.constant 0 : index
    %c0_0 = arith.constant 0 : index
    %c0_1 = arith.constant 0 : index
    %c0_2 = arith.constant 0 : index
    %0 = vector.load %arg0[%c0, %c0_0, %c0_1, %c0_2] : memref<2x17x17x64xf32, #tpu.memory_space<vmem>>, vector<2x16x16x64xf32>
    %1 = vector.shape_cast %0 : vector<2x16x16x64xf32> to vector<512x64xf32>
    %c0_3 = arith.constant 0 : index
    %c0_4 = arith.constant 0 : index
    %c1 = arith.constant 1 : index
    %c0_5 = arith.constant 0 : index
    %2 = vector.load %arg0[%c0_3, %c0_4, %c1, %c0_5] : memref<2x17x17x64xf32, #tpu.memory_space<vmem>>, vector<2x16x16x64xf32>
    %3 = vector.shape_cast %2 : vector<2x16x16x64xf32> to vector<512x64xf32>
    %c0_6 = arith.constant 0 : index
    %c1_7 = arith.constant 1 : index
    %c0_8 = arith.constant 0 : index
    %c0_9 = arith.constant 0 : index
    %4 = vector.load %arg0[%c0_6, %c1_7, %c0_8, %c0_9] : memref<2x17x17x64xf32, #tpu.memory_space<vmem>>, vector<2x16x16x64xf32>
    %5 = vector.shape_cast %4 : vector<2x16x16x64xf32> to vector<512x64xf32>
    %c0_10 = arith.constant 0 : index
    %c1_11 = arith.constant 1 : index
    %c1_12 = arith.constant 1 : index
    %c0_13 = arith.constant 0 : index
    %6 = vector.load %arg0[%c0_10, %c1_11, %c1_12, %c0_13] : memref<2x17x17x64xf32, #tpu.memory_space<vmem>>, vector<2x16x16x64xf32>
    %7 = vector.shape_cast %6 : vector<2x16x16x64xf32> to vector<512x64xf32>
    %8 = tpu.concatenate %1, %3, %5, %7 in 1 : vector<512x64xf32>, vector<512x64xf32>, vector<512x64xf32>, vector<512x64xf32> -> vector<512x256xf32>
    %c0_14 = arith.constant 0 : index
    %c0_15 = arith.constant 0 : index
    %9 = vector.load %arg1[%c0_14, %c0_15] : memref<256x32xf32, #tpu.memory_space<vmem>>, vector<256x32xf32>
    %cst = arith.constant dense<0.000000e+00> : vector<512x32xf32>
    %10 = tpu.matmul %8, %9, %cst {dimension_numbers = #tpu.dot_dimension_numbers<[1], [0], [0], [1], [0, 0, 1, 1], [], []>} : vector<512x256xf32>, vector<256x32xf32>, vector<512x32xf32> -> vector<512x32xf32>
    %cst_16 = arith.constant dense<0.000000e+00> : vector<32xf32>
    %11 = vector.multi_reduction <add>, %10, %cst_16 [0] : vector<512x32xf32> to vector<32xf32>
    %12 = vector.shape_cast %11 : vector<32xf32> to vector<1x32xf32>
    %13 = arith.mulf %10, %10 : vector<512x32xf32>
    %cst_17 = arith.constant dense<0.000000e+00> : vector<32xf32>
    %14 = vector.multi_reduction <add>, %13, %cst_17 [0] : vector<512x32xf32> to vector<32xf32>
    %15 = vector.shape_cast %14 : vector<32xf32> to vector<1x32xf32>
    %cst_18 = arith.constant 0.001953125 : f32
    %16 = vector.broadcast %cst_18 : f32 to vector<1x32xf32>
    %17 = arith.mulf %12, %16 : vector<1x32xf32>
    %cst_19 = arith.constant 0.001953125 : f32
    %18 = vector.broadcast %cst_19 : f32 to vector<1x32xf32>
    %19 = arith.mulf %15, %18 : vector<1x32xf32>
    %20 = arith.mulf %17, %17 : vector<1x32xf32>
    %21 = arith.subf %19, %20 : vector<1x32xf32>
    %c0_20 = arith.constant 0 : index
    %c0_21 = arith.constant 0 : index
    %22 = vector.load %arg2[%c0_20, %c0_21] : memref<1x32xf32, #tpu.memory_space<vmem>>, vector<1x32xf32>
    %cst_22 = arith.constant 9.99999974E-6 : f32
    %23 = vector.broadcast %cst_22 : f32 to vector<1x32xf32>
    %24 = arith.addf %21, %23 : vector<1x32xf32>
    %25 = math.rsqrt %24 : vector<1x32xf32>
    %26 = arith.mulf %22, %25 : vector<1x32xf32>
    %c0_23 = arith.constant 0 : index
    %c0_24 = arith.constant 0 : index
    %27 = vector.load %arg3[%c0_23, %c0_24] : memref<1x32xf32, #tpu.memory_space<vmem>>, vector<1x32xf32>
    %28 = arith.mulf %17, %26 : vector<1x32xf32>
    %29 = arith.subf %27, %28 : vector<1x32xf32>
    %30 = vector.broadcast %26 : vector<1x32xf32> to vector<512x32xf32>
    %31 = arith.mulf %10, %30 : vector<512x32xf32>
    %32 = vector.broadcast %29 : vector<1x32xf32> to vector<512x32xf32>
    %33 = arith.addf %31, %32 : vector<512x32xf32>
    %cst_25 = arith.constant 0.000000e+00 : f32
    %34 = vector.broadcast %cst_25 : f32 to vector<512x32xf32>
    %35 = arith.cmpf ogt, %33, %34 : vector<512x32xf32>
    %cst_26 = arith.constant 2.000000e-01 : f32
    %36 = vector.broadcast %cst_26 : f32 to vector<512x32xf32>
    %37 = arith.mulf %36, %33 : vector<512x32xf32>
    %38 = arith.select %35, %33, %37 : vector<512x32xi1>, vector<512x32xf32>
    %c0_27 = arith.constant 0 : index
    %c0_28 = arith.constant 0 : index
    %39 = vector.load %arg4[%c0_27, %c0_28] : memref<512x32xf32, #tpu.memory_space<vmem>>, vector<512x32xf32>
    tpu.vector_store %arg4[%c0_27, %c0_28], %38 {strides = array<i32>} : memref<512x32xf32, #tpu.memory_space<vmem>>, vector<512x32xf32>,
    return
  }
}

module attributes {stable_mosaic.version = 11 : i64} {
  func.func @_conv_block_kernel(%arg0: memref<2x9x9x128xf32, #tpu.memory_space<vmem>>, %arg1: memref<512x64xf32, #tpu.memory_space<vmem>>, %arg2: memref<1x64xf32, #tpu.memory_space<vmem>>, %arg3: memref<1x64xf32, #tpu.memory_space<vmem>>, %arg4: memref<128x64xf32, #tpu.memory_space<vmem>>) attributes {dimension_semantics = [], scalar_prefetch = 0 : i64, scratch_operands = 0 : i64, tpu.core_type = #tpu.core_type<tc>} {
    %c0 = arith.constant 0 : index
    %c0_0 = arith.constant 0 : index
    %c0_1 = arith.constant 0 : index
    %c0_2 = arith.constant 0 : index
    %0 = vector.load %arg0[%c0, %c0_0, %c0_1, %c0_2] : memref<2x9x9x128xf32, #tpu.memory_space<vmem>>, vector<2x8x8x128xf32>
    %1 = vector.shape_cast %0 : vector<2x8x8x128xf32> to vector<128x128xf32>
    %c0_3 = arith.constant 0 : index
    %c0_4 = arith.constant 0 : index
    %c1 = arith.constant 1 : index
    %c0_5 = arith.constant 0 : index
    %2 = vector.load %arg0[%c0_3, %c0_4, %c1, %c0_5] : memref<2x9x9x128xf32, #tpu.memory_space<vmem>>, vector<2x8x8x128xf32>
    %3 = vector.shape_cast %2 : vector<2x8x8x128xf32> to vector<128x128xf32>
    %c0_6 = arith.constant 0 : index
    %c1_7 = arith.constant 1 : index
    %c0_8 = arith.constant 0 : index
    %c0_9 = arith.constant 0 : index
    %4 = vector.load %arg0[%c0_6, %c1_7, %c0_8, %c0_9] : memref<2x9x9x128xf32, #tpu.memory_space<vmem>>, vector<2x8x8x128xf32>
    %5 = vector.shape_cast %4 : vector<2x8x8x128xf32> to vector<128x128xf32>
    %c0_10 = arith.constant 0 : index
    %c1_11 = arith.constant 1 : index
    %c1_12 = arith.constant 1 : index
    %c0_13 = arith.constant 0 : index
    %6 = vector.load %arg0[%c0_10, %c1_11, %c1_12, %c0_13] : memref<2x9x9x128xf32, #tpu.memory_space<vmem>>, vector<2x8x8x128xf32>
    %7 = vector.shape_cast %6 : vector<2x8x8x128xf32> to vector<128x128xf32>
    %8 = tpu.concatenate %1, %3, %5, %7 in 1 : vector<128x128xf32>, vector<128x128xf32>, vector<128x128xf32>, vector<128x128xf32> -> vector<128x512xf32>
    %c0_14 = arith.constant 0 : index
    %c0_15 = arith.constant 0 : index
    %9 = vector.load %arg1[%c0_14, %c0_15] : memref<512x64xf32, #tpu.memory_space<vmem>>, vector<512x64xf32>
    %cst = arith.constant dense<0.000000e+00> : vector<128x64xf32>
    %10 = tpu.matmul %8, %9, %cst {dimension_numbers = #tpu.dot_dimension_numbers<[1], [0], [0], [1], [0, 0, 1, 1], [], []>} : vector<128x512xf32>, vector<512x64xf32>, vector<128x64xf32> -> vector<128x64xf32>
    %cst_16 = arith.constant dense<0.000000e+00> : vector<64xf32>
    %11 = vector.multi_reduction <add>, %10, %cst_16 [0] : vector<128x64xf32> to vector<64xf32>
    %12 = vector.shape_cast %11 : vector<64xf32> to vector<1x64xf32>
    %13 = arith.mulf %10, %10 : vector<128x64xf32>
    %cst_17 = arith.constant dense<0.000000e+00> : vector<64xf32>
    %14 = vector.multi_reduction <add>, %13, %cst_17 [0] : vector<128x64xf32> to vector<64xf32>
    %15 = vector.shape_cast %14 : vector<64xf32> to vector<1x64xf32>
    %cst_18 = arith.constant 7.812500e-03 : f32
    %16 = vector.broadcast %cst_18 : f32 to vector<1x64xf32>
    %17 = arith.mulf %12, %16 : vector<1x64xf32>
    %cst_19 = arith.constant 7.812500e-03 : f32
    %18 = vector.broadcast %cst_19 : f32 to vector<1x64xf32>
    %19 = arith.mulf %15, %18 : vector<1x64xf32>
    %20 = arith.mulf %17, %17 : vector<1x64xf32>
    %21 = arith.subf %19, %20 : vector<1x64xf32>
    %c0_20 = arith.constant 0 : index
    %c0_21 = arith.constant 0 : index
    %22 = vector.load %arg2[%c0_20, %c0_21] : memref<1x64xf32, #tpu.memory_space<vmem>>, vector<1x64xf32>
    %cst_22 = arith.constant 9.99999974E-6 : f32
    %23 = vector.broadcast %cst_22 : f32 to vector<1x64xf32>
    %24 = arith.addf %21, %23 : vector<1x64xf32>
    %25 = math.rsqrt %24 : vector<1x64xf32>
    %26 = arith.mulf %22, %25 : vector<1x64xf32>
    %c0_23 = arith.constant 0 : index
    %c0_24 = arith.constant 0 : index
    %27 = vector.load %arg3[%c0_23, %c0_24] : memref<1x64xf32, #tpu.memory_space<vmem>>, vector<1x64xf32>
    %28 = arith.mulf %17, %26 : vector<1x64xf32>
    %29 = arith.subf %27, %28 : vector<1x64xf32>
    %30 = vector.broadcast %26 : vector<1x64xf32> to vector<128x64xf32>
    %31 = arith.mulf %10, %30 : vector<128x64xf32>
    %32 = vector.broadcast %29 : vector<1x64xf32> to vector<128x64xf32>
    %33 = arith.addf %31, %32 : vector<128x64xf32>
    %cst_25 = arith.constant 0.000000e+00 : f32
    %34 = vector.broadcast %cst_25 : f32 to vector<128x64xf32>
    %35 = arith.cmpf ogt, %33, %34 : vector<128x64xf32>
    %cst_26 = arith.constant 2.000000e-01 : f32
    %36 = vector.broadcast %cst_26 : f32 to vector<128x64xf32>
    %37 = arith.mulf %36, %33 : vector<128x64xf32>
    %38 = arith.select %35, %33, %37 : vector<128x64xi1>, vector<128x64xf32>
    %c0_27 = arith.constant 0 : index
    %c0_28 = arith.constant 0 : index
    %39 = vector.load %arg4[%c0_27, %c0_28] : memref<128x64xf32, #tpu.memory_space<vmem>>, vector<128x64xf32>
    tpu.vector_store %arg4[%c0_27, %c0_28], %38 {strides = array<i32>} : memref<128x64xf32, #tpu.memory_space<vmem>>, vector<128x64xf32>,
    return
  }
}

module attributes {stable_mosaic.version = 11 : i64} {
  func.func @_conv_block_kernel(%arg0: memref<32x1024xf32, #tpu.memory_space<vmem>>, %arg1: memref<1024x128xf32, #tpu.memory_space<vmem>>, %arg2: memref<1x128xf32, #tpu.memory_space<vmem>>, %arg3: memref<1x128xf32, #tpu.memory_space<vmem>>, %arg4: memref<32x128xf32, #tpu.memory_space<vmem>>) attributes {dimension_semantics = [], scalar_prefetch = 0 : i64, scratch_operands = 0 : i64, tpu.core_type = #tpu.core_type<tc>} {
    %c0 = arith.constant 0 : index
    %c0_0 = arith.constant 0 : index
    %0 = vector.load %arg0[%c0, %c0_0] : memref<32x1024xf32, #tpu.memory_space<vmem>>, vector<32x1024xf32>
    %c0_1 = arith.constant 0 : index
    %c0_2 = arith.constant 0 : index
    %1 = vector.load %arg1[%c0_1, %c0_2] : memref<1024x128xf32, #tpu.memory_space<vmem>>, vector<1024x128xf32>
    %cst = arith.constant dense<0.000000e+00> : vector<32x128xf32>
    %2 = tpu.matmul %0, %1, %cst {dimension_numbers = #tpu.dot_dimension_numbers<[1], [0], [0], [1], [0, 0, 1, 1], [], []>} : vector<32x1024xf32>, vector<1024x128xf32>, vector<32x128xf32> -> vector<32x128xf32>
    %cst_3 = arith.constant dense<0.000000e+00> : vector<128xf32>
    %3 = vector.multi_reduction <add>, %2, %cst_3 [0] : vector<32x128xf32> to vector<128xf32>
    %4 = vector.shape_cast %3 : vector<128xf32> to vector<1x128xf32>
    %5 = arith.mulf %2, %2 : vector<32x128xf32>
    %cst_4 = arith.constant dense<0.000000e+00> : vector<128xf32>
    %6 = vector.multi_reduction <add>, %5, %cst_4 [0] : vector<32x128xf32> to vector<128xf32>
    %7 = vector.shape_cast %6 : vector<128xf32> to vector<1x128xf32>
    %cst_5 = arith.constant 3.125000e-02 : f32
    %8 = vector.broadcast %cst_5 : f32 to vector<1x128xf32>
    %9 = arith.mulf %4, %8 : vector<1x128xf32>
    %cst_6 = arith.constant 3.125000e-02 : f32
    %10 = vector.broadcast %cst_6 : f32 to vector<1x128xf32>
    %11 = arith.mulf %7, %10 : vector<1x128xf32>
    %12 = arith.mulf %9, %9 : vector<1x128xf32>
    %13 = arith.subf %11, %12 : vector<1x128xf32>
    %c0_7 = arith.constant 0 : index
    %c0_8 = arith.constant 0 : index
    %14 = vector.load %arg2[%c0_7, %c0_8] : memref<1x128xf32, #tpu.memory_space<vmem>>, vector<1x128xf32>
    %cst_9 = arith.constant 9.99999974E-6 : f32
    %15 = vector.broadcast %cst_9 : f32 to vector<1x128xf32>
    %16 = arith.addf %13, %15 : vector<1x128xf32>
    %17 = math.rsqrt %16 : vector<1x128xf32>
    %18 = arith.mulf %14, %17 : vector<1x128xf32>
    %c0_10 = arith.constant 0 : index
    %c0_11 = arith.constant 0 : index
    %19 = vector.load %arg3[%c0_10, %c0_11] : memref<1x128xf32, #tpu.memory_space<vmem>>, vector<1x128xf32>
    %20 = arith.mulf %9, %18 : vector<1x128xf32>
    %21 = arith.subf %19, %20 : vector<1x128xf32>
    %22 = vector.broadcast %18 : vector<1x128xf32> to vector<32x128xf32>
    %23 = arith.mulf %2, %22 : vector<32x128xf32>
    %24 = vector.broadcast %21 : vector<1x128xf32> to vector<32x128xf32>
    %25 = arith.addf %23, %24 : vector<32x128xf32>
    %cst_12 = arith.constant 0.000000e+00 : f32
    %26 = vector.broadcast %cst_12 : f32 to vector<32x128xf32>
    %27 = arith.cmpf ogt, %25, %26 : vector<32x128xf32>
    %cst_13 = arith.constant 2.000000e-01 : f32
    %28 = vector.broadcast %cst_13 : f32 to vector<32x128xf32>
    %29 = arith.mulf %28, %25 : vector<32x128xf32>
    %30 = arith.select %27, %25, %29 : vector<32x128xi1>, vector<32x128xf32>
    %c0_14 = arith.constant 0 : index
    %c0_15 = arith.constant 0 : index
    %31 = vector.load %arg4[%c0_14, %c0_15] : memref<32x128xf32, #tpu.memory_space<vmem>>, vector<32x128xf32>
    tpu.vector_store %arg4[%c0_14, %c0_15], %30 {strides = array<i32>} : memref<32x128xf32, #tpu.memory_space<vmem>>, vector<32x128xf32>,
    return
  }
}

</mosaic_0001>

<bundles_post_ra>
// kernel: wgan_discriminator_forward.4
= control target key start
LH: loop header
LB: loop body
LE: loop exit
PB: predicated region body
PF: predicated region fallthrough
CT: control target
= control target key end

     0   :  { %s5098_s9 = smov 0   ;;  %s7457_s0 = inlined_call_operand.vmem [shape: f32[2,33,33,16], index: 0, kind: input, shape index: {}]   ;;  %s7458_s1 = inlined_call_operand.vmem [shape: f32[64,16], index: 1, kind: input, shape index: {}]   ;;  %s7459_s2 = inlined_call_operand.vmem [shape: f32[2048,16], index: 2, kind: output, shape index: {}]  }
   0x1 LB: > { %s5104_s10 = sadd.s32 4294967295, %s5078_s9   ;;  %p4251_p0 = scmp.ge.s32.totalorder %s5078_s9, 1  ;;  %s5078_s9 = sphi %s5098_s9, %s12_s9  }
   0x2   : > { %p112_p1 = scmp.lt.s32.totalorder %s5078_s9, 3 }
   0x4   : > { %p113_p2 = pnand %p4251_p0, %p112_p1 }
   0x6   : > { %116 = sbr.rel (%p113_p2) target bundleno = 1121 (0x461), region = 28 }
   0xd   : > { %p134_p3 = scmp.lt.s32.totalorder %s5104_s10, 1  ;;  %s5080_s16 = smov 16   ;;  %vm2194_vm0 = vcmask 130048   ;;  %vm2323_vm1 = vcmask 261120   ;;  %vm2452_vm2 = vcmask 392192   ;;  %vm2589_vm3 = vcmask 523264  }
   0xe   : > { %s5081_s17 = smov 32   ;;  %s5082_s6 = smov 48  }
   0xf   : > { %s135_s11 = scalar_select %p134_p3, %s5104_s10, 1 }
  0x10   : > { %s4253_s7 = sshll.u32 %s5104_s10, 7 }
  0x11   : > { %s5009_s12 = smul.u32 1320, %s135_s11  ;;  %p140_p4 = scmp.lt.s32.totalorder %s4253_s7, 255 }
  0x13   : > { %s5113_s15 = scalar_lea.vmem %s7457_s0, %s5009_s12  ;;  %s7791_s7 = smov (!%p140_p4, %s4253_s7), 255 }
  0x14   : > { %v275_v0 = vld [vmem:[%s5113_s15 + $0x11] sm:$0xff]  ;;  %v273_v1 = vld [vmem:[%s5113_s15 + $0x1] sm:$0xff]  ;;  %v276_v2 = vld [vmem:[%s5113_s15 + $0x19] sm:$0xff]  ;;  %s4254_s8 = sshll.u32 %s7791_s7, 3 }
  0x15   : > { %790 = vrot.lane.b32.xlu1 %v275_v0, %s5080_s16  ;;  %786 = vrot.lane.b32.xlu0 %v273_v1, %s5080_s16  ;;  %v274_v3 = vld [vmem:[%s5113_s15 + $0x9] sm:$0xff]  ;;  %v278_v4 = vld [vmem:[%s5113_s15 + $0x31] sm:$0xff]  ;;  %s6799_s12 = scalar_lea.vmem %s7459_s2, %s4254_s8 }
  0x16   : > { %v277_v5 = vld [vmem:[%s5113_s15 + $0x29] sm:$0xff]  ;;  %v280_v6 = vld [vmem:[%s5113_s15 + $0x41] sm:$0xff]  ;;  %v279_v7 = vld [vmem:[%s5113_s15 + $0x39] sm:$0xff] }
  0x17   : > { %v282_v8 = vld [vmem:[%s5113_s15 + $0x59] sm:$0xff]  ;;  %v281_v9 = vld [vmem:[%s5113_s15 + $0x51] sm:$0xff]  ;;  %v284_v10 = vld [vmem:[%s5113_s15 + $0x69] sm:$0xff] }
  0x18   : > { %v283_v11 = vld [vmem:[%s5113_s15 + $0x61] sm:$0xff]  ;;  %v285_v13 = vld [vmem:[%s5113_s15 + $0x79] sm:$0xff]  ;;  %v288_v14 = vld [vmem:[%s5113_s15 + $0x91] sm:$0xff] }
  0x19   : > { %792 = vrot.lane.b32.xlu1 %v276_v2, %s5080_s16  ;;  %788 = vrot.lane.b32.xlu0 %v274_v3, %s5080_s16  ;;  %v286_v12 = vld [vmem:[%s5113_s15 + $0x81] sm:$0xff]  ;;  %v287_v15 = vld [vmem:[%s5113_s15 + $0x89] sm:$0xff] }
  0x1a   : > { %v290_v16 = vld [vmem:[%s5113_s15 + $0xa9] sm:$0xff]  ;;  %v289_v17 = vld [vmem:[%s5113_s15 + $0xa1] sm:$0xff]  ;;  %v292_v18 = vld [vmem:[%s5113_s15 + $0xb9] sm:$0xff] }
  0x1b   : > { %v291_v19 = vld [vmem:[%s5113_s15 + $0xb1] sm:$0xff]  ;;  %v293_v21 = vld [vmem:[%s5113_s15 + $0xc9] sm:$0xff]  ;;  %v296_v22 = vld [vmem:[%s5113_s15 + $0xe1] sm:$0xff] }
  0x1c   : > { %v294_v20 = vld [vmem:[%s5113_s15 + $0xd1] sm:$0xff]  ;;  %v295_v23 = vld [vmem:[%s5113_s15 + $0xd9] sm:$0xff]  ;;  %v300_v26 = vld [vmem:[%s5113_s15 + $0x109] sm:$0xff] }
  0x1d   : > { %796 = vrot.lane.b32.xlu1 %v278_v4, %s5080_s16  ;;  %794 = vrot.lane.b32.xlu0 %v277_v5, %s5080_s16  ;;  %v298_v24 = vld [vmem:[%s5113_s15 + $0xf9] sm:$0xff]  ;;  %v297_v25 = vld [vmem:[%s5113_s15 + $0xf1] sm:$0xff] }
  0x1e   : > { %v299_v27 = vld [vmem:[%s5113_s15 + $0x101] sm:$0xff]  ;;  %v301_v29 = vld [vmem:[%s5113_s15 + $0x119] sm:$0xff]  ;;  %v304_v30 = vld [vmem:[%s5113_s15 + $0x131] sm:$0xff] }
  0x1f   : > { %v302_v28 = vld [vmem:[%s5113_s15 + $0x121] sm:$0xff]  ;;  %v303_v31 = vld [vmem:[%s5113_s15 + $0x129] sm:$0xff]  ;;  %v308_v34 = vld [vmem:[%s5113_s15 + $0x159] sm:$0xff] }
  0x20   : > { %v306_v32 = vld [vmem:[%s5113_s15 + $0x149] sm:$0xff]  ;;  %v305_v33 = vld [vmem:[%s5113_s15 + $0x141] sm:$0xff]  ;;  %v307_v35 = vld [vmem:[%s5113_s15 + $0x151] sm:$0xff] }
  0x21   : > { %800 = vrot.lane.b32.xlu1 %v280_v6, %s5080_s16  ;;  %798 = vrot.lane.b32.xlu0 %v279_v7, %s5080_s16  ;;  %v310_v36 = vld [vmem:[%s5113_s15 + $0x171] sm:$0xff]  ;;  %v309_v37 = vld [vmem:[%s5113_s15 + $0x169] sm:$0xff] }
  0x22   : > { %v312_v38 = vld [vmem:[%s5113_s15 + $0x181] sm:$0xff]  ;;  %v311_v39 = vld [vmem:[%s5113_s15 + $0x179] sm:$0xff]  ;;  %v313_v41 = vld [vmem:[%s5113_s15 + $0x191] sm:$0xff] }
  0x23   : > { %v314_v40 = vld [vmem:[%s5113_s15 + $0x199] sm:$0xff]  ;;  %v316_v42 = vld [vmem:[%s5113_s15 + $0x1a9] sm:$0xff]  ;;  %v315_v43 = vld [vmem:[%s5113_s15 + $0x1a1] sm:$0xff] }
  0x24   : > { %v318_v44 = vld [vmem:[%s5113_s15 + $0x1c1] sm:$0xff]  ;;  %v317_v45 = vld [vmem:[%s5113_s15 + $0x1b9] sm:$0xff]  ;;  %v320_v46 = vld [vmem:[%s5113_s15 + $0x1d1] sm:$0xff] }
  0x25   : > { %804 = vrot.lane.b32.xlu1 %v282_v8, %s5080_s16  ;;  %802 = vrot.lane.b32.xlu0 %v281_v9, %s5080_s16  ;;  %v319_v47 = vld [vmem:[%s5113_s15 + $0x1c9] sm:$0xff]  ;;  %v321_v49 = vld [vmem:[%s5113_s15 + $0x1e1] sm:$0xff] }
  0x26   : > { %v322_v48 = vld [vmem:[%s5113_s15 + $0x1e9] sm:$0xff]  ;;  %v324_v50 = vld [vmem:[%s5113_s15 + $0x1f9] sm:$0xff]  ;;  %v323_v51 = vld [vmem:[%s5113_s15 + $0x1f1] sm:$0xff] }
  0x27   : > { %v326_v52 = vld [vmem:[%s5113_s15 + $0x211] sm:$0xff]  ;;  %v325_v53 = vld [vmem:[%s5113_s15 + $0x209] sm:$0xff]  ;;  %v328_v54 = vld [vmem:[%s5113_s15 + $0x221] sm:$0xff] }
  0x28   : > { %v327_v55 = vld [vmem:[%s5113_s15 + $0x219] sm:$0xff]  ;;  %v329_v57 = vld [vmem:[%s5113_s15 + $0x231] sm:$0xff]  ;;  %v332_v58 = vld [vmem:[%s5113_s15 + $0x249] sm:$0xff] }
  0x29   : > { %808 = vrot.lane.b32.xlu1 %v284_v10, %s5080_s16  ;;  %806 = vrot.lane.b32.xlu0 %v283_v11, %s5080_s16  ;;  %v330_v56 = vld [vmem:[%s5113_s15 + $0x239] sm:$0xff]  ;;  %v331_v59 = vld [vmem:[%s5113_s15 + $0x241] sm:$0xff] }
  0x2a   : > { %v334_v62 = vld [vmem:[%s5113_s15 + $0x261] sm:$0xff]  ;;  %v333_v63 = vld [vmem:[%s5113_s15 + $0x259] sm:$0xff]  ;;  %v336_v2 = vld [vmem:[%s5113_s15 + $0x271] sm:$0xff] }
  0x2b   : > { %v335_v3 = vld [vmem:[%s5113_s15 + $0x269] sm:$0xff]  ;;  %v337_v7 = vld [vmem:[%s5113_s15 + $0x281] sm:$0xff]  ;;  %v340_v10 = vld [vmem:[%s5113_s15 + $0x299] sm:$0xff] }
  0x2c   : > { %v338_v6 = vld [vmem:[%s5113_s15 + $0x289] sm:$0xff]  ;;  %v339_v11 = vld [vmem:[%s5113_s15 + $0x291] sm:$0xff] }
  0x2d   : > { %812 = vrot.lane.b32.xlu1 %v286_v12, %s5080_s16  ;;  %810 = vrot.lane.b32.xlu0 %v285_v13, %s5080_s16 }
  0x31   : > { %816 = vrot.lane.b32.xlu1 %v288_v14, %s5080_s16  ;;  %814 = vrot.lane.b32.xlu0 %v287_v15, %s5080_s16  ;;  %v342_v14 = vld [vmem:[%s5113_s15 + $0x2b1] sm:$0xff]  ;;  %v341_v15 = vld [vmem:[%s5113_s15 + $0x2a9] sm:$0xff] }
  0x35   : > { %820 = vrot.lane.b32.xlu1 %v290_v16, %s5080_s16  ;;  %818 = vrot.lane.b32.xlu0 %v289_v17, %s5080_s16 }
  0x39   : > { %824 = vrot.lane.b32.xlu1 %v292_v18, %s5080_s16  ;;  %822 = vrot.lane.b32.xlu0 %v291_v19, %s5080_s16  ;;  %v344_v18 = vld [vmem:[%s5113_s15 + $0x2c1] sm:$0xff]  ;;  %v343_v19 = vld [vmem:[%s5113_s15 + $0x2b9] sm:$0xff] }
  0x3d   : > { %828 = vrot.lane.b32.xlu1 %v294_v20, %s5080_s16  ;;  %826 = vrot.lane.b32.xlu0 %v293_v21, %s5080_s16 }
  0x41   : > { %832 = vrot.lane.b32.xlu1 %v296_v22, %s5080_s16  ;;  %830 = vrot.lane.b32.xlu0 %v295_v23, %s5080_s16  ;;  %v346_v22 = vld [vmem:[%s5113_s15 + $0x2d9] sm:$0xff]  ;;  %v345_v23 = vld [vmem:[%s5113_s15 + $0x2d1] sm:$0xff] }
  0x45   : > { %836 = vrot.lane.b32.xlu1 %v298_v24, %s5080_s16  ;;  %834 = vrot.lane.b32.xlu0 %v297_v25, %s5080_s16 }
  0x49   : > { %840 = vrot.lane.b32.xlu1 %v300_v26, %s5080_s16  ;;  %838 = vrot.lane.b32.xlu0 %v299_v27, %s5080_s16  ;;  %v348_v26 = vld [vmem:[%s5113_s15 + $0x2e9] sm:$0xff]  ;;  %v347_v27 = vld [vmem:[%s5113_s15 + $0x2e1] sm:$0xff] }
  0x4d   : > { %844 = vrot.lane.b32.xlu1 %v302_v28, %s5080_s16  ;;  %842 = vrot.lane.b32.xlu0 %v301_v29, %s5080_s16 }
  0x51   : > { %848 = vrot.lane.b32.xlu1 %v304_v30, %s5080_s16  ;;  %846 = vrot.lane.b32.xlu0 %v303_v31, %s5080_s16  ;;  %v350_v30 = vld [vmem:[%s5113_s15 + $0x301] sm:$0xff]  ;;  %v349_v31 = vld [vmem:[%s5113_s15 + $0x2f9] sm:$0xff] }
  0x55   : > { %852 = vrot.lane.b32.xlu1 %v306_v32, %s5080_s16  ;;  %850 = vrot.lane.b32.xlu0 %v305_v33, %s5080_s16 }
  0x59   : > { %856 = vrot.lane.b32.xlu1 %v308_v34, %s5080_s16  ;;  %854 = vrot.lane.b32.xlu0 %v307_v35, %s5080_s16  ;;  %v352_v34 = vld [vmem:[%s5113_s15 + $0x311] sm:$0xff]  ;;  %v351_v35 = vld [vmem:[%s5113_s15 + $0x309] sm:$0xff] }
  0x5d   : > { %860 = vrot.lane.b32.xlu1 %v310_v36, %s5080_s16  ;;  %858 = vrot.lane.b32.xlu0 %v309_v37, %s5080_s16 }
  0x61   : > { %864 = vrot.lane.b32.xlu1 %v312_v38, %s5080_s16  ;;  %862 = vrot.lane.b32.xlu0 %v311_v39, %s5080_s16  ;;  %v354_v38 = vld [vmem:[%s5113_s15 + $0x329] sm:$0xff]  ;;  %v353_v39 = vld [vmem:[%s5113_s15 + $0x321] sm:$0xff] }
  0x65   : > { %868 = vrot.lane.b32.xlu1 %v314_v40, %s5080_s16  ;;  %866 = vrot.lane.b32.xlu0 %v313_v41, %s5080_s16 }
  0x69   : > { %872 = vrot.lane.b32.xlu1 %v316_v42, %s5080_s16  ;;  %870 = vrot.lane.b32.xlu0 %v315_v43, %s5080_s16  ;;  %v356_v42 = vld [vmem:[%s5113_s15 + $0x339] sm:$0xff]  ;;  %v355_v43 = vld [vmem:[%s5113_s15 + $0x331] sm:$0xff] }
  0x6d   : > { %876 = vrot.lane.b32.xlu1 %v318_v44, %s5080_s16  ;;  %874 = vrot.lane.b32.xlu0 %v317_v45, %s5080_s16 }
  0x71   : > { %880 = vrot.lane.b32.xlu1 %v320_v46, %s5080_s16  ;;  %878 = vrot.lane.b32.xlu0 %v319_v47, %s5080_s16  ;;  %v358_v46 = vld [vmem:[%s5113_s15 + $0x351] sm:$0xff]  ;;  %v357_v47 = vld [vmem:[%s5113_s15 + $0x349] sm:$0xff] }
  0x75   : > { %884 = vrot.lane.b32.xlu1 %v322_v48, %s5080_s16  ;;  %882 = vrot.lane.b32.xlu0 %v321_v49, %s5080_s16 }
  0x79   : > { %888 = vrot.lane.b32.xlu1 %v324_v50, %s5080_s16  ;;  %886 = vrot.lane.b32.xlu0 %v323_v51, %s5080_s16  ;;  %v360_v50 = vld [vmem:[%s5113_s15 + $0x361] sm:$0xff]  ;;  %v359_v51 = vld [vmem:[%s5113_s15 + $0x359] sm:$0xff] }
  0x7d   : > { %892 = vrot.lane.b32.xlu1 %v326_v52, %s5080_s16  ;;  %890 = vrot.lane.b32.xlu0 %v325_v53, %s5080_s16 }
  0x81   : > { %896 = vrot.lane.b32.xlu1 %v328_v54, %s5080_s16  ;;  %894 = vrot.lane.b32.xlu0 %v327_v55, %s5080_s16  ;;  %v362_v54 = vld [vmem:[%s5113_s15 + $0x379] sm:$0xff]  ;;  %v361_v55 = vld [vmem:[%s5113_s15 + $0x371] sm:$0xff] }
  0x85   : > { %900 = vrot.lane.b32.xlu1 %v330_v56, %s5080_s16  ;;  %898 = vrot.lane.b32.xlu0 %v329_v57, %s5080_s16 }
  0x87   : > { %v5233_v60 = vpop.permute.xlu1 %790  ;;  %v5235_v61 = vpop.permute.xlu0 %786 }
  0x89   : > { %904 = vrot.lane.b32.xlu1 %v332_v58, %s5080_s16  ;;  %902 = vrot.lane.b32.xlu0 %v331_v59, %s5080_s16  ;;  %v364_v58 = vld [vmem:[%s5113_s15 + $0x389] sm:$0xff]  ;;  %v363_v59 = vld [vmem:[%s5113_s15 + $0x381] sm:$0xff] }
  0x8b   : > { %v5241_v0 = vpop.permute.xlu1 %792  ;;  %v5243_v1 = vpop.permute.xlu0 %788 }
  0x8d   : > { %908 = vrot.lane.b32.xlu1 %v334_v62, %s5080_s16  ;;  %906 = vrot.lane.b32.xlu0 %v333_v63, %s5080_s16 }
  0x8f   : > { %v5249_v4 = vpop.permute.xlu1 %796  ;;  %v5251_v5 = vpop.permute.xlu0 %794 }
  0x91   : > { %912 = vrot.lane.b32.xlu1 %v336_v2, %s5080_s16  ;;  %910 = vrot.lane.b32.xlu0 %v335_v3, %s5080_s16  ;;  %v366_v2 = vld [vmem:[%s5113_s15 + $0x3a1] sm:$0xff]  ;;  %v365_v3 = vld [vmem:[%s5113_s15 + $0x399] sm:$0xff] }
  0x93   : > { %v5257_v8 = vpop.permute.xlu1 %800  ;;  %v5259_v9 = vpop.permute.xlu0 %798 }
  0x95   : > { %916 = vrot.lane.b32.xlu1 %v338_v6, %s5080_s16  ;;  %914 = vrot.lane.b32.xlu0 %v337_v7, %s5080_s16 }
  0x97   : > { %v5265_v12 = vpop.permute.xlu1 %804  ;;  %v5267_v13 = vpop.permute.xlu0 %802 }
  0x99   : > { %920 = vrot.lane.b32.xlu1 %v340_v10, %s5080_s16  ;;  %918 = vrot.lane.b32.xlu0 %v339_v11, %s5080_s16  ;;  %v368_v10 = vld [vmem:[%s5113_s15 + $0x3b1] sm:$0xff]  ;;  %v367_v11 = vld [vmem:[%s5113_s15 + $0x3a9] sm:$0xff] }
  0x9b   : > { %v5273_v16 = vpop.permute.xlu1 %808  ;;  %v5275_v17 = vpop.permute.xlu0 %806 }
  0x9d   : > { %924 = vrot.lane.b32.xlu1 %v342_v14, %s5080_s16  ;;  %922 = vrot.lane.b32.xlu0 %v341_v15, %s5080_s16 }
  0x9f   : > { %v5281_v20 = vpop.permute.xlu1 %812  ;;  %v5283_v21 = vpop.permute.xlu0 %810 }
  0xa0   : > { %7472 = vst [vmem:[#allocation2_spill] sm:$0xff] %v5281_v20 }
  0xa1   : > { %928 = vrot.lane.b32.xlu1 %v344_v18, %s5080_s16  ;;  %926 = vrot.lane.b32.xlu0 %v343_v19, %s5080_s16  ;;  %v370_v18 = vld [vmem:[%s5113_s15 + $0x3c9] sm:$0xff]  ;;  %v369_v19 = vld [vmem:[%s5113_s15 + $0x3c1] sm:$0xff] }
  0xa3   : > { %v5289_v24 = vpop.permute.xlu1 %816  ;;  %v5291_v25 = vpop.permute.xlu0 %814 }
  0xa4   : > { %7473 = vst [vmem:[#allocation3_spill] sm:$0xff] %v5289_v24  ;;  %7474 = vst [vmem:[#allocation4_spill] sm:$0xff] %v5291_v25  ;;  %v5869_v24 = vld [vmem:[%s5113_s15 + $0x2e8] sm:$0xff]  ;;  %v5899_v25 = vld [vmem:[%s5113_s15 + $0x300] sm:$0xff] }
  0xa5   : > { %932 = vrot.lane.b32.xlu1 %v346_v22, %s5080_s16  ;;  %930 = vrot.lane.b32.xlu0 %v345_v23, %s5080_s16  ;;  %7587 = vst [vmem:[#allocation117_spill] sm:$0xff] %v5899_v25 }
  0xa7   : > { %v5297_v28 = vpop.permute.xlu1 %820  ;;  %v5299_v29 = vpop.permute.xlu0 %818 }
  0xa8   : > { %7475 = vst [vmem:[#allocation5_spill] sm:$0xff] %v5297_v28  ;;  %7476 = vst [vmem:[#allocation6_spill] sm:$0xff] %v5299_v29 }
  0xa9   : > { %936 = vrot.lane.b32.xlu1 %v348_v26, %s5080_s16  ;;  %934 = vrot.lane.b32.xlu0 %v347_v27, %s5080_s16  ;;  %v372_v26 = vld [vmem:[%s5113_s15 + $0x3d9] sm:$0xff]  ;;  %v371_v27 = vld [vmem:[%s5113_s15 + $0x3d1] sm:$0xff] }
  0xab   : > { %v5305_v32 = vpop.permute.xlu1 %824  ;;  %v5307_v33 = vpop.permute.xlu0 %822 }
  0xac   : > { %7477 = vst [vmem:[#allocation7_spill] sm:$0xff] %v5305_v32  ;;  %7478 = vst [vmem:[#allocation8_spill] sm:$0xff] %v5307_v33  ;;  %v5839_v32 = vld [vmem:[%s5113_s15 + $0x2d8] sm:$0xff] }
  0xad   : > { %940 = vrot.lane.b32.xlu1 %v350_v30, %s5080_s16  ;;  %938 = vrot.lane.b32.xlu0 %v349_v31, %s5080_s16  ;;  %v4452_v33 = vld [vmem:[%s5113_s15 + $0x2d9] sm:$0xff] }
  0xaf   : > { %v5313_v36 = vpop.permute.xlu1 %828  ;;  %v5315_v37 = vpop.permute.xlu0 %826 }
  0xb0   : > { %7479 = vst [vmem:[#allocation9_spill] sm:$0xff] %v5313_v36  ;;  %7480 = vst [vmem:[#allocation10_spill] sm:$0xff] %v5315_v37 }
  0xb1   : > { %944 = vrot.lane.b32.xlu1 %v352_v34, %s5080_s16  ;;  %942 = vrot.lane.b32.xlu0 %v351_v35, %s5080_s16  ;;  %v374_v34 = vld [vmem:[%s5113_s15 + $0x3f1] sm:$0xff]  ;;  %v373_v35 = vld [vmem:[%s5113_s15 + $0x3e9] sm:$0xff] }
  0xb3   : > { %v5321_v40 = vpop.permute.xlu1 %832  ;;  %v5323_v41 = vpop.permute.xlu0 %830 }
  0xb4   : > { %7481 = vst [vmem:[#allocation11_spill] sm:$0xff] %v5321_v40  ;;  %7482 = vst [vmem:[#allocation12_spill] sm:$0xff] %v5323_v41  ;;  %v5809_v40 = vld [vmem:[%s5113_s15 + $0x2c0] sm:$0xff] }
  0xb5   : > { %948 = vrot.lane.b32.xlu1 %v354_v38, %s5080_s16  ;;  %946 = vrot.lane.b32.xlu0 %v353_v39, %s5080_s16  ;;  %v4450_v41 = vld [vmem:[%s5113_s15 + $0x2c1] sm:$0xff] }
  0xb7   : > { %v5329_v44 = vpop.permute.xlu1 %836  ;;  %v5331_v45 = vpop.permute.xlu0 %834 }
  0xb8   : > { %7483 = vst [vmem:[#allocation13_spill] sm:$0xff] %v5329_v44  ;;  %7484 = vst [vmem:[#allocation14_spill] sm:$0xff] %v5331_v45  ;;  %v171_v44 = vld [vmem:[%s5113_s15 + $0x100] sm:$0xff] }
  0xb9   : > { %952 = vrot.lane.b32.xlu1 %v356_v42, %s5080_s16  ;;  %950 = vrot.lane.b32.xlu0 %v355_v43, %s5080_s16  ;;  %v376_v42 = vld [vmem:[%s5113_s15 + $0x401] sm:$0xff]  ;;  %v375_v43 = vld [vmem:[%s5113_s15 + $0x3f9] sm:$0xff] }
  0xbb   : > { %v5337_v48 = vpop.permute.xlu1 %840  ;;  %v5339_v49 = vpop.permute.xlu0 %838 }
  0xbc   : > { %7485 = vst [vmem:[#allocation15_spill] sm:$0xff] %v5337_v48  ;;  %7486 = vst [vmem:[#allocation16_spill] sm:$0xff] %v5339_v49  ;;  %v169_v49 = vld [vmem:[%s5113_s15 + $0xf0] sm:$0xff] }
  0xbd   : > { %956 = vrot.lane.b32.xlu1 %v358_v46, %s5080_s16  ;;  %954 = vrot.lane.b32.xlu0 %v357_v47, %s5080_s16 }
  0xbf   : > { %v5345_v52 = vpop.permute.xlu1 %844  ;;  %v5347_v53 = vpop.permute.xlu0 %842 }
  0xc0   : > { %7487 = vst [vmem:[#allocation17_spill] sm:$0xff] %v5345_v52  ;;  %7488 = vst [vmem:[#allocation18_spill] sm:$0xff] %v5347_v53  ;;  %v167_v53 = vld [vmem:[%s5113_s15 + $0xd8] sm:$0xff] }
  0xc1   : > { %960 = vrot.lane.b32.xlu1 %v360_v50, %s5080_s16  ;;  %958 = vrot.lane.b32.xlu0 %v359_v51, %s5080_s16  ;;  %v378_v50 = vld [vmem:[%s5113_s15 + $0x419] sm:$0xff]  ;;  %v377_v51 = vld [vmem:[%s5113_s15 + $0x411] sm:$0xff] }
  0xc3   : > { %v5353_v56 = vpop.permute.xlu1 %848  ;;  %v5355_v57 = vpop.permute.xlu0 %846 }
  0xc4   : > { %7489 = vst [vmem:[#allocation19_spill] sm:$0xff] %v5353_v56  ;;  %7490 = vst [vmem:[#allocation20_spill] sm:$0xff] %v5355_v57  ;;  %v165_v57 = vld [vmem:[%s5113_s15 + $0xc8] sm:$0xff] }
  0xc5   : > { %964 = vrot.lane.b32.xlu1 %v362_v54, %s5080_s16  ;;  %962 = vrot.lane.b32.xlu0 %v361_v55, %s5080_s16 }
  0xc7   : > { %v5361_v62 = vpop.permute.xlu1 %852  ;;  %v5363_v63 = vpop.permute.xlu0 %850 }
  0xc8   : > { %7491 = vst [vmem:[#allocation21_spill] sm:$0xff] %v5361_v62  ;;  %7492 = vst [vmem:[#allocation22_spill] sm:$0xff] %v5363_v63  ;;  %v163_v63 = vld [vmem:[%s5113_s15 + $0xb0] sm:$0xff] }
  0xc9   : > { %968 = vrot.lane.b32.xlu1 %v364_v58, %s5080_s16  ;;  %966 = vrot.lane.b32.xlu0 %v363_v59, %s5080_s16  ;;  %v380_v58 = vld [vmem:[%s5113_s15 + $0x429] sm:$0xff]  ;;  %v379_v59 = vld [vmem:[%s5113_s15 + $0x421] sm:$0xff] }
  0xcb   : > { %v5369_v6 = vpop.permute.xlu1 %856  ;;  %v5371_v7 = vpop.permute.xlu0 %854 }
  0xcc   : > { %7493 = vst [vmem:[#allocation23_spill] sm:$0xff] %v5369_v6  ;;  %7494 = vst [vmem:[#allocation24_spill] sm:$0xff] %v5371_v7  ;;  %v161_v7 = vld [vmem:[%s5113_s15 + $0xa0] sm:$0xff] }
  0xcd   : > { %972 = vrot.lane.b32.xlu1 %v366_v2, %s5080_s16  ;;  %970 = vrot.lane.b32.xlu0 %v365_v3, %s5080_s16 }
  0xcf   : > { %v5377_v14 = vpop.permute.xlu1 %860  ;;  %v5379_v15 = vpop.permute.xlu0 %858 }
  0xd0   : > { %7495 = vst [vmem:[#allocation25_spill] sm:$0xff] %v5377_v14  ;;  %7496 = vst [vmem:[#allocation26_spill] sm:$0xff] %v5379_v15  ;;  %v159_v15 = vld [vmem:[%s5113_s15 + $0x88] sm:$0xff] }
  0xd1   : > { %976 = vrot.lane.b32.xlu1 %v368_v10, %s5080_s16  ;;  %974 = vrot.lane.b32.xlu0 %v367_v11, %s5080_s16  ;;  %v382_v10 = vld [vmem:[%s5113_s15 + $0x441] sm:$0xff]  ;;  %v381_v11 = vld [vmem:[%s5113_s15 + $0x439] sm:$0xff] }
  0xd3   : > { %v5385_v22 = vpop.permute.xlu1 %864  ;;  %v5387_v23 = vpop.permute.xlu0 %862 }
  0xd4   : > { %7497 = vst [vmem:[#allocation27_spill] sm:$0xff] %v5385_v22  ;;  %7498 = vst [vmem:[#allocation28_spill] sm:$0xff] %v5387_v23  ;;  %v157_v22 = vld [vmem:[%s5113_s15 + $0x78] sm:$0xff] }
  0xd5   : > { %980 = vrot.lane.b32.xlu1 %v370_v18, %s5080_s16  ;;  %978 = vrot.lane.b32.xlu0 %v369_v19, %s5080_s16 }
  0xd7   : > { %v5393_v30 = vpop.permute.xlu1 %868  ;;  %v5395_v31 = vpop.permute.xlu0 %866 }
  0xd8   : > { %7499 = vst [vmem:[#allocation29_spill] sm:$0xff] %v5393_v30  ;;  %7500 = vst [vmem:[#allocation30_spill] sm:$0xff] %v5395_v31  ;;  %v158_v31 = vld [vmem:[%s5113_s15 + $0x80] sm:$0xff] }
  0xd9   : > { %984 = vrot.lane.b32.xlu1 %v372_v26, %s5080_s16  ;;  %982 = vrot.lane.b32.xlu0 %v371_v27, %s5080_s16  ;;  %v384_v26 = vld [vmem:[%s5113_s15 + $0x451] sm:$0xff]  ;;  %v383_v27 = vld [vmem:[%s5113_s15 + $0x449] sm:$0xff] }
  0xdb   : > { %v5401_v38 = vpop.permute.xlu1 %872  ;;  %v5403_v39 = vpop.permute.xlu0 %870 }
  0xdc   : > { %7501 = vst [vmem:[#allocation31_spill] sm:$0xff] %v5401_v38  ;;  %7502 = vst [vmem:[#allocation32_spill] sm:$0xff] %v5403_v39  ;;  %v156_v38 = vld [vmem:[%s5113_s15 + $0x68] sm:$0xff]  ;;  %v155_v39 = vld [vmem:[%s5113_s15 + $0x60] sm:$0xff] }
  0xdd   : > { %988 = vrot.lane.b32.xlu1 %v374_v34, %s5080_s16  ;;  %986 = vrot.lane.b32.xlu0 %v373_v35, %s5080_s16 }
  0xdf   : > { %v5409_v46 = vpop.permute.xlu1 %876  ;;  %v5411_v47 = vpop.permute.xlu0 %874 }
  0xe0   : > { %7503 = vst [vmem:[#allocation33_spill] sm:$0xff] %v5409_v46  ;;  %7504 = vst [vmem:[#allocation34_spill] sm:$0xff] %v5411_v47 }
  0xe1   : > { %992 = vrot.lane.b32.xlu1 %v376_v42, %s5080_s16  ;;  %990 = vrot.lane.b32.xlu0 %v375_v43, %s5080_s16  ;;  %v386_v42 = vld [vmem:[%s5113_s15 + $0x469] sm:$0xff]  ;;  %v385_v43 = vld [vmem:[%s5113_s15 + $0x461] sm:$0xff] }
  0xe3   : > { %v5417_v54 = vpop.permute.xlu1 %880  ;;  %v5419_v55 = vpop.permute.xlu0 %878 }
  0xe4   : > { %7505 = vst [vmem:[#allocation35_spill] sm:$0xff] %v5417_v54  ;;  %7506 = vst [vmem:[#allocation36_spill] sm:$0xff] %v5419_v55  ;;  %v154_v54 = vld [vmem:[%s5113_s15 + $0x58] sm:$0xff]  ;;  %v5545_v55 = vld [vmem:[%s5113_s15 + $0x50] sm:$0xff] }
  0xe5   : > { %996 = vrot.lane.b32.xlu1 %v378_v50, %s5080_s16  ;;  %994 = vrot.lane.b32.xlu0 %v377_v51, %s5080_s16 }
  0xe7   : > { %v5425_v2 = vpop.permute.xlu1 %884  ;;  %v5427_v3 = vpop.permute.xlu0 %882 }
  0xe8   : > { %7507 = vst [vmem:[#allocation37_spill] sm:$0xff] %v5425_v2  ;;  %7508 = vst [vmem:[#allocation38_spill] sm:$0xff] %v5427_v3 }
  0xe9   : > { %1000 = vrot.lane.b32.xlu1 %v380_v58, %s5080_s16  ;;  %998 = vrot.lane.b32.xlu0 %v379_v59, %s5080_s16  ;;  %v388_v58 = vld [vmem:[%s5113_s15 + $0x479] sm:$0xff]  ;;  %v387_v59 = vld [vmem:[%s5113_s15 + $0x471] sm:$0xff] }
  0xeb   : > { %v5433_v18 = vpop.permute.xlu1 %888  ;;  %v5435_v19 = vpop.permute.xlu0 %886 }
  0xec   : > { %7509 = vst [vmem:[#allocation39_spill] sm:$0xff] %v5433_v18  ;;  %7510 = vst [vmem:[#allocation40_spill] sm:$0xff] %v5435_v19  ;;  %v5530_v18 = vld [vmem:[%s5113_s15 + $0x40] sm:$0xff]  ;;  %v5533_v19 = vld [vmem:[%s5113_s15 + $0x38] sm:$0xff] }
  0xed   : > { %1004 = vrot.lane.b32.xlu1 %v382_v10, %s5080_s16  ;;  %1002 = vrot.lane.b32.xlu0 %v381_v11, %s5080_s16 }
  0xef   : > { %v5441_v34 = vpop.permute.xlu1 %892  ;;  %v5443_v35 = vpop.permute.xlu0 %890 }
  0xf0   : > { %7511 = vst [vmem:[#allocation41_spill] sm:$0xff] %v5441_v34  ;;  %7512 = vst [vmem:[#allocation42_spill] sm:$0xff] %v5443_v35 }
  0xf1   : > { %1008 = vrot.lane.b32.xlu1 %v384_v26, %s5080_s16  ;;  %1006 = vrot.lane.b32.xlu0 %v383_v27, %s5080_s16  ;;  %v390_v26 = vld [vmem:[%s5113_s15 + $0x491] sm:$0xff]  ;;  %v389_v27 = vld [vmem:[%s5113_s15 + $0x489] sm:$0xff] }
  0xf3   : > { %v5449_v50 = vpop.permute.xlu1 %896  ;;  %v5451_v51 = vpop.permute.xlu0 %894 }
  0xf4   : > { %7513 = vst [vmem:[#allocation43_spill] sm:$0xff] %v5449_v50  ;;  %7514 = vst [vmem:[#allocation44_spill] sm:$0xff] %v5451_v51 }
  0xf5   : > { %1012 = vrot.lane.b32.xlu1 %v386_v42, %s5080_s16  ;;  %1010 = vrot.lane.b32.xlu0 %v385_v43, %s5080_s16  ;;  %v392_v43 = vld [vmem:[%s5113_s15 + $0x4a1] sm:$0xff] }
  0xf7   : > { %v5457_v10 = vpop.permute.xlu1 %900  ;;  %v5459_v11 = vpop.permute.xlu0 %898 }
  0xf8   : > { %7515 = vst [vmem:[#allocation45_spill] sm:$0xff] %v5457_v10  ;;  %7516 = vst [vmem:[#allocation46_spill] sm:$0xff] %v5459_v11  ;;  %v391_v10 = vld [vmem:[%s5113_s15 + $0x499] sm:$0xff] }
  0xf9   : > { %1016 = vrot.lane.b32.xlu1 %v388_v58, %s5080_s16  ;;  %1014 = vrot.lane.b32.xlu0 %v387_v59, %s5080_s16  ;;  %v394_v59 = vld [vmem:[%s5113_s15 + $0x4b9] sm:$0xff] }
  0xfb   : > { %v5465_v50 = vpop.permute.xlu1 %904  ;;  %v5467_v42 = vpop.permute.xlu0 %902 }
  0xfc   : > { %7517 = vst [vmem:[#allocation47_spill] sm:$0xff] %v5465_v50  ;;  %7518 = vst [vmem:[#allocation48_spill] sm:$0xff] %v5467_v42  ;;  %v393_v50 = vld [vmem:[%s5113_s15 + $0x4b1] sm:$0xff] }
  0xfd   : > { %1020 = vrot.lane.b32.xlu1 %v390_v26, %s5080_s16  ;;  %1018 = vrot.lane.b32.xlu0 %v389_v27, %s5080_s16  ;;  %v396_v27 = vld [vmem:[%s5113_s15 + $0x4c9] sm:$0xff] }
  0xff   : > { %v5473_v11 = vpop.permute.xlu1 %908  ;;  %v5475_v58 = vpop.permute.xlu0 %906 }
 0x100   : > { %7519 = vst [vmem:[#allocation49_spill] sm:$0xff] %v5473_v11  ;;  %7520 = vst [vmem:[#allocation50_spill] sm:$0xff] %v5475_v58  ;;  %v395_v11 = vld [vmem:[%s5113_s15 + $0x4c1] sm:$0xff] }
 0x101   : > { %1024 = vrot.lane.b32.xlu1 %v392_v43, %s5080_s16  ;;  %1022 = vrot.lane.b32.xlu0 %v391_v10, %s5080_s16  ;;  %v398_v10 = vld [vmem:[%s5113_s15 + $0x4e1] sm:$0xff]  ;;  %v397_v43 = vld [vmem:[%s5113_s15 + $0x4d9] sm:$0xff] }
 0x103   : > { %v5481_v42 = vpop.permute.xlu1 %912  ;;  %v5483_v26 = vpop.permute.xlu0 %910 }
 0x104   : > { %7521 = vst [vmem:[#allocation51_spill] sm:$0xff] %v5481_v42  ;;  %7522 = vst [vmem:[#allocation52_spill] sm:$0xff] %v5483_v26 }
 0x105   : > { %1028 = vrot.lane.b32.xlu1 %v394_v59, %s5080_s16  ;;  %1026 = vrot.lane.b32.xlu0 %v393_v50, %s5080_s16  ;;  %v400_v50 = vld [vmem:[%s5113_s15 + $0x4f1] sm:$0xff]  ;;  %v399_v59 = vld [vmem:[%s5113_s15 + $0x4e9] sm:$0xff] }
 0x107   : > { %v5489_v58 = vpop.permute.xlu1 %916  ;;  %v5491_v51 = vpop.permute.xlu0 %914 }
 0x109   : > { %1032 = vrot.lane.b32.xlu1 %v396_v27, %s5080_s16  ;;  %1030 = vrot.lane.b32.xlu0 %v395_v11, %s5080_s16 }
 0x10b   : > { %v5497_v42 = vpop.permute.xlu1 %920  ;;  %v5499_v26 = vpop.permute.xlu0 %918 }
 0x10d   : > { %1036 = vrot.lane.b32.xlu1 %v398_v10, %s5080_s16  ;;  %1034 = vrot.lane.b32.xlu0 %v397_v43, %s5080_s16  ;;  %v5516_v10 = vld [vmem:[%s5113_s15 + $0x30] sm:$0xff]  ;;  %v5519_v43 = vld [vmem:[%s5113_s15 + $0x28] sm:$0xff] }
 0x10f   : > { %v5505_v34 = vpop.permute.xlu1 %924  ;;  %v5507_v27 = vpop.permute.xlu0 %922 }
 0x111   : > { %1040 = vrot.lane.b32.xlu1 %v400_v50, %s5080_s16  ;;  %1038 = vrot.lane.b32.xlu0 %v399_v59, %s5080_s16 }
 0x113   : > { %v5511_v11 = vpop.permute.xlu1 %928  ;;  %v5513_v35 = vpop.permute.xlu0 %926 }
 0x115   : > { %1300 = vrot.lane.b32.xlu1 %v5516_v10, %s5081_s17  ;;  %1298 = vrot.lane.b32.xlu0 %v5519_v43, %s5081_s17 }
 0x117   : > { %v5525_v50 = vpop.permute.xlu1 %932  ;;  %v5527_v59 = vpop.permute.xlu0 %930 }
 0x119   : > { %1304 = vrot.lane.b32.xlu1 %v5530_v18, %s5081_s17  ;;  %1302 = vrot.lane.b32.xlu0 %v5533_v19, %s5081_s17 }
 0x11b   : > { %v5539_v2 = vpop.permute.xlu1 %936  ;;  %v5541_v3 = vpop.permute.xlu0 %934 }
 0x11d   : > { %1308 = vrot.lane.b32.xlu1 %v154_v54, %s5081_s17  ;;  %1306 = vrot.lane.b32.xlu0 %v5545_v55, %s5081_s17 }
 0x11f   : > { %v5550_v46 = vpop.permute.xlu1 %940  ;;  %v5552_v47 = vpop.permute.xlu0 %938 }
 0x120   : > { %7523 = vst [vmem:[#allocation53_spill] sm:$0xff] %v5550_v46  ;;  %7524 = vst [vmem:[#allocation54_spill] sm:$0xff] %v5552_v47  ;;  %v6085_v47 = vld [vmem:[%s5113_s15 + $0x370] sm:$0xff] }
 0x121   : > { %1312 = vrot.lane.b32.xlu1 %v156_v38, %s5081_s17  ;;  %1310 = vrot.lane.b32.xlu0 %v155_v39, %s5081_s17  ;;  %v160_v38 = vld [vmem:[%s5113_s15 + $0x90] sm:$0xff] }
 0x123   : > { %v5558_v30 = vpop.permute.xlu1 %944  ;;  %v5560_v54 = vpop.permute.xlu0 %942 }
 0x124   : > { %7525 = vst [vmem:[#allocation55_spill] sm:$0xff] %v5558_v30  ;;  %7526 = vst [vmem:[#allocation56_spill] sm:$0xff] %v5560_v54 }
 0x125   : > { %1316 = vrot.lane.b32.xlu1 %v158_v31, %s5081_s17  ;;  %1314 = vrot.lane.b32.xlu0 %v157_v22, %s5081_s17  ;;  %v162_v31 = vld [vmem:[%s5113_s15 + $0xa8] sm:$0xff] }
 0x127   : > { %v5566_v23 = vpop.permute.xlu1 %948  ;;  %v5568_v14 = vpop.permute.xlu0 %946 }
 0x128   : > { %7527 = vst [vmem:[#allocation57_spill] sm:$0xff] %v5566_v23  ;;  %7528 = vst [vmem:[#allocation58_spill] sm:$0xff] %v5568_v14  ;;  %v4388_v23 = vld [vmem:[%s5113_s15 + $0x59] sm:$0xff] }
 0x129   : > { %1320 = vrot.lane.b32.xlu1 %v160_v38, %s5081_s17  ;;  %1318 = vrot.lane.b32.xlu0 %v159_v15, %s5081_s17  ;;  %v164_v38 = vld [vmem:[%s5113_s15 + $0xb8] sm:$0xff] }
 0x12b   : > { %v5574_v39 = vpop.permute.xlu1 %952  ;;  %v5576_v6 = vpop.permute.xlu0 %950 }
 0x12c   : > { %7529 = vst [vmem:[#allocation59_spill] sm:$0xff] %v5574_v39  ;;  %7530 = vst [vmem:[#allocation60_spill] sm:$0xff] %v5576_v6 }
 0x12d   : > { %1324 = vrot.lane.b32.xlu1 %v162_v31, %s5081_s17  ;;  %1322 = vrot.lane.b32.xlu0 %v161_v7, %s5081_s17  ;;  %v166_v31 = vld [vmem:[%s5113_s15 + $0xd0] sm:$0xff] }
 0x12f   : > { %v5582_v22 = vpop.permute.xlu1 %956  ;;  %v5584_v62 = vpop.permute.xlu0 %954 }
 0x130   : > { %7531 = vst [vmem:[#allocation61_spill] sm:$0xff] %v5582_v22  ;;  %7532 = vst [vmem:[#allocation62_spill] sm:$0xff] %v5584_v62  ;;  %v4386_v22 = vld [vmem:[%s5113_s15 + $0x41] sm:$0xff] }
 0x131   : > { %1328 = vrot.lane.b32.xlu1 %v164_v38, %s5081_s17  ;;  %1326 = vrot.lane.b32.xlu0 %v163_v63, %s5081_s17  ;;  %v168_v38 = vld [vmem:[%s5113_s15 + $0xe0] sm:$0xff] }
 0x133   : > { %v5590_v15 = vpop.permute.xlu1 %960  ;;  %v5592_v56 = vpop.permute.xlu0 %958 }
 0x134   : > { %7533 = vst [vmem:[#allocation63_spill] sm:$0xff] %v5590_v15  ;;  %7534 = vst [vmem:[#allocation64_spill] sm:$0xff] %v5592_v56 }
 0x135   : > { %1332 = vrot.lane.b32.xlu1 %v166_v31, %s5081_s17  ;;  %1330 = vrot.lane.b32.xlu0 %v165_v57, %s5081_s17  ;;  %v170_v31 = vld [vmem:[%s5113_s15 + $0xf8] sm:$0xff] }
 0x137   : > { %v5598_v7 = vpop.permute.xlu1 %964  ;;  %v5600_v52 = vpop.permute.xlu0 %962 }
 0x138   : > { %7535 = vst [vmem:[#allocation65_spill] sm:$0xff] %v5598_v7  ;;  %7536 = vst [vmem:[#allocation66_spill] sm:$0xff] %v5600_v52 }
 0x139   : > { %1336 = vrot.lane.b32.xlu1 %v168_v38, %s5081_s17  ;;  %1334 = vrot.lane.b32.xlu0 %v167_v53, %s5081_s17  ;;  %v172_v38 = vld [vmem:[%s5113_s15 + $0x108] sm:$0xff] }
 0x13b   : > { %v5606_v63 = vpop.permute.xlu1 %968  ;;  %v5608_v48 = vpop.permute.xlu0 %966 }
 0x13c   : > { %7537 = vst [vmem:[#allocation67_spill] sm:$0xff] %v5606_v63  ;;  %7538 = vst [vmem:[#allocation68_spill] sm:$0xff] %v5608_v48  ;;  %v173_v48 = vld [vmem:[%s5113_s15 + $0x118] sm:$0xff] }
 0x13d   : > { %1340 = vrot.lane.b32.xlu1 %v170_v31, %s5081_s17  ;;  %1338 = vrot.lane.b32.xlu0 %v169_v49, %s5081_s17  ;;  %v174_v31 = vld [vmem:[%s5113_s15 + $0x120] sm:$0xff] }
 0x13f   : > { %v5614_v57 = vpop.permute.xlu1 %972  ;;  %v5616_v7 = vpop.permute.xlu0 %970 }
 0x140   : > { %7539 = vst [vmem:[#allocation69_spill] sm:$0xff] %v5614_v57  ;;  %7540 = vst [vmem:[#allocation70_spill] sm:$0xff] %v5616_v7  ;;  %v175_v7 = vld [vmem:[%s5113_s15 + $0x128] sm:$0xff] }
 0x141   : > { %1344 = vrot.lane.b32.xlu1 %v172_v38, %s5081_s17  ;;  %1342 = vrot.lane.b32.xlu0 %v171_v44, %s5081_s17  ;;  %v176_v38 = vld [vmem:[%s5113_s15 + $0x130] sm:$0xff] }
 0x143   : > { %v5622_v53 = vpop.permute.xlu1 %976  ;;  %v5624_v63 = vpop.permute.xlu0 %974 }
 0x144   : > { %7541 = vst [vmem:[#allocation71_spill] sm:$0xff] %v5622_v53  ;;  %7542 = vst [vmem:[#allocation72_spill] sm:$0xff] %v5624_v63  ;;  %v177_v63 = vld [vmem:[%s5113_s15 + $0x140] sm:$0xff] }
 0x145   : > { %1348 = vrot.lane.b32.xlu1 %v174_v31, %s5081_s17  ;;  %1346 = vrot.lane.b32.xlu0 %v173_v48, %s5081_s17  ;;  %v178_v31 = vld [vmem:[%s5113_s15 + $0x148] sm:$0xff] }
 0x147   : > { %v5630_v49 = vpop.permute.xlu1 %980  ;;  %v5632_v57 = vpop.permute.xlu0 %978 }
 0x148   : > { %7543 = vst [vmem:[#allocation73_spill] sm:$0xff] %v5630_v49  ;;  %7544 = vst [vmem:[#allocation74_spill] sm:$0xff] %v5632_v57  ;;  %v179_v57 = vld [vmem:[%s5113_s15 + $0x150] sm:$0xff] }
 0x149   : > { %1352 = vrot.lane.b32.xlu1 %v176_v38, %s5081_s17  ;;  %1350 = vrot.lane.b32.xlu0 %v175_v7, %s5081_s17  ;;  %v180_v38 = vld [vmem:[%s5113_s15 + $0x158] sm:$0xff] }
 0x14b   : > { %v5638_v44 = vpop.permute.xlu1 %984  ;;  %v5640_v53 = vpop.permute.xlu0 %982 }
 0x14c   : > { %7545 = vst [vmem:[#allocation75_spill] sm:$0xff] %v5638_v44  ;;  %7546 = vst [vmem:[#allocation76_spill] sm:$0xff] %v5640_v53  ;;  %v181_v53 = vld [vmem:[%s5113_s15 + $0x168] sm:$0xff] }
 0x14d   : > { %1356 = vrot.lane.b32.xlu1 %v178_v31, %s5081_s17  ;;  %1354 = vrot.lane.b32.xlu0 %v177_v63, %s5081_s17  ;;  %v182_v31 = vld [vmem:[%s5113_s15 + $0x170] sm:$0xff] }
 0x14f   : > { %v5646_v48 = vpop.permute.xlu1 %988  ;;  %v5648_v49 = vpop.permute.xlu0 %986 }
 0x150   : > { %7547 = vst [vmem:[#allocation77_spill] sm:$0xff] %v5646_v48  ;;  %7548 = vst [vmem:[#allocation78_spill] sm:$0xff] %v5648_v49  ;;  %v183_v49 = vld [vmem:[%s5113_s15 + $0x178] sm:$0xff] }
 0x151   : > { %1360 = vrot.lane.b32.xlu1 %v180_v38, %s5081_s17  ;;  %1358 = vrot.lane.b32.xlu0 %v179_v57, %s5081_s17  ;;  %v184_v38 = vld [vmem:[%s5113_s15 + $0x180] sm:$0xff] }
 0x153   : > { %v5654_v7 = vpop.permute.xlu1 %992  ;;  %v5656_v44 = vpop.permute.xlu0 %990 }
 0x154   : > { %7549 = vst [vmem:[#allocation79_spill] sm:$0xff] %v5654_v7  ;;  %7550 = vst [vmem:[#allocation80_spill] sm:$0xff] %v5656_v44  ;;  %v185_v44 = vld [vmem:[%s5113_s15 + $0x190] sm:$0xff] }
 0x155   : > { %1364 = vrot.lane.b32.xlu1 %v182_v31, %s5081_s17  ;;  %1362 = vrot.lane.b32.xlu0 %v181_v53, %s5081_s17  ;;  %v186_v31 = vld [vmem:[%s5113_s15 + $0x198] sm:$0xff] }
 0x157   : > { %v5662_v63 = vpop.permute.xlu1 %996  ;;  %v5664_v48 = vpop.permute.xlu0 %994 }
 0x158   : > { %7551 = vst [vmem:[#allocation81_spill] sm:$0xff] %v5662_v63  ;;  %7552 = vst [vmem:[#allocation82_spill] sm:$0xff] %v5664_v48  ;;  %v187_v48 = vld [vmem:[%s5113_s15 + $0x1a0] sm:$0xff] }
 0x159   : > { %1368 = vrot.lane.b32.xlu1 %v184_v38, %s5081_s17  ;;  %1366 = vrot.lane.b32.xlu0 %v183_v49, %s5081_s17  ;;  %v188_v38 = vld [vmem:[%s5113_s15 + $0x1a8] sm:$0xff] }
 0x15b   : > { %v5670_v57 = vpop.permute.xlu1 %1000  ;;  %v5672_v7 = vpop.permute.xlu0 %998 }
 0x15c   : > { %7553 = vst [vmem:[#allocation83_spill] sm:$0xff] %v5670_v57  ;;  %7554 = vst [vmem:[#allocation84_spill] sm:$0xff] %v5672_v7  ;;  %v189_v7 = vld [vmem:[%s5113_s15 + $0x1b8] sm:$0xff] }
 0x15d   : > { %1372 = vrot.lane.b32.xlu1 %v186_v31, %s5081_s17  ;;  %1370 = vrot.lane.b32.xlu0 %v185_v44, %s5081_s17  ;;  %v190_v31 = vld [vmem:[%s5113_s15 + $0x1c0] sm:$0xff] }
 0x15f   : > { %v5678_v53 = vpop.permute.xlu1 %1004  ;;  %v5680_v63 = vpop.permute.xlu0 %1002 }
 0x160   : > { %7555 = vst [vmem:[#allocation85_spill] sm:$0xff] %v5678_v53  ;;  %7556 = vst [vmem:[#allocation86_spill] sm:$0xff] %v5680_v63  ;;  %v191_v63 = vld [vmem:[%s5113_s15 + $0x1c8] sm:$0xff] }
 0x161   : > { %1376 = vrot.lane.b32.xlu1 %v188_v38, %s5081_s17  ;;  %1374 = vrot.lane.b32.xlu0 %v187_v48, %s5081_s17  ;;  %v192_v38 = vld [vmem:[%s5113_s15 + $0x1d0] sm:$0xff] }
 0x163   : > { %v5686_v49 = vpop.permute.xlu1 %1008  ;;  %v5688_v57 = vpop.permute.xlu0 %1006 }
 0x164   : > { %7557 = vst [vmem:[#allocation87_spill] sm:$0xff] %v5686_v49  ;;  %7558 = vst [vmem:[#allocation88_spill] sm:$0xff] %v5688_v57  ;;  %v194_v57 = vld [vmem:[%s5113_s15 + $0x1e8] sm:$0xff] }
 0x165   : > { %1380 = vrot.lane.b32.xlu1 %v190_v31, %s5081_s17  ;;  %1378 = vrot.lane.b32.xlu0 %v189_v7, %s5081_s17  ;;  %v193_v31 = vld [vmem:[%s5113_s15 + $0x1e0] sm:$0xff] }
 0x166   : > { %v2581_v7 = vld [vmem:[%s7458_s1] sm:$0xff] }
 0x167   : > { %v5694_v44 = vpop.permute.xlu1 %1012  ;;  %v5696_v53 = vpop.permute.xlu0 %1010 }
 0x168   : > { %7559 = vst [vmem:[#allocation89_spill] sm:$0xff] %v5694_v44  ;;  %7560 = vst [vmem:[#allocation90_spill] sm:$0xff] %v5696_v53  ;;  %v195_v53 = vld [vmem:[%s5113_s15 + $0x1f0] sm:$0xff] }
 0x169   : > { %1384 = vrot.lane.b32.xlu1 %v192_v38, %s5081_s17  ;;  %1382 = vrot.lane.b32.xlu0 %v191_v63, %s5081_s17  ;;  %v2582_v38 = vld [vmem:[%s7458_s1 + $0x8] sm:$0xff] }
 0x16b   : > { %v5702_v48 = vpop.permute.xlu1 %1016  ;;  %v5704_v49 = vpop.permute.xlu0 %1014 }
 0x16c   : > { %7561 = vst [vmem:[#allocation91_spill] sm:$0xff] %v5702_v48  ;;  %7562 = vst [vmem:[#allocation92_spill] sm:$0xff] %v5704_v49  ;;  %v4985_v48 = vpack.c.bf16 %v2582_v38, %v2581_v7  ;;  %v196_v49 = vld [vmem:[%s5113_s15 + $0x1f8] sm:$0xff]  ;;  %v197_v7 = vld [vmem:[%s5113_s15 + $0x208] sm:$0xff] }
 0x16d   : > { %1388 = vrot.lane.b32.xlu1 %v194_v57, %s5081_s17  ;;  %1386 = vrot.lane.b32.xlu0 %v193_v31, %s5081_s17  ;;  %v2583_v57 = vld [vmem:[%s7458_s1 + $0x10] sm:$0xff]  ;;  %v2584_v31 = vld [vmem:[%s7458_s1 + $0x18] sm:$0xff] }
 0x16e   : > { %4986 = vmatprep.subr.bf16.mxu0 %v4985_v48  ;;  %5001 = vmatprep.subr.bf16.mxu1 %v4985_v48  ;;  %v2585_v38 = vld [vmem:[%s7458_s1 + $0x20] sm:$0xff] }
 0x16f   : > { %v5716_v44 = vpop.permute.xlu1 %1020  ;;  %v5718_v63 = vpop.permute.xlu0 %1018  ;;  %4988 = vmatpush3.bf16.msra.mxu0 %v4985_v48  ;;  %5005 = vmatpush3.bf16.msra.mxu1 %v4985_v48 }
 0x170   : > { %7563 = vst [vmem:[#allocation93_spill] sm:$0xff] %v5716_v44  ;;  %7564 = vst [vmem:[#allocation94_spill] sm:$0xff] %v5718_v63 }
 0x171   : > { %1392 = vrot.lane.b32.xlu1 %v196_v49, %s5081_s17  ;;  %1390 = vrot.lane.b32.xlu0 %v195_v53, %s5081_s17  ;;  %v4989_v49 = vpack.c.bf16 %v2584_v31, %v2583_v57  ;;  %v198_v53 = vld [vmem:[%s5113_s15 + $0x210] sm:$0xff]  ;;  %v200_v31 = vld [vmem:[%s5113_s15 + $0x220] sm:$0xff] }
 0x173   : > { %v5730_v44 = vpop.permute.xlu1 %1024  ;;  %v5732_v63 = vpop.permute.xlu0 %1022  ;;  %4990 = vmatprep.subr.bf16.mxu0 %v4989_v49  ;;  %5002 = vmatprep.subr.bf16.mxu1 %v4989_v49 }
 0x174   : > { %7565 = vst [vmem:[#allocation95_spill] sm:$0xff] %v5730_v44  ;;  %7566 = vst [vmem:[#allocation96_spill] sm:$0xff] %v5732_v63  ;;  %v2586_v44 = vld [vmem:[%s7458_s1 + $0x28] sm:$0xff]  ;;  %4992 = vmatpush3.bf16.msra.mxu0 %v4989_v49  ;;  %5006 = vmatpush3.bf16.msra.mxu1 %v4989_v49 }
 0x175   : > { %1396 = vrot.lane.b32.xlu1 %v198_v53, %s5081_s17  ;;  %1394 = vrot.lane.b32.xlu0 %v197_v7, %s5081_s17  ;;  %v4993_v57 = vpack.c.bf16 %v2586_v44, %v2585_v38  ;;  %v199_v53 = vld [vmem:[%s5113_s15 + $0x218] sm:$0xff]  ;;  %v2587_v7 = vld [vmem:[%s7458_s1 + $0x30] sm:$0xff] }
 0x177   : > { %v5744_v63 = vpop.permute.xlu1 %1028  ;;  %v5746_v48 = vpop.permute.xlu0 %1026  ;;  %4994 = vmatprep.subr.bf16.mxu0 %v4993_v57  ;;  %5003 = vmatprep.subr.bf16.mxu1 %v4993_v57 }
 0x178   : > { %7567 = vst [vmem:[#allocation97_spill] sm:$0xff] %v5744_v63  ;;  %7568 = vst [vmem:[#allocation98_spill] sm:$0xff] %v5746_v48  ;;  %v2588_v63 = vld [vmem:[%s7458_s1 + $0x38] sm:$0xff]  ;;  %4996 = vmatpush3.bf16.msra.mxu0 %v4993_v57  ;;  %5007 = vmatpush3.bf16.msra.mxu1 %v4993_v57  ;;  %v204_v57 = vld [vmem:[%s5113_s15 + $0x248] sm:$0xff] }
 0x179   : > { %1400 = vrot.lane.b32.xlu1 %v200_v31, %s5081_s17  ;;  %1398 = vrot.lane.b32.xlu0 %v199_v53, %s5081_s17  ;;  %v4997_v38 = vpack.c.bf16 %v2588_v63, %v2587_v7  ;;  %v202_v31 = vld [vmem:[%s5113_s15 + $0x238] sm:$0xff]  ;;  %v201_v53 = vld [vmem:[%s5113_s15 + $0x230] sm:$0xff] }
 0x17a   : > { %v203_v63 = vld [vmem:[%s5113_s15 + $0x240] sm:$0xff] }
 0x17b   : > { %v5758_v49 = vpop.permute.xlu1 %1032  ;;  %v5760_v44 = vpop.permute.xlu0 %1030  ;;  %4998 = vmatprep.subr.bf16.mxu0 %v4997_v38  ;;  %5004 = vmatprep.subr.bf16.mxu1 %v4997_v38 }
 0x17c   : > { %7569 = vst [vmem:[#allocation99_spill] sm:$0xff] %v5758_v49  ;;  %7570 = vst [vmem:[#allocation100_spill] sm:$0xff] %v5760_v44  ;;  %5000 = vmatpush3.bf16.msra.mxu0 %v4997_v38  ;;  %5008 = vmatpush3.bf16.msra.mxu1 %v4997_v38  ;;  %v5782_v44 = vld [vmem:[%s5113_s15 + $0x2a8] sm:$0xff] }
 0x17d   : > { %1404 = vrot.lane.b32.xlu1 %v202_v31, %s5081_s17  ;;  %1402 = vrot.lane.b32.xlu0 %v201_v53, %s5081_s17  ;;  %v5779_v53 = vld [vmem:[%s5113_s15 + $0x2b0] sm:$0xff] }
 0x17e   : > { %v4447_v38 = vld [vmem:[%s5113_s15 + $0x2a9] sm:$0xff] }
 0x17f   : > { %v5766_v48 = vpop.permute.xlu1 %1036  ;;  %v5768_v49 = vpop.permute.xlu0 %1034 }
 0x180   : > { %7571 = vst [vmem:[#allocation101_spill] sm:$0xff] %v5766_v48  ;;  %7572 = vst [vmem:[#allocation102_spill] sm:$0xff] %v5768_v49 }
 0x181   : > { %1408 = vrot.lane.b32.xlu1 %v204_v57, %s5081_s17  ;;  %1406 = vrot.lane.b32.xlu0 %v203_v63, %s5081_s17  ;;  %v4383_v57 = vld [vmem:[%s5113_s15 + $0x29] sm:$0xff] }
 0x183   : > { %v5774_v7 = vpop.permute.xlu1 %1040  ;;  %v5776_v31 = vpop.permute.xlu0 %1038 }
 0x184   : > { %7573 = vst [vmem:[#allocation103_spill] sm:$0xff] %v5774_v7  ;;  %7574 = vst [vmem:[#allocation104_spill] sm:$0xff] %v5776_v31  ;;  %v4448_v7 = vld [vmem:[%s5113_s15 + $0x2b1] sm:$0xff] }
 0x185   : > { %1428 = vrot.lane.b32.xlu1 %v5779_v53, %s5081_s17  ;;  %1426 = vrot.lane.b32.xlu0 %v5782_v44, %s5081_s17  ;;  %v4384_v31 = vld [vmem:[%s5113_s15 + $0x31] sm:$0xff] }
 0x187   : > { %v5790_v48 = vpop.permute.xlu1 %1300  ;;  %v5792_v63 = vpop.permute.xlu0 %1298 }
 0x189   : > { %1938 = vrot.lane.b32.xlu1 %v4447_v38, %s5082_s6  ;;  %1810 = vrot.lane.b32.xlu0 %v4383_v57, %s5082_s6  ;;  %v5812_v38 = vld [vmem:[%s5113_s15 + $0x2b8] sm:$0xff] }
 0x18a   : > { %v4449_v57 = vld [vmem:[%s5113_s15 + $0x2b9] sm:$0xff] }
 0x18b   : > { %v5798_v49 = vpop.permute.xlu1 %1304  ;;  %v5800_v52 = vpop.permute.xlu0 %1302 }
 0x18d   : > { %1940 = vrot.lane.b32.xlu1 %v4448_v7, %s5082_s6  ;;  %1812 = vrot.lane.b32.xlu0 %v4384_v31, %s5082_s6  ;;  %v4385_v7 = vld [vmem:[%s5113_s15 + $0x39] sm:$0xff] }
 0x18f   : > { %v5804_v45 = vpop.permute.xlu1 %1308  ;;  %v5806_v15 = vpop.permute.xlu0 %1306 }
 0x191   : > { %1432 = vrot.lane.b32.xlu1 %v5809_v40, %s5081_s17  ;;  %1430 = vrot.lane.b32.xlu0 %v5812_v38, %s5081_s17 }
 0x193   : > { %v5820_v56 = vpop.permute.xlu1 %1312  ;;  %v5822_v31 = vpop.permute.xlu0 %1310 }
 0x195   : > { %1942 = vrot.lane.b32.xlu1 %v4449_v57, %s5082_s6  ;;  %1814 = vrot.lane.b32.xlu0 %v4385_v7, %s5082_s6  ;;  %v5842_v57 = vld [vmem:[%s5113_s15 + $0x2d0] sm:$0xff] }
 0x196   : > { %v4451_v7 = vld [vmem:[%s5113_s15 + $0x2d1] sm:$0xff] }
 0x197   : > { %v5828_v36 = vpop.permute.xlu1 %1316  ;;  %v5830_v62 = vpop.permute.xlu0 %1314 }
 0x199   : > { %1944 = vrot.lane.b32.xlu1 %v4450_v41, %s5082_s6  ;;  %1816 = vrot.lane.b32.xlu0 %v4386_v22, %s5082_s6  ;;  %v4387_v41 = vld [vmem:[%s5113_s15 + $0x51] sm:$0xff] }
 0x19b   : > { %v5834_v37 = vpop.permute.xlu1 %1320  ;;  %v5836_v39 = vpop.permute.xlu0 %1318 }
 0x19d   : > { %1436 = vrot.lane.b32.xlu1 %v5839_v32, %s5081_s17  ;;  %1434 = vrot.lane.b32.xlu0 %v5842_v57, %s5081_s17 }
 0x19f   : > { %v5850_v6 = vpop.permute.xlu1 %1324  ;;  %v5852_v22 = vpop.permute.xlu0 %1322 }
 0x1a0   : > { %7575 = vst [vmem:[#allocation105_spill] sm:$0xff] %v5850_v6  ;;  %7576 = vst [vmem:[#allocation106_spill] sm:$0xff] %v5852_v22 }
 0x1a1   : > { %1946 = vrot.lane.b32.xlu1 %v4451_v7, %s5082_s6  ;;  %1818 = vrot.lane.b32.xlu0 %v4387_v41, %s5082_s6  ;;  %v5872_v7 = vld [vmem:[%s5113_s15 + $0x2e0] sm:$0xff] }
 0x1a2   : > { %v4453_v41 = vld [vmem:[%s5113_s15 + $0x2e1] sm:$0xff] }
 0x1a3   : > { %v5858_v28 = vpop.permute.xlu1 %1328  ;;  %v5860_v14 = vpop.permute.xlu0 %1326 }
 0x1a4   : > { %7577 = vst [vmem:[#allocation107_spill] sm:$0xff] %v5858_v28  ;;  %7578 = vst [vmem:[#allocation108_spill] sm:$0xff] %v5860_v14 }
 0x1a5   : > { %1948 = vrot.lane.b32.xlu1 %v4452_v33, %s5082_s6  ;;  %1820 = vrot.lane.b32.xlu0 %v4388_v23, %s5082_s6  ;;  %v4389_v33 = vld [vmem:[%s5113_s15 + $0x61] sm:$0xff] }
 0x1a7   : > { %v5864_v29 = vpop.permute.xlu1 %1332  ;;  %v5866_v30 = vpop.permute.xlu0 %1330 }
 0x1a8   : > { %7579 = vst [vmem:[#allocation109_spill] sm:$0xff] %v5864_v29  ;;  %7580 = vst [vmem:[#allocation110_spill] sm:$0xff] %v5866_v30  ;;  %v4454_v29 = vld [vmem:[%s5113_s15 + $0x2e9] sm:$0xff] }
 0x1a9   : > { %1440 = vrot.lane.b32.xlu1 %v5869_v24, %s5081_s17  ;;  %1438 = vrot.lane.b32.xlu0 %v5872_v7, %s5081_s17  ;;  %v4390_v30 = vld [vmem:[%s5113_s15 + $0x69] sm:$0xff] }
 0x1ab   : > { %v5880_v28 = vpop.permute.xlu1 %1336  ;;  %v5882_v23 = vpop.permute.xlu0 %1334 }
 0x1ac   : > { %7581 = vst [vmem:[#allocation111_spill] sm:$0xff] %v5880_v28  ;;  %7582 = vst [vmem:[#allocation112_spill] sm:$0xff] %v5882_v23 }
 0x1ad   : > { %1950 = vrot.lane.b32.xlu1 %v4453_v41, %s5082_s6  ;;  %1822 = vrot.lane.b32.xlu0 %v4389_v33, %s5082_s6  ;;  %v5902_v41 = vld [vmem:[%s5113_s15 + $0x2f8] sm:$0xff] }
 0x1ae   : > { %7588 = vst [vmem:[#allocation118_spill] sm:$0xff] %v5902_v41  ;;  %v4455_v33 = vld [vmem:[%s5113_s15 + $0x2f9] sm:$0xff] }
 0x1af   : > { %v5888_v14 = vpop.permute.xlu1 %1340  ;;  %v5890_v54 = vpop.permute.xlu0 %1338 }
 0x1b0   : > { %7583 = vst [vmem:[#allocation113_spill] sm:$0xff] %v5888_v14  ;;  %7584 = vst [vmem:[#allocation114_spill] sm:$0xff] %v5890_v54 }
 0x1b1   : > { %1952 = vrot.lane.b32.xlu1 %v4454_v29, %s5082_s6  ;;  %1824 = vrot.lane.b32.xlu0 %v4390_v30, %s5082_s6  ;;  %v4391_v29 = vld [vmem:[%s5113_s15 + $0x79] sm:$0xff] }
 0x1b3   : > { %v5894_v28 = vpop.permute.xlu1 %1344  ;;  %v5896_v23 = vpop.permute.xlu0 %1342 }
 0x1b4   : > { %7585 = vst [vmem:[#allocation115_spill] sm:$0xff] %v5894_v28  ;;  %7586 = vst [vmem:[#allocation116_spill] sm:$0xff] %v5896_v23  ;;  %v4456_v28 = vld [vmem:[%s5113_s15 + $0x301] sm:$0xff] }
 0x1b5   : > { %1444 = vrot.lane.b32.xlu1 %v5899_v25, %s5081_s17  ;;  %1442 = vrot.lane.b32.xlu0 %v5902_v41, %s5081_s17  ;;  %v4392_v23 = vld [vmem:[%s5113_s15 + $0x81] sm:$0xff]  ;;  %v5929_v25 = vld [vmem:[%s5113_s15 + $0x310] sm:$0xff] }
 0x1b6   : > { %7595 = vst [vmem:[#allocation125_spill] sm:$0xff] %v5929_v25 }
 0x1b7   : > { %v5910_v14 = vpop.permute.xlu1 %1348  ;;  %v5912_v30 = vpop.permute.xlu0 %1346 }
 0x1b8   : > { %7589 = vst [vmem:[#allocation119_spill] sm:$0xff] %v5910_v14  ;;  %7590 = vst [vmem:[#allocation120_spill] sm:$0xff] %v5912_v30 }
 0x1b9   : > { %1954 = vrot.lane.b32.xlu1 %v4455_v33, %s5082_s6  ;;  %1826 = vrot.lane.b32.xlu0 %v4391_v29, %s5082_s6  ;;  %v5932_v33 = vld [vmem:[%s5113_s15 + $0x308] sm:$0xff] }
 0x1ba   : > { %7596 = vst [vmem:[#allocation126_spill] sm:$0xff] %v5932_v33  ;;  %v4457_v29 = vld [vmem:[%s5113_s15 + $0x309] sm:$0xff] }
 0x1bb   : > { %v5918_v54 = vpop.permute.xlu1 %1352  ;;  %v5920_v6 = vpop.permute.xlu0 %1350 }
 0x1bc   : > { %7591 = vst [vmem:[#allocation121_spill] sm:$0xff] %v5918_v54  ;;  %7592 = vst [vmem:[#allocation122_spill] sm:$0xff] %v5920_v6 }
 0x1bd   : > { %1956 = vrot.lane.b32.xlu1 %v4456_v28, %s5082_s6  ;;  %1828 = vrot.lane.b32.xlu0 %v4392_v23, %s5082_s6  ;;  %v4393_v28 = vld [vmem:[%s5113_s15 + $0x89] sm:$0xff] }
 0x1bf   : > { %v5924_v14 = vpop.permute.xlu1 %1356  ;;  %v5926_v30 = vpop.permute.xlu0 %1354 }
 0x1c0   : > { %7593 = vst [vmem:[#allocation123_spill] sm:$0xff] %v5924_v14  ;;  %7594 = vst [vmem:[#allocation124_spill] sm:$0xff] %v5926_v30  ;;  %v4458_v14 = vld [vmem:[%s5113_s15 + $0x311] sm:$0xff] }
 0x1c1   : > { %1448 = vrot.lane.b32.xlu1 %v5929_v25, %s5081_s17  ;;  %1446 = vrot.lane.b32.xlu0 %v5932_v33, %s5081_s17  ;;  %v4394_v30 = vld [vmem:[%s5113_s15 + $0x91] sm:$0xff]  ;;  %v5959_v33 = vld [vmem:[%s5113_s15 + $0x328] sm:$0xff] }
 0x1c2   : > { %7603 = vst [vmem:[#allocation133_spill] sm:$0xff] %v5959_v33 }
 0x1c3   : > { %v5940_v54 = vpop.permute.xlu1 %1360  ;;  %v5942_v23 = vpop.permute.xlu0 %1358 }
 0x1c4   : > { %7597 = vst [vmem:[#allocation127_spill] sm:$0xff] %v5940_v54  ;;  %7598 = vst [vmem:[#allocation128_spill] sm:$0xff] %v5942_v23 }
 0x1c5   : > { %1958 = vrot.lane.b32.xlu1 %v4457_v29, %s5082_s6  ;;  %1830 = vrot.lane.b32.xlu0 %v4393_v28, %s5082_s6  ;;  %v5962_v29 = vld [vmem:[%s5113_s15 + $0x320] sm:$0xff] }
 0x1c6   : > { %7604 = vst [vmem:[#allocation134_spill] sm:$0xff] %v5962_v29  ;;  %v4459_v28 = vld [vmem:[%s5113_s15 + $0x321] sm:$0xff] }
 0x1c7   : > { %v5948_v6 = vpop.permute.xlu1 %1364  ;;  %v5950_v25 = vpop.permute.xlu0 %1362 }
 0x1c8   : > { %7599 = vst [vmem:[#allocation129_spill] sm:$0xff] %v5948_v6  ;;  %7600 = vst [vmem:[#allocation130_spill] sm:$0xff] %v5950_v25 }
 0x1c9   : > { %1960 = vrot.lane.b32.xlu1 %v4458_v14, %s5082_s6  ;;  %1832 = vrot.lane.b32.xlu0 %v4394_v30, %s5082_s6  ;;  %v4395_v14 = vld [vmem:[%s5113_s15 + $0xa1] sm:$0xff] }
 0x1cb   : > { %v5954_v54 = vpop.permute.xlu1 %1368  ;;  %v5956_v23 = vpop.permute.xlu0 %1366 }
 0x1cc   : > { %7601 = vst [vmem:[#allocation131_spill] sm:$0xff] %v5954_v54  ;;  %7602 = vst [vmem:[#allocation132_spill] sm:$0xff] %v5956_v23  ;;  %v4460_v54 = vld [vmem:[%s5113_s15 + $0x329] sm:$0xff] }
 0x1cd   : > { %1452 = vrot.lane.b32.xlu1 %v5959_v33, %s5081_s17  ;;  %1450 = vrot.lane.b32.xlu0 %v5962_v29, %s5081_s17  ;;  %v4396_v23 = vld [vmem:[%s5113_s15 + $0xa9] sm:$0xff]  ;;  %v5989_v29 = vld [vmem:[%s5113_s15 + $0x338] sm:$0xff] }
 0x1ce   : > { %7611 = vst [vmem:[#allocation141_spill] sm:$0xff] %v5989_v29 }
 0x1cf   : > { %v5970_v6 = vpop.permute.xlu1 %1372  ;;  %v5972_v30 = vpop.permute.xlu0 %1370 }
 0x1d0   : > { %7605 = vst [vmem:[#allocation135_spill] sm:$0xff] %v5970_v6  ;;  %7606 = vst [vmem:[#allocation136_spill] sm:$0xff] %v5972_v30 }
 0x1d1   : > { %1962 = vrot.lane.b32.xlu1 %v4459_v28, %s5082_s6  ;;  %1834 = vrot.lane.b32.xlu0 %v4395_v14, %s5082_s6  ;;  %v5992_v28 = vld [vmem:[%s5113_s15 + $0x330] sm:$0xff] }
 0x1d2   : > { %7612 = vst [vmem:[#allocation142_spill] sm:$0xff] %v5992_v28  ;;  %v4461_v14 = vld [vmem:[%s5113_s15 + $0x331] sm:$0xff] }
 0x1d3   : > { %v5978_v25 = vpop.permute.xlu1 %1376  ;;  %v5980_v33 = vpop.permute.xlu0 %1374 }
 0x1d4   : > { %7607 = vst [vmem:[#allocation137_spill] sm:$0xff] %v5978_v25  ;;  %7608 = vst [vmem:[#allocation138_spill] sm:$0xff] %v5980_v33 }
 0x1d5   : > { %1964 = vrot.lane.b32.xlu1 %v4460_v54, %s5082_s6  ;;  %1836 = vrot.lane.b32.xlu0 %v4396_v23, %s5082_s6  ;;  %v4397_v54 = vld [vmem:[%s5113_s15 + $0xb1] sm:$0xff] }
 0x1d7   : > { %v5984_v6 = vpop.permute.xlu1 %1380  ;;  %v5986_v30 = vpop.permute.xlu0 %1378 }
 0x1d8   : > { %7609 = vst [vmem:[#allocation139_spill] sm:$0xff] %v5984_v6  ;;  %7610 = vst [vmem:[#allocation140_spill] sm:$0xff] %v5986_v30  ;;  %v4462_v6 = vld [vmem:[%s5113_s15 + $0x339] sm:$0xff] }
 0x1d9   : > { %1456 = vrot.lane.b32.xlu1 %v5989_v29, %s5081_s17  ;;  %1454 = vrot.lane.b32.xlu0 %v5992_v28, %s5081_s17  ;;  %v4398_v30 = vld [vmem:[%s5113_s15 + $0xb9] sm:$0xff]  ;;  %v6019_v28 = vld [vmem:[%s5113_s15 + $0x350] sm:$0xff] }
 0x1da   : > { %7619 = vst [vmem:[#allocation149_spill] sm:$0xff] %v6019_v28 }
 0x1db   : > { %v6000_v25 = vpop.permute.xlu1 %1384  ;;  %v6002_v23 = vpop.permute.xlu0 %1382 }
 0x1dc   : > { %7613 = vst [vmem:[#allocation143_spill] sm:$0xff] %v6000_v25  ;;  %7614 = vst [vmem:[#allocation144_spill] sm:$0xff] %v6002_v23 }
 0x1dd   : > { %1966 = vrot.lane.b32.xlu1 %v4461_v14, %s5082_s6  ;;  %1838 = vrot.lane.b32.xlu0 %v4397_v54, %s5082_s6  ;;  %v6022_v14 = vld [vmem:[%s5113_s15 + $0x348] sm:$0xff] }
 0x1de   : > { %7620 = vst [vmem:[#allocation150_spill] sm:$0xff] %v6022_v14  ;;  %v4463_v54 = vld [vmem:[%s5113_s15 + $0x349] sm:$0xff] }
 0x1df   : > { %v6008_v33 = vpop.permute.xlu1 %1388  ;;  %v6010_v29 = vpop.permute.xlu0 %1386 }
 0x1e0   : > { %7615 = vst [vmem:[#allocation145_spill] sm:$0xff] %v6008_v33  ;;  %7616 = vst [vmem:[#allocation146_spill] sm:$0xff] %v6010_v29 }
 0x1e1   : > { %1968 = vrot.lane.b32.xlu1 %v4462_v6, %s5082_s6  ;;  %1840 = vrot.lane.b32.xlu0 %v4398_v30, %s5082_s6  ;;  %v4399_v6 = vld [vmem:[%s5113_s15 + $0xc9] sm:$0xff] }
 0x1e3   : > { %v6014_v25 = vpop.permute.xlu1 %1392  ;;  %v6016_v23 = vpop.permute.xlu0 %1390 }
 0x1e4   : > { %7617 = vst [vmem:[#allocation147_spill] sm:$0xff] %v6014_v25  ;;  %7618 = vst [vmem:[#allocation148_spill] sm:$0xff] %v6016_v23  ;;  %v4464_v25 = vld [vmem:[%s5113_s15 + $0x351] sm:$0xff] }
 0x1e5   : > { %1460 = vrot.lane.b32.xlu1 %v6019_v28, %s5081_s17  ;;  %1458 = vrot.lane.b32.xlu0 %v6022_v14, %s5081_s17  ;;  %v4400_v23 = vld [vmem:[%s5113_s15 + $0xd1] sm:$0xff]  ;;  %v145_v14 = vld [vmem:[%s5113_s15] sm:$0xff] }
 0x1e7   : > { %v6030_v33 = vpop.permute.xlu1 %1396  ;;  %v6032_v30 = vpop.permute.xlu0 %1394 }
 0x1e8   : > { %7621 = vst [vmem:[#allocation151_spill] sm:$0xff] %v6030_v33  ;;  %7622 = vst [vmem:[#allocation152_spill] sm:$0xff] %v6032_v30 }
 0x1e9   : > { %1970 = vrot.lane.b32.xlu1 %v4463_v54, %s5082_s6  ;;  %1842 = vrot.lane.b32.xlu0 %v4399_v6, %s5082_s6  ;;  %v6049_v54 = vld [vmem:[%s5113_s15 + $0x360] sm:$0xff]  ;;  %v6052_v6 = vld [vmem:[%s5113_s15 + $0x358] sm:$0xff] }
 0x1ea   : > { %7627 = vst [vmem:[#allocation157_spill] sm:$0xff] %v6049_v54  ;;  %7628 = vst [vmem:[#allocation158_spill] sm:$0xff] %v6052_v6 }
 0x1eb   : > { %v6038_v29 = vpop.permute.xlu1 %1400  ;;  %v6040_v28 = vpop.permute.xlu0 %1398 }
 0x1ec   : > { %7623 = vst [vmem:[#allocation153_spill] sm:$0xff] %v6038_v29  ;;  %7624 = vst [vmem:[#allocation154_spill] sm:$0xff] %v6040_v28  ;;  %v4465_v29 = vld [vmem:[%s5113_s15 + $0x359] sm:$0xff] }
 0x1ed   : > { %1972 = vrot.lane.b32.xlu1 %v4464_v25, %s5082_s6  ;;  %1844 = vrot.lane.b32.xlu0 %v4400_v23, %s5082_s6  ;;  %v4401_v25 = vld [vmem:[%s5113_s15 + $0xd9] sm:$0xff] }
 0x1ef   : > { %v6044_v33 = vpop.permute.xlu1 %1404  ;;  %v6046_v30 = vpop.permute.xlu0 %1402 }
 0x1f0   : > { %7625 = vst [vmem:[#allocation155_spill] sm:$0xff] %v6044_v33  ;;  %7626 = vst [vmem:[#allocation156_spill] sm:$0xff] %v6046_v30  ;;  %v4466_v33 = vld [vmem:[%s5113_s15 + $0x361] sm:$0xff] }
 0x1f1   : > { %1464 = vrot.lane.b32.xlu1 %v6049_v54, %s5081_s17  ;;  %1462 = vrot.lane.b32.xlu0 %v6052_v6, %s5081_s17  ;;  %v4402_v30 = vld [vmem:[%s5113_s15 + $0xe1] sm:$0xff] }
 0x1f2   : > { %v209_v54 = vld [vmem:[%s5113_s15 + $0x280] sm:$0xff] }
 0x1f3   : > { %v6060_v28 = vpop.permute.xlu1 %1408  ;;  %v6062_v23 = vpop.permute.xlu0 %1406 }
 0x1f4   : > { %7629 = vst [vmem:[#allocation159_spill] sm:$0xff] %v6060_v28  ;;  %7630 = vst [vmem:[#allocation160_spill] sm:$0xff] %v6062_v23  ;;  %v146_v28 = vld [vmem:[%s5113_s15 + $0x8] sm:$0xff] }
 0x1f5   : > { %1974 = vrot.lane.b32.xlu1 %v4465_v29, %s5082_s6  ;;  %1846 = vrot.lane.b32.xlu0 %v4401_v25, %s5082_s6  ;;  %v2195_v29 = vsel %vm2194_vm0, %v145_v14, %v5235_v61  ;;  %v2259_v25 = vsel %vm2194_vm0, %v209_v54, %v5491_v51  ;;  %v210_v23 = vld [vmem:[%s5113_s15 + $0x288] sm:$0xff] }
 0x1f6   : > { %v2324_v20 = vsel %vm2323_vm1, %v2195_v29, %v5792_v63  ;;  %v2196_v63 = vsel %vm2194_vm0, %v146_v28, %v5243_v1  ;;  %v2260_v14 = vsel %vm2194_vm0, %v210_v23, %v5489_v58  ;;  %v4468_v23 = vld [vmem:[%s5113_s15 + $0x379] sm:$0xff]  ;;  %v211_v29 = vld [vmem:[%s5113_s15 + $0x290] sm:$0xff] }
 0x1f7   : > { %v1429_v46 = vpop.permute.xlu1 %1428  ;;  %v1427_v6 = vpop.permute.xlu0 %1426 }
 0x1f8   : > { %v2388_v22 = vsel %vm2323_vm1, %v2259_v25, %v1427_v6  ;;  %v2389_v54 = vsel %vm2323_vm1, %v2260_v14, %v1429_v46  ;;  %v147_v46 = vld [vmem:[%s5113_s15 + $0x10] sm:$0xff]  ;;  %v212_v14 = vld [vmem:[%s5113_s15 + $0x298] sm:$0xff] }
 0x1f9   : > { %1976 = vrot.lane.b32.xlu1 %v4466_v33, %s5082_s6  ;;  %1848 = vrot.lane.b32.xlu0 %v4402_v30, %s5082_s6  ;;  %v6082_v30 = vld [vmem:[%s5113_s15 + $0x378] sm:$0xff] }
 0x1fb   : > { %v1939_v41 = vpop.permute.xlu1 %1938  ;;  %v1811_v33 = vpop.permute.xlu0 %1810 }
 0x1fc   : > { %v2453_v61 = vsel %vm2452_vm2, %v2324_v20, %v1811_v33  ;;  %v2517_v51 = vsel %vm2452_vm2, %v2388_v22, %v1939_v41  ;;  %v4467_v20 = vld [vmem:[%s5113_s15 + $0x371] sm:$0xff]  ;;  %v2325_v41 = vsel %vm2323_vm1, %v2196_v63, %v5790_v48  ;;  %v4404_v48 = vld [vmem:[%s5113_s15 + $0xf9] sm:$0xff] }
 0x1fd   : > { %1468 = vrot.lane.b32.xlu1 %v6082_v30, %s5081_s17  ;;  %1466 = vrot.lane.b32.xlu0 %v6085_v47, %s5081_s17  ;;  %v4403_v22 = vld [vmem:[%s5113_s15 + $0xf1] sm:$0xff] }
 0x1fe   : > { %4793 = vmatprep.mubr.msk.f32.mxu0 %vm2589_vm3, %v2453_v61  ;;  %4889 = vmatprep.mubr.msk.f32.mxu1 %vm2589_vm3, %v2517_v51  ;;  %v2197_v61 = vsel %vm2194_vm0, %v147_v46, %v5233_v60  ;;  %v2261_v51 = vsel %vm2194_vm0, %v211_v29, %v5499_v26  ;;  %v148_v63 = vld [vmem:[%s5113_s15 + $0x18] sm:$0xff]  ;;  %v2262_v26 = vsel %vm2194_vm0, %v212_v14, %v5497_v42  ;;  %v4470_v42 = vld [vmem:[%s5113_s15 + $0x389] sm:$0xff] }
 0x1ff   : > { %v1941_v6 = vpop.permute.xlu1 %1940  ;;  %v1813_v1 = vpop.permute.xlu0 %1812  ;;  %v2263_v14 = vsel %vm2194_vm0, %v5782_v44, %v5507_v27  ;;  %v2200_v27 = vsel %vm2194_vm0, %v5516_v10, %v5249_v4  ;;  %v4407_v44 = vld [vmem:[%s5113_s15 + $0x119] sm:$0xff] }
 0x200   : > { %v2518_v28 = vsel %vm2452_vm2, %v2389_v54, %v1941_v6  ;;  %v2454_v58 = vsel %vm2452_vm2, %v2325_v41, %v1813_v1  ;;  %v6126_v6 = vld [vmem:[%s5113_s15 + $0x388] sm:$0xff]  ;;  %v6129_v1 = vld [vmem:[%s5113_s15 + $0x380] sm:$0xff] }
 0x201   : > { %1978 = vrot.lane.b32.xlu1 %v4467_v20, %s5082_s6  ;;  %1850 = vrot.lane.b32.xlu0 %v4403_v22, %s5082_s6  ;;  %v2326_v20 = vsel %vm2323_vm1, %v2197_v61, %v5800_v52  ;;  %v2198_v52 = vsel %vm2194_vm0, %v148_v63, %v5241_v0  ;;  %v2199_v63 = vsel %vm2194_vm0, %v5519_v43, %v5251_v5 }
 0x202   : > { %4794 = vmatmul.mubr.msk.f32.vlgmr.msra.gmra.mrb[0].mxu0 %vm2589_vm3, %v2454_v58  ;;  %4890 = vmatmul.mubr.msk.f32.vlgmr.msra.gmra.mrb[0].mxu1 %vm2589_vm3, %v2518_v28  ;;  %v4469_v58 = vld [vmem:[%s5113_s15 + $0x381] sm:$0xff]  ;;  %v2264_v43 = vsel %vm2194_vm0, %v5779_v53, %v5505_v34 }
 0x203   : > { %v1433_v25 = vpop.permute.xlu1 %1432  ;;  %v1431_v33 = vpop.permute.xlu0 %1430  ;;  %v4472_v53 = vld [vmem:[%s5113_s15 + $0x3a1] sm:$0xff] }
 0x204   : > { %v2390_v22 = vsel %vm2323_vm1, %v2261_v51, %v1431_v33  ;;  %v2391_v46 = vsel %vm2323_vm1, %v2262_v26, %v1433_v25  ;;  %v2329_v26 = vsel %vm2323_vm1, %v2200_v27, %v5804_v45  ;;  %v4408_v45 = vld [vmem:[%s5113_s15 + $0x121] sm:$0xff] }
 0x205   : > { %1980 = vrot.lane.b32.xlu1 %v4468_v23, %s5082_s6  ;;  %1852 = vrot.lane.b32.xlu0 %v4404_v48, %s5082_s6  ;;  %v4405_v23 = vld [vmem:[%s5113_s15 + $0x101] sm:$0xff]  ;;  %v2327_v48 = vsel %vm2323_vm1, %v2198_v52, %v5798_v49  ;;  %v4406_v49 = vld [vmem:[%s5113_s15 + $0x109] sm:$0xff] }
 0x206   : > { %v4348_v27 = vld [vmem:[%s5113_s15 + $0x3c8] sm:$0xff] }
 0x207   : > { %v1943_v41 = vpop.permute.xlu1 %1942  ;;  %v1815_v54 = vpop.permute.xlu0 %1814 }
 0x208   : > { %v2519_v60 = vsel %vm2452_vm2, %v2390_v22, %v1943_v41  ;;  %v2455_v28 = vsel %vm2452_vm2, %v2326_v20, %v1815_v54  ;;  %v2328_v20 = vsel %vm2323_vm1, %v2199_v63, %v5806_v15  ;;  %v4471_v15 = vld [vmem:[%s5113_s15 + $0x399] sm:$0xff] }
 0x209   : > { %1472 = vrot.lane.b32.xlu1 %v6126_v6, %s5081_s17  ;;  %1470 = vrot.lane.b32.xlu0 %v6129_v1, %s5081_s17 }
 0x20a   : > { %4796 = vmatprep.mubr.msk.f32.mxu0 %vm2589_vm3, %v2455_v28  ;;  %4892 = vmatprep.mubr.msk.f32.mxu1 %vm2589_vm3, %v2519_v60  ;;  %v6168_v60 = vld [vmem:[%s5113_s15 + $0x3a0] sm:$0xff]  ;;  %v6171_v28 = vld [vmem:[%s5113_s15 + $0x398] sm:$0xff] }
 0x20b   : > { %v1945_v29 = vpop.permute.xlu1 %1944  ;;  %v1817_v33 = vpop.permute.xlu0 %1816 }
 0x20c   : > { %v2520_v0 = vsel %vm2452_vm2, %v2391_v46, %v1945_v29  ;;  %v2456_v61 = vsel %vm2452_vm2, %v2327_v48, %v1817_v33  ;;  %v2201_v29 = vsel %vm2194_vm0, %v5533_v19, %v5259_v9  ;;  %v2265_v33 = vsel %vm2194_vm0, %v5812_v38, %v5513_v35  ;;  %v4473_v35 = vld [vmem:[%s5113_s15 + $0x3a9] sm:$0xff] }
 0x20d   : > { %1982 = vrot.lane.b32.xlu1 %v4469_v58, %s5082_s6  ;;  %1854 = vrot.lane.b32.xlu0 %v4405_v23, %s5082_s6  ;;  %v2202_v9 = vsel %vm2194_vm0, %v5530_v18, %v5257_v8  ;;  %v2266_v19 = vsel %vm2194_vm0, %v5809_v40, %v5511_v11  ;;  %v4409_v38 = vld [vmem:[%s5113_s15 + $0x129] sm:$0xff]  ;;  %v4474_v11 = vld [vmem:[%s5113_s15 + $0x3b1] sm:$0xff] }
 0x20e   : > { %4797 = vmatmul.mubr.msk.f32.gmra.mrb[2].mxu0 %vm2589_vm3, %v2456_v61  ;;  %4893 = vmatmul.mubr.msk.f32.gmra.mrb[2].mxu1 %vm2589_vm3, %v2520_v0  ;;  %v4346_v0 = vld [vmem:[%s5113_s15 + $0x3b0] sm:$0xff]  ;;  %v4345_v61 = vld [vmem:[%s5113_s15 + $0x3a8] sm:$0xff] }
 0x20f   : > { %v1437_v51 = vpop.permute.xlu1 %1436  ;;  %v1435_v25 = vpop.permute.xlu0 %1434 }
 0x210   : > { %v2392_v22 = vsel %vm2323_vm1, %v2263_v14, %v1435_v25  ;;  %v2393_v58 = vsel %vm2323_vm1, %v2264_v43, %v1437_v51  ;;  %v4347_v43 = vld [vmem:[%s5113_s15 + $0x3c0] sm:$0xff] }
 0x211   : > { %1984 = vrot.lane.b32.xlu1 %v4470_v42, %s5082_s6  ;;  %1856 = vrot.lane.b32.xlu0 %v4406_v49, %s5082_s6  ;;  %v2330_v42 = vsel %vm2323_vm1, %v2201_v29, %v5822_v31  ;;  %v2331_v31 = vsel %vm2323_vm1, %v2202_v9, %v5820_v56  ;;  %v4410_v56 = vld [vmem:[%s5113_s15 + $0x131] sm:$0xff]  ;;  %v5022_v29 = vld [vmem:[%s5113_s15 + $0x60] sm:$0xff] }
 0x213   : > { %v1947_v41 = vpop.permute.xlu1 %1946  ;;  %v1819_v54 = vpop.permute.xlu0 %1818 }
 0x214   : > { %v2521_v52 = vsel %vm2452_vm2, %v2392_v22, %v1947_v41  ;;  %v2457_v5 = vsel %vm2452_vm2, %v2328_v20, %v1819_v54 }
 0x215   : > { %1476 = vrot.lane.b32.xlu1 %v6168_v60, %s5081_s17  ;;  %1474 = vrot.lane.b32.xlu0 %v6171_v28, %s5081_s17 }
 0x216   : > { %4799 = vmatprep.mubr.msk.f32.mxu0 %vm2589_vm3, %v2457_v5  ;;  %4895 = vmatprep.mubr.msk.f32.mxu1 %vm2589_vm3, %v2521_v52  ;;  %v2203_v52 = vsel %vm2194_vm0, %v5545_v55, %v5267_v13  ;;  %v2267_v5 = vsel %vm2194_vm0, %v5842_v57, %v5527_v59  ;;  %v5021_v13 = vld [vmem:[%s5113_s15 + $0x58] sm:$0xff]  ;;  %v4475_v59 = vld [vmem:[%s5113_s15 + $0x3c1] sm:$0xff] }
 0x217   : > { %v1949_v23 = vpop.permute.xlu1 %1948  ;;  %v1821_v4 = vpop.permute.xlu0 %1820  ;;  %v2204_v55 = vsel %vm2194_vm0, %v5021_v13, %v5265_v12  ;;  %v4411_v57 = vld [vmem:[%s5113_s15 + $0x141] sm:$0xff]  ;;  %v7635_v13 = vld [vmem:[#allocation53_spill] sm:$0xff] }
 0x218   : > { %v2522_v10 = vsel %vm2452_vm2, %v2393_v58, %v1949_v23  ;;  %v2458_v34 = vsel %vm2452_vm2, %v2329_v26, %v1821_v4 }
 0x219   : > { %1986 = vrot.lane.b32.xlu1 %v4471_v15, %s5082_s6  ;;  %1858 = vrot.lane.b32.xlu0 %v4407_v44, %s5082_s6  ;;  %v2332_v15 = vsel %vm2323_vm1, %v2203_v52, %v5830_v62  ;;  %v2268_v62 = vsel %vm2194_vm0, %v5839_v32, %v5525_v50  ;;  %v4412_v50 = vld [vmem:[%s5113_s15 + $0x149] sm:$0xff] }
 0x21a   : > { %4800 = vmatmul.mubr.msk.f32.gmra.mrb[4].mxu0 %vm2589_vm3, %v2458_v34  ;;  %4896 = vmatmul.mubr.msk.f32.gmra.mrb[4].mxu1 %vm2589_vm3, %v2522_v10  ;;  %v2333_v10 = vsel %vm2323_vm1, %v2204_v55, %v5828_v36  ;;  %v4476_v36 = vld [vmem:[%s5113_s15 + $0x3c9] sm:$0xff]  ;;  %v7636_v55 = vld [vmem:[#allocation117_spill] sm:$0xff] }
 0x21b   : > { %v1441_v48 = vpop.permute.xlu1 %1440  ;;  %v1439_v46 = vpop.permute.xlu0 %1438  ;;  %v4351_v52 = vld [vmem:[%s5113_s15 + $0x3e8] sm:$0xff] }
 0x21c   : > { %v2394_v49 = vsel %vm2323_vm1, %v2265_v33, %v1439_v46  ;;  %v2395_v20 = vsel %vm2323_vm1, %v2266_v19, %v1441_v48  ;;  %v2205_v33 = vsel %vm2194_vm0, %v5022_v29, %v5275_v17  ;;  %v5023_v17 = vld [vmem:[%s5113_s15 + $0x68] sm:$0xff]  ;;  %v4413_v19 = vld [vmem:[%s5113_s15 + $0x151] sm:$0xff] }
 0x21d   : > { %1988 = vrot.lane.b32.xlu1 %v4472_v53, %s5082_s6  ;;  %1860 = vrot.lane.b32.xlu0 %v4408_v45, %s5082_s6 }
 0x21f   : > { %v1951_v51 = vpop.permute.xlu1 %1950  ;;  %v1823_v25 = vpop.permute.xlu0 %1822 }
 0x220   : > { %v2523_v63 = vsel %vm2452_vm2, %v2394_v49, %v1951_v51  ;;  %v2459_v14 = vsel %vm2452_vm2, %v2330_v42, %v1823_v25  ;;  %v4349_v42 = vld [vmem:[%s5113_s15 + $0x3d0] sm:$0xff]  ;;  %v2334_v49 = vsel %vm2323_vm1, %v2205_v33, %v5836_v39  ;;  %v2270_v39 = vsel %vm2194_vm0, %v5869_v24, %v5539_v2  ;;  %v4414_v2 = vld [vmem:[%s5113_s15 + $0x159] sm:$0xff]  ;;  %v5026_v33 = vld [vmem:[%s5113_s15 + $0x88] sm:$0xff] }
 0x221   : > { %1480 = vrot.lane.b32.xlu1 %v4346_v0, %s5081_s17  ;;  %1478 = vrot.lane.b32.xlu0 %v4345_v61, %s5081_s17  ;;  %v2269_v0 = vsel %vm2194_vm0, %v5872_v7, %v5541_v3  ;;  %v4350_v61 = vld [vmem:[%s5113_s15 + $0x3d8] sm:$0xff]  ;;  %v2206_v3 = vsel %vm2194_vm0, %v5023_v17, %v5273_v16 }
 0x222   : > { %4802 = vmatprep.mubr.msk.f32.mxu0 %vm2589_vm3, %v2459_v14  ;;  %4898 = vmatprep.mubr.msk.f32.mxu1 %vm2589_vm3, %v2523_v63  ;;  %v4477_v7 = vld [vmem:[%s5113_s15 + $0x3d1] sm:$0xff] }
 0x223   : > { %v1953_v22 = vpop.permute.xlu1 %1952  ;;  %v1825_v8 = vpop.permute.xlu0 %1824 }
 0x224   : > { %v2524_v18 = vsel %vm2452_vm2, %v2395_v20, %v1953_v22  ;;  %v2460_v40 = vsel %vm2452_vm2, %v2331_v31, %v1825_v8 }
 0x225   : > { %1990 = vrot.lane.b32.xlu1 %v4473_v35, %s5082_s6  ;;  %1862 = vrot.lane.b32.xlu0 %v4409_v38, %s5082_s6  ;;  %v2335_v35 = vsel %vm2323_vm1, %v2206_v3, %v5834_v37  ;;  %v4478_v37 = vld [vmem:[%s5113_s15 + $0x3d9] sm:$0xff] }
 0x226   : > { %4803 = vmatmul.mubr.msk.f32.gmra.mrb[6].mxu0 %vm2589_vm3, %v2460_v40  ;;  %4899 = vmatmul.mubr.msk.f32.gmra.mrb[6].mxu1 %vm2589_vm3, %v2524_v18  ;;  %v5024_v18 = vld [vmem:[%s5113_s15 + $0x78] sm:$0xff] }
 0x227   : > { %v1445_v41 = vpop.permute.xlu1 %1444  ;;  %v1443_v54 = vpop.permute.xlu0 %1442  ;;  %v2207_v40 = vsel %vm2194_vm0, %v5024_v18, %v5283_v21  ;;  %v5025_v21 = vld [vmem:[%s5113_s15 + $0x80] sm:$0xff] }
 0x228   : > { %v2396_v44 = vsel %vm2323_vm1, %v2267_v5, %v1443_v54  ;;  %v2397_v34 = vsel %vm2323_vm1, %v2268_v62, %v1445_v41  ;;  %v4352_v54 = vld [vmem:[%s5113_s15 + $0x3f0] sm:$0xff]  ;;  %v7633_v5 = vld [vmem:[#allocation106_spill] sm:$0xff]  ;;  %v2272_v62 = vsel %vm2194_vm0, %v7636_v55, %v7635_v13 }
 0x229   : > { %1992 = vrot.lane.b32.xlu1 %v4474_v11, %s5082_s6  ;;  %1864 = vrot.lane.b32.xlu0 %v4410_v56, %s5082_s6  ;;  %v7631_v11 = vld [vmem:[#allocation54_spill] sm:$0xff] }
 0x22a   : > { %v7632_v56 = vld [vmem:[#allocation118_spill] sm:$0xff] }
 0x22b   : > { %v1955_v26 = vpop.permute.xlu1 %1954  ;;  %v1827_v58 = vpop.permute.xlu0 %1826  ;;  %v2271_v41 = vsel %vm2194_vm0, %v7632_v56, %v7631_v11  ;;  %v7649_v13 = vld [vmem:[#allocation110_spill] sm:$0xff] }
 0x22c   : > { %v2525_v23 = vsel %vm2452_vm2, %v2396_v44, %v1955_v26  ;;  %v2461_v4 = vsel %vm2452_vm2, %v2332_v15, %v1827_v58 }
 0x22d   : > { %1484 = vrot.lane.b32.xlu1 %v4348_v27, %s5081_s17  ;;  %1482 = vrot.lane.b32.xlu0 %v4347_v43, %s5081_s17  ;;  %v2336_v27 = vsel %vm2323_vm1, %v2207_v40, %v7633_v5 }
 0x22e   : > { %4805 = vmatprep.mubr.msk.f32.mxu0 %vm2589_vm3, %v2461_v4  ;;  %4901 = vmatprep.mubr.msk.f32.mxu1 %vm2589_vm3, %v2525_v23  ;;  %v7634_v23 = vld [vmem:[#allocation2_spill] sm:$0xff] }
 0x22f   : > { %v1957_v53 = vpop.permute.xlu1 %1956  ;;  %v1829_v12 = vpop.permute.xlu0 %1828  ;;  %v2208_v4 = vsel %vm2194_vm0, %v5025_v21, %v7634_v23  ;;  %v4356_v23 = vld [vmem:[%s5113_s15 + $0x418] sm:$0xff] }
 0x230   : > { %v2526_v45 = vsel %vm2452_vm2, %v2397_v34, %v1957_v53  ;;  %v2462_v32 = vsel %vm2452_vm2, %v2333_v10, %v1829_v12  ;;  %v7637_v10 = vld [vmem:[#allocation105_spill] sm:$0xff] }
 0x231   : > { %1994 = vrot.lane.b32.xlu1 %v4475_v59, %s5082_s6  ;;  %1866 = vrot.lane.b32.xlu0 %v4411_v57, %s5082_s6  ;;  %v4479_v59 = vld [vmem:[%s5113_s15 + $0x3e9] sm:$0xff]  ;;  %v2337_v34 = vsel %vm2323_vm1, %v2208_v4, %v7637_v10 }
 0x232   : > { %4806 = vmatmul.mubr.msk.f32.gmra.mrb[8].mxu0 %vm2589_vm3, %v2462_v32  ;;  %4902 = vmatmul.mubr.msk.f32.gmra.mrb[8].mxu1 %vm2589_vm3, %v2526_v45  ;;  %v4415_v57 = vld [vmem:[%s5113_s15 + $0x169] sm:$0xff] }
 0x233   : > { %v1449_v48 = vpop.permute.xlu1 %1448  ;;  %v1447_v46 = vpop.permute.xlu0 %1446  ;;  %v4355_v4 = vld [vmem:[%s5113_s15 + $0x410] sm:$0xff] }
 0x234   : > { %v2398_v51 = vsel %vm2323_vm1, %v2269_v0, %v1447_v46  ;;  %v2399_v38 = vsel %vm2323_vm1, %v2270_v39, %v1449_v48  ;;  %v4416_v48 = vld [vmem:[%s5113_s15 + $0x171] sm:$0xff] }
 0x235   : > { %1996 = vrot.lane.b32.xlu1 %v4476_v36, %s5082_s6  ;;  %1868 = vrot.lane.b32.xlu0 %v4412_v50, %s5082_s6  ;;  %v4480_v50 = vld [vmem:[%s5113_s15 + $0x3f1] sm:$0xff] }
 0x236   : > { %v7638_v0 = vld [vmem:[#allocation4_spill] sm:$0xff] }
 0x237   : > { %v1959_v25 = vpop.permute.xlu1 %1958  ;;  %v1831_v63 = vpop.permute.xlu0 %1830 }
 0x238   : > { %v2527_v14 = vsel %vm2452_vm2, %v2398_v51, %v1959_v25  ;;  %v2463_v9 = vsel %vm2452_vm2, %v2334_v49, %v1831_v63  ;;  %v7640_v49 = vld [vmem:[#allocation126_spill] sm:$0xff]  ;;  %v4353_v63 = vld [vmem:[%s5113_s15 + $0x3f8] sm:$0xff] }
 0x239   : > { %1488 = vrot.lane.b32.xlu1 %v4350_v61, %s5081_s17  ;;  %1486 = vrot.lane.b32.xlu0 %v4349_v42, %s5081_s17  ;;  %v2209_v61 = vsel %vm2194_vm0, %v5026_v33, %v7638_v0  ;;  %v7639_v42 = vld [vmem:[#allocation56_spill] sm:$0xff]  ;;  %v4354_v25 = vld [vmem:[%s5113_s15 + $0x400] sm:$0xff] }
 0x23a   : > { %4808 = vmatprep.mubr.msk.f32.mxu0 %vm2589_vm3, %v2463_v9  ;;  %4904 = vmatprep.mubr.msk.f32.mxu1 %vm2589_vm3, %v2527_v14  ;;  %v2273_v51 = vsel %vm2194_vm0, %v7640_v49, %v7639_v42  ;;  %v7641_v14 = vld [vmem:[#allocation108_spill] sm:$0xff] }
 0x23b   : > { %v1961_v31 = vpop.permute.xlu1 %1960  ;;  %v1833_v16 = vpop.permute.xlu0 %1832  ;;  %v2338_v9 = vsel %vm2323_vm1, %v2209_v61, %v7641_v14 }
 0x23c   : > { %v2528_v20 = vsel %vm2452_vm2, %v2399_v38, %v1961_v31  ;;  %v2464_v24 = vsel %vm2452_vm2, %v2335_v35, %v1833_v16  ;;  %v5027_v35 = vld [vmem:[%s5113_s15 + $0x90] sm:$0xff]  ;;  %v7642_v38 = vld [vmem:[#allocation3_spill] sm:$0xff] }
 0x23d   : > { %1998 = vrot.lane.b32.xlu1 %v4477_v7, %s5082_s6  ;;  %1870 = vrot.lane.b32.xlu0 %v4413_v19, %s5082_s6  ;;  %v2210_v31 = vsel %vm2194_vm0, %v5027_v35, %v7642_v38  ;;  %v7643_v16 = vld [vmem:[#allocation55_spill] sm:$0xff] }
 0x23e   : > { %4809 = vmatmul.mubr.msk.f32.gmra.mrb[10].mxu0 %vm2589_vm3, %v2464_v24  ;;  %4905 = vmatmul.mubr.msk.f32.gmra.mrb[10].mxu1 %vm2589_vm3, %v2528_v20  ;;  %v7644_v20 = vld [vmem:[#allocation125_spill] sm:$0xff]  ;;  %v4358_v38 = vld [vmem:[%s5113_s15 + $0x428] sm:$0xff] }
 0x23f   : > { %v1453_v22 = vpop.permute.xlu1 %1452  ;;  %v1451_v8 = vpop.permute.xlu0 %1450  ;;  %v2274_v24 = vsel %vm2194_vm0, %v7644_v20, %v7643_v16  ;;  %v7657_v16 = vld [vmem:[#allocation112_spill] sm:$0xff] }
 0x240   : > { %v2400_v43 = vsel %vm2323_vm1, %v2271_v41, %v1451_v8  ;;  %v2401_v53 = vsel %vm2323_vm1, %v2272_v62, %v1453_v22  ;;  %v7645_v22 = vld [vmem:[#allocation107_spill] sm:$0xff] }
 0x241   : > { %2000 = vrot.lane.b32.xlu1 %v4478_v37, %s5082_s6  ;;  %1872 = vrot.lane.b32.xlu0 %v4414_v2, %s5082_s6  ;;  %v4481_v37 = vld [vmem:[%s5113_s15 + $0x3f9] sm:$0xff]  ;;  %v2339_v8 = vsel %vm2323_vm1, %v2210_v31, %v7645_v22 }
 0x242   : > { %v4417_v2 = vld [vmem:[%s5113_s15 + $0x179] sm:$0xff] }
 0x243   : > { %v1963_v15 = vpop.permute.xlu1 %1962  ;;  %v1835_v44 = vpop.permute.xlu0 %1834  ;;  %v4357_v31 = vld [vmem:[%s5113_s15 + $0x420] sm:$0xff] }
 0x244   : > { %v2529_v26 = vsel %vm2452_vm2, %v2400_v43, %v1963_v15  ;;  %v2465_v58 = vsel %vm2452_vm2, %v2336_v27, %v1835_v44  ;;  %v5028_v43 = vld [vmem:[%s5113_s15 + $0xa0] sm:$0xff] }
 0x245   : > { %1492 = vrot.lane.b32.xlu1 %v4352_v54, %s5081_s17  ;;  %1490 = vrot.lane.b32.xlu0 %v4351_v52, %s5081_s17  ;;  %v4482_v54 = vld [vmem:[%s5113_s15 + $0x401] sm:$0xff] }
 0x246   : > { %4811 = vmatprep.mubr.msk.f32.mxu0 %vm2589_vm3, %v2465_v58  ;;  %4907 = vmatprep.mubr.msk.f32.mxu1 %vm2589_vm3, %v2529_v26  ;;  %v4418_v52 = vld [vmem:[%s5113_s15 + $0x181] sm:$0xff] }
 0x247   : > { %v1965_v12 = vpop.permute.xlu1 %1964  ;;  %v1837_v45 = vpop.permute.xlu0 %1836  ;;  %v7646_v15 = vld [vmem:[#allocation6_spill] sm:$0xff] }
 0x248   : > { %v2530_v32 = vsel %vm2452_vm2, %v2401_v53, %v1965_v12  ;;  %v2466_v36 = vsel %vm2452_vm2, %v2337_v34, %v1837_v45  ;;  %v2211_v44 = vsel %vm2194_vm0, %v5028_v43, %v7646_v15  ;;  %v7647_v26 = vld [vmem:[#allocation58_spill] sm:$0xff]  ;;  %v5029_v53 = vld [vmem:[%s5113_s15 + $0xa8] sm:$0xff]  ;;  %v7650_v12 = vld [vmem:[#allocation5_spill] sm:$0xff] }
 0x249   : > { %2002 = vrot.lane.b32.xlu1 %v4479_v59, %s5082_s6  ;;  %1874 = vrot.lane.b32.xlu0 %v4415_v57, %s5082_s6  ;;  %v7648_v58 = vld [vmem:[#allocation134_spill] sm:$0xff]  ;;  %v2340_v55 = vsel %vm2323_vm1, %v2211_v44, %v7649_v13  ;;  %v2212_v45 = vsel %vm2194_vm0, %v5029_v53, %v7650_v12 }
 0x24a   : > { %4812 = vmatmul.mubr.msk.f32.gmra.mrb[12].mxu0 %vm2589_vm3, %v2466_v36  ;;  %4908 = vmatmul.mubr.msk.f32.gmra.mrb[12].mxu1 %vm2589_vm3, %v2530_v32  ;;  %v2275_v21 = vsel %vm2194_vm0, %v7648_v58, %v7647_v26  ;;  %v7651_v32 = vld [vmem:[#allocation57_spill] sm:$0xff]  ;;  %v4360_v12 = vld [vmem:[%s5113_s15 + $0x440] sm:$0xff] }
 0x24b   : > { %v1457_v46 = vpop.permute.xlu1 %1456  ;;  %v1455_v29 = vpop.permute.xlu0 %1454  ;;  %v7652_v36 = vld [vmem:[#allocation133_spill] sm:$0xff] }
 0x24c   : > { %v2402_v17 = vsel %vm2323_vm1, %v2273_v51, %v1455_v29  ;;  %v2403_v18 = vsel %vm2323_vm1, %v2274_v24, %v1457_v46  ;;  %v4419_v46 = vld [vmem:[%s5113_s15 + $0x191] sm:$0xff] }
 0x24d   : > { %2004 = vrot.lane.b32.xlu1 %v4480_v50, %s5082_s6  ;;  %1876 = vrot.lane.b32.xlu0 %v4416_v48, %s5082_s6  ;;  %v2276_v50 = vsel %vm2194_vm0, %v7652_v36, %v7651_v32  ;;  %v4483_v48 = vld [vmem:[%s5113_s15 + $0x411] sm:$0xff]  ;;  %v7665_v32 = vld [vmem:[#allocation114_spill] sm:$0xff] }
 0x24e   : > { %v7653_v29 = vld [vmem:[#allocation109_spill] sm:$0xff] }
 0x24f   : > { %v1967_v3 = vpop.permute.xlu1 %1966  ;;  %v1839_v39 = vpop.permute.xlu0 %1838  ;;  %v2341_v33 = vsel %vm2323_vm1, %v2212_v45, %v7653_v29  ;;  %v4359_v45 = vld [vmem:[%s5113_s15 + $0x438] sm:$0xff] }
 0x250   : > { %v2531_v7 = vsel %vm2452_vm2, %v2402_v17, %v1967_v3  ;;  %v2467_v19 = vsel %vm2452_vm2, %v2338_v9, %v1839_v39  ;;  %v5030_v17 = vld [vmem:[%s5113_s15 + $0xb0] sm:$0xff] }
 0x251   : > { %1496 = vrot.lane.b32.xlu1 %v4354_v25, %s5081_s17  ;;  %1494 = vrot.lane.b32.xlu0 %v4353_v63, %s5081_s17  ;;  %v4484_v25 = vld [vmem:[%s5113_s15 + $0x419] sm:$0xff]  ;;  %v7654_v3 = vld [vmem:[#allocation8_spill] sm:$0xff] }
 0x252   : > { %4814 = vmatprep.mubr.msk.f32.mxu0 %vm2589_vm3, %v2467_v19  ;;  %4910 = vmatprep.mubr.msk.f32.mxu1 %vm2589_vm3, %v2531_v7  ;;  %v4420_v63 = vld [vmem:[%s5113_s15 + $0x199] sm:$0xff]  ;;  %v2213_v39 = vsel %vm2194_vm0, %v5030_v17, %v7654_v3  ;;  %v7655_v7 = vld [vmem:[#allocation60_spill] sm:$0xff] }
 0x253   : > { %v1969_v40 = vpop.permute.xlu1 %1968  ;;  %v1841_v11 = vpop.permute.xlu0 %1840  ;;  %v7656_v19 = vld [vmem:[#allocation142_spill] sm:$0xff]  ;;  %v2342_v20 = vsel %vm2323_vm1, %v2213_v39, %v7657_v16 }
 0x254   : > { %v2532_v56 = vsel %vm2452_vm2, %v2403_v18, %v1969_v40  ;;  %v2468_v41 = vsel %vm2452_vm2, %v2339_v8, %v1841_v11  ;;  %v2277_v35 = vsel %vm2194_vm0, %v7656_v19, %v7655_v7  ;;  %v5031_v18 = vld [vmem:[%s5113_s15 + $0xb8] sm:$0xff]  ;;  %v7658_v40 = vld [vmem:[#allocation7_spill] sm:$0xff] }
 0x255   : > { %2006 = vrot.lane.b32.xlu1 %v4481_v37, %s5082_s6  ;;  %1878 = vrot.lane.b32.xlu0 %v4417_v2, %s5082_s6  ;;  %v2214_v11 = vsel %vm2194_vm0, %v5031_v18, %v7658_v40  ;;  %v4362_v40 = vld [vmem:[%s5113_s15 + $0x450] sm:$0xff] }
 0x256   : > { %4815 = vmatmul.mubr.msk.f32.gmra.mrb[14].mxu0 %vm2589_vm3, %v2468_v41  ;;  %4911 = vmatmul.mubr.msk.f32.gmra.mrb[14].mxu1 %vm2589_vm3, %v2532_v56  ;;  %v7659_v56 = vld [vmem:[#allocation59_spill] sm:$0xff]  ;;  %v7660_v41 = vld [vmem:[#allocation141_spill] sm:$0xff] }
 0x257   : > { %v1461_v5 = vpop.permute.xlu1 %1460  ;;  %v1459_v27 = vpop.permute.xlu0 %1458 }
 0x258   : > { %v2404_v62 = vsel %vm2323_vm1, %v2275_v21, %v1459_v27  ;;  %v2405_v0 = vsel %vm2323_vm1, %v2276_v50, %v1461_v5  ;;  %v4421_v5 = vld [vmem:[%s5113_s15 + $0x1a1] sm:$0xff] }
 0x259   : > { %2008 = vrot.lane.b32.xlu1 %v4482_v54, %s5082_s6  ;;  %1880 = vrot.lane.b32.xlu0 %v4418_v52, %s5082_s6  ;;  %v2278_v54 = vsel %vm2194_vm0, %v7660_v41, %v7659_v56  ;;  %v4485_v52 = vld [vmem:[%s5113_s15 + $0x421] sm:$0xff]  ;;  %v7673_v56 = vld [vmem:[#allocation116_spill] sm:$0xff] }
 0x25a   : > { %v7661_v27 = vld [vmem:[#allocation111_spill] sm:$0xff] }
 0x25b   : > { %v1971_v59 = vpop.permute.xlu1 %1970  ;;  %v1843_v57 = vpop.permute.xlu0 %1842  ;;  %v2343_v43 = vsel %vm2323_vm1, %v2214_v11, %v7661_v27  ;;  %v4361_v11 = vld [vmem:[%s5113_s15 + $0x448] sm:$0xff] }
 0x25c   : > { %v2533_v10 = vsel %vm2452_vm2, %v2404_v62, %v1971_v59  ;;  %v2469_v34 = vsel %vm2452_vm2, %v2340_v55, %v1843_v57  ;;  %v5032_v62 = vld [vmem:[%s5113_s15 + $0xc8] sm:$0xff]  ;;  %v7662_v59 = vld [vmem:[#allocation10_spill] sm:$0xff] }
 0x25d   : > { %1500 = vrot.lane.b32.xlu1 %v4356_v23, %s5081_s17  ;;  %1498 = vrot.lane.b32.xlu0 %v4355_v4, %s5081_s17  ;;  %v4486_v23 = vld [vmem:[%s5113_s15 + $0x429] sm:$0xff]  ;;  %v2215_v57 = vsel %vm2194_vm0, %v5032_v62, %v7662_v59 }
 0x25e   : > { %4817 = vmatprep.mubr.msk.f32.mxu0 %vm2589_vm3, %v2469_v34  ;;  %4913 = vmatprep.mubr.msk.f32.mxu1 %vm2589_vm3, %v2533_v10  ;;  %v4422_v4 = vld [vmem:[%s5113_s15 + $0x1a9] sm:$0xff]  ;;  %v7663_v10 = vld [vmem:[#allocation62_spill] sm:$0xff]  ;;  %v2344_v36 = vsel %vm2323_vm1, %v2215_v57, %v7665_v32 }
 0x25f   : > { %v1973_v61 = vpop.permute.xlu1 %1972  ;;  %v1845_v42 = vpop.permute.xlu0 %1844  ;;  %v7664_v34 = vld [vmem:[#allocation150_spill] sm:$0xff] }
 0x260   : > { %v2534_v49 = vsel %vm2452_vm2, %v2405_v0, %v1973_v61  ;;  %v2470_v51 = vsel %vm2452_vm2, %v2341_v33, %v1845_v42  ;;  %v2279_v53 = vsel %vm2194_vm0, %v7664_v34, %v7663_v10  ;;  %v5033_v0 = vld [vmem:[%s5113_s15 + $0xd0] sm:$0xff]  ;;  %v7666_v61 = vld [vmem:[#allocation9_spill] sm:$0xff] }
 0x261   : > { %2010 = vrot.lane.b32.xlu1 %v4483_v48, %s5082_s6  ;;  %1882 = vrot.lane.b32.xlu0 %v4419_v46, %s5082_s6  ;;  %v2216_v42 = vsel %vm2194_vm0, %v5033_v0, %v7666_v61  ;;  %v4364_v0 = vld [vmem:[%s5113_s15 + $0x468] sm:$0xff]  ;;  %v4363_v61 = vld [vmem:[%s5113_s15 + $0x460] sm:$0xff] }
 0x262   : > { %4818 = vmatmul.mubr.msk.f32.gmra.mrb[16].mxu0 %vm2589_vm3, %v2470_v51  ;;  %4914 = vmatmul.mubr.msk.f32.gmra.mrb[16].mxu1 %vm2589_vm3, %v2534_v49  ;;  %v7667_v49 = vld [vmem:[#allocation61_spill] sm:$0xff] }
 0x263   : > { %v1465_v14 = vpop.permute.xlu1 %1464  ;;  %v1463_v9 = vpop.permute.xlu0 %1462  ;;  %v7668_v51 = vld [vmem:[#allocation149_spill] sm:$0xff] }
 0x264   : > { %v2406_v24 = vsel %vm2323_vm1, %v2277_v35, %v1463_v9  ;;  %v2407_v15 = vsel %vm2323_vm1, %v2278_v54, %v1465_v14  ;;  %v4423_v14 = vld [vmem:[%s5113_s15 + $0x1b9] sm:$0xff] }
 0x265   : > { %2012 = vrot.lane.b32.xlu1 %v4484_v25, %s5082_s6  ;;  %1884 = vrot.lane.b32.xlu0 %v4420_v63, %s5082_s6  ;;  %v2280_v25 = vsel %vm2194_vm0, %v7668_v51, %v7667_v49  ;;  %v4487_v63 = vld [vmem:[%s5113_s15 + $0x439] sm:$0xff] }
 0x266   : > { %v7669_v9 = vld [vmem:[#allocation113_spill] sm:$0xff] }
 0x267   : > { %v1975_v37 = vpop.permute.xlu1 %1974  ;;  %v1847_v2 = vpop.permute.xlu0 %1846  ;;  %v2345_v17 = vsel %vm2323_vm1, %v2216_v42, %v7669_v9  ;;  %v7680_v42 = vld [vmem:[#allocation120_spill] sm:$0xff] }
 0x268   : > { %v2535_v22 = vsel %vm2452_vm2, %v2406_v24, %v1975_v37  ;;  %v2471_v8 = vsel %vm2452_vm2, %v2342_v20, %v1847_v2  ;;  %v5034_v24 = vld [vmem:[%s5113_s15 + $0xd8] sm:$0xff]  ;;  %v7670_v37 = vld [vmem:[#allocation12_spill] sm:$0xff] }
 0x269   : > { %1504 = vrot.lane.b32.xlu1 %v4358_v38, %s5081_s17  ;;  %1502 = vrot.lane.b32.xlu0 %v4357_v31, %s5081_s17  ;;  %v4488_v38 = vld [vmem:[%s5113_s15 + $0x441] sm:$0xff]  ;;  %v2217_v2 = vsel %vm2194_vm0, %v5034_v24, %v7670_v37 }
 0x26a   : > { %4820 = vmatprep.mubr.msk.f32.mxu0 %vm2589_vm3, %v2471_v8  ;;  %4916 = vmatprep.mubr.msk.f32.mxu1 %vm2589_vm3, %v2535_v22  ;;  %v4424_v31 = vld [vmem:[%s5113_s15 + $0x1c1] sm:$0xff]  ;;  %v7671_v22 = vld [vmem:[#allocation64_spill] sm:$0xff]  ;;  %v2346_v41 = vsel %vm2323_vm1, %v2217_v2, %v7673_v56 }
 0x26b   : > { %v1977_v44 = vpop.permute.xlu1 %1976  ;;  %v1849_v26 = vpop.permute.xlu0 %1848  ;;  %v7672_v8 = vld [vmem:[#allocation158_spill] sm:$0xff]  ;;  %v4492_v2 = vld [vmem:[%s5113_s15 + $0x469] sm:$0xff] }
 0x26c   : > { %v2536_v58 = vsel %vm2452_vm2, %v2407_v15, %v1977_v44  ;;  %v2472_v21 = vsel %vm2452_vm2, %v2343_v43, %v1849_v26  ;;  %v2281_v18 = vsel %vm2194_vm0, %v7672_v8, %v7671_v22  ;;  %v5035_v15 = vld [vmem:[%s5113_s15 + $0xe0] sm:$0xff]  ;;  %v7674_v44 = vld [vmem:[#allocation11_spill] sm:$0xff] }
 0x26d   : > { %2014 = vrot.lane.b32.xlu1 %v4485_v52, %s5082_s6  ;;  %1886 = vrot.lane.b32.xlu0 %v4421_v5, %s5082_s6  ;;  %v2218_v26 = vsel %vm2194_vm0, %v5035_v15, %v7674_v44  ;;  %v4428_v22 = vld [vmem:[%s5113_s15 + $0x1e9] sm:$0xff] }
 0x26e   : > { %4821 = vmatmul.mubr.msk.f32.gmra.mrb[18].mxu0 %vm2589_vm3, %v2472_v21  ;;  %4917 = vmatmul.mubr.msk.f32.gmra.mrb[18].mxu1 %vm2589_vm3, %v2536_v58  ;;  %v7675_v58 = vld [vmem:[#allocation63_spill] sm:$0xff]  ;;  %v7676_v21 = vld [vmem:[#allocation157_spill] sm:$0xff] }
 0x26f   : > { %v1469_v13 = vpop.permute.xlu1 %1468  ;;  %v1467_v55 = vpop.permute.xlu0 %1466 }
 0x270   : > { %v2408_v50 = vsel %vm2323_vm1, %v2279_v53, %v1467_v55  ;;  %v2409_v3 = vsel %vm2323_vm1, %v2280_v25, %v1469_v13  ;;  %v4425_v13 = vld [vmem:[%s5113_s15 + $0x1c9] sm:$0xff] }
 0x271   : > { %2016 = vrot.lane.b32.xlu1 %v4486_v23, %s5082_s6  ;;  %1888 = vrot.lane.b32.xlu0 %v4422_v4, %s5082_s6  ;;  %v2282_v23 = vsel %vm2194_vm0, %v7676_v21, %v7675_v58  ;;  %v4489_v4 = vld [vmem:[%s5113_s15 + $0x449] sm:$0xff] }
 0x272   : > { %v7677_v55 = vld [vmem:[#allocation115_spill] sm:$0xff] }
 0x273   : > { %v1979_v48 = vpop.permute.xlu1 %1978  ;;  %v1851_v46 = vpop.permute.xlu0 %1850  ;;  %v2347_v62 = vsel %vm2323_vm1, %v2218_v26, %v7677_v55 }
 0x274   : > { %v2537_v29 = vsel %vm2452_vm2, %v2408_v50, %v1979_v48  ;;  %v2473_v33 = vsel %vm2452_vm2, %v2344_v36, %v1851_v46  ;;  %v5036_v50 = vld [vmem:[%s5113_s15 + $0xf0] sm:$0xff]  ;;  %v7678_v48 = vld [vmem:[#allocation14_spill] sm:$0xff] }
 0x275   : > { %1508 = vrot.lane.b32.xlu1 %v4360_v12, %s5081_s17  ;;  %1506 = vrot.lane.b32.xlu0 %v4359_v45, %s5081_s17  ;;  %v4490_v12 = vld [vmem:[%s5113_s15 + $0x451] sm:$0xff]  ;;  %v2219_v46 = vsel %vm2194_vm0, %v5036_v50, %v7678_v48 }
 0x276   : > { %4823 = vmatprep.mubr.msk.f32.mxu0 %vm2589_vm3, %v2473_v33  ;;  %4919 = vmatprep.mubr.msk.f32.mxu1 %vm2589_vm3, %v2537_v29  ;;  %v4426_v45 = vld [vmem:[%s5113_s15 + $0x1d1] sm:$0xff]  ;;  %v7679_v29 = vld [vmem:[#allocation66_spill] sm:$0xff]  ;;  %v2348_v49 = vsel %vm2323_vm1, %v2219_v46, %v7680_v42 }
 0x277   : > { %v1981_v39 = vpop.permute.xlu1 %1980  ;;  %v1853_v7 = vpop.permute.xlu0 %1852  ;;  %v2283_v33 = vsel %vm2194_vm0, %v6085_v47, %v7679_v29  ;;  %v5037_v47 = vld [vmem:[%s5113_s15 + $0xf8] sm:$0xff]  ;;  %v7690_v29 = vld [vmem:[#allocation18_spill] sm:$0xff]  ;;  %v4368_v42 = vld [vmem:[%s5113_s15 + $0x490] sm:$0xff] }
 0x278   : > { %v2538_v19 = vsel %vm2452_vm2, %v2409_v3, %v1981_v39  ;;  %v2474_v35 = vsel %vm2452_vm2, %v2345_v17, %v1853_v7  ;;  %v7681_v17 = vld [vmem:[#allocation13_spill] sm:$0xff] }
 0x279   : > { %2018 = vrot.lane.b32.xlu1 %v4487_v63, %s5082_s6  ;;  %1890 = vrot.lane.b32.xlu0 %v4423_v14, %s5082_s6  ;;  %v2220_v3 = vsel %vm2194_vm0, %v5037_v47, %v7681_v17  ;;  %v7682_v39 = vld [vmem:[#allocation65_spill] sm:$0xff] }
 0x27a   : > { %4824 = vmatmul.mubr.msk.f32.gmra.mrb[20].mxu0 %vm2589_vm3, %v2474_v35  ;;  %4920 = vmatmul.mubr.msk.f32.gmra.mrb[20].mxu1 %vm2589_vm3, %v2538_v19  ;;  %v2284_v7 = vsel %vm2194_vm0, %v6082_v30, %v7682_v39  ;;  %v4491_v19 = vld [vmem:[%s5113_s15 + $0x461] sm:$0xff]  ;;  %v5040_v46 = vld [vmem:[%s5113_s15 + $0x118] sm:$0xff] }
 0x27b   : > { %v1473_v16 = vpop.permute.xlu1 %1472  ;;  %v1471_v20 = vpop.permute.xlu0 %1470  ;;  %v4427_v35 = vld [vmem:[%s5113_s15 + $0x1e1] sm:$0xff] }
 0x27c   : > { %v2410_v54 = vsel %vm2323_vm1, %v2281_v18, %v1471_v20  ;;  %v2411_v59 = vsel %vm2323_vm1, %v2282_v23, %v1473_v16  ;;  %v7687_v23 = vld [vmem:[#allocation15_spill] sm:$0xff] }
 0x27d   : > { %2020 = vrot.lane.b32.xlu1 %v4488_v38, %s5082_s6  ;;  %1892 = vrot.lane.b32.xlu0 %v4424_v31, %s5082_s6  ;;  %v7683_v38 = vld [vmem:[#allocation119_spill] sm:$0xff] }
 0x27e   : > { %v2349_v31 = vsel %vm2323_vm1, %v2220_v3, %v7683_v38  ;;  %v7693_v3 = vld [vmem:[#allocation17_spill] sm:$0xff]  ;;  %v4431_v38 = vld [vmem:[%s5113_s15 + $0x209] sm:$0xff] }
 0x27f   : > { %v1983_v52 = vpop.permute.xlu1 %1982  ;;  %v1855_v5 = vpop.permute.xlu0 %1854 }
 0x280   : > { %v2539_v27 = vsel %vm2452_vm2, %v2410_v54, %v1983_v52  ;;  %v2475_v43 = vsel %vm2452_vm2, %v2346_v41, %v1855_v5  ;;  %v7685_v41 = vld [vmem:[#allocation68_spill] sm:$0xff]  ;;  %v4366_v52 = vld [vmem:[%s5113_s15 + $0x478] sm:$0xff] }
 0x281   : > { %1512 = vrot.lane.b32.xlu1 %v4362_v40, %s5081_s17  ;;  %1510 = vrot.lane.b32.xlu0 %v4361_v11, %s5081_s17  ;;  %v5038_v40 = vld [vmem:[%s5113_s15 + $0x100] sm:$0xff]  ;;  %v7684_v11 = vld [vmem:[#allocation16_spill] sm:$0xff]  ;;  %v2285_v54 = vsel %vm2194_vm0, %v6129_v1, %v7685_v41  ;;  %v5039_v1 = vld [vmem:[%s5113_s15 + $0x108] sm:$0xff] }
 0x282   : > { %4826 = vmatprep.mubr.msk.f32.mxu0 %vm2589_vm3, %v2475_v43  ;;  %4922 = vmatprep.mubr.msk.f32.mxu1 %vm2589_vm3, %v2539_v27  ;;  %v2221_v56 = vsel %vm2194_vm0, %v5038_v40, %v7684_v11  ;;  %v4365_v5 = vld [vmem:[%s5113_s15 + $0x470] sm:$0xff]  ;;  %v7686_v27 = vld [vmem:[#allocation122_spill] sm:$0xff]  ;;  %v5042_v11 = vld [vmem:[%s5113_s15 + $0x128] sm:$0xff] }
 0x283   : > { %v1985_v57 = vpop.permute.xlu1 %1984  ;;  %v1857_v10 = vpop.permute.xlu0 %1856  ;;  %v2350_v43 = vsel %vm2323_vm1, %v2221_v56, %v7686_v27  ;;  %v7696_v56 = vld [vmem:[#allocation20_spill] sm:$0xff]  ;;  %v4369_v27 = vld [vmem:[%s5113_s15 + $0x498] sm:$0xff] }
 0x284   : > { %v2540_v34 = vsel %vm2452_vm2, %v2411_v59, %v1985_v57  ;;  %v2476_v53 = vsel %vm2452_vm2, %v2347_v62, %v1857_v10  ;;  %v4493_v62 = vld [vmem:[%s5113_s15 + $0x471] sm:$0xff]  ;;  %v2225_v41 = vsel %vm2194_vm0, %v5042_v11, %v7696_v56  ;;  %v4436_v11 = vld [vmem:[%s5113_s15 + $0x239] sm:$0xff] }
 0x285   : > { %2022 = vrot.lane.b32.xlu1 %v4489_v4, %s5082_s6  ;;  %1894 = vrot.lane.b32.xlu0 %v4425_v13, %s5082_s6  ;;  %v2222_v4 = vsel %vm2194_vm0, %v5039_v1, %v7687_v23  ;;  %v7688_v13 = vld [vmem:[#allocation67_spill] sm:$0xff]  ;;  %v4429_v59 = vld [vmem:[%s5113_s15 + $0x1f1] sm:$0xff] }
 0x286   : > { %4827 = vmatmul.mubr.msk.f32.gmra.mrb[22].mxu0 %vm2589_vm3, %v2476_v53  ;;  %4923 = vmatmul.mubr.msk.f32.gmra.mrb[22].mxu1 %vm2589_vm3, %v2540_v34  ;;  %v2286_v55 = vsel %vm2194_vm0, %v6126_v6, %v7688_v13  ;;  %v7689_v57 = vld [vmem:[#allocation121_spill] sm:$0xff]  ;;  %v7699_v13 = vld [vmem:[#allocation19_spill] sm:$0xff]  ;;  %v243_v56 = vld [vmem:[%s5113_s15 + $0x3d0] sm:$0xff] }
 0x287   : > { %v1477_v32 = vpop.permute.xlu1 %1476  ;;  %v1475_v36 = vpop.permute.xlu0 %1474  ;;  %v2351_v10 = vsel %vm2323_vm1, %v2222_v4, %v7689_v57  ;;  %v5043_v4 = vld [vmem:[%s5113_s15 + $0x130] sm:$0xff]  ;;  %v4497_v57 = vld [vmem:[%s5113_s15 + $0x499] sm:$0xff] }
 0x288   : > { %v2412_v51 = vsel %vm2323_vm1, %v2283_v33, %v1475_v36  ;;  %v2413_v16 = vsel %vm2323_vm1, %v2284_v7, %v1477_v32  ;;  %v4494_v32 = vld [vmem:[%s5113_s15 + $0x479] sm:$0xff]  ;;  %v2223_v33 = vsel %vm2194_vm0, %v5040_v46, %v7690_v29 }
 0x289   : > { %2024 = vrot.lane.b32.xlu1 %v4490_v12, %s5082_s6  ;;  %1896 = vrot.lane.b32.xlu0 %v4426_v45, %s5082_s6  ;;  %v4430_v36 = vld [vmem:[%s5113_s15 + $0x1f9] sm:$0xff] }
 0x28a   : > { %v7694_v7 = vld [vmem:[#allocation69_spill] sm:$0xff]  ;;  %v241_v46 = vld [vmem:[%s5113_s15 + $0x3c0] sm:$0xff] }
 0x28b   : > { %v1987_v25 = vpop.permute.xlu1 %1986  ;;  %v1859_v63 = vpop.permute.xlu0 %1858 }
 0x28c   : > { %v2541_v14 = vsel %vm2452_vm2, %v2412_v51, %v1987_v25  ;;  %v2477_v9 = vsel %vm2452_vm2, %v2348_v49, %v1859_v63  ;;  %v4367_v49 = vld [vmem:[%s5113_s15 + $0x488] sm:$0xff]  ;;  %v7692_v51 = vld [vmem:[#allocation124_spill] sm:$0xff] }
 0x28d   : > { %1516 = vrot.lane.b32.xlu1 %v4364_v0, %s5081_s17  ;;  %1514 = vrot.lane.b32.xlu0 %v4363_v61, %s5081_s17  ;;  %v7691_v0 = vld [vmem:[#allocation70_spill] sm:$0xff]  ;;  %v2352_v25 = vsel %vm2323_vm1, %v2223_v33, %v7692_v51 }
 0x28e   : > { %4829 = vmatprep.mubr.msk.f32.mxu0 %vm2589_vm3, %v2477_v9  ;;  %4925 = vmatprep.mubr.msk.f32.mxu1 %vm2589_vm3, %v2541_v14  ;;  %v2287_v61 = vsel %vm2194_vm0, %v6171_v28, %v7691_v0  ;;  %v5041_v28 = vld [vmem:[%s5113_s15 + $0x120] sm:$0xff] }
 0x28f   : > { %v1989_v20 = vpop.permute.xlu1 %1988  ;;  %v1861_v24 = vpop.permute.xlu0 %1860  ;;  %v2224_v39 = vsel %vm2194_vm0, %v5041_v28, %v7693_v3  ;;  %v5044_v0 = vld [vmem:[%s5113_s15 + $0x140] sm:$0xff] }
 0x290   : > { %v2542_v37 = vsel %vm2452_vm2, %v2413_v16, %v1989_v20  ;;  %v2478_v30 = vsel %vm2452_vm2, %v2349_v31, %v1861_v24  ;;  %v7695_v31 = vld [vmem:[#allocation123_spill] sm:$0xff] }
 0x291   : > { %2026 = vrot.lane.b32.xlu1 %v4491_v19, %s5082_s6  ;;  %1898 = vrot.lane.b32.xlu0 %v4427_v35, %s5082_s6  ;;  %v2288_v19 = vsel %vm2194_vm0, %v6168_v60, %v7694_v7  ;;  %v4495_v35 = vld [vmem:[%s5113_s15 + $0x489] sm:$0xff]  ;;  %v2353_v16 = vsel %vm2323_vm1, %v2224_v39, %v7695_v31  ;;  %v7706_v31 = vld [vmem:[#allocation73_spill] sm:$0xff] }
 0x292   : > { %4830 = vmatmul.mubr.msk.f32.gmra.mrb[24].mxu0 %vm2589_vm3, %v2478_v30  ;;  %4926 = vmatmul.mubr.msk.f32.gmra.mrb[24].mxu1 %vm2589_vm3, %v2542_v37 }
 0x293   : > { %v1481_v8 = vpop.permute.xlu1 %1480  ;;  %v1479_v18 = vpop.permute.xlu0 %1478 }
 0x294   : > { %v2414_v15 = vsel %vm2323_vm1, %v2285_v54, %v1479_v18  ;;  %v2415_v34 = vsel %vm2323_vm1, %v2286_v55, %v1481_v8  ;;  %v239_v8 = vld [vmem:[%s5113_s15 + $0x3a8] sm:$0xff]  ;;  %v7697_v54 = vld [vmem:[#allocation72_spill] sm:$0xff]  ;;  %v2226_v55 = vsel %vm2194_vm0, %v5043_v4, %v7699_v13 }
 0x295   : > { %2028 = vrot.lane.b32.xlu1 %v4492_v2, %s5082_s6  ;;  %1900 = vrot.lane.b32.xlu0 %v4428_v22, %s5082_s6  ;;  %v4496_v2 = vld [vmem:[%s5113_s15 + $0x491] sm:$0xff] }
 0x296   : > { %v4432_v22 = vld [vmem:[%s5113_s15 + $0x211] sm:$0xff] }
 0x297   : > { %v1991_v44 = vpop.permute.xlu1 %1990  ;;  %v1863_v26 = vpop.permute.xlu0 %1862 }
 0x298   : > { %v2543_v58 = vsel %vm2452_vm2, %v2414_v15, %v1991_v44  ;;  %v2479_v21 = vsel %vm2452_vm2, %v2350_v43, %v1863_v26  ;;  %v240_v43 = vld [vmem:[%s5113_s15 + $0x3b0] sm:$0xff] }
 0x299   : > { %1520 = vrot.lane.b32.xlu1 %v4366_v52, %s5081_s17  ;;  %1518 = vrot.lane.b32.xlu0 %v4365_v5, %s5081_s17  ;;  %v2289_v52 = vsel %vm2194_vm0, %v239_v8, %v7697_v54  ;;  %v4370_v5 = vld [vmem:[%s5113_s15 + $0x4a0] sm:$0xff]  ;;  %v7698_v15 = vld [vmem:[#allocation128_spill] sm:$0xff] }
 0x29a   : > { %4832 = vmatprep.mubr.msk.f32.mxu0 %vm2589_vm3, %v2479_v21  ;;  %4928 = vmatprep.mubr.msk.f32.mxu1 %vm2589_vm3, %v2543_v58  ;;  %v2354_v44 = vsel %vm2323_vm1, %v2225_v41, %v7698_v15 }
 0x29b   : > { %v1993_v53 = vpop.permute.xlu1 %1992  ;;  %v1865_v12 = vpop.permute.xlu0 %1864 }
 0x29c   : > { %v2544_v45 = vsel %vm2452_vm2, %v2415_v34, %v1993_v53  ;;  %v2480_v6 = vsel %vm2452_vm2, %v2351_v10, %v1865_v12  ;;  %v4433_v10 = vld [vmem:[%s5113_s15 + $0x219] sm:$0xff]  ;;  %v7701_v34 = vld [vmem:[#allocation127_spill] sm:$0xff] }
 0x29d   : > { %2030 = vrot.lane.b32.xlu1 %v4493_v62, %s5082_s6  ;;  %1902 = vrot.lane.b32.xlu0 %v4429_v59, %s5082_s6  ;;  %v7700_v62 = vld [vmem:[#allocation71_spill] sm:$0xff]  ;;  %v2355_v53 = vsel %vm2323_vm1, %v2226_v55, %v7701_v34 }
 0x29e   : > { %4833 = vmatmul.mubr.msk.f32.gmra.mrb[26].mxu0 %vm2589_vm3, %v2480_v6  ;;  %4929 = vmatmul.mubr.msk.f32.gmra.mrb[26].mxu1 %vm2589_vm3, %v2544_v45  ;;  %v2290_v59 = vsel %vm2194_vm0, %v240_v43, %v7700_v62  ;;  %v7709_v43 = vld [vmem:[#allocation76_spill] sm:$0xff]  ;;  %v7712_v34 = vld [vmem:[#allocation75_spill] sm:$0xff] }
 0x29f   : > { %v1485_v50 = vpop.permute.xlu1 %1484  ;;  %v1483_v48 = vpop.permute.xlu0 %1482  ;;  %v2293_v15 = vsel %vm2194_vm0, %v243_v56, %v7709_v43 }
 0x2a0   : > { %v2416_v63 = vsel %vm2323_vm1, %v2287_v61, %v1483_v48  ;;  %v2417_v20 = vsel %vm2323_vm1, %v2288_v19, %v1485_v50  ;;  %v4498_v50 = vld [vmem:[%s5113_s15 + $0x4a1] sm:$0xff] }
 0x2a1   : > { %2032 = vrot.lane.b32.xlu1 %v4494_v32, %s5082_s6  ;;  %1904 = vrot.lane.b32.xlu0 %v4430_v36, %s5082_s6  ;;  %v4434_v48 = vld [vmem:[%s5113_s15 + $0x221] sm:$0xff] }
 0x2a2   : > { %v7702_v61 = vld [vmem:[#allocation22_spill] sm:$0xff]  ;;  %v5045_v19 = vld [vmem:[%s5113_s15 + $0x148] sm:$0xff] }
 0x2a3   : > { %v1995_v14 = vpop.permute.xlu1 %1994  ;;  %v1867_v9 = vpop.permute.xlu0 %1866 }
 0x2a4   : > { %v2545_v47 = vsel %vm2452_vm2, %v2416_v63, %v1995_v14  ;;  %v2481_v17 = vsel %vm2452_vm2, %v2352_v25, %v1867_v9  ;;  %v4372_v25 = vld [vmem:[%s5113_s15 + $0x4b8] sm:$0xff]  ;;  %v4371_v63 = vld [vmem:[%s5113_s15 + $0x4b0] sm:$0xff]  ;;  %v242_v14 = vld [vmem:[%s5113_s15 + $0x3c8] sm:$0xff] }
 0x2a5   : > { %1524 = vrot.lane.b32.xlu1 %v4368_v42, %s5081_s17  ;;  %1522 = vrot.lane.b32.xlu0 %v4367_v49, %s5081_s17  ;;  %v2227_v42 = vsel %vm2194_vm0, %v5044_v0, %v7702_v61  ;;  %v7703_v49 = vld [vmem:[#allocation74_spill] sm:$0xff]  ;;  %v4438_v0 = vld [vmem:[%s5113_s15 + $0x249] sm:$0xff] }
 0x2a6   : > { %4835 = vmatprep.mubr.msk.f32.mxu0 %vm2589_vm3, %v2481_v17  ;;  %4931 = vmatprep.mubr.msk.f32.mxu1 %vm2589_vm3, %v2545_v47  ;;  %v2291_v51 = vsel %vm2194_vm0, %v241_v46, %v7703_v49  ;;  %v7704_v9 = vld [vmem:[#allocation130_spill] sm:$0xff]  ;;  %v245_v61 = vld [vmem:[%s5113_s15 + $0x3e8] sm:$0xff] }
 0x2a7   : > { %v1997_v24 = vpop.permute.xlu1 %1996  ;;  %v1869_v37 = vpop.permute.xlu0 %1868  ;;  %v2356_v47 = vsel %vm2323_vm1, %v2227_v42, %v7704_v9  ;;  %v7715_v9 = vld [vmem:[#allocation78_spill] sm:$0xff] }
 0x2a8   : > { %v2546_v30 = vsel %vm2452_vm2, %v2417_v20, %v1997_v24  ;;  %v2482_v60 = vsel %vm2452_vm2, %v2353_v16, %v1869_v37  ;;  %v2292_v16 = vsel %vm2194_vm0, %v242_v14, %v7706_v31  ;;  %v4499_v20 = vld [vmem:[%s5113_s15 + $0x4b1] sm:$0xff] }
 0x2a9   : > { %2034 = vrot.lane.b32.xlu1 %v4495_v35, %s5082_s6  ;;  %1906 = vrot.lane.b32.xlu0 %v4431_v38, %s5082_s6  ;;  %v7705_v35 = vld [vmem:[#allocation21_spill] sm:$0xff]  ;;  %v246_v14 = vld [vmem:[%s5113_s15 + $0x3f0] sm:$0xff] }
 0x2aa   : > { %4836 = vmatmul.mubr.msk.f32.gmra.mrb[28].mxu0 %vm2589_vm3, %v2482_v60  ;;  %4932 = vmatmul.mubr.msk.f32.gmra.mrb[28].mxu1 %vm2589_vm3, %v2546_v30  ;;  %v2228_v38 = vsel %vm2194_vm0, %v5045_v19, %v7705_v35  ;;  %v4435_v24 = vld [vmem:[%s5113_s15 + $0x231] sm:$0xff] }
 0x2ab   : > { %v1489_v18 = vpop.permute.xlu1 %1488  ;;  %v1487_v40 = vpop.permute.xlu0 %1486  ;;  %v7707_v37 = vld [vmem:[#allocation129_spill] sm:$0xff] }
 0x2ac   : > { %v2418_v26 = vsel %vm2323_vm1, %v2289_v52, %v1487_v40  ;;  %v2419_v12 = vsel %vm2323_vm1, %v2290_v59, %v1489_v18  ;;  %v2357_v30 = vsel %vm2323_vm1, %v2228_v38, %v7707_v37  ;;  %v4500_v40 = vld [vmem:[%s5113_s15 + $0x4b9] sm:$0xff]  ;;  %v5046_v52 = vld [vmem:[%s5113_s15 + $0x150] sm:$0xff] }
 0x2ad   : > { %2036 = vrot.lane.b32.xlu1 %v4496_v2, %s5082_s6  ;;  %1908 = vrot.lane.b32.xlu0 %v4432_v22, %s5082_s6  ;;  %v5047_v59 = vld [vmem:[%s5113_s15 + $0x158] sm:$0xff] }
 0x2ae   : > { %v7718_v37 = vld [vmem:[#allocation77_spill] sm:$0xff] }
 0x2af   : > { %v1999_v58 = vpop.permute.xlu1 %1998  ;;  %v1871_v21 = vpop.permute.xlu0 %1870 }
 0x2b0   : > { %v2547_v1 = vsel %vm2452_vm2, %v2418_v26, %v1999_v58  ;;  %v2483_v23 = vsel %vm2452_vm2, %v2354_v44, %v1871_v21  ;;  %v4374_v44 = vld [vmem:[%s5113_s15 + $0x4c8] sm:$0xff]  ;;  %v4373_v26 = vld [vmem:[%s5113_s15 + $0x4c0] sm:$0xff]  ;;  %v244_v58 = vld [vmem:[%s5113_s15 + $0x3d8] sm:$0xff] }
 0x2b1   : > { %1528 = vrot.lane.b32.xlu1 %v4370_v5, %s5081_s17  ;;  %1526 = vrot.lane.b32.xlu0 %v4369_v27, %s5081_s17  ;;  %v7708_v5 = vld [vmem:[#allocation24_spill] sm:$0xff] }
 0x2b2   : > { %4838 = vmatprep.mubr.msk.f32.mxu0 %vm2589_vm3, %v2483_v23  ;;  %4934 = vmatprep.mubr.msk.f32.mxu1 %vm2589_vm3, %v2547_v1  ;;  %v2229_v27 = vsel %vm2194_vm0, %v5046_v52, %v7708_v5  ;;  %v7710_v21 = vld [vmem:[#allocation132_spill] sm:$0xff] }
 0x2b3   : > { %v2001_v45 = vpop.permute.xlu1 %2000  ;;  %v1873_v6 = vpop.permute.xlu0 %1872  ;;  %v2358_v1 = vsel %vm2323_vm1, %v2229_v27, %v7710_v21 }
 0x2b4   : > { %v2548_v32 = vsel %vm2452_vm2, %v2419_v12, %v2001_v45  ;;  %v2484_v36 = vsel %vm2452_vm2, %v2355_v53, %v1873_v6  ;;  %v2294_v53 = vsel %vm2194_vm0, %v244_v58, %v7712_v34  ;;  %v4501_v12 = vld [vmem:[%s5113_s15 + $0x4c1] sm:$0xff] }
 0x2b5   : > { %2038 = vrot.lane.b32.xlu1 %v4497_v57, %s5082_s6  ;;  %1910 = vrot.lane.b32.xlu0 %v4433_v10, %s5082_s6  ;;  %v7711_v57 = vld [vmem:[#allocation23_spill] sm:$0xff] }
 0x2b6   : > { %4839 = vmatmul.mubr.msk.f32.gmra.mrb[30].mxu0 %vm2589_vm3, %v2484_v36  ;;  %4935 = vmatmul.mubr.msk.f32.gmra.mrb[30].mxu1 %vm2589_vm3, %v2548_v32  ;;  %v2230_v10 = vsel %vm2194_vm0, %v5047_v59, %v7711_v57  ;;  %v4437_v45 = vld [vmem:[%s5113_s15 + $0x241] sm:$0xff] }
 0x2b7   : > { %v1493_v29 = vpop.permute.xlu1 %1492  ;;  %v1491_v33 = vpop.permute.xlu0 %1490  ;;  %v7713_v6 = vld [vmem:[#allocation131_spill] sm:$0xff]  ;;  %v248_v57 = vld [vmem:[%s5113_s15 + $0x400] sm:$0xff] }
 0x2b8   : > { %v2420_v17 = vsel %vm2323_vm1, %v2291_v51, %v1491_v33  ;;  %v2421_v60 = vsel %vm2323_vm1, %v2292_v16, %v1493_v29  ;;  %v2359_v32 = vsel %vm2323_vm1, %v2230_v10, %v7713_v6  ;;  %v4502_v33 = vld [vmem:[%s5113_s15 + $0x4c9] sm:$0xff]  ;;  %v4504_v10 = vld [vmem:[%s5113_s15 + $0x4e1] sm:$0xff] }
 0x2b9   : > { %2040 = vrot.lane.b32.xlu1 %v4498_v50, %s5082_s6  ;;  %1912 = vrot.lane.b32.xlu0 %v4434_v48, %s5082_s6  ;;  %v5048_v51 = vld [vmem:[%s5113_s15 + $0x168] sm:$0xff]  ;;  %v5049_v16 = vld [vmem:[%s5113_s15 + $0x170] sm:$0xff] }
 0x2ba   : > { %v4440_v34 = vld [vmem:[%s5113_s15 + $0x261] sm:$0xff]  ;;  %v7721_v6 = vld [vmem:[#allocation80_spill] sm:$0xff] }
 0x2bb   : > { %v2003_v28 = vpop.permute.xlu1 %2002  ;;  %v1875_v3 = vpop.permute.xlu0 %1874 }
 0x2bc   : > { %v2549_v39 = vsel %vm2452_vm2, %v2420_v17, %v2003_v28  ;;  %v2485_v7 = vsel %vm2452_vm2, %v2356_v47, %v1875_v3  ;;  %v2295_v47 = vsel %vm2194_vm0, %v245_v61, %v7715_v9  ;;  %v4375_v17 = vld [vmem:[%s5113_s15 + $0x4d8] sm:$0xff]  ;;  %v7716_v3 = vld [vmem:[#allocation136_spill] sm:$0xff]  ;;  %v4377_v9 = vld [vmem:[%s5113_s15 + $0x4e8] sm:$0xff] }
 0x2bd   : > { %1532 = vrot.lane.b32.xlu1 %v4372_v25, %s5081_s17  ;;  %1530 = vrot.lane.b32.xlu0 %v4371_v63, %s5081_s17  ;;  %v7714_v25 = vld [vmem:[#allocation26_spill] sm:$0xff]  ;;  %v4311_v28 = vld [vmem:[%s5113_s15 + $0x258] sm:$0xff] }
 0x2be   : > { %4841 = vmatprep.mubr.msk.f32.mxu0 %vm2589_vm3, %v2485_v7  ;;  %4937 = vmatprep.mubr.msk.f32.mxu1 %vm2589_vm3, %v2549_v39  ;;  %v2231_v63 = vsel %vm2194_vm0, %v5048_v51, %v7714_v25 }
 0x2bf   : > { %v2005_v2 = vpop.permute.xlu1 %2004  ;;  %v1877_v22 = vpop.permute.xlu0 %1876  ;;  %v2360_v39 = vsel %vm2323_vm1, %v2231_v63, %v7716_v3  ;;  %v7725_v3 = vld [vmem:[#allocation137_spill] sm:$0xff] }
 0x2c0   : > { %v2550_v8 = vsel %vm2452_vm2, %v2421_v60, %v2005_v2  ;;  %v2486_v18 = vsel %vm2452_vm2, %v2357_v30, %v1877_v22  ;;  %v2296_v30 = vsel %vm2194_vm0, %v246_v14, %v7718_v37  ;;  %v4376_v22 = vld [vmem:[%s5113_s15 + $0x4e0] sm:$0xff] }
 0x2c1   : > { %2042 = vrot.lane.b32.xlu1 %v4499_v20, %s5082_s6  ;;  %1914 = vrot.lane.b32.xlu0 %v4435_v24, %s5082_s6  ;;  %v7717_v20 = vld [vmem:[#allocation25_spill] sm:$0xff] }
 0x2c2   : > { %4842 = vmatmul.mubr.msk.f32.gmra.mrb[32].mxu0 %vm2589_vm3, %v2486_v18  ;;  %4938 = vmatmul.mubr.msk.f32.gmra.mrb[32].mxu1 %vm2589_vm3, %v2550_v8  ;;  %v2232_v24 = vsel %vm2194_vm0, %v5049_v16, %v7717_v20  ;;  %v4312_v8 = vld [vmem:[%s5113_s15 + $0x260] sm:$0xff] }
 0x2c3   : > { %v1497_v41 = vpop.permute.xlu1 %1496  ;;  %v1495_v54 = vpop.permute.xlu0 %1494 }
 0x2c4   : > { %v2422_v23 = vsel %vm2323_vm1, %v2293_v15, %v1495_v54  ;;  %v2423_v36 = vsel %vm2323_vm1, %v2294_v53, %v1497_v41  ;;  %v5050_v53 = vld [vmem:[%s5113_s15 + $0x178] sm:$0xff] }
 0x2c5   : > { %2044 = vrot.lane.b32.xlu1 %v4500_v40, %s5082_s6  ;;  %1916 = vrot.lane.b32.xlu0 %v4436_v11, %s5082_s6  ;;  %v7719_v11 = vld [vmem:[#allocation135_spill] sm:$0xff] }
 0x2c6   : > { %v2361_v56 = vsel %vm2323_vm1, %v2232_v24, %v7719_v11 }
 0x2c7   : > { %v2007_v4 = vpop.permute.xlu1 %2006  ;;  %v1879_v13 = vpop.permute.xlu0 %1878 }
 0x2c8   : > { %v2551_v55 = vsel %vm2452_vm2, %v2422_v23, %v2007_v4  ;;  %v2487_v62 = vsel %vm2452_vm2, %v2358_v1, %v1879_v13  ;;  %v4503_v23 = vld [vmem:[%s5113_s15 + $0x4d9] sm:$0xff] }
 0x2c9   : > { %1536 = vrot.lane.b32.xlu1 %v4374_v44, %s5081_s17  ;;  %1534 = vrot.lane.b32.xlu0 %v4373_v26, %s5081_s17  ;;  %v4439_v4 = vld [vmem:[%s5113_s15 + $0x259] sm:$0xff] }
 0x2ca   : > { %4844 = vmatprep.mubr.msk.f32.mxu0 %vm2589_vm3, %v2487_v62  ;;  %4940 = vmatprep.mubr.msk.f32.mxu1 %vm2589_vm3, %v2551_v55  ;;  %v247_v55 = vld [vmem:[%s5113_s15 + $0x3f8] sm:$0xff] }
 0x2cb   : > { %v2009_v50 = vpop.permute.xlu1 %2008  ;;  %v1881_v48 = vpop.permute.xlu0 %1880 }
 0x2cc   : > { %v2552_v46 = vsel %vm2452_vm2, %v2423_v36, %v2009_v50  ;;  %v2488_v29 = vsel %vm2452_vm2, %v2359_v32, %v1881_v48  ;;  %v2297_v32 = vsel %vm2194_vm0, %v247_v55, %v7721_v6  ;;  %v5051_v36 = vld [vmem:[%s5113_s15 + $0x180] sm:$0xff]  ;;  %v7722_v50 = vld [vmem:[#allocation27_spill] sm:$0xff] }
 0x2cd   : > { %2046 = vrot.lane.b32.xlu1 %v4501_v12, %s5082_s6  ;;  %1918 = vrot.lane.b32.xlu0 %v4437_v45, %s5082_s6  ;;  %v7720_v12 = vld [vmem:[#allocation28_spill] sm:$0xff]  ;;  %v2234_v48 = vsel %vm2194_vm0, %v5051_v36, %v7722_v50  ;;  %v7731_v36 = vld [vmem:[#allocation139_spill] sm:$0xff] }
 0x2ce   : > { %4845 = vmatmul.mubr.msk.f32.gmra.mrb[34].mxu0 %vm2589_vm3, %v2488_v29  ;;  %4941 = vmatmul.mubr.msk.f32.gmra.mrb[34].mxu1 %vm2589_vm3, %v2552_v46  ;;  %v2233_v45 = vsel %vm2194_vm0, %v5050_v53, %v7720_v12  ;;  %v7723_v46 = vld [vmem:[#allocation138_spill] sm:$0xff]  ;;  %v4506_v12 = vld [vmem:[%s5113_s15 + $0x4f1] sm:$0xff] }
 0x2cf   : > { %v1501_v42 = vpop.permute.xlu1 %1500  ;;  %v1499_v49 = vpop.permute.xlu0 %1498  ;;  %v2362_v29 = vsel %vm2323_vm1, %v2233_v45, %v7723_v46  ;;  %v4442_v45 = vld [vmem:[%s5113_s15 + $0x271] sm:$0xff] }
 0x2d0   : > { %v2424_v7 = vsel %vm2323_vm1, %v2295_v47, %v1499_v49  ;;  %v2425_v41 = vsel %vm2323_vm1, %v2296_v30, %v1501_v42  ;;  %v7724_v42 = vld [vmem:[#allocation79_spill] sm:$0xff] }
 0x2d1   : > { %2048 = vrot.lane.b32.xlu1 %v4502_v33, %s5082_s6  ;;  %1920 = vrot.lane.b32.xlu0 %v4438_v0, %s5082_s6  ;;  %v2298_v49 = vsel %vm2194_vm0, %v248_v57, %v7724_v42  ;;  %v4313_v47 = vld [vmem:[%s5113_s15 + $0x268] sm:$0xff] }
 0x2d3   : > { %v2011_v19 = vpop.permute.xlu1 %2010  ;;  %v1883_v35 = vpop.permute.xlu0 %1882 }
 0x2d4   : > { %v2553_v38 = vsel %vm2452_vm2, %v2424_v7, %v2011_v19  ;;  %v2489_v31 = vsel %vm2452_vm2, %v2360_v39, %v1883_v35  ;;  %v2363_v39 = vsel %vm2323_vm1, %v2234_v48, %v7725_v3 }
 0x2d5   : > { %v4795_v60 = vpop.f32.mrb[0].mxu0  ;;  %v4891_v2 = vpop.f32.mrb[0].mxu1  ;;  %1538 = vrot.lane.b32.xlu1 %v4375_v17, %s5081_s17  ;;  %1410 = vrot.lane.b32.xlu0 %v4311_v28, %s5081_s17 }
 0x2d6   : > { %vm3680_vm4 = vcmp.gt.f32.partialorder %v4795_v60, 0.0  ;;  %v3808_v18 = vmul.f32 0.2, %v4795_v60  ;;  %vm3744_vm5 = vcmp.gt.f32.partialorder %v4891_v2, 0.0  ;;  %v3872_v40 = vmul.f32 0.2, %v4891_v2  ;;  %4847 = vmatprep.mubr.msk.f32.mxu0 %vm2589_vm3, %v2489_v31  ;;  %4943 = vmatprep.mubr.msk.f32.mxu1 %vm2589_vm3, %v2553_v38 }
 0x2d7   : > { %v3040_v54 = vpop.f32.mrb[1].mxu0  ;;  %v3360_v52 = vpop.f32.mrb[1].mxu1 }
 0x2d8   : > { %v3936_v5 = vsel %vm3680_vm4, %v4795_v60, %v3808_v18  ;;  %v4000_v27 = vsel %vm3744_vm5, %v4891_v2, %v3872_v40  ;;  %vm3679_vm6 = vcmp.gt.f32.partialorder %v3040_v54, 0.0  ;;  %v3807_v43 = vmul.f32 0.2, %v3040_v54  ;;  %v2013_v15 = vpop.permute.xlu1 %2012  ;;  %v1885_v44 = vpop.permute.xlu0 %1884  ;;  %v249_v40 = vld [vmem:[%s5113_s15 + $0x410] sm:$0xff] }
 0x2d9   : > { %4064 = vst.msk [vmem:[%s6799_s12 + $0x8] sm:$0xff] %vm2194_vm0, %v3936_v5  ;;  %4128 = vst.msk [vmem:[%s6799_s12 + $0x208] sm:$0xff] %vm2194_vm0, %v4000_v27  ;;  %vm3743_vm7 = vcmp.gt.f32.partialorder %v3360_v52, 0.0  ;;  %v3871_v26 = vmul.f32 0.2, %v3360_v52  ;;  %v2554_v58 = vsel %vm2452_vm2, %v2425_v41, %v2013_v15  ;;  %v2490_v21 = vsel %vm2452_vm2, %v2361_v56, %v1885_v44  ;;  %1540 = vrot.lane.b32.xlu1 %v4376_v22, %s5081_s17  ;;  %v4378_v22 = vld [vmem:[%s5113_s15 + $0x4f0] sm:$0xff] }
 0x2da   : > { %1412 = vrot.lane.b32.xlu0 %v4312_v8, %s5081_s17  ;;  %v3935_v1 = vsel %vm3679_vm6, %v3040_v54, %v3807_v43  ;;  %4848 = vmatmul.mubr.msk.f32.gmra.mrb[36].mxu0 %vm2589_vm3, %v2490_v21  ;;  %v4314_v8 = vld [vmem:[%s5113_s15 + $0x270] sm:$0xff]  ;;  %v250_v41 = vld [vmem:[%s5113_s15 + $0x418] sm:$0xff]  ;;  %v7726_v27 = vld [vmem:[#allocation30_spill] sm:$0xff] }
 0x2db   : > { %4944 = vmatmul.mubr.msk.f32.gmra.mrb[36].mxu1 %vm2589_vm3, %v2554_v58  ;;  %4063 = vst.msk [vmem:[%s6799_s12] sm:$0xff] %vm2194_vm0, %v3935_v1  ;;  %v3999_v13 = vsel %vm3743_vm7, %v3360_v52, %v3871_v26  ;;  %v4505_v54 = vld [vmem:[%s5113_s15 + $0x4e9] sm:$0xff]  ;;  %v7727_v15 = vld [vmem:[#allocation82_spill] sm:$0xff]  ;;  %v5053_v26 = vld [vmem:[%s5113_s15 + $0x198] sm:$0xff] }
 0x2dc   : > { %4127 = vst.msk [vmem:[%s6799_s12 + $0x200] sm:$0xff] %vm2194_vm0, %v3999_v13  ;;  %v1505_v62 = vpop.permute.xlu1 %1504  ;;  %v1503_v59 = vpop.permute.xlu0 %1502  ;;  %v4441_v52 = vld [vmem:[%s5113_s15 + $0x269] sm:$0xff]  ;;  %v2299_v44 = vsel %vm2194_vm0, %v249_v40, %v7727_v15  ;;  %v7728_v58 = vld [vmem:[#allocation29_spill] sm:$0xff] }
 0x2dd   : > { %2050 = vrot.lane.b32.xlu1 %v4503_v23, %s5082_s6  ;;  %v2426_v33 = vsel %vm2323_vm1, %v2297_v32, %v1503_v59  ;;  %v2427_v7 = vsel %vm2323_vm1, %v2298_v49, %v1505_v62  ;;  %v5052_v5 = vld [vmem:[%s5113_s15 + $0x190] sm:$0xff]  ;;  %v2236_v21 = vsel %vm2194_vm0, %v5053_v26, %v7728_v58  ;;  %v7730_v62 = vld [vmem:[#allocation81_spill] sm:$0xff]  ;;  %v7737_v26 = vld [vmem:[#allocation143_spill] sm:$0xff] }
 0x2de   : > { %1922 = vrot.lane.b32.xlu0 %v4439_v4, %s5082_s6  ;;  %v2235_v43 = vsel %vm2194_vm0, %v5052_v5, %v7726_v27  ;;  %v7729_v1 = vld [vmem:[#allocation140_spill] sm:$0xff]  ;;  %v2300_v59 = vsel %vm2194_vm0, %v250_v41, %v7730_v62  ;;  %v2365_v50 = vsel %vm2323_vm1, %v2236_v21, %v7731_v36  ;;  %v4507_v27 = vld [vmem:[%s5113_s15 + $0x501] sm:$0xff] }
 0x2df   : > { %v2364_v23 = vsel %vm2323_vm1, %v2235_v43, %v7729_v1  ;;  %v4443_v43 = vld [vmem:[%s5113_s15 + $0x281] sm:$0xff] }
 0x2e0   : > { %v2015_v0 = vpop.permute.xlu1 %2014  ;;  %v1887_v61 = vpop.permute.xlu0 %1886 }
 0x2e1   : > { %v2555_v51 = vsel %vm2452_vm2, %v2426_v33, %v2015_v0  ;;  %v2491_v25 = vsel %vm2452_vm2, %v2362_v29, %v1887_v61  ;;  %v4798_v63 = vpop.f32.mrb[2].mxu0  ;;  %v4894_v14 = vpop.f32.mrb[2].mxu1  ;;  %2052 = vrot.lane.b32.xlu1 %v4504_v10, %s5082_s6 }
 0x2e2   : > { %1924 = vrot.lane.b32.xlu0 %v4440_v34, %s5082_s6  ;;  %vm3682_vm8 = vcmp.gt.f32.partialorder %v4798_v63, 0.0  ;;  %v3810_v17 = vmul.f32 0.2, %v4798_v63  ;;  %vm3746_vm9 = vcmp.gt.f32.partialorder %v4894_v14, 0.0  ;;  %v3874_v28 = vmul.f32 0.2, %v4894_v14  ;;  %4850 = vmatprep.mubr.msk.f32.mxu0 %vm2589_vm3, %v2491_v25 }
 0x2e3   : > { %4946 = vmatprep.mubr.msk.f32.mxu1 %vm2589_vm3, %v2555_v51  ;;  %v3050_v19 = vpop.f32.mrb[3].mxu0  ;;  %v3370_v35 = vpop.f32.mrb[3].mxu1 }
 0x2e4   : > { %v3938_v38 = vsel %vm3682_vm8, %v4798_v63, %v3810_v17  ;;  %v4002_v31 = vsel %vm3746_vm9, %v4894_v14, %v3874_v28  ;;  %vm3681_vm10 = vcmp.gt.f32.partialorder %v3050_v19, 0.0  ;;  %v3809_v16 = vmul.f32 0.2, %v3050_v19  ;;  %v2017_v20 = vpop.permute.xlu1 %2016  ;;  %v1889_v24 = vpop.permute.xlu0 %1888  ;;  %v251_v28 = vld [vmem:[%s5113_s15 + $0x420] sm:$0xff] }
 0x2e5   : > { %4066 = vst.msk [vmem:[%s6799_s12 + $0x18] sm:$0xff] %vm2194_vm0, %v3938_v38  ;;  %4130 = vst.msk [vmem:[%s6799_s12 + $0x218] sm:$0xff] %vm2194_vm0, %v4002_v31  ;;  %vm3745_vm11 = vcmp.gt.f32.partialorder %v3370_v35, 0.0  ;;  %v3873_v37 = vmul.f32 0.2, %v3370_v35  ;;  %v2556_v30 = vsel %vm2452_vm2, %v2427_v7, %v2017_v20  ;;  %v2492_v60 = vsel %vm2452_vm2, %v2363_v39, %v1889_v24  ;;  %1542 = vrot.lane.b32.xlu1 %v4377_v9, %s5081_s17  ;;  %v4379_v9 = vld [vmem:[%s5113_s15 + $0x500] sm:$0xff] }
 0x2e6   : > { %1414 = vrot.lane.b32.xlu0 %v4313_v47, %s5081_s17  ;;  %v3937_v2 = vsel %vm3681_vm10, %v3050_v19, %v3809_v16  ;;  %4851 = vmatmul.mubr.msk.f32.gmra.mrb[38].mxu0 %vm2589_vm3, %v2492_v60  ;;  %v4315_v47 = vld [vmem:[%s5113_s15 + $0x280] sm:$0xff]  ;;  %v252_v7 = vld [vmem:[%s5113_s15 + $0x428] sm:$0xff]  ;;  %v7732_v31 = vld [vmem:[#allocation32_spill] sm:$0xff] }
 0x2e7   : > { %4947 = vmatmul.mubr.msk.f32.gmra.mrb[38].mxu1 %vm2589_vm3, %v2556_v30  ;;  %4065 = vst.msk [vmem:[%s6799_s12 + $0x10] sm:$0xff] %vm2194_vm0, %v3937_v2  ;;  %v4001_v18 = vsel %vm3745_vm11, %v3370_v35, %v3873_v37  ;;  %v4380_v19 = vld [vmem:[%s5113_s15 + $0x508] sm:$0xff]  ;;  %v5054_v38 = vld [vmem:[%s5113_s15 + $0x1a0] sm:$0xff]  ;;  %v7733_v20 = vld [vmem:[#allocation84_spill] sm:$0xff] }
 0x2e8   : > { %4129 = vst.msk [vmem:[%s6799_s12 + $0x210] sm:$0xff] %vm2194_vm0, %v4001_v18  ;;  %v1509_v11 = vpop.permute.xlu1 %1508  ;;  %v1507_v56 = vpop.permute.xlu0 %1506  ;;  %v4316_v35 = vld [vmem:[%s5113_s15 + $0x288] sm:$0xff]  ;;  %v2237_v16 = vsel %vm2194_vm0, %v5054_v38, %v7732_v31  ;;  %v2301_v24 = vsel %vm2194_vm0, %v251_v28, %v7733_v20  ;;  %v7735_v2 = vld [vmem:[#allocation144_spill] sm:$0xff]  ;;  %v4382_v31 = vld [vmem:[%s5113_s15 + $0x518] sm:$0xff] }
 0x2e9   : > { %1544 = vrot.lane.b32.xlu1 %v4378_v22, %s5081_s17  ;;  %v2428_v4 = vsel %vm2323_vm1, %v2299_v44, %v1507_v56  ;;  %v2429_v48 = vsel %vm2323_vm1, %v2300_v59, %v1509_v11  ;;  %v5055_v37 = vld [vmem:[%s5113_s15 + $0x1a8] sm:$0xff]  ;;  %v2366_v22 = vsel %vm2323_vm1, %v2237_v16, %v7735_v2  ;;  %v4318_v16 = vld [vmem:[%s5113_s15 + $0x298] sm:$0xff] }
 0x2ea   : > { %1416 = vrot.lane.b32.xlu0 %v4314_v8, %s5081_s17  ;;  %v7734_v30 = vld [vmem:[#allocation31_spill] sm:$0xff] }
 0x2eb   : > { %v2238_v60 = vsel %vm2194_vm0, %v5055_v37, %v7734_v30  ;;  %v7736_v11 = vld [vmem:[#allocation83_spill] sm:$0xff]  ;;  %v7743_v37 = vld [vmem:[#allocation145_spill] sm:$0xff] }
 0x2ec   : > { %v2019_v13 = vpop.permute.xlu1 %2018  ;;  %v1891_v55 = vpop.permute.xlu0 %1890  ;;  %v2302_v56 = vsel %vm2194_vm0, %v252_v7, %v7736_v11  ;;  %v2367_v58 = vsel %vm2323_vm1, %v2238_v60, %v7737_v26 }
 0x2ed   : > { %v2557_v57 = vsel %vm2452_vm2, %v2428_v4, %v2019_v13  ;;  %v2493_v10 = vsel %vm2452_vm2, %v2364_v23, %v1891_v55  ;;  %v4801_v34 = vpop.f32.mrb[4].mxu0  ;;  %v4897_v53 = vpop.f32.mrb[4].mxu1  ;;  %2054 = vrot.lane.b32.xlu1 %v4505_v54, %s5082_s6 }
 0x2ee   : > { %1926 = vrot.lane.b32.xlu0 %v4441_v52, %s5082_s6  ;;  %vm3684_vm12 = vcmp.gt.f32.partialorder %v4801_v34, 0.0  ;;  %v3812_v6 = vmul.f32 0.2, %v4801_v34  ;;  %vm3748_vm13 = vcmp.gt.f32.partialorder %v4897_v53, 0.0  ;;  %v3876_v32 = vmul.f32 0.2, %v4897_v53  ;;  %4853 = vmatprep.mubr.msk.f32.mxu0 %vm2589_vm3, %v2493_v10 }
 0x2ef   : > { %4949 = vmatprep.mubr.msk.f32.mxu1 %vm2589_vm3, %v2557_v57  ;;  %v3060_v46 = vpop.f32.mrb[5].mxu0  ;;  %v3380_v29 = vpop.f32.mrb[5].mxu1 }
 0x2f0   : > { %v3940_v33 = vsel %vm3684_vm12, %v4801_v34, %v3812_v6  ;;  %v4004_v0 = vsel %vm3748_vm13, %v4897_v53, %v3876_v32  ;;  %vm3683_vm14 = vcmp.gt.f32.partialorder %v3060_v46, 0.0  ;;  %v3811_v61 = vmul.f32 0.2, %v3060_v46  ;;  %v2021_v42 = vpop.permute.xlu1 %2020  ;;  %v1893_v49 = vpop.permute.xlu0 %1892  ;;  %v253_v32 = vld [vmem:[%s5113_s15 + $0x438] sm:$0xff] }
 0x2f1   : > { %4068 = vst.msk [vmem:[%s6799_s12 + $0x28] sm:$0xff] %vm2194_vm0, %v3940_v33  ;;  %4132 = vst.msk [vmem:[%s6799_s12 + $0x228] sm:$0xff] %vm2194_vm0, %v4004_v0  ;;  %vm3747_vm15 = vcmp.gt.f32.partialorder %v3380_v29, 0.0  ;;  %v3875_v51 = vmul.f32 0.2, %v3380_v29  ;;  %v2558_v25 = vsel %vm2452_vm2, %v2429_v48, %v2021_v42  ;;  %v2494_v63 = vsel %vm2452_vm2, %v2365_v50, %v1893_v49  ;;  %2056 = vrot.lane.b32.xlu1 %v4506_v12, %s5082_s6  ;;  %v4508_v12 = vld [vmem:[%s5113_s15 + $0x509] sm:$0xff] }
 0x2f2   : > { %1928 = vrot.lane.b32.xlu0 %v4442_v45, %s5082_s6  ;;  %v3939_v14 = vsel %vm3683_vm14, %v3060_v46, %v3811_v61  ;;  %4854 = vmatmul.mubr.msk.f32.gmra.mrb[40].mxu0 %vm2589_vm3, %v2494_v63  ;;  %v4444_v45 = vld [vmem:[%s5113_s15 + $0x289] sm:$0xff]  ;;  %v254_v48 = vld [vmem:[%s5113_s15 + $0x440] sm:$0xff]  ;;  %v5056_v33 = vld [vmem:[%s5113_s15 + $0x1b8] sm:$0xff] }
 0x2f3   : > { %4950 = vmatmul.mubr.msk.f32.gmra.mrb[40].mxu1 %vm2589_vm3, %v2558_v25  ;;  %4067 = vst.msk [vmem:[%s6799_s12 + $0x20] sm:$0xff] %vm2194_vm0, %v3939_v14  ;;  %v4003_v17 = vsel %vm3747_vm15, %v3380_v29, %v3875_v51  ;;  %v4381_v46 = vld [vmem:[%s5113_s15 + $0x510] sm:$0xff]  ;;  %v7738_v0 = vld [vmem:[#allocation34_spill] sm:$0xff]  ;;  %v7740_v25 = vld [vmem:[#allocation33_spill] sm:$0xff] }
 0x2f4   : > { %4131 = vst.msk [vmem:[%s6799_s12 + $0x220] sm:$0xff] %vm2194_vm0, %v4003_v17  ;;  %v1513_v3 = vpop.permute.xlu1 %1512  ;;  %v1511_v39 = vpop.permute.xlu0 %1510  ;;  %v4317_v29 = vld [vmem:[%s5113_s15 + $0x290] sm:$0xff]  ;;  %v2239_v61 = vsel %vm2194_vm0, %v5056_v33, %v7738_v0  ;;  %v7739_v42 = vld [vmem:[#allocation86_spill] sm:$0xff] }
 0x2f5   : > { %1546 = vrot.lane.b32.xlu1 %v4379_v9, %s5081_s17  ;;  %v2430_v8 = vsel %vm2323_vm1, %v2301_v24, %v1511_v39  ;;  %v2431_v21 = vsel %vm2323_vm1, %v2302_v56, %v1513_v3  ;;  %v2303_v49 = vsel %vm2194_vm0, %v253_v32, %v7739_v42  ;;  %v5057_v51 = vld [vmem:[%s5113_s15 + $0x1c0] sm:$0xff]  ;;  %v7742_v3 = vld [vmem:[#allocation85_spill] sm:$0xff]  ;;  %v7749_v42 = vld [vmem:[#allocation147_spill] sm:$0xff] }
 0x2f6   : > { %1418 = vrot.lane.b32.xlu0 %v4315_v47, %s5081_s17  ;;  %v2240_v63 = vsel %vm2194_vm0, %v5057_v51, %v7740_v25  ;;  %v7741_v14 = vld [vmem:[#allocation146_spill] sm:$0xff]  ;;  %v2304_v39 = vsel %vm2194_vm0, %v254_v48, %v7742_v3 }
 0x2f7   : > { %v2368_v9 = vsel %vm2323_vm1, %v2239_v61, %v7741_v14  ;;  %v2369_v30 = vsel %vm2323_vm1, %v2240_v63, %v7743_v37  ;;  %v7750_v37 = vld [vmem:[#allocation38_spill] sm:$0xff] }
 0x2f8   : > { %v2023_v18 = vpop.permute.xlu1 %2022  ;;  %v1895_v40 = vpop.permute.xlu0 %1894 }
 0x2f9   : > { %v2559_v41 = vsel %vm2452_vm2, %v2430_v8, %v2023_v18  ;;  %v2495_v54 = vsel %vm2452_vm2, %v2366_v22, %v1895_v40  ;;  %v4804_v52 = vpop.f32.mrb[6].mxu0  ;;  %v4900_v5 = vpop.f32.mrb[6].mxu1  ;;  %1548 = vrot.lane.b32.xlu1 %v4380_v19, %s5081_s17 }
 0x2fa   : > { %1420 = vrot.lane.b32.xlu0 %v4316_v35, %s5081_s17  ;;  %vm3686_vm4 = vcmp.gt.f32.partialorder %v4804_v52, 0.0  ;;  %v3814_v15 = vmul.f32 0.2, %v4804_v52  ;;  %vm3750_vm5 = vcmp.gt.f32.partialorder %v4900_v5, 0.0  ;;  %v3878_v44 = vmul.f32 0.2, %v4900_v5  ;;  %4856 = vmatprep.mubr.msk.f32.mxu0 %vm2589_vm3, %v2495_v54 }
 0x2fb   : > { %4952 = vmatprep.mubr.msk.f32.mxu1 %vm2589_vm3, %v2559_v41  ;;  %v3070_v1 = vpop.f32.mrb[7].mxu0  ;;  %v3390_v23 = vpop.f32.mrb[7].mxu1 }
 0x2fc   : > { %v3942_v4 = vsel %vm3686_vm4, %v4804_v52, %v3814_v15  ;;  %v4006_v13 = vsel %vm3750_vm5, %v4900_v5, %v3878_v44  ;;  %vm3685_vm6 = vcmp.gt.f32.partialorder %v3070_v1, 0.0  ;;  %v3813_v55 = vmul.f32 0.2, %v3070_v1  ;;  %v2025_v62 = vpop.permute.xlu1 %2024  ;;  %v1897_v59 = vpop.permute.xlu0 %1896  ;;  %v255_v44 = vld [vmem:[%s5113_s15 + $0x448] sm:$0xff] }
 0x2fd   : > { %4070 = vst.msk [vmem:[%s6799_s12 + $0x38] sm:$0xff] %vm2194_vm0, %v3942_v4  ;;  %4134 = vst.msk [vmem:[%s6799_s12 + $0x238] sm:$0xff] %vm2194_vm0, %v4006_v13  ;;  %vm3749_vm7 = vcmp.gt.f32.partialorder %v3390_v23, 0.0  ;;  %v3877_v57 = vmul.f32 0.2, %v3390_v23  ;;  %v2560_v10 = vsel %vm2452_vm2, %v2431_v21, %v2025_v62  ;;  %v2496_v34 = vsel %vm2452_vm2, %v2367_v58, %v1897_v59  ;;  %2058 = vrot.lane.b32.xlu1 %v4507_v27, %s5082_s6  ;;  %v4509_v27 = vld [vmem:[%s5113_s15 + $0x511] sm:$0xff] }
 0x2fe   : > { %1930 = vrot.lane.b32.xlu0 %v4443_v43, %s5082_s6  ;;  %v3941_v53 = vsel %vm3685_vm6, %v3070_v1, %v3813_v55  ;;  %4857 = vmatmul.mubr.msk.f32.gmra.mrb[42].mxu0 %vm2589_vm3, %v2496_v34  ;;  %v4445_v43 = vld [vmem:[%s5113_s15 + $0x291] sm:$0xff]  ;;  %v4510_v1 = vld [vmem:[%s5113_s15 + $0x519] sm:$0xff]  ;;  %v5058_v4 = vld [vmem:[%s5113_s15 + $0x1c8] sm:$0xff] }
 0x2ff   : > { %4953 = vmatmul.mubr.msk.f32.gmra.mrb[42].mxu1 %vm2589_vm3, %v2560_v10  ;;  %4069 = vst.msk [vmem:[%s6799_s12 + $0x30] sm:$0xff] %vm2194_vm0, %v3941_v53  ;;  %v4005_v6 = vsel %vm3749_vm7, %v3390_v23, %v3877_v57  ;;  %v256_v21 = vld [vmem:[%s5113_s15 + $0x450] sm:$0xff]  ;;  %v4446_v23 = vld [vmem:[%s5113_s15 + $0x299] sm:$0xff]  ;;  %v7746_v10 = vld [vmem:[#allocation35_spill] sm:$0xff] }
 0x300   : > { %4133 = vst.msk [vmem:[%s6799_s12 + $0x230] sm:$0xff] %vm2194_vm0, %v4005_v6  ;;  %v1517_v36 = vpop.permute.xlu1 %1516  ;;  %v1515_v50 = vpop.permute.xlu0 %1514  ;;  %v7744_v13 = vld [vmem:[#allocation36_spill] sm:$0xff] }
 0x301   : > { %2060 = vrot.lane.b32.xlu1 %v4508_v12, %s5082_s6  ;;  %v2432_v47 = vsel %vm2323_vm1, %v2303_v49, %v1515_v50  ;;  %v2433_v60 = vsel %vm2323_vm1, %v2304_v39, %v1517_v36  ;;  %v2241_v55 = vsel %vm2194_vm0, %v5058_v4, %v7744_v13  ;;  %v7745_v62 = vld [vmem:[#allocation88_spill] sm:$0xff]  ;;  %v7748_v36 = vld [vmem:[#allocation87_spill] sm:$0xff] }
 0x302   : > { %1932 = vrot.lane.b32.xlu0 %v4444_v45, %s5082_s6  ;;  %v2305_v59 = vsel %vm2194_vm0, %v255_v44, %v7745_v62  ;;  %v5059_v57 = vld [vmem:[%s5113_s15 + $0x1d0] sm:$0xff]  ;;  %v2306_v50 = vsel %vm2194_vm0, %v256_v21, %v7748_v36  ;;  %v7755_v21 = vld [vmem:[#allocation151_spill] sm:$0xff] }
 0x303   : > { %v2242_v34 = vsel %vm2194_vm0, %v5059_v57, %v7746_v10  ;;  %v7747_v53 = vld [vmem:[#allocation148_spill] sm:$0xff] }
 0x304   : > { %v2027_v17 = vpop.permute.xlu1 %2026  ;;  %v1899_v28 = vpop.permute.xlu0 %1898  ;;  %v2370_v12 = vsel %vm2323_vm1, %v2241_v55, %v7747_v53  ;;  %v2371_v49 = vsel %vm2323_vm1, %v2242_v34, %v7749_v42  ;;  %v7758_v42 = vld [vmem:[#allocation154_spill] sm:$0xff] }
 0x305   : > { %v2561_v7 = vsel %vm2452_vm2, %v2432_v47, %v2027_v17  ;;  %v2497_v19 = vsel %vm2452_vm2, %v2368_v9, %v1899_v28  ;;  %v4807_v35 = vpop.f32.mrb[8].mxu0  ;;  %v4903_v38 = vpop.f32.mrb[8].mxu1  ;;  %1550 = vrot.lane.b32.xlu1 %v4381_v46, %s5081_s17 }
 0x306   : > { %1422 = vrot.lane.b32.xlu0 %v4317_v29, %s5081_s17  ;;  %vm3688_vm8 = vcmp.gt.f32.partialorder %v4807_v35, 0.0  ;;  %v3816_v20 = vmul.f32 0.2, %v4807_v35  ;;  %vm3752_vm9 = vcmp.gt.f32.partialorder %v4903_v38, 0.0  ;;  %v3880_v24 = vmul.f32 0.2, %v4903_v38  ;;  %4859 = vmatprep.mubr.msk.f32.mxu0 %vm2589_vm3, %v2497_v19 }
 0x307   : > { %4955 = vmatprep.mubr.msk.f32.mxu1 %vm2589_vm3, %v2561_v7  ;;  %v3080_v2 = vpop.f32.mrb[9].mxu0  ;;  %v3400_v22 = vpop.f32.mrb[9].mxu1 }
 0x308   : > { %v3944_v8 = vsel %vm3688_vm8, %v4807_v35, %v3816_v20  ;;  %v4008_v18 = vsel %vm3752_vm9, %v4903_v38, %v3880_v24  ;;  %vm3687_vm10 = vcmp.gt.f32.partialorder %v3080_v2, 0.0  ;;  %v3815_v40 = vmul.f32 0.2, %v3080_v2  ;;  %v2029_v11 = vpop.permute.xlu1 %2028  ;;  %v1901_v56 = vpop.permute.xlu0 %1900  ;;  %v257_v38 = vld [vmem:[%s5113_s15 + $0x460] sm:$0xff]  ;;  %v258_v20 = vld [vmem:[%s5113_s15 + $0x468] sm:$0xff] }
 0x309   : > { %4072 = vst.msk [vmem:[%s6799_s12 + $0x48] sm:$0xff] %vm2194_vm0, %v3944_v8  ;;  %4136 = vst.msk [vmem:[%s6799_s12 + $0x248] sm:$0xff] %vm2194_vm0, %v4008_v18  ;;  %vm3751_vm11 = vcmp.gt.f32.partialorder %v3400_v22, 0.0  ;;  %v3879_v41 = vmul.f32 0.2, %v3400_v22  ;;  %v2562_v54 = vsel %vm2452_vm2, %v2433_v60, %v2029_v11  ;;  %v2498_v52 = vsel %vm2452_vm2, %v2369_v30, %v1901_v56  ;;  %1552 = vrot.lane.b32.xlu1 %v4382_v31, %s5081_s17  ;;  %v5060_v24 = vld [vmem:[%s5113_s15 + $0x1e0] sm:$0xff] }
 0x30a   : > { %1424 = vrot.lane.b32.xlu0 %v4318_v16, %s5081_s17  ;;  %v3943_v5 = vsel %vm3687_vm10, %v3080_v2, %v3815_v40  ;;  %4860 = vmatmul.mubr.msk.f32.gmra.mrb[44].mxu0 %vm2589_vm3, %v2498_v52  ;;  %v2243_v30 = vsel %vm2194_vm0, %v5060_v24, %v7750_v37  ;;  %v7751_v60 = vld [vmem:[#allocation90_spill] sm:$0xff]  ;;  %v5061_v56 = vld [vmem:[%s5113_s15 + $0x1e8] sm:$0xff]  ;;  %v7754_v52 = vld [vmem:[#allocation89_spill] sm:$0xff] }
 0x30b   : > { %4956 = vmatmul.mubr.msk.f32.gmra.mrb[44].mxu1 %vm2589_vm3, %v2562_v54  ;;  %4071 = vst.msk [vmem:[%s6799_s12 + $0x40] sm:$0xff] %vm2194_vm0, %v3943_v5  ;;  %v4007_v15 = vsel %vm3751_vm11, %v3400_v22, %v3879_v41  ;;  %v2307_v2 = vsel %vm2194_vm0, %v257_v38, %v7751_v60  ;;  %v7752_v22 = vld [vmem:[#allocation152_spill] sm:$0xff]  ;;  %v7753_v41 = vld [vmem:[#allocation37_spill] sm:$0xff]  ;;  %v2308_v5 = vsel %vm2194_vm0, %v258_v20, %v7754_v52 }
 0x30c   : > { %4135 = vst.msk [vmem:[%s6799_s12 + $0x240] sm:$0xff] %vm2194_vm0, %v4007_v15  ;;  %v1521_v26 = vpop.permute.xlu1 %1520  ;;  %v1519_v58 = vpop.permute.xlu0 %1518  ;;  %v2372_v8 = vsel %vm2323_vm1, %v2243_v30, %v7752_v22  ;;  %v2244_v54 = vsel %vm2194_vm0, %v5061_v56, %v7753_v41 }
 0x30d   : > { %2062 = vrot.lane.b32.xlu1 %v4509_v27, %s5082_s6  ;;  %v2434_v45 = vsel %vm2323_vm1, %v2305_v59, %v1519_v58  ;;  %v2435_v51 = vsel %vm2323_vm1, %v2306_v50, %v1521_v26 }
 0x30e   : > { %1934 = vrot.lane.b32.xlu0 %v4445_v43, %s5082_s6 }
 0x310   : > { %v2031_v6 = vpop.permute.xlu1 %2030  ;;  %v1903_v32 = vpop.permute.xlu0 %1902 }
 0x311   : > { %v2563_v48 = vsel %vm2452_vm2, %v2434_v45, %v2031_v6  ;;  %v2499_v46 = vsel %vm2452_vm2, %v2370_v12, %v1903_v32  ;;  %v4810_v29 = vpop.f32.mrb[10].mxu0  ;;  %v4906_v33 = vpop.f32.mrb[10].mxu1  ;;  %2064 = vrot.lane.b32.xlu1 %v4510_v1, %s5082_s6  ;;  %v2373_v1 = vsel %vm2323_vm1, %v2244_v54, %v7755_v21  ;;  %v259_v32 = vld [vmem:[%s5113_s15 + $0x470] sm:$0xff]  ;;  %v261_v54 = vld [vmem:[%s5113_s15 + $0x488] sm:$0xff] }
 0x312   : > { %1936 = vrot.lane.b32.xlu0 %v4446_v23, %s5082_s6  ;;  %vm3690_vm12 = vcmp.gt.f32.partialorder %v4810_v29, 0.0  ;;  %v3818_v0 = vmul.f32 0.2, %v4810_v29  ;;  %vm3754_vm13 = vcmp.gt.f32.partialorder %v4906_v33, 0.0  ;;  %v3882_v61 = vmul.f32 0.2, %v4906_v33  ;;  %4862 = vmatprep.mubr.msk.f32.mxu0 %vm2589_vm3, %v2499_v46 }
 0x313   : > { %4958 = vmatprep.mubr.msk.f32.mxu1 %vm2589_vm3, %v2563_v48  ;;  %v3090_v25 = vpop.f32.mrb[11].mxu0  ;;  %v3410_v63 = vpop.f32.mrb[11].mxu1  ;;  %v260_v48 = vld [vmem:[%s5113_s15 + $0x478] sm:$0xff]  ;;  %v5062_v46 = vld [vmem:[%s5113_s15 + $0x1f0] sm:$0xff] }
 0x314   : > { %v3946_v14 = vsel %vm3690_vm12, %v4810_v29, %v3818_v0  ;;  %v4010_v9 = vsel %vm3754_vm13, %v4906_v33, %v3882_v61  ;;  %vm3689_vm14 = vcmp.gt.f32.partialorder %v3090_v25, 0.0  ;;  %v3817_v47 = vmul.f32 0.2, %v3090_v25  ;;  %v2033_v17 = vpop.permute.xlu1 %2032  ;;  %v1905_v28 = vpop.permute.xlu0 %1904  ;;  %v7756_v29 = vld [vmem:[#allocation40_spill] sm:$0xff] }
 0x315   : > { %4074 = vst.msk [vmem:[%s6799_s12 + $0x58] sm:$0xff] %vm2194_vm0, %v3946_v14  ;;  %4138 = vst.msk [vmem:[%s6799_s12 + $0x258] sm:$0xff] %vm2194_vm0, %v4010_v9  ;;  %vm3753_vm15 = vcmp.gt.f32.partialorder %v3410_v63, 0.0  ;;  %v3881_v3 = vmul.f32 0.2, %v3410_v63  ;;  %v2564_v39 = vsel %vm2452_vm2, %v2435_v51, %v2033_v17  ;;  %v2500_v7 = vsel %vm2452_vm2, %v2371_v49, %v1905_v28  ;;  %v7757_v0 = vld [vmem:[#allocation92_spill] sm:$0xff] }
 0x316   : > { %v3945_v19 = vsel %vm3689_vm14, %v3090_v25, %v3817_v47  ;;  %4863 = vmatmul.mubr.msk.f32.gmra.mrb[46].mxu0 %vm2589_vm3, %v2500_v7  ;;  %4959 = vmatmul.mubr.msk.f32.gmra.mrb[46].mxu1 %vm2589_vm3, %v2564_v39  ;;  %v2245_v33 = vsel %vm2194_vm0, %v5062_v46, %v7756_v29  ;;  %v2309_v61 = vsel %vm2194_vm0, %v259_v32, %v7757_v0  ;;  %v5063_v14 = vld [vmem:[%s5113_s15 + $0x1f8] sm:$0xff]  ;;  %v7759_v9 = vld [vmem:[#allocation39_spill] sm:$0xff]  ;;  %v7764_v21 = vld [vmem:[#allocation156_spill] sm:$0xff] }
 0x317   : > { %4073 = vst.msk [vmem:[%s6799_s12 + $0x50] sm:$0xff] %vm2194_vm0, %v3945_v19  ;;  %v4009_v35 = vsel %vm3753_vm15, %v3410_v63, %v3881_v3  ;;  %v2374_v49 = vsel %vm2323_vm1, %v2245_v33, %v7758_v42  ;;  %v2246_v47 = vsel %vm2194_vm0, %v5063_v14, %v7759_v9  ;;  %v7760_v17 = vld [vmem:[#allocation91_spill] sm:$0xff] }
 0x318   : > { %4137 = vst.msk [vmem:[%s6799_s12 + $0x250] sm:$0xff] %vm2194_vm0, %v4009_v35  ;;  %v1525_v31 = vpop.permute.xlu1 %1524  ;;  %v1523_v16 = vpop.permute.xlu0 %1522  ;;  %v2310_v28 = vsel %vm2194_vm0, %v260_v48, %v7760_v17 }
 0x319   : > { %v2436_v18 = vsel %vm2323_vm1, %v2307_v2, %v1523_v16  ;;  %v2437_v23 = vsel %vm2323_vm1, %v2308_v5, %v1525_v31  ;;  %v7761_v31 = vld [vmem:[#allocation153_spill] sm:$0xff] }
 0x31a   : > { %v2375_v16 = vsel %vm2323_vm1, %v2246_v47, %v7761_v31  ;;  %v263_v47 = vld [vmem:[%s5113_s15 + $0x498] sm:$0xff]  ;;  %v7770_v31 = vld [vmem:[#allocation160_spill] sm:$0xff] }
 0x31c   : > { %v2035_v40 = vpop.permute.xlu1 %2034  ;;  %v1907_v11 = vpop.permute.xlu0 %1906 }
 0x31d   : > { %v2565_v27 = vsel %vm2452_vm2, %v2436_v18, %v2035_v40  ;;  %v2501_v43 = vsel %vm2452_vm2, %v2372_v8, %v1907_v11  ;;  %v4813_v15 = vpop.f32.mrb[12].mxu0  ;;  %v4909_v44 = vpop.f32.mrb[12].mxu1 }
 0x31e   : > { %vm3692_vm4 = vcmp.gt.f32.partialorder %v4813_v15, 0.0  ;;  %v3820_v26 = vmul.f32 0.2, %v4813_v15  ;;  %vm3756_vm5 = vcmp.gt.f32.partialorder %v4909_v44, 0.0  ;;  %v3884_v58 = vmul.f32 0.2, %v4909_v44  ;;  %4865 = vmatprep.mubr.msk.f32.mxu0 %vm2589_vm3, %v2501_v43  ;;  %4961 = vmatprep.mubr.msk.f32.mxu1 %vm2589_vm3, %v2565_v27 }
 0x31f   : > { %v3100_v4 = vpop.f32.mrb[13].mxu0  ;;  %v3420_v13 = vpop.f32.mrb[13].mxu1  ;;  %v262_v27 = vld [vmem:[%s5113_s15 + $0x490] sm:$0xff]  ;;  %v5064_v43 = vld [vmem:[%s5113_s15 + $0x208] sm:$0xff] }
 0x320   : > { %v3948_v55 = vsel %vm3692_vm4, %v4813_v15, %v3820_v26  ;;  %v4012_v62 = vsel %vm3756_vm5, %v4909_v44, %v3884_v58  ;;  %vm3691_vm6 = vcmp.gt.f32.partialorder %v3100_v4, 0.0  ;;  %v3819_v59 = vmul.f32 0.2, %v3100_v4  ;;  %v2037_v57 = vpop.permute.xlu1 %2036  ;;  %v1909_v10 = vpop.permute.xlu0 %1908  ;;  %v7762_v15 = vld [vmem:[#allocation42_spill] sm:$0xff] }
 0x321   : > { %4076 = vst.msk [vmem:[%s6799_s12 + $0x68] sm:$0xff] %vm2194_vm0, %v3948_v55  ;;  %4140 = vst.msk [vmem:[%s6799_s12 + $0x268] sm:$0xff] %vm2194_vm0, %v4012_v62  ;;  %vm3755_vm7 = vcmp.gt.f32.partialorder %v3420_v13, 0.0  ;;  %v3883_v34 = vmul.f32 0.2, %v3420_v13  ;;  %v2566_v53 = vsel %vm2452_vm2, %v2437_v23, %v2037_v57  ;;  %v2502_v12 = vsel %vm2452_vm2, %v2373_v1, %v1909_v10  ;;  %v7763_v26 = vld [vmem:[#allocation94_spill] sm:$0xff] }
 0x322   : > { %v3947_v45 = vsel %vm3691_vm6, %v3100_v4, %v3819_v59  ;;  %4866 = vmatmul.mubr.msk.f32.gmra.mrb[48].mxu0 %vm2589_vm3, %v2502_v12  ;;  %4962 = vmatmul.mubr.msk.f32.gmra.mrb[48].mxu1 %vm2589_vm3, %v2566_v53  ;;  %v2247_v44 = vsel %vm2194_vm0, %v5064_v43, %v7762_v15  ;;  %v2311_v58 = vsel %vm2194_vm0, %v261_v54, %v7763_v26  ;;  %v5065_v55 = vld [vmem:[%s5113_s15 + $0x210] sm:$0xff]  ;;  %v7765_v62 = vld [vmem:[#allocation41_spill] sm:$0xff] }
 0x323   : > { %4075 = vst.msk [vmem:[%s6799_s12 + $0x60] sm:$0xff] %vm2194_vm0, %v3947_v45  ;;  %v4011_v6 = vsel %vm3755_vm7, %v3420_v13, %v3883_v34  ;;  %v2376_v1 = vsel %vm2323_vm1, %v2247_v44, %v7764_v21  ;;  %v2248_v59 = vsel %vm2194_vm0, %v5065_v55, %v7765_v62  ;;  %v7766_v57 = vld [vmem:[#allocation93_spill] sm:$0xff] }
 0x324   : > { %4139 = vst.msk [vmem:[%s6799_s12 + $0x260] sm:$0xff] %vm2194_vm0, %v4011_v6  ;;  %v1529_v36 = vpop.permute.xlu1 %1528  ;;  %v1527_v50 = vpop.permute.xlu0 %1526  ;;  %v2312_v10 = vsel %vm2194_vm0, %v262_v27, %v7766_v57 }
 0x325   : > { %v2438_v51 = vsel %vm2323_vm1, %v2309_v61, %v1527_v50  ;;  %v2439_v20 = vsel %vm2323_vm1, %v2310_v28, %v1529_v36  ;;  %v7767_v36 = vld [vmem:[#allocation155_spill] sm:$0xff] }
 0x326   : > { %v2377_v50 = vsel %vm2323_vm1, %v2248_v59, %v7767_v36 }
 0x328   : > { %v2039_v25 = vpop.permute.xlu1 %2038  ;;  %v1911_v63 = vpop.permute.xlu0 %1910 }
 0x329   : > { %v2567_v3 = vsel %vm2452_vm2, %v2438_v51, %v2039_v25  ;;  %v2503_v39 = vsel %vm2452_vm2, %v2374_v49, %v1911_v63  ;;  %v4816_v7 = vpop.f32.mrb[14].mxu0  ;;  %v4912_v19 = vpop.f32.mrb[14].mxu1 }
 0x32a   : > { %vm3694_vm8 = vcmp.gt.f32.partialorder %v4816_v7, 0.0  ;;  %v3822_v35 = vmul.f32 0.2, %v4816_v7  ;;  %vm3758_vm9 = vcmp.gt.f32.partialorder %v4912_v19, 0.0  ;;  %v3886_v38 = vmul.f32 0.2, %v4912_v19  ;;  %4868 = vmatprep.mubr.msk.f32.mxu0 %vm2589_vm3, %v2503_v39  ;;  %4964 = vmatprep.mubr.msk.f32.mxu1 %vm2589_vm3, %v2567_v3 }
 0x32b   : > { %v3110_v24 = vpop.f32.mrb[15].mxu0  ;;  %v3430_v37 = vpop.f32.mrb[15].mxu1  ;;  %v264_v3 = vld [vmem:[%s5113_s15 + $0x4a0] sm:$0xff]  ;;  %v5066_v39 = vld [vmem:[%s5113_s15 + $0x218] sm:$0xff] }
 0x32c   : > { %v3950_v30 = vsel %vm3694_vm8, %v4816_v7, %v3822_v35  ;;  %v4014_v60 = vsel %vm3758_vm9, %v4912_v19, %v3886_v38  ;;  %vm3693_vm10 = vcmp.gt.f32.partialorder %v3110_v24, 0.0  ;;  %v3821_v2 = vmul.f32 0.2, %v3110_v24  ;;  %v2041_v22 = vpop.permute.xlu1 %2040  ;;  %v1913_v8 = vpop.permute.xlu0 %1912  ;;  %v7768_v7 = vld [vmem:[#allocation44_spill] sm:$0xff] }
 0x32d   : > { %4078 = vst.msk [vmem:[%s6799_s12 + $0x78] sm:$0xff] %vm2194_vm0, %v3950_v30  ;;  %4142 = vst.msk [vmem:[%s6799_s12 + $0x278] sm:$0xff] %vm2194_vm0, %v4014_v60  ;;  %vm3757_vm11 = vcmp.gt.f32.partialorder %v3430_v37, 0.0  ;;  %v3885_v18 = vmul.f32 0.2, %v3430_v37  ;;  %v2568_v40 = vsel %vm2452_vm2, %v2439_v20, %v2041_v22  ;;  %v2504_v11 = vsel %vm2452_vm2, %v2375_v16, %v1913_v8  ;;  %v7769_v35 = vld [vmem:[#allocation96_spill] sm:$0xff] }
 0x32e   : > { %v3949_v56 = vsel %vm3693_vm10, %v3110_v24, %v3821_v2  ;;  %4869 = vmatmul.mubr.msk.f32.gmra.mrb[50].mxu0 %vm2589_vm3, %v2504_v11  ;;  %4965 = vmatmul.mubr.msk.f32.gmra.mrb[50].mxu1 %vm2589_vm3, %v2568_v40  ;;  %v2249_v19 = vsel %vm2194_vm0, %v5066_v39, %v7768_v7  ;;  %v2313_v38 = vsel %vm2194_vm0, %v263_v47, %v7769_v35  ;;  %v5067_v30 = vld [vmem:[%s5113_s15 + $0x220] sm:$0xff]  ;;  %v7771_v60 = vld [vmem:[#allocation43_spill] sm:$0xff]  ;;  %v5069_v39 = vld [vmem:[%s5113_s15 + $0x238] sm:$0xff] }
 0x32f   : > { %4077 = vst.msk [vmem:[%s6799_s12 + $0x70] sm:$0xff] %vm2194_vm0, %v3949_v56  ;;  %v4013_v41 = vsel %vm3757_vm11, %v3430_v37, %v3885_v18  ;;  %v2378_v16 = vsel %vm2323_vm1, %v2249_v19, %v7770_v31  ;;  %v2250_v2 = vsel %vm2194_vm0, %v5067_v30, %v7771_v60  ;;  %v7772_v22 = vld [vmem:[#allocation95_spill] sm:$0xff]  ;;  %v7776_v7 = vld [vmem:[#allocation45_spill] sm:$0xff] }
 0x330   : > { %4141 = vst.msk [vmem:[%s6799_s12 + $0x270] sm:$0xff] %vm2194_vm0, %v4013_v41  ;;  %v1533_v52 = vpop.permute.xlu1 %1532  ;;  %v1531_v5 = vpop.permute.xlu0 %1530  ;;  %v2314_v8 = vsel %vm2194_vm0, %v264_v3, %v7772_v22  ;;  %v2252_v19 = vsel %vm2194_vm0, %v5069_v39, %v7776_v7  ;;  %v7777_v35 = vld [vmem:[#allocation97_spill] sm:$0xff] }
 0x331   : > { %v2440_v23 = vsel %vm2323_vm1, %v2311_v58, %v1531_v5  ;;  %v2441_v48 = vsel %vm2323_vm1, %v2312_v10, %v1533_v52  ;;  %v7773_v52 = vld [vmem:[#allocation159_spill] sm:$0xff]  ;;  %v265_v10 = vld [vmem:[%s5113_s15 + $0x4b0] sm:$0xff] }
 0x332   : > { %v2379_v5 = vsel %vm2323_vm1, %v2250_v2, %v7773_v52 }
 0x334   : > { %v2043_v4 = vpop.permute.xlu1 %2042  ;;  %v1915_v13 = vpop.permute.xlu0 %1914 }
 0x335   : > { %v2569_v34 = vsel %vm2452_vm2, %v2440_v23, %v2043_v4  ;;  %v2505_v53 = vsel %vm2452_vm2, %v2376_v1, %v1915_v13  ;;  %v4819_v12 = vpop.f32.mrb[16].mxu0  ;;  %v4915_v45 = vpop.f32.mrb[16].mxu1 }
 0x336   : > { %vm3696_vm12 = vcmp.gt.f32.partialorder %v4819_v12, 0.0  ;;  %v3824_v6 = vmul.f32 0.2, %v4819_v12  ;;  %vm3760_vm13 = vcmp.gt.f32.partialorder %v4915_v45, 0.0  ;;  %v3888_v32 = vmul.f32 0.2, %v4915_v45  ;;  %4871 = vmatprep.mubr.msk.f32.mxu0 %vm2589_vm3, %v2505_v53  ;;  %4967 = vmatprep.mubr.msk.f32.mxu1 %vm2589_vm3, %v2569_v34 }
 0x337   : > { %v3120_v46 = vpop.f32.mrb[17].mxu0  ;;  %v3440_v29 = vpop.f32.mrb[17].mxu1 }
 0x338   : > { %v3952_v33 = vsel %vm3696_vm12, %v4819_v12, %v3824_v6  ;;  %v4016_v0 = vsel %vm3760_vm13, %v4915_v45, %v3888_v32  ;;  %vm3695_vm14 = vcmp.gt.f32.partialorder %v3120_v46, 0.0  ;;  %v3823_v61 = vmul.f32 0.2, %v3120_v46  ;;  %v2045_v42 = vpop.permute.xlu1 %2044  ;;  %v1917_v49 = vpop.permute.xlu0 %1916  ;;  %v5068_v12 = vld [vmem:[%s5113_s15 + $0x230] sm:$0xff]  ;;  %v7774_v45 = vld [vmem:[#allocation46_spill] sm:$0xff] }
 0x339   : > { %4080 = vst.msk [vmem:[%s6799_s12 + $0x88] sm:$0xff] %vm2194_vm0, %v3952_v33  ;;  %4144 = vst.msk [vmem:[%s6799_s12 + $0x288] sm:$0xff] %vm2194_vm0, %v4016_v0  ;;  %vm3759_vm15 = vcmp.gt.f32.partialorder %v3440_v29, 0.0  ;;  %v3887_v51 = vmul.f32 0.2, %v3440_v29  ;;  %v2570_v25 = vsel %vm2452_vm2, %v2441_v48, %v2045_v42  ;;  %v2506_v63 = vsel %vm2452_vm2, %v2377_v50, %v1917_v49  ;;  %v7775_v32 = vld [vmem:[#allocation98_spill] sm:$0xff] }
 0x33a   : > { %v3951_v14 = vsel %vm3695_vm14, %v3120_v46, %v3823_v61  ;;  %4872 = vmatmul.mubr.msk.f32.gmra.mrb[52].mxu0 %vm2589_vm3, %v2506_v63  ;;  %4968 = vmatmul.mubr.msk.f32.gmra.mrb[52].mxu1 %vm2589_vm3, %v2570_v25  ;;  %v2251_v6 = vsel %vm2194_vm0, %v5068_v12, %v7774_v45  ;;  %v2315_v36 = vsel %vm2194_vm0, %v265_v10, %v7775_v32  ;;  %v266_v49 = vld [vmem:[%s5113_s15 + $0x4b8] sm:$0xff]  ;;  %v5071_v12 = vld [vmem:[%s5113_s15 + $0x248] sm:$0xff] }
 0x33b   : > { %4079 = vst.msk [vmem:[%s6799_s12 + $0x80] sm:$0xff] %vm2194_vm0, %v3951_v14  ;;  %v4015_v9 = vsel %vm3759_vm15, %v3440_v29, %v3887_v51  ;;  %v7780_v45 = vld [vmem:[#allocation47_spill] sm:$0xff] }
 0x33c   : > { %4143 = vst.msk [vmem:[%s6799_s12 + $0x280] sm:$0xff] %vm2194_vm0, %v4015_v9  ;;  %v1537_v17 = vpop.permute.xlu1 %1536  ;;  %v1535_v28 = vpop.permute.xlu0 %1534  ;;  %v7781_v32 = vld [vmem:[#allocation99_spill] sm:$0xff] }
 0x33d   : > { %v2442_v20 = vsel %vm2323_vm1, %v2313_v38, %v1535_v28  ;;  %v2443_v27 = vsel %vm2323_vm1, %v2314_v8, %v1537_v17  ;;  %v2316_v38 = vsel %vm2194_vm0, %v266_v49, %v7777_v35  ;;  %v269_v35 = vld [vmem:[%s5113_s15 + $0x4d8] sm:$0xff] }
 0x340   : > { %v2047_v24 = vpop.permute.xlu1 %2046  ;;  %v1919_v37 = vpop.permute.xlu0 %1918 }
 0x341   : > { %v2571_v18 = vsel %vm2452_vm2, %v2442_v20, %v2047_v24  ;;  %v2507_v40 = vsel %vm2452_vm2, %v2378_v16, %v1919_v37  ;;  %v4822_v11 = vpop.f32.mrb[18].mxu0  ;;  %v4918_v56 = vpop.f32.mrb[18].mxu1 }
 0x342   : > { %vm3698_vm4 = vcmp.gt.f32.partialorder %v4822_v11, 0.0  ;;  %v3826_v41 = vmul.f32 0.2, %v4822_v11  ;;  %vm3762_vm5 = vcmp.gt.f32.partialorder %v4918_v56, 0.0  ;;  %v3890_v54 = vmul.f32 0.2, %v4918_v56  ;;  %4874 = vmatprep.mubr.msk.f32.mxu0 %vm2589_vm3, %v2507_v40  ;;  %4970 = vmatprep.mubr.msk.f32.mxu1 %vm2589_vm3, %v2571_v18 }
 0x343   : > { %v3130_v43 = vpop.f32.mrb[19].mxu0  ;;  %v3450_v15 = vpop.f32.mrb[19].mxu1 }
 0x344   : > { %v3954_v44 = vsel %vm3698_vm4, %v4822_v11, %v3826_v41  ;;  %v4018_v26 = vsel %vm3762_vm5, %v4918_v56, %v3890_v54  ;;  %vm3697_vm6 = vcmp.gt.f32.partialorder %v3130_v43, 0.0  ;;  %v3825_v58 = vmul.f32 0.2, %v3130_v43  ;;  %v2049_v21 = vpop.permute.xlu1 %2048  ;;  %v1921_v1 = vpop.permute.xlu0 %1920  ;;  %v267_v54 = vld [vmem:[%s5113_s15 + $0x4c0] sm:$0xff] }
 0x345   : > { %4082 = vst.msk [vmem:[%s6799_s12 + $0x98] sm:$0xff] %vm2194_vm0, %v3954_v44  ;;  %4146 = vst.msk [vmem:[%s6799_s12 + $0x298] sm:$0xff] %vm2194_vm0, %v4018_v26  ;;  %vm3761_vm7 = vcmp.gt.f32.partialorder %v3450_v15, 0.0  ;;  %v3889_v23 = vmul.f32 0.2, %v3450_v15  ;;  %v2572_v4 = vsel %vm2452_vm2, %v2443_v27, %v2049_v21  ;;  %v2508_v13 = vsel %vm2452_vm2, %v2379_v5, %v1921_v1  ;;  %v7778_v21 = vld [vmem:[#allocation48_spill] sm:$0xff] }
 0x346   : > { %v3953_v55 = vsel %vm3697_vm6, %v3130_v43, %v3825_v58  ;;  %4875 = vmatmul.mubr.msk.f32.gmra.mrb[54].mxu0 %vm2589_vm3, %v2508_v13  ;;  %4971 = vmatmul.mubr.msk.f32.gmra.mrb[54].mxu1 %vm2589_vm3, %v2572_v4  ;;  %v5070_v58 = vld [vmem:[%s5113_s15 + $0x240] sm:$0xff] }
 0x347   : > { %4081 = vst.msk [vmem:[%s6799_s12 + $0x90] sm:$0xff] %vm2194_vm0, %v3953_v55  ;;  %v4017_v62 = vsel %vm3761_vm7, %v3450_v15, %v3889_v23  ;;  %v2253_v1 = vsel %vm2194_vm0, %v5070_v58, %v7778_v21  ;;  %v7779_v23 = vld [vmem:[#allocation100_spill] sm:$0xff]  ;;  %v268_v55 = vld [vmem:[%s5113_s15 + $0x4c8] sm:$0xff] }
 0x348   : > { %4145 = vst.msk [vmem:[%s6799_s12 + $0x290] sm:$0xff] %vm2194_vm0, %v4017_v62  ;;  %v1539_v59 = vpop.permute.xlu1 %1538  ;;  %v1411_v57 = vpop.permute.xlu0 %1410  ;;  %v2317_v4 = vsel %vm2194_vm0, %v267_v54, %v7779_v23 }
 0x349   : > { %v2444_v33 = vsel %vm2323_vm1, %v2315_v36, %v1539_v59  ;;  %v2380_v0 = vsel %vm2323_vm1, %v2251_v6, %v1411_v57  ;;  %v2254_v6 = vsel %vm2194_vm0, %v5071_v12, %v7780_v45  ;;  %v2318_v36 = vsel %vm2194_vm0, %v268_v55, %v7781_v32  ;;  %v207_v45 = vld [vmem:[%s5113_s15 + $0x268] sm:$0xff] }
 0x34c   : > { %v1541_v34 = vpop.permute.xlu1 %1540  ;;  %v1413_v53 = vpop.permute.xlu0 %1412 }
 0x34d   : > { %v4825_v50 = vpop.f32.mrb[20].mxu0  ;;  %v4921_v48 = vpop.f32.mrb[20].mxu1  ;;  %v2445_v16 = vsel %vm2323_vm1, %v2316_v38, %v1541_v34  ;;  %v2381_v20 = vsel %vm2323_vm1, %v2252_v19, %v1413_v53  ;;  %v205_v19 = vld [vmem:[%s5113_s15 + $0x258] sm:$0xff] }
 0x34e   : > { %vm3700_vm8 = vcmp.gt.f32.partialorder %v4825_v50, 0.0  ;;  %v3828_v46 = vmul.f32 0.2, %v4825_v50  ;;  %vm3764_vm9 = vcmp.gt.f32.partialorder %v4921_v48, 0.0  ;;  %v3892_v29 = vmul.f32 0.2, %v4921_v48 }
 0x34f   : > { %v3140_v61 = vpop.f32.mrb[21].mxu0  ;;  %v3460_v42 = vpop.f32.mrb[21].mxu1 }
 0x350   : > { %v3956_v51 = vsel %vm3700_vm8, %v4825_v50, %v3828_v46  ;;  %v4020_v25 = vsel %vm3764_vm9, %v4921_v48, %v3892_v29  ;;  %vm3699_vm10 = vcmp.gt.f32.partialorder %v3140_v61, 0.0  ;;  %v3827_v63 = vmul.f32 0.2, %v3140_v61  ;;  %v2051_v14 = vpop.permute.xlu1 %2050  ;;  %v1923_v9 = vpop.permute.xlu0 %1922 }
 0x351   : > { %4084 = vst.msk [vmem:[%s6799_s12 + $0xa8] sm:$0xff] %vm2194_vm0, %v3956_v51  ;;  %4148 = vst.msk [vmem:[%s6799_s12 + $0x2a8] sm:$0xff] %vm2194_vm0, %v4020_v25  ;;  %vm3763_vm11 = vcmp.gt.f32.partialorder %v3460_v42, 0.0  ;;  %v3891_v47 = vmul.f32 0.2, %v3460_v42  ;;  %v2573_v17 = vsel %vm2452_vm2, %v2444_v33, %v2051_v14  ;;  %v2509_v28 = vsel %vm2452_vm2, %v2380_v0, %v1923_v9 }
 0x352   : > { %v3955_v3 = vsel %vm3699_vm10, %v3140_v61, %v3827_v63  ;;  %4877 = vmatprep.mubr.msk.f32.mxu0 %vm2589_vm3, %v2509_v28  ;;  %4973 = vmatprep.mubr.msk.f32.mxu1 %vm2589_vm3, %v2573_v17 }
 0x353   : > { %4083 = vst.msk [vmem:[%s6799_s12 + $0xa0] sm:$0xff] %vm2194_vm0, %v3955_v3  ;;  %v4019_v31 = vsel %vm3763_vm11, %v3460_v42, %v3891_v47 }
 0x354   : > { %4147 = vst.msk [vmem:[%s6799_s12 + $0x2a0] sm:$0xff] %vm2194_vm0, %v4019_v31  ;;  %v2053_v24 = vpop.permute.xlu1 %2052  ;;  %v1925_v37 = vpop.permute.xlu0 %1924 }
 0x355   : > { %v2574_v30 = vsel %vm2452_vm2, %v2445_v16, %v2053_v24  ;;  %v2510_v60 = vsel %vm2452_vm2, %v2381_v20, %v1925_v37  ;;  %v206_v16 = vld [vmem:[%s5113_s15 + $0x260] sm:$0xff] }
 0x356   : > { %4878 = vmatmul.mubr.msk.f32.gmra.mrb[56].mxu0 %vm2589_vm3, %v2510_v60  ;;  %4974 = vmatmul.mubr.msk.f32.gmra.mrb[56].mxu1 %vm2589_vm3, %v2574_v30  ;;  %v270_v20 = vld [vmem:[%s5113_s15 + $0x4e0] sm:$0xff] }
 0x357   : > { %v7782_v24 = vld [vmem:[#allocation50_spill] sm:$0xff] }
 0x358   : > { %v1543_v2 = vpop.permute.xlu1 %1542  ;;  %v1415_v22 = vpop.permute.xlu0 %1414  ;;  %v2255_v37 = vsel %vm2194_vm0, %v205_v19, %v7782_v24  ;;  %v7783_v30 = vld [vmem:[#allocation102_spill] sm:$0xff] }
 0x359   : > { %v4828_v8 = vpop.f32.mrb[22].mxu0  ;;  %v4924_v18 = vpop.f32.mrb[22].mxu1  ;;  %v2446_v62 = vsel %vm2323_vm1, %v2317_v4, %v1543_v2  ;;  %v2382_v59 = vsel %vm2323_vm1, %v2253_v1, %v1415_v22  ;;  %v2319_v60 = vsel %vm2194_vm0, %v269_v35, %v7783_v30 }
 0x35a   : > { %vm3702_vm12 = vcmp.gt.f32.partialorder %v4828_v8, 0.0  ;;  %v3830_v40 = vmul.f32 0.2, %v4828_v8  ;;  %vm3766_vm13 = vcmp.gt.f32.partialorder %v4924_v18, 0.0  ;;  %v3894_v11 = vmul.f32 0.2, %v4924_v18 }
 0x35b   : > { %v3150_v56 = vpop.f32.mrb[23].mxu0  ;;  %v3470_v41 = vpop.f32.mrb[23].mxu1 }
 0x35c   : > { %v3958_v52 = vsel %vm3702_vm12, %v4828_v8, %v3830_v40  ;;  %v4022_v5 = vsel %vm3766_vm13, %v4924_v18, %v3894_v11  ;;  %vm3701_vm14 = vcmp.gt.f32.partialorder %v3150_v56, 0.0  ;;  %v3829_v27 = vmul.f32 0.2, %v3150_v56  ;;  %v1545_v43 = vpop.permute.xlu1 %1544  ;;  %v1417_v15 = vpop.permute.xlu0 %1416  ;;  %v7784_v40 = vld [vmem:[#allocation49_spill] sm:$0xff] }
 0x35d   : > { %4086 = vst.msk [vmem:[%s6799_s12 + $0xb8] sm:$0xff] %vm2194_vm0, %v3958_v52  ;;  %4150 = vst.msk [vmem:[%s6799_s12 + $0x2b8] sm:$0xff] %vm2194_vm0, %v4022_v5  ;;  %vm3765_vm15 = vcmp.gt.f32.partialorder %v3470_v41, 0.0  ;;  %v3893_v44 = vmul.f32 0.2, %v3470_v41  ;;  %v2447_v50 = vsel %vm2323_vm1, %v2318_v36, %v1545_v43  ;;  %v2383_v48 = vsel %vm2323_vm1, %v2254_v6, %v1417_v15  ;;  %v271_v6 = vld [vmem:[%s5113_s15 + $0x4e8] sm:$0xff] }
 0x35e   : > { %v3957_v26 = vsel %vm3701_vm14, %v3150_v56, %v3829_v27  ;;  %v2256_v11 = vsel %vm2194_vm0, %v206_v16, %v7784_v40  ;;  %v7785_v56 = vld [vmem:[#allocation101_spill] sm:$0xff] }
 0x35f   : > { %4085 = vst.msk [vmem:[%s6799_s12 + $0xb0] sm:$0xff] %vm2194_vm0, %v3957_v26  ;;  %v4021_v13 = vsel %vm3765_vm15, %v3470_v41, %v3893_v44  ;;  %v2320_v41 = vsel %vm2194_vm0, %v270_v20, %v7785_v56  ;;  %v7789_v20 = vld [vmem:[#allocation103_spill] sm:$0xff] }
 0x360   : > { %4149 = vst.msk [vmem:[%s6799_s12 + $0x2b0] sm:$0xff] %vm2194_vm0, %v4021_v13  ;;  %v2055_v57 = vpop.permute.xlu1 %2054  ;;  %v1927_v10 = vpop.permute.xlu0 %1926 }
 0x361   : > { %v2575_v34 = vsel %vm2452_vm2, %v2446_v62, %v2055_v57  ;;  %v2511_v53 = vsel %vm2452_vm2, %v2382_v59, %v1927_v10 }
 0x362   : > { %4880 = vmatprep.mubr.msk.f32.mxu0 %vm2589_vm3, %v2511_v53  ;;  %4976 = vmatprep.mubr.msk.f32.mxu1 %vm2589_vm3, %v2575_v34 }
 0x364   : > { %v2057_v46 = vpop.permute.xlu1 %2056  ;;  %v1929_v29 = vpop.permute.xlu0 %1928 }
 0x365   : > { %v2576_v33 = vsel %vm2452_vm2, %v2447_v50, %v2057_v46  ;;  %v2512_v0 = vsel %vm2452_vm2, %v2383_v48, %v1929_v29  ;;  %v4831_v61 = vpop.f32.mrb[24].mxu0  ;;  %v4927_v42 = vpop.f32.mrb[24].mxu1  ;;  %v7786_v50 = vld [vmem:[#allocation52_spill] sm:$0xff] }
 0x366   : > { %vm3704_vm4 = vcmp.gt.f32.partialorder %v4831_v61, 0.0  ;;  %v3832_v49 = vmul.f32 0.2, %v4831_v61  ;;  %vm3768_vm5 = vcmp.gt.f32.partialorder %v4927_v42, 0.0  ;;  %v3896_v51 = vmul.f32 0.2, %v4927_v42  ;;  %4881 = vmatmul.mubr.msk.f32.gmra.mrb[58].mxu0 %vm2589_vm3, %v2512_v0  ;;  %4977 = vmatmul.mubr.msk.f32.gmra.mrb[58].mxu1 %vm2589_vm3, %v2576_v33 }
 0x367   : > { %v3160_v25 = vpop.f32.mrb[25].mxu0  ;;  %v3480_v63 = vpop.f32.mrb[25].mxu1  ;;  %v2257_v48 = vsel %vm2194_vm0, %v207_v45, %v7786_v50  ;;  %v7787_v46 = vld [vmem:[#allocation104_spill] sm:$0xff] }
 0x368   : > { %v3960_v14 = vsel %vm3704_vm4, %v4831_v61, %v3832_v49  ;;  %v4024_v9 = vsel %vm3768_vm5, %v4927_v42, %v3896_v51  ;;  %vm3703_vm6 = vcmp.gt.f32.partialorder %v3160_v25, 0.0  ;;  %v3831_v47 = vmul.f32 0.2, %v3160_v25  ;;  %v1547_v17 = vpop.permute.xlu1 %1546  ;;  %v1419_v28 = vpop.permute.xlu0 %1418 }
 0x369   : > { %4088 = vst.msk [vmem:[%s6799_s12 + $0xc8] sm:$0xff] %vm2194_vm0, %v3960_v14  ;;  %4152 = vst.msk [vmem:[%s6799_s12 + $0x2c8] sm:$0xff] %vm2194_vm0, %v4024_v9  ;;  %vm3767_vm7 = vcmp.gt.f32.partialorder %v3480_v63, 0.0  ;;  %v3895_v3 = vmul.f32 0.2, %v3480_v63  ;;  %v2448_v2 = vsel %vm2323_vm1, %v2319_v60, %v1547_v17  ;;  %v2384_v22 = vsel %vm2323_vm1, %v2255_v37, %v1419_v28  ;;  %v208_v14 = vld [vmem:[%s5113_s15 + $0x270] sm:$0xff] }
 0x36a   : > { %v3959_v39 = vsel %vm3703_vm6, %v3160_v25, %v3831_v47  ;;  %v2321_v29 = vsel %vm2194_vm0, %v271_v6, %v7787_v46  ;;  %v272_v9 = vld [vmem:[%s5113_s15 + $0x4f0] sm:$0xff] }
 0x36b   : > { %4087 = vst.msk [vmem:[%s6799_s12 + $0xc0] sm:$0xff] %vm2194_vm0, %v3959_v39  ;;  %v4023_v7 = vsel %vm3767_vm7, %v3480_v63, %v3895_v3  ;;  %v2322_v24 = vsel %vm2194_vm0, %v272_v9, %v7789_v20 }
 0x36c   : > { %4151 = vst.msk [vmem:[%s6799_s12 + $0x2c0] sm:$0xff] %vm2194_vm0, %v4023_v7  ;;  %v1549_v38 = vpop.permute.xlu1 %1548  ;;  %v1421_v31 = vpop.permute.xlu0 %1420 }
 0x36d   : > { %v2449_v44 = vsel %vm2323_vm1, %v2320_v41, %v1549_v38  ;;  %v2385_v26 = vsel %vm2323_vm1, %v2256_v11, %v1421_v31  ;;  %v7788_v31 = vld [vmem:[#allocation51_spill] sm:$0xff] }
 0x36e   : > { %v2258_v16 = vsel %vm2194_vm0, %v208_v14, %v7788_v31 }
 0x370   : > { %v2059_v8 = vpop.permute.xlu1 %2058  ;;  %v1931_v18 = vpop.permute.xlu0 %1930 }
 0x371   : > { %v2577_v54 = vsel %vm2452_vm2, %v2448_v2, %v2059_v8  ;;  %v2513_v52 = vsel %vm2452_vm2, %v2384_v22, %v1931_v18  ;;  %v4834_v5 = vpop.f32.mrb[26].mxu0  ;;  %v4930_v27 = vpop.f32.mrb[26].mxu1 }
 0x372   : > { %vm3706_vm8 = vcmp.gt.f32.partialorder %v4834_v5, 0.0  ;;  %v3834_v43 = vmul.f32 0.2, %v4834_v5  ;;  %vm3770_vm9 = vcmp.gt.f32.partialorder %v4930_v27, 0.0  ;;  %v3898_v15 = vmul.f32 0.2, %v4930_v27  ;;  %4883 = vmatprep.mubr.msk.f32.mxu0 %vm2589_vm3, %v2513_v52  ;;  %4979 = vmatprep.mubr.msk.f32.mxu1 %vm2589_vm3, %v2577_v54 }
 0x373   : > { %v3170_v58 = vpop.f32.mrb[27].mxu0  ;;  %v3490_v21 = vpop.f32.mrb[27].mxu1 }
 0x374   : > { %v3962_v1 = vsel %vm3706_vm8, %v4834_v5, %v3834_v43  ;;  %v4026_v23 = vsel %vm3770_vm9, %v4930_v27, %v3898_v15  ;;  %vm3705_vm10 = vcmp.gt.f32.partialorder %v3170_v58, 0.0  ;;  %v3833_v4 = vmul.f32 0.2, %v3170_v58  ;;  %v2061_v13 = vpop.permute.xlu1 %2060  ;;  %v1933_v55 = vpop.permute.xlu0 %1932 }
 0x375   : > { %4090 = vst.msk [vmem:[%s6799_s12 + $0xd8] sm:$0xff] %vm2194_vm0, %v3962_v1  ;;  %4154 = vst.msk [vmem:[%s6799_s12 + $0x2d8] sm:$0xff] %vm2194_vm0, %v4026_v23  ;;  %vm3769_vm11 = vcmp.gt.f32.partialorder %v3490_v21, 0.0  ;;  %v3897_v62 = vmul.f32 0.2, %v3490_v21  ;;  %v2578_v59 = vsel %vm2452_vm2, %v2449_v44, %v2061_v13  ;;  %v2514_v57 = vsel %vm2452_vm2, %v2385_v26, %v1933_v55 }
 0x376   : > { %v3961_v10 = vsel %vm3705_vm10, %v3170_v58, %v3833_v4  ;;  %4884 = vmatmul.mubr.msk.f32.gmra.mrb[60].mxu0 %vm2589_vm3, %v2514_v57  ;;  %4980 = vmatmul.mubr.msk.f32.gmra.mrb[60].mxu1 %vm2589_vm3, %v2578_v59 }
 0x377   : > { %4089 = vst.msk [vmem:[%s6799_s12 + $0xd0] sm:$0xff] %vm2194_vm0, %v3961_v10  ;;  %v4025_v34 = vsel %vm3769_vm11, %v3490_v21, %v3897_v62 }
 0x378   : > { %4153 = vst.msk [vmem:[%s6799_s12 + $0x2d0] sm:$0xff] %vm2194_vm0, %v4025_v34  ;;  %v1551_v53 = vpop.permute.xlu1 %1550  ;;  %v1423_v12 = vpop.permute.xlu0 %1422 }
 0x379   : > { %v2450_v49 = vsel %vm2323_vm1, %v2321_v29, %v1551_v53  ;;  %v2386_v51 = vsel %vm2323_vm1, %v2257_v48, %v1423_v12 }
 0x37c   : > { %v1553_v32 = vpop.permute.xlu1 %1552  ;;  %v1425_v36 = vpop.permute.xlu0 %1424 }
 0x37d   : > { %v4837_v33 = vpop.f32.mrb[28].mxu0  ;;  %v4933_v0 = vpop.f32.mrb[28].mxu1  ;;  %v2451_v30 = vsel %vm2323_vm1, %v2322_v24, %v1553_v32  ;;  %v2387_v60 = vsel %vm2323_vm1, %v2258_v16, %v1425_v36 }
 0x37e   : > { %vm3708_vm12 = vcmp.gt.f32.partialorder %v4837_v33, 0.0  ;;  %v3836_v61 = vmul.f32 0.2, %v4837_v33  ;;  %vm3772_vm13 = vcmp.gt.f32.partialorder %v4933_v0, 0.0  ;;  %v3900_v42 = vmul.f32 0.2, %v4933_v0 }
 0x37f   : > { %v3180_v25 = vpop.f32.mrb[29].mxu0  ;;  %v3500_v63 = vpop.f32.mrb[29].mxu1 }
 0x380   : > { %v3964_v47 = vsel %vm3708_vm12, %v4837_v33, %v3836_v61  ;;  %v4028_v17 = vsel %vm3772_vm13, %v4933_v0, %v3900_v42  ;;  %vm3707_vm14 = vcmp.gt.f32.partialorder %v3180_v25, 0.0  ;;  %v3835_v28 = vmul.f32 0.2, %v3180_v25  ;;  %v2063_v3 = vpop.permute.xlu1 %2062  ;;  %v1935_v39 = vpop.permute.xlu0 %1934 }
 0x381   : > { %4092 = vst.msk [vmem:[%s6799_s12 + $0xe8] sm:$0xff] %vm2194_vm0, %v3964_v47  ;;  %4156 = vst.msk [vmem:[%s6799_s12 + $0x2e8] sm:$0xff] %vm2194_vm0, %v4028_v17  ;;  %vm3771_vm15 = vcmp.gt.f32.partialorder %v3500_v63, 0.0  ;;  %v3899_v7 = vmul.f32 0.2, %v3500_v63  ;;  %v2579_v19 = vsel %vm2452_vm2, %v2450_v49, %v2063_v3  ;;  %v2515_v35 = vsel %vm2452_vm2, %v2386_v51, %v1935_v39 }
 0x382   : > { %v3963_v38 = vsel %vm3707_vm14, %v3180_v25, %v3835_v28  ;;  %4886 = vmatprep.mubr.msk.f32.mxu0 %vm2589_vm3, %v2515_v35  ;;  %4982 = vmatprep.mubr.msk.f32.mxu1 %vm2589_vm3, %v2579_v19 }
 0x383   : > { %4091 = vst.msk [vmem:[%s6799_s12 + $0xe0] sm:$0xff] %vm2194_vm0, %v3963_v38  ;;  %v4027_v37 = vsel %vm3771_vm15, %v3500_v63, %v3899_v7 }
 0x384   : > { %4155 = vst.msk [vmem:[%s6799_s12 + $0x2e0] sm:$0xff] %vm2194_vm0, %v4027_v37  ;;  %v2065_v2 = vpop.permute.xlu1 %2064  ;;  %v1937_v22 = vpop.permute.xlu0 %1936 }
 0x385   : > { %v2580_v8 = vsel %vm2452_vm2, %v2451_v30, %v2065_v2  ;;  %v2516_v18 = vsel %vm2452_vm2, %v2387_v60, %v1937_v22 }
 0x386   : > { %4887 = vmatmul.mubr.msk.f32.gmra.mrb[62].mxu0 %vm2589_vm3, %v2516_v18  ;;  %4983 = vmatmul.mubr.msk.f32.gmra.mrb[62].mxu1 %vm2589_vm3, %v2580_v8 }
 0x389   : > { %v4840_v40 = vpop.f32.mrb[30].mxu0  ;;  %v4936_v11 = vpop.f32.mrb[30].mxu1 }
 0x38a   : > { %vm3710_vm4 = vcmp.gt.f32.partialorder %v4840_v40, 0.0  ;;  %v3838_v56 = vmul.f32 0.2, %v4840_v40  ;;  %vm3774_vm1 = vcmp.gt.f32.partialorder %v4936_v11, 0.0  ;;  %v3902_v41 = vmul.f32 0.2, %v4936_v11 }
 0x38b   : > { %v3190_v54 = vpop.f32.mrb[31].mxu0  ;;  %v3510_v52 = vpop.f32.mrb[31].mxu1 }
 0x38c   : > { %v3966_v5 = vsel %vm3710_vm4, %v4840_v40, %v3838_v56  ;;  %v4030_v27 = vsel %vm3774_vm1, %v4936_v11, %v3902_v41  ;;  %vm3709_vm5 = vcmp.gt.f32.partialorder %v3190_v54, 0.0  ;;  %v3837_v43 = vmul.f32 0.2, %v3190_v54 }
 0x38d   : > { %4094 = vst.msk [vmem:[%s6799_s12 + $0xf8] sm:$0xff] %vm2194_vm0, %v3966_v5  ;;  %4158 = vst.msk [vmem:[%s6799_s12 + $0x2f8] sm:$0xff] %vm2194_vm0, %v4030_v27  ;;  %vm3773_vm2 = vcmp.gt.f32.partialorder %v3510_v52, 0.0  ;;  %v3901_v15 = vmul.f32 0.2, %v3510_v52 }
 0x38e   : > { %v3965_v44 = vsel %vm3709_vm5, %v3190_v54, %v3837_v43 }
 0x38f   : > { %4093 = vst.msk [vmem:[%s6799_s12 + $0xf0] sm:$0xff] %vm2194_vm0, %v3965_v44  ;;  %v4029_v26 = vsel %vm3773_vm2, %v3510_v52, %v3901_v15 }
 0x390   : > { %4157 = vst.msk [vmem:[%s6799_s12 + $0x2f0] sm:$0xff] %vm2194_vm0, %v4029_v26 }
 0x395   : > { %v4843_v58 = vpop.f32.mrb[32].mxu0  ;;  %v4939_v21 = vpop.f32.mrb[32].mxu1 }
 0x396   : > { %vm3712_vm3 = vcmp.gt.f32.partialorder %v4843_v58, 0.0  ;;  %v3840_v1 = vmul.f32 0.2, %v4843_v58  ;;  %vm3776_vm6 = vcmp.gt.f32.partialorder %v4939_v21, 0.0  ;;  %v3904_v23 = vmul.f32 0.2, %v4939_v21 }
 0x397   : > { %v3200_v4 = vpop.f32.mrb[33].mxu0  ;;  %v3520_v13 = vpop.f32.mrb[33].mxu1 }
 0x398   : > { %v3968_v55 = vsel %vm3712_vm3, %v4843_v58, %v3840_v1  ;;  %v4032_v62 = vsel %vm3776_vm6, %v4939_v21, %v3904_v23  ;;  %vm3711_vm7 = vcmp.gt.f32.partialorder %v3200_v4, 0.0  ;;  %v3839_v59 = vmul.f32 0.2, %v3200_v4 }
 0x399   : > { %4096 = vst.msk [vmem:[%s6799_s12 + $0x108] sm:$0xff] %vm2194_vm0, %v3968_v55  ;;  %4160 = vst.msk [vmem:[%s6799_s12 + $0x308] sm:$0xff] %vm2194_vm0, %v4032_v62  ;;  %vm3775_vm8 = vcmp.gt.f32.partialorder %v3520_v13, 0.0  ;;  %v3903_v57 = vmul.f32 0.2, %v3520_v13 }
 0x39a   : > { %v3967_v10 = vsel %vm3711_vm7, %v3200_v4, %v3839_v59 }
 0x39b   : > { %4095 = vst.msk [vmem:[%s6799_s12 + $0x100] sm:$0xff] %vm2194_vm0, %v3967_v10  ;;  %v4031_v34 = vsel %vm3775_vm8, %v3520_v13, %v3903_v57 }
 0x39c   : > { %4159 = vst.msk [vmem:[%s6799_s12 + $0x300] sm:$0xff] %vm2194_vm0, %v4031_v34 }
 0x3a1   : > { %v4846_v53 = vpop.f32.mrb[34].mxu0  ;;  %v4942_v12 = vpop.f32.mrb[34].mxu1 }
 0x3a2   : > { %vm3714_vm9 = vcmp.gt.f32.partialorder %v4846_v53, 0.0  ;;  %v3842_v45 = vmul.f32 0.2, %v4846_v53  ;;  %vm3778_vm10 = vcmp.gt.f32.partialorder %v4942_v12, 0.0  ;;  %v3906_v6 = vmul.f32 0.2, %v4942_v12 }
 0x3a3   : > { %v3210_v32 = vpop.f32.mrb[35].mxu0  ;;  %v3530_v36 = vpop.f32.mrb[35].mxu1 }
 0x3a4   : > { %v3970_v50 = vsel %vm3714_vm9, %v4846_v53, %v3842_v45  ;;  %v4034_v48 = vsel %vm3778_vm10, %v4942_v12, %v3906_v6  ;;  %vm3713_vm11 = vcmp.gt.f32.partialorder %v3210_v32, 0.0  ;;  %v3841_v46 = vmul.f32 0.2, %v3210_v32 }
 0x3a5   : > { %4098 = vst.msk [vmem:[%s6799_s12 + $0x118] sm:$0xff] %vm2194_vm0, %v3970_v50  ;;  %4162 = vst.msk [vmem:[%s6799_s12 + $0x318] sm:$0xff] %vm2194_vm0, %v4034_v48  ;;  %vm3777_vm12 = vcmp.gt.f32.partialorder %v3530_v36, 0.0  ;;  %v3905_v29 = vmul.f32 0.2, %v3530_v36 }
 0x3a6   : > { %v3969_v33 = vsel %vm3713_vm11, %v3210_v32, %v3841_v46 }
 0x3a7   : > { %4097 = vst.msk [vmem:[%s6799_s12 + $0x110] sm:$0xff] %vm2194_vm0, %v3969_v33  ;;  %v4033_v0 = vsel %vm3777_vm12, %v3530_v36, %v3905_v29 }
 0x3a8   : > { %4161 = vst.msk [vmem:[%s6799_s12 + $0x310] sm:$0xff] %vm2194_vm0, %v4033_v0 }
 0x3ad   : > { %v4849_v61 = vpop.f32.mrb[36].mxu0 }
 0x3ae   : > { %v4945_v42 = vpop.f32.mrb[36].mxu1  ;;  %vm3716_vm13 = vcmp.gt.f32.partialorder %v4849_v61, 0.0  ;;  %v3844_v49 = vmul.f32 0.2, %v4849_v61  ;;  %v3220_v25 = vpop.f32.mrb[37].mxu0 }
 0x3af   : > { %vm3780_vm14 = vcmp.gt.f32.partialorder %v4945_v42, 0.0  ;;  %v3908_v51 = vmul.f32 0.2, %v4945_v42  ;;  %v3540_v63 = vpop.f32.mrb[37].mxu1  ;;  %vm3715_vm15 = vcmp.gt.f32.partialorder %v3220_v25, 0.0 }
 0x3b0   : > { %v3972_v14 = vsel %vm3716_vm13, %v4849_v61, %v3844_v49  ;;  %v3843_v47 = vmul.f32 0.2, %v3220_v25  ;;  %vm3779_vm4 = vcmp.gt.f32.partialorder %v3540_v63, 0.0  ;;  %v3907_v17 = vmul.f32 0.2, %v3540_v63 }
 0x3b1   : > { %v4036_v9 = vsel %vm3780_vm14, %v4945_v42, %v3908_v51  ;;  %4100 = vst.msk [vmem:[%s6799_s12 + $0x128] sm:$0xff] %vm2194_vm0, %v3972_v14 }
 0x3b2   : > { %4164 = vst.msk [vmem:[%s6799_s12 + $0x328] sm:$0xff] %vm2194_vm0, %v4036_v9  ;;  %v3971_v28 = vsel %vm3715_vm15, %v3220_v25, %v3843_v47  ;;  %v4035_v3 = vsel %vm3779_vm4, %v3540_v63, %v3907_v17 }
 0x3b3   : > { %4099 = vst.msk [vmem:[%s6799_s12 + $0x120] sm:$0xff] %vm2194_vm0, %v3971_v28  ;;  %4163 = vst.msk [vmem:[%s6799_s12 + $0x320] sm:$0xff] %vm2194_vm0, %v4035_v3 }
 0x3b9   : > { %v4852_v39 = vpop.f32.mrb[38].mxu0 }
 0x3ba   : > { %v4948_v7 = vpop.f32.mrb[38].mxu1  ;;  %vm3718_vm1 = vcmp.gt.f32.partialorder %v4852_v39, 0.0  ;;  %v3846_v19 = vmul.f32 0.2, %v4852_v39  ;;  %v3230_v38 = vpop.f32.mrb[39].mxu0 }
 0x3bb   : > { %vm3782_vm5 = vcmp.gt.f32.partialorder %v4948_v7, 0.0  ;;  %v3910_v35 = vmul.f32 0.2, %v4948_v7  ;;  %v3550_v31 = vpop.f32.mrb[39].mxu1  ;;  %vm3717_vm2 = vcmp.gt.f32.partialorder %v3230_v38, 0.0 }
 0x3bc   : > { %v3974_v16 = vsel %vm3718_vm1, %v4852_v39, %v3846_v19  ;;  %v3845_v24 = vmul.f32 0.2, %v3230_v38  ;;  %vm3781_vm3 = vcmp.gt.f32.partialorder %v3550_v31, 0.0  ;;  %v3909_v37 = vmul.f32 0.2, %v3550_v31 }
 0x3bd   : > { %v4038_v20 = vsel %vm3782_vm5, %v4948_v7, %v3910_v35  ;;  %4102 = vst.msk [vmem:[%s6799_s12 + $0x138] sm:$0xff] %vm2194_vm0, %v3974_v16 }
 0x3be   : > { %4166 = vst.msk [vmem:[%s6799_s12 + $0x338] sm:$0xff] %vm2194_vm0, %v4038_v20  ;;  %v3973_v30 = vsel %vm3717_vm2, %v3230_v38, %v3845_v24  ;;  %v4037_v60 = vsel %vm3781_vm3, %v3550_v31, %v3909_v37 }
 0x3bf   : > { %4101 = vst.msk [vmem:[%s6799_s12 + $0x130] sm:$0xff] %vm2194_vm0, %v3973_v30  ;;  %4165 = vst.msk [vmem:[%s6799_s12 + $0x330] sm:$0xff] %vm2194_vm0, %v4037_v60 }
 0x3c5   : > { %v4855_v2 = vpop.f32.mrb[40].mxu0 }
 0x3c6   : > { %v4951_v22 = vpop.f32.mrb[40].mxu1  ;;  %vm3720_vm6 = vcmp.gt.f32.partialorder %v4855_v2, 0.0  ;;  %v3848_v8 = vmul.f32 0.2, %v4855_v2  ;;  %v3240_v40 = vpop.f32.mrb[41].mxu0 }
 0x3c7   : > { %vm3784_vm7 = vcmp.gt.f32.partialorder %v4951_v22, 0.0  ;;  %v3912_v18 = vmul.f32 0.2, %v4951_v22  ;;  %v3560_v11 = vpop.f32.mrb[41].mxu1  ;;  %vm3719_vm8 = vcmp.gt.f32.partialorder %v3240_v40, 0.0 }
 0x3c8   : > { %v3976_v56 = vsel %vm3720_vm6, %v4855_v2, %v3848_v8  ;;  %v3847_v54 = vmul.f32 0.2, %v3240_v40  ;;  %vm3783_vm9 = vcmp.gt.f32.partialorder %v3560_v11, 0.0  ;;  %v3911_v52 = vmul.f32 0.2, %v3560_v11 }
 0x3c9   : > { %v4040_v41 = vsel %vm3784_vm7, %v4951_v22, %v3912_v18  ;;  %4104 = vst.msk [vmem:[%s6799_s12 + $0x148] sm:$0xff] %vm2194_vm0, %v3976_v56 }
 0x3ca   : > { %4168 = vst.msk [vmem:[%s6799_s12 + $0x348] sm:$0xff] %vm2194_vm0, %v4040_v41  ;;  %v3975_v5 = vsel %vm3719_vm8, %v3240_v40, %v3847_v54  ;;  %v4039_v27 = vsel %vm3783_vm9, %v3560_v11, %v3911_v52 }
 0x3cb   : > { %4103 = vst.msk [vmem:[%s6799_s12 + $0x140] sm:$0xff] %vm2194_vm0, %v3975_v5  ;;  %4167 = vst.msk [vmem:[%s6799_s12 + $0x340] sm:$0xff] %vm2194_vm0, %v4039_v27 }
 0x3d1   : > { %v4858_v43 = vpop.f32.mrb[42].mxu0 }
 0x3d2   : > { %v4954_v15 = vpop.f32.mrb[42].mxu1  ;;  %vm3722_vm10 = vcmp.gt.f32.partialorder %v4858_v43, 0.0  ;;  %v3850_v44 = vmul.f32 0.2, %v4858_v43  ;;  %v3250_v58 = vpop.f32.mrb[43].mxu0 }
 0x3d3   : > { %vm3786_vm11 = vcmp.gt.f32.partialorder %v4954_v15, 0.0  ;;  %v3914_v26 = vmul.f32 0.2, %v4954_v15  ;;  %v3570_v21 = vpop.f32.mrb[43].mxu1  ;;  %vm3721_vm12 = vcmp.gt.f32.partialorder %v3250_v58, 0.0 }
 0x3d4   : > { %v3978_v1 = vsel %vm3722_vm10, %v4858_v43, %v3850_v44  ;;  %v3849_v4 = vmul.f32 0.2, %v3250_v58  ;;  %vm3785_vm13 = vcmp.gt.f32.partialorder %v3570_v21, 0.0  ;;  %v3913_v13 = vmul.f32 0.2, %v3570_v21 }
 0x3d5   : > { %v4042_v23 = vsel %vm3786_vm11, %v4954_v15, %v3914_v26  ;;  %4106 = vst.msk [vmem:[%s6799_s12 + $0x158] sm:$0xff] %vm2194_vm0, %v3978_v1 }
 0x3d6   : > { %4170 = vst.msk [vmem:[%s6799_s12 + $0x358] sm:$0xff] %vm2194_vm0, %v4042_v23  ;;  %v3977_v55 = vsel %vm3721_vm12, %v3250_v58, %v3849_v4  ;;  %v4041_v62 = vsel %vm3785_vm13, %v3570_v21, %v3913_v13 }
 0x3d7   : > { %4105 = vst.msk [vmem:[%s6799_s12 + $0x150] sm:$0xff] %vm2194_vm0, %v3977_v55  ;;  %4169 = vst.msk [vmem:[%s6799_s12 + $0x350] sm:$0xff] %vm2194_vm0, %v4041_v62 }
 0x3dd   : > { %v4861_v59 = vpop.f32.mrb[44].mxu0 }
 0x3de   : > { %v4957_v57 = vpop.f32.mrb[44].mxu1  ;;  %vm3724_vm14 = vcmp.gt.f32.partialorder %v4861_v59, 0.0  ;;  %v3852_v10 = vmul.f32 0.2, %v4861_v59  ;;  %v3260_v53 = vpop.f32.mrb[45].mxu0 }
 0x3df   : > { %vm3788_vm15 = vcmp.gt.f32.partialorder %v4957_v57, 0.0  ;;  %v3916_v34 = vmul.f32 0.2, %v4957_v57  ;;  %v3580_v12 = vpop.f32.mrb[45].mxu1  ;;  %vm3723_vm4 = vcmp.gt.f32.partialorder %v3260_v53, 0.0 }
 0x3e0   : > { %v3980_v45 = vsel %vm3724_vm14, %v4861_v59, %v3852_v10  ;;  %v3851_v32 = vmul.f32 0.2, %v3260_v53  ;;  %vm3787_vm1 = vcmp.gt.f32.partialorder %v3580_v12, 0.0  ;;  %v3915_v36 = vmul.f32 0.2, %v3580_v12 }
 0x3e1   : > { %v4044_v6 = vsel %vm3788_vm15, %v4957_v57, %v3916_v34  ;;  %4108 = vst.msk [vmem:[%s6799_s12 + $0x168] sm:$0xff] %vm2194_vm0, %v3980_v45 }
 0x3e2   : > { %4172 = vst.msk [vmem:[%s6799_s12 + $0x368] sm:$0xff] %vm2194_vm0, %v4044_v6  ;;  %v3979_v50 = vsel %vm3723_vm4, %v3260_v53, %v3851_v32  ;;  %v4043_v48 = vsel %vm3787_vm1, %v3580_v12, %v3915_v36 }
 0x3e3   : > { %4107 = vst.msk [vmem:[%s6799_s12 + $0x160] sm:$0xff] %vm2194_vm0, %v3979_v50  ;;  %4171 = vst.msk [vmem:[%s6799_s12 + $0x360] sm:$0xff] %vm2194_vm0, %v4043_v48 }
 0x3e9   : > { %v4864_v46 = vpop.f32.mrb[46].mxu0  ;;  %v4960_v29 = vpop.f32.mrb[46].mxu1 }
 0x3ea   : > { %vm3726_vm5 = vcmp.gt.f32.partialorder %v4864_v46, 0.0  ;;  %v3854_v33 = vmul.f32 0.2, %v4864_v46  ;;  %vm3790_vm2 = vcmp.gt.f32.partialorder %v4960_v29, 0.0  ;;  %v3918_v0 = vmul.f32 0.2, %v4960_v29 }
 0x3eb   : > { %v3270_v61 = vpop.f32.mrb[47].mxu0  ;;  %v3590_v42 = vpop.f32.mrb[47].mxu1 }
 0x3ec   : > { %v3982_v49 = vsel %vm3726_vm5, %v4864_v46, %v3854_v33  ;;  %v4046_v51 = vsel %vm3790_vm2, %v4960_v29, %v3918_v0  ;;  %vm3725_vm3 = vcmp.gt.f32.partialorder %v3270_v61, 0.0  ;;  %v3853_v25 = vmul.f32 0.2, %v3270_v61 }
 0x3ed   : > { %4110 = vst.msk [vmem:[%s6799_s12 + $0x178] sm:$0xff] %vm2194_vm0, %v3982_v49  ;;  %4174 = vst.msk [vmem:[%s6799_s12 + $0x378] sm:$0xff] %vm2194_vm0, %v4046_v51  ;;  %vm3789_vm6 = vcmp.gt.f32.partialorder %v3590_v42, 0.0  ;;  %v3917_v63 = vmul.f32 0.2, %v3590_v42 }
 0x3ee   : > { %v3981_v14 = vsel %vm3725_vm3, %v3270_v61, %v3853_v25 }
 0x3ef   : > { %4109 = vst.msk [vmem:[%s6799_s12 + $0x170] sm:$0xff] %vm2194_vm0, %v3981_v14  ;;  %v4045_v9 = vsel %vm3789_vm6, %v3590_v42, %v3917_v63 }
 0x3f0   : > { %4173 = vst.msk [vmem:[%s6799_s12 + $0x370] sm:$0xff] %vm2194_vm0, %v4045_v9 }
 0x3f5   : > { %v4867_v47 = vpop.f32.mrb[48].mxu0  ;;  %v4963_v17 = vpop.f32.mrb[48].mxu1 }
 0x3f6   : > { %vm3728_vm7 = vcmp.gt.f32.partialorder %v4867_v47, 0.0  ;;  %v3856_v28 = vmul.f32 0.2, %v4867_v47  ;;  %vm3792_vm8 = vcmp.gt.f32.partialorder %v4963_v17, 0.0  ;;  %v3920_v3 = vmul.f32 0.2, %v4963_v17 }
 0x3f7   : > { %v3280_v39 = vpop.f32.mrb[49].mxu0  ;;  %v3600_v7 = vpop.f32.mrb[49].mxu1 }
 0x3f8   : > { %v3984_v19 = vsel %vm3728_vm7, %v4867_v47, %v3856_v28  ;;  %v4048_v35 = vsel %vm3792_vm8, %v4963_v17, %v3920_v3  ;;  %vm3727_vm9 = vcmp.gt.f32.partialorder %v3280_v39, 0.0  ;;  %v3855_v38 = vmul.f32 0.2, %v3280_v39 }
 0x3f9   : > { %4112 = vst.msk [vmem:[%s6799_s12 + $0x188] sm:$0xff] %vm2194_vm0, %v3984_v19  ;;  %4176 = vst.msk [vmem:[%s6799_s12 + $0x388] sm:$0xff] %vm2194_vm0, %v4048_v35  ;;  %vm3791_vm10 = vcmp.gt.f32.partialorder %v3600_v7, 0.0  ;;  %v3919_v31 = vmul.f32 0.2, %v3600_v7 }
 0x3fa   : > { %v3983_v16 = vsel %vm3727_vm9, %v3280_v39, %v3855_v38 }
 0x3fb   : > { %4111 = vst.msk [vmem:[%s6799_s12 + $0x180] sm:$0xff] %vm2194_vm0, %v3983_v16  ;;  %v4047_v20 = vsel %vm3791_vm10, %v3600_v7, %v3919_v31 }
 0x3fc   : > { %4175 = vst.msk [vmem:[%s6799_s12 + $0x380] sm:$0xff] %vm2194_vm0, %v4047_v20 }
 0x401   : > { %v4870_v24 = vpop.f32.mrb[50].mxu0  ;;  %v4966_v37 = vpop.f32.mrb[50].mxu1 }
 0x402   : > { %vm3730_vm11 = vcmp.gt.f32.partialorder %v4870_v24, 0.0  ;;  %v3858_v30 = vmul.f32 0.2, %v4870_v24  ;;  %vm3794_vm12 = vcmp.gt.f32.partialorder %v4966_v37, 0.0  ;;  %v3922_v60 = vmul.f32 0.2, %v4966_v37 }
 0x403   : > { %v3290_v2 = vpop.f32.mrb[51].mxu0  ;;  %v3610_v22 = vpop.f32.mrb[51].mxu1 }
 0x404   : > { %v3986_v8 = vsel %vm3730_vm11, %v4870_v24, %v3858_v30  ;;  %v4050_v18 = vsel %vm3794_vm12, %v4966_v37, %v3922_v60  ;;  %vm3729_vm13 = vcmp.gt.f32.partialorder %v3290_v2, 0.0  ;;  %v3857_v40 = vmul.f32 0.2, %v3290_v2 }
 0x405   : > { %4114 = vst.msk [vmem:[%s6799_s12 + $0x198] sm:$0xff] %vm2194_vm0, %v3986_v8  ;;  %4178 = vst.msk [vmem:[%s6799_s12 + $0x398] sm:$0xff] %vm2194_vm0, %v4050_v18  ;;  %vm3793_vm14 = vcmp.gt.f32.partialorder %v3610_v22, 0.0  ;;  %v3921_v11 = vmul.f32 0.2, %v3610_v22 }
 0x406   : > { %v3985_v56 = vsel %vm3729_vm13, %v3290_v2, %v3857_v40 }
 0x407   : > { %4113 = vst.msk [vmem:[%s6799_s12 + $0x190] sm:$0xff] %vm2194_vm0, %v3985_v56  ;;  %v4049_v41 = vsel %vm3793_vm14, %v3610_v22, %v3921_v11 }
 0x408   : > { %4177 = vst.msk [vmem:[%s6799_s12 + $0x390] sm:$0xff] %vm2194_vm0, %v4049_v41 }
 0x40d   : > { %v4873_v54 = vpop.f32.mrb[52].mxu0  ;;  %v4969_v52 = vpop.f32.mrb[52].mxu1 }
 0x40e   : > { %vm3732_vm15 = vcmp.gt.f32.partialorder %v4873_v54, 0.0  ;;  %v3860_v5 = vmul.f32 0.2, %v4873_v54  ;;  %vm3796_vm4 = vcmp.gt.f32.partialorder %v4969_v52, 0.0  ;;  %v3924_v27 = vmul.f32 0.2, %v4969_v52 }
 0x40f   : > { %v3300_v43 = vpop.f32.mrb[53].mxu0  ;;  %v3620_v15 = vpop.f32.mrb[53].mxu1 }
 0x410   : > { %v3988_v44 = vsel %vm3732_vm15, %v4873_v54, %v3860_v5  ;;  %v4052_v26 = vsel %vm3796_vm4, %v4969_v52, %v3924_v27  ;;  %vm3731_vm1 = vcmp.gt.f32.partialorder %v3300_v43, 0.0  ;;  %v3859_v58 = vmul.f32 0.2, %v3300_v43 }
 0x411   : > { %4116 = vst.msk [vmem:[%s6799_s12 + $0x1a8] sm:$0xff] %vm2194_vm0, %v3988_v44  ;;  %4180 = vst.msk [vmem:[%s6799_s12 + $0x3a8] sm:$0xff] %vm2194_vm0, %v4052_v26  ;;  %vm3795_vm5 = vcmp.gt.f32.partialorder %v3620_v15, 0.0  ;;  %v3923_v21 = vmul.f32 0.2, %v3620_v15 }
 0x412   : > { %v3987_v1 = vsel %vm3731_vm1, %v3300_v43, %v3859_v58 }
 0x413   : > { %4115 = vst.msk [vmem:[%s6799_s12 + $0x1a0] sm:$0xff] %vm2194_vm0, %v3987_v1  ;;  %v4051_v23 = vsel %vm3795_vm5, %v3620_v15, %v3923_v21 }
 0x414   : > { %4179 = vst.msk [vmem:[%s6799_s12 + $0x3a0] sm:$0xff] %vm2194_vm0, %v4051_v23 }
 0x419   : > { %v4876_v4 = vpop.f32.mrb[54].mxu0  ;;  %v4972_v13 = vpop.f32.mrb[54].mxu1 }
 0x41a   : > { %vm3734_vm2 = vcmp.gt.f32.partialorder %v4876_v4, 0.0  ;;  %v3862_v55 = vmul.f32 0.2, %v4876_v4  ;;  %vm3798_vm3 = vcmp.gt.f32.partialorder %v4972_v13, 0.0  ;;  %v3926_v62 = vmul.f32 0.2, %v4972_v13 }
 0x41b   : > { %v3310_v59 = vpop.f32.mrb[55].mxu0  ;;  %v3630_v57 = vpop.f32.mrb[55].mxu1 }
 0x41c   : > { %v3990_v10 = vsel %vm3734_vm2, %v4876_v4, %v3862_v55  ;;  %v4054_v34 = vsel %vm3798_vm3, %v4972_v13, %v3926_v62  ;;  %vm3733_vm6 = vcmp.gt.f32.partialorder %v3310_v59, 0.0  ;;  %v3861_v53 = vmul.f32 0.2, %v3310_v59 }
 0x41d   : > { %4118 = vst.msk [vmem:[%s6799_s12 + $0x1b8] sm:$0xff] %vm2194_vm0, %v3990_v10  ;;  %4182 = vst.msk [vmem:[%s6799_s12 + $0x3b8] sm:$0xff] %vm2194_vm0, %v4054_v34  ;;  %vm3797_vm7 = vcmp.gt.f32.partialorder %v3630_v57, 0.0  ;;  %v3925_v12 = vmul.f32 0.2, %v3630_v57 }
 0x41e   : > { %v3989_v45 = vsel %vm3733_vm6, %v3310_v59, %v3861_v53 }
 0x41f   : > { %4117 = vst.msk [vmem:[%s6799_s12 + $0x1b0] sm:$0xff] %vm2194_vm0, %v3989_v45  ;;  %v4053_v6 = vsel %vm3797_vm7, %v3630_v57, %v3925_v12 }
 0x420   : > { %4181 = vst.msk [vmem:[%s6799_s12 + $0x3b0] sm:$0xff] %vm2194_vm0, %v4053_v6 }
 0x429   : > { %v4879_v32 = vpop.f32.mrb[56].mxu0  ;;  %v4975_v36 = vpop.f32.mrb[56].mxu1 }
 0x42a   : > { %vm3736_vm8 = vcmp.gt.f32.partialorder %v4879_v32, 0.0  ;;  %v3864_v50 = vmul.f32 0.2, %v4879_v32  ;;  %vm3800_vm9 = vcmp.gt.f32.partialorder %v4975_v36, 0.0  ;;  %v3928_v48 = vmul.f32 0.2, %v4975_v36 }
 0x42b   : > { %v3320_v46 = vpop.f32.mrb[57].mxu0  ;;  %v3640_v29 = vpop.f32.mrb[57].mxu1 }
 0x42c   : > { %v3992_v33 = vsel %vm3736_vm8, %v4879_v32, %v3864_v50  ;;  %v4056_v0 = vsel %vm3800_vm9, %v4975_v36, %v3928_v48  ;;  %vm3735_vm10 = vcmp.gt.f32.partialorder %v3320_v46, 0.0  ;;  %v3863_v61 = vmul.f32 0.2, %v3320_v46 }
 0x42d   : > { %4120 = vst.msk [vmem:[%s6799_s12 + $0x1c8] sm:$0xff] %vm2194_vm0, %v3992_v33  ;;  %4184 = vst.msk [vmem:[%s6799_s12 + $0x3c8] sm:$0xff] %vm2194_vm0, %v4056_v0  ;;  %vm3799_vm11 = vcmp.gt.f32.partialorder %v3640_v29, 0.0  ;;  %v3927_v42 = vmul.f32 0.2, %v3640_v29 }
 0x42e   : > { %v3991_v49 = vsel %vm3735_vm10, %v3320_v46, %v3863_v61 }
 0x42f   : > { %4119 = vst.msk [vmem:[%s6799_s12 + $0x1c0] sm:$0xff] %vm2194_vm0, %v3991_v49  ;;  %v4055_v51 = vsel %vm3799_vm11, %v3640_v29, %v3927_v42 }
 0x430   : > { %4183 = vst.msk [vmem:[%s6799_s12 + $0x3c0] sm:$0xff] %vm2194_vm0, %v4055_v51 }
 0x439   : > { %v4882_v25 = vpop.f32.mrb[58].mxu0  ;;  %v4978_v63 = vpop.f32.mrb[58].mxu1 }
 0x43a   : > { %vm3738_vm12 = vcmp.gt.f32.partialorder %v4882_v25, 0.0  ;;  %v3866_v14 = vmul.f32 0.2, %v4882_v25  ;;  %vm3802_vm13 = vcmp.gt.f32.partialorder %v4978_v63, 0.0  ;;  %v3930_v9 = vmul.f32 0.2, %v4978_v63 }
 0x43b   : > { %v3330_v47 = vpop.f32.mrb[59].mxu0  ;;  %v3650_v17 = vpop.f32.mrb[59].mxu1 }
 0x43c   : > { %v3994_v28 = vsel %vm3738_vm12, %v4882_v25, %v3866_v14  ;;  %v4058_v3 = vsel %vm3802_vm13, %v4978_v63, %v3930_v9  ;;  %vm3737_vm14 = vcmp.gt.f32.partialorder %v3330_v47, 0.0  ;;  %v3865_v39 = vmul.f32 0.2, %v3330_v47 }
 0x43d   : > { %4122 = vst.msk [vmem:[%s6799_s12 + $0x1d8] sm:$0xff] %vm2194_vm0, %v3994_v28  ;;  %4186 = vst.msk [vmem:[%s6799_s12 + $0x3d8] sm:$0xff] %vm2194_vm0, %v4058_v3  ;;  %vm3801_vm15 = vcmp.gt.f32.partialorder %v3650_v17, 0.0  ;;  %v3929_v7 = vmul.f32 0.2, %v3650_v17 }
 0x43e   : > { %v3993_v19 = vsel %vm3737_vm14, %v3330_v47, %v3865_v39 }
 0x43f   : > { %4121 = vst.msk [vmem:[%s6799_s12 + $0x1d0] sm:$0xff] %vm2194_vm0, %v3993_v19  ;;  %v4057_v35 = vsel %vm3801_vm15, %v3650_v17, %v3929_v7 }
 0x440   : > { %4185 = vst.msk [vmem:[%s6799_s12 + $0x3d0] sm:$0xff] %vm2194_vm0, %v4057_v35 }
 0x449   : > { %v4885_v38 = vpop.f32.mrb[60].mxu0  ;;  %v4981_v31 = vpop.f32.mrb[60].mxu1 }
 0x44a   : > { %vm3740_vm4 = vcmp.gt.f32.partialorder %v4885_v38, 0.0  ;;  %v3868_v16 = vmul.f32 0.2, %v4885_v38  ;;  %vm3804_vm1 = vcmp.gt.f32.partialorder %v4981_v31, 0.0  ;;  %v3932_v20 = vmul.f32 0.2, %v4981_v31 }
 0x44b   : > { %v3340_v24 = vpop.f32.mrb[61].mxu0  ;;  %v3660_v37 = vpop.f32.mrb[61].mxu1 }
 0x44c   : > { %v3996_v30 = vsel %vm3740_vm4, %v4885_v38, %v3868_v16  ;;  %v4060_v60 = vsel %vm3804_vm1, %v4981_v31, %v3932_v20  ;;  %vm3739_vm5 = vcmp.gt.f32.partialorder %v3340_v24, 0.0  ;;  %v3867_v2 = vmul.f32 0.2, %v3340_v24 }
 0x44d   : > { %4124 = vst.msk [vmem:[%s6799_s12 + $0x1e8] sm:$0xff] %vm2194_vm0, %v3996_v30  ;;  %4188 = vst.msk [vmem:[%s6799_s12 + $0x3e8] sm:$0xff] %vm2194_vm0, %v4060_v60  ;;  %vm3803_vm2 = vcmp.gt.f32.partialorder %v3660_v37, 0.0  ;;  %v3931_v22 = vmul.f32 0.2, %v3660_v37 }
 0x44e   : > { %v3995_v8 = vsel %vm3739_vm5, %v3340_v24, %v3867_v2 }
 0x44f   : > { %4123 = vst.msk [vmem:[%s6799_s12 + $0x1e0] sm:$0xff] %vm2194_vm0, %v3995_v8  ;;  %v4059_v18 = vsel %vm3803_vm2, %v3660_v37, %v3931_v22 }
 0x450   : > { %4187 = vst.msk [vmem:[%s6799_s12 + $0x3e0] sm:$0xff] %vm2194_vm0, %v4059_v18 }
 0x459   : > { %v4888_v40 = vpop.f32.mrb[62].mxu0  ;;  %v4984_v11 = vpop.f32.mrb[62].mxu1 }
 0x45a   : > { %vm3742_vm3 = vcmp.gt.f32.partialorder %v4888_v40, 0.0  ;;  %v3870_v56 = vmul.f32 0.2, %v4888_v40  ;;  %vm3806_vm6 = vcmp.gt.f32.partialorder %v4984_v11, 0.0  ;;  %v3934_v41 = vmul.f32 0.2, %v4984_v11 }
 0x45b   : > { %v3350_v54 = vpop.f32.mrb[63].mxu0  ;;  %v3670_v52 = vpop.f32.mrb[63].mxu1 }
 0x45c   : > { %v3998_v5 = vsel %vm3742_vm3, %v4888_v40, %v3870_v56  ;;  %v4062_v27 = vsel %vm3806_vm6, %v4984_v11, %v3934_v41  ;;  %vm3741_vm7 = vcmp.gt.f32.partialorder %v3350_v54, 0.0  ;;  %v3869_v43 = vmul.f32 0.2, %v3350_v54 }
 0x45d   : > { %4126 = vst.msk [vmem:[%s6799_s12 + $0x1f8] sm:$0xff] %vm2194_vm0, %v3998_v5  ;;  %4190 = vst.msk [vmem:[%s6799_s12 + $0x3f8] sm:$0xff] %vm2194_vm0, %v4062_v27  ;;  %vm3805_vm8 = vcmp.gt.f32.partialorder %v3670_v52, 0.0  ;;  %v3933_v15 = vmul.f32 0.2, %v3670_v52 }
 0x45e   : > { %v3997_v44 = vsel %vm3741_vm7, %v3350_v54, %v3869_v43 }
 0x45f   : > { %4125 = vst.msk [vmem:[%s6799_s12 + $0x1f0] sm:$0xff] %vm2194_vm0, %v3997_v44  ;;  %v4061_v26 = vsel %vm3805_vm8, %v3670_v52, %v3933_v15 }
 0x460   : > { %4189 = vst.msk [vmem:[%s6799_s12 + $0x3f0] sm:$0xff] %vm2194_vm0, %v4061_v26 }
 0x461 PF: > { %s12_s9 = sadd.s32 1, %s5078_s9  }
 0x462   : > { %p9_p5 = scmp.ge.s32.totalorder %s12_s9, 4  }
 0x464   :  { %11 = sbr.rel (!%p9_p5) target bundleno = 1 (0x1), region = 59 }

// kernel: wgan_discriminator_forward.5
= control target key start
LH: loop header
LB: loop body
LE: loop exit
PB: predicated region body
PF: predicated region fallthrough
CT: control target
= control target key end

     0   :  { %v2606_v3 = vmov 0.0|0.0   ;;  %s2607_s27 = smov 64   ;;  %vm786_vm0 = vcmask 523264   ;;  %vm1332_vm1 = vcmask 261120   ;;  %s5245_s0 = inlined_call_operand.vmem [shape: f32[2,17,17,64], index: 0, kind: input, shape index: {}]   ;;  %s5246_s1 = inlined_call_operand.vmem [shape: f32[256,32], index: 1, kind: input, shape index: {}]   ;;  %s5247_s2 = inlined_call_operand.vmem [shape: f32[1,32], index: 2, kind: input, shape index: {}]   ;;  %s5248_s3 = inlined_call_operand.vmem [shape: f32[1,32], index: 3, kind: input, shape index: {}]   ;;  %s5249_s4 = inlined_call_operand.vmem [shape: f32[512,32], index: 4, kind: output, shape index: {}]  }
   0x1   :  { %v81_v0 = vld [vmem:[%s5245_s0 + $0x1] sm:$0xff]  ;;  %v2138_v1 = vld [vmem:[%s5245_s0 + $0x19] sm:$0xff]  ;;  %v82_v2 = vld [vmem:[%s5245_s0 + $0x9] sm:$0xff]  ;;  %2202 = vmatprep.subr.bf16.mxu0 %v2606_v3  ;;  %2250 = vmatprep.subr.bf16.mxu1 %v2606_v3 }
   0x2   :  { %v2284_v4 = vpack.i.bf16 %v81_v0, %v2138_v1  ;;  %v2139_v5 = vld [vmem:[%s5245_s0 + $0x21] sm:$0xff]  ;;  %v2140_v6 = vld [vmem:[%s5245_s0 + $0x31] sm:$0xff]  ;;  %v2141_v7 = vld [vmem:[%s5245_s0 + $0x39] sm:$0xff] }
   0x3   :  { %v2294_v8 = vpack.i.bf16 %v2138_v1, %v2140_v6  ;;  %v2289_v9 = vpack.i.bf16 %v82_v2, %v2139_v5  ;;  %v2299_v10 = vpack.i.bf16 %v2139_v5, %v2141_v7  ;;  %v2142_v11 = vld [vmem:[%s5245_s0 + $0x49] sm:$0xff]  ;;  %v2143_v12 = vld [vmem:[%s5245_s0 + $0x51] sm:$0xff]  ;;  %v915_v13 = vld [vmem:[%s5246_s1] sm:$0xff] }
   0x4   :  { %2285 = vrot.lane.b32.xlu0 %v2284_v4, %s2607_s27  ;;  %v916_v14 = vld [vmem:[%s5246_s1 + $0x8] sm:$0xff]  ;;  %v917_v16 = vld [vmem:[%s5246_s1 + $0x10] sm:$0xff]  ;;  %v2304_v17 = vpack.i.bf16 %v2140_v6, %v2142_v11  ;;  %v918_v18 = vld [vmem:[%s5246_s1 + $0x18] sm:$0xff]  ;;  %v2309_v19 = vpack.i.bf16 %v2141_v7, %v2143_v12 }
   0x5   :  { %2295 = vrot.lane.b32.xlu1 %v2294_v8, %s2607_s27  ;;  %v2203_v15 = vpack.c.bf16 %v916_v14, %v915_v13  ;;  %v2144_v20 = vld [vmem:[%s5245_s0 + $0x61] sm:$0xff]  ;;  %v2206_v21 = vpack.c.bf16 %v918_v18, %v917_v16  ;;  %v2145_v22 = vld [vmem:[%s5245_s0 + $0x69] sm:$0xff]  ;;  %v2146_v27 = vld [vmem:[%s5245_s0 + $0x79] sm:$0xff] }
   0x6   :  { %v919_v23 = vld [vmem:[%s5246_s1 + $0x20] sm:$0xff]  ;;  %v920_v24 = vld [vmem:[%s5246_s1 + $0x28] sm:$0xff]  ;;  %v2314_v25 = vpack.i.bf16 %v2142_v11, %v2144_v20  ;;  %v2319_v26 = vpack.i.bf16 %v2143_v12, %v2145_v22  ;;  %v921_v30 = vld [vmem:[%s5246_s1 + $0x30] sm:$0xff]  ;;  %v2324_v32 = vpack.i.bf16 %v2144_v20, %v2146_v27 }
   0x7   :  { %2204 = vmatpush1.bf16.msra.mxu0 %v2203_v15  ;;  %2266 = vmatpush1.bf16.msra.mxu1 %v2203_v15  ;;  %v2209_v28 = vpack.c.bf16 %v920_v24, %v919_v23  ;;  %v2147_v29 = vld [vmem:[%s5245_s0 + $0x81] sm:$0xff]  ;;  %v922_v31 = vld [vmem:[%s5246_s1 + $0x38] sm:$0xff]  ;;  %v2150_v41 = vld [vmem:[%s5245_s0 + $0xa9] sm:$0xff] }
   0x8   :  { %2290 = vrot.lane.b32.xlu0 %v2289_v9, %s2607_s27  ;;  %2205 = vmatprep.subr.bf16.mxu0 %v2606_v3  ;;  %v2329_v33 = vpack.i.bf16 %v2145_v22, %v2147_v29  ;;  %v2148_v34 = vld [vmem:[%s5245_s0 + $0x91] sm:$0xff]  ;;  %v2212_v35 = vpack.c.bf16 %v922_v31, %v921_v30  ;;  %v2149_v36 = vld [vmem:[%s5245_s0 + $0x99] sm:$0xff]  ;;  %v924_v38 = vld [vmem:[%s5246_s1 + $0x48] sm:$0xff] }
   0x9   :  { %2300 = vrot.lane.b32.xlu1 %v2299_v10, %s2607_s27  ;;  %2251 = vmatprep.subr.bf16.mxu1 %v2606_v3  ;;  %v923_v37 = vld [vmem:[%s5246_s1 + $0x40] sm:$0xff]  ;;  %v2334_v39 = vpack.i.bf16 %v2146_v27, %v2148_v34  ;;  %v2339_v40 = vpack.i.bf16 %v2147_v29, %v2149_v36  ;;  %v2151_v43 = vld [vmem:[%s5245_s0 + $0xb1] sm:$0xff]  ;;  %v2344_v46 = vpack.i.bf16 %v2148_v34, %v2150_v41  ;;  %v2153_v50 = vld [vmem:[%s5245_s0 + $0xc9] sm:$0xff] }
   0xa   :  { %v2215_v42 = vpack.c.bf16 %v924_v38, %v923_v37  ;;  %v925_v44 = vld [vmem:[%s5246_s1 + $0x50] sm:$0xff]  ;;  %v926_v45 = vld [vmem:[%s5246_s1 + $0x58] sm:$0xff]  ;;  %v2349_v47 = vpack.i.bf16 %v2149_v36, %v2151_v43  ;;  %v2152_v48 = vld [vmem:[%s5245_s0 + $0xc1] sm:$0xff]  ;;  %v2359_v54 = vpack.i.bf16 %v2151_v43, %v2153_v50 }
   0xb   :  { %2207 = vmatpush1.bf16.msra.mxu0 %v2206_v21  ;;  %2267 = vmatpush1.bf16.msra.mxu1 %v2206_v21  ;;  %v2218_v49 = vpack.c.bf16 %v926_v45, %v925_v44  ;;  %v927_v51 = vld [vmem:[%s5246_s1 + $0x60] sm:$0xff]  ;;  %v928_v52 = vld [vmem:[%s5246_s1 + $0x68] sm:$0xff]  ;;  %v2354_v53 = vpack.i.bf16 %v2150_v41, %v2152_v48  ;;  %v2170_v56 = vld [vmem:[%s5245_s0 + $0x1b1] sm:$0xff] }
   0xc   :  { %2305 = vrot.lane.b32.xlu0 %v2304_v17, %s2607_s27  ;;  %2208 = vmatprep.subr.bf16.mxu0 %v2606_v3  ;;  %v2154_v55 = vld [vmem:[%s5245_s0 + $0xd9] sm:$0xff]  ;;  %v2221_v57 = vpack.c.bf16 %v928_v52, %v927_v51  ;;  %v929_v59 = vld [vmem:[%s5246_s1 + $0x70] sm:$0xff]  ;;  %v2155_v63 = vld [vmem:[%s5245_s0 + $0xe1] sm:$0xff] }
   0xd   :  { %2310 = vrot.lane.b32.xlu1 %v2309_v19, %s2607_s27  ;;  %2252 = vmatprep.subr.bf16.mxu1 %v2606_v3  ;;  %v113_v58 = vld [vmem:[%s5245_s0 + $0x199] sm:$0xff]  ;;  %v2364_v61 = vpack.i.bf16 %v2170_v56, %v2154_v55  ;;  %v114_v2 = vld [vmem:[%s5245_s0 + $0x1a1] sm:$0xff]  ;;  %v2156_v8 = vld [vmem:[%s5245_s0 + $0xf1] sm:$0xff] }
   0xe   :  { %v930_v60 = vld [vmem:[%s5246_s1 + $0x78] sm:$0xff]  ;;  %v2369_v62 = vpack.i.bf16 %v113_v58, %v2152_v48  ;;  %v931_v4 = vld [vmem:[%s5246_s1 + $0x80] sm:$0xff]  ;;  %v932_v5 = vld [vmem:[%s5246_s1 + $0x88] sm:$0xff]  ;;  %v2379_v7 = vpack.i.bf16 %v114_v2, %v2153_v50 }
   0xf   :  { %2210 = vmatpush1.bf16.msra.mxu0 %v2209_v28  ;;  %2268 = vmatpush1.bf16.msra.mxu1 %v2209_v28  ;;  %v2171_v0 = vld [vmem:[%s5245_s0 + $0x1b9] sm:$0xff]  ;;  %v2224_v1 = vpack.c.bf16 %v930_v60, %v929_v59  ;;  %v2172_v9 = vld [vmem:[%s5245_s0 + $0x1c9] sm:$0xff]  ;;  %v2227_v10 = vpack.c.bf16 %v932_v5, %v931_v4  ;;  %v2173_v15 = vld [vmem:[%s5245_s0 + $0x1d1] sm:$0xff] }
  0x10   :  { %2315 = vrot.lane.b32.xlu0 %v2314_v25, %s2607_s27  ;;  %2211 = vmatprep.subr.bf16.mxu0 %v2606_v3  ;;  %v2374_v6 = vpack.i.bf16 %v2171_v0, %v2155_v63  ;;  %v933_v11 = vld [vmem:[%s5246_s1 + $0x90] sm:$0xff]  ;;  %v934_v12 = vld [vmem:[%s5246_s1 + $0x98] sm:$0xff]  ;;  %v2384_v13 = vpack.i.bf16 %v2172_v9, %v2156_v8  ;;  %v935_v17 = vld [vmem:[%s5246_s1 + $0xa0] sm:$0xff] }
  0x11   :  { %2320 = vrot.lane.b32.xlu1 %v2319_v26, %s2607_s27  ;;  %2253 = vmatprep.subr.bf16.mxu1 %v2606_v3  ;;  %v2157_v14 = vld [vmem:[%s5245_s0 + $0xf9] sm:$0xff]  ;;  %v2230_v16 = vpack.c.bf16 %v934_v12, %v933_v11  ;;  %v936_v18 = vld [vmem:[%s5246_s1 + $0xa8] sm:$0xff]  ;;  %v937_v23 = vld [vmem:[%s5246_s1 + $0xb0] sm:$0xff] }
  0x12   :  { %v2394_v19 = vpack.i.bf16 %v2173_v15, %v2157_v14  ;;  %v2158_v20 = vld [vmem:[%s5245_s0 + $0x109] sm:$0xff]  ;;  %v2174_v21 = vld [vmem:[%s5245_s0 + $0x1e1] sm:$0xff]  ;;  %v2233_v22 = vpack.c.bf16 %v936_v18, %v935_v17  ;;  %v938_v24 = vld [vmem:[%s5246_s1 + $0xb8] sm:$0xff] }
  0x13   :  { %2213 = vmatpush1.bf16.msra.mxu0 %v2212_v35  ;;  %2269 = vmatpush1.bf16.msra.mxu1 %v2212_v35  ;;  %v2404_v25 = vpack.i.bf16 %v2174_v21, %v2158_v20  ;;  %v2159_v26 = vld [vmem:[%s5245_s0 + $0x111] sm:$0xff]  ;;  %v2175_v27 = vld [vmem:[%s5245_s0 + $0x1e9] sm:$0xff]  ;;  %v2236_v28 = vpack.c.bf16 %v938_v24, %v937_v23  ;;  %v939_v29 = vld [vmem:[%s5246_s1 + $0xc0] sm:$0xff] }
  0x14   :  { %2325 = vrot.lane.b32.xlu0 %v2324_v32, %s2607_s27  ;;  %2214 = vmatprep.subr.bf16.mxu0 %v2606_v3  ;;  %v940_v30 = vld [vmem:[%s5246_s1 + $0xc8] sm:$0xff]  ;;  %v2414_v31 = vpack.i.bf16 %v2175_v27, %v2159_v26  ;;  %v941_v35 = vld [vmem:[%s5246_s1 + $0xd0] sm:$0xff]  ;;  %v942_v36 = vld [vmem:[%s5246_s1 + $0xd8] sm:$0xff] }
  0x15   :  { %2330 = vrot.lane.b32.xlu1 %v2329_v33, %s2607_s27  ;;  %2254 = vmatprep.subr.bf16.mxu1 %v2606_v3  ;;  %v2160_v32 = vld [vmem:[%s5245_s0 + $0x121] sm:$0xff]  ;;  %v2176_v33 = vld [vmem:[%s5245_s0 + $0x1f9] sm:$0xff]  ;;  %v2239_v34 = vpack.c.bf16 %v940_v30, %v939_v29  ;;  %v2161_v38 = vld [vmem:[%s5245_s0 + $0x129] sm:$0xff] }
  0x16   :  { %v2424_v37 = vpack.i.bf16 %v2176_v33, %v2160_v32  ;;  %v943_v41 = vld [vmem:[%s5246_s1 + $0xe0] sm:$0xff]  ;;  %v2178_v45 = vld [vmem:[%s5245_s0 + $0x211] sm:$0xff]  ;;  %v2180_v55 = vld [vmem:[%s5245_s0 + $0x229] sm:$0xff] }
  0x17   :  { %2216 = vmatpush1.bf16.msra.mxu0 %v2215_v42  ;;  %2270 = vmatpush1.bf16.msra.mxu1 %v2215_v42  ;;  %v944_v42 = vld [vmem:[%s5246_s1 + $0xe8] sm:$0xff]  ;;  %v2162_v44 = vld [vmem:[%s5245_s0 + $0x139] sm:$0xff]  ;;  %v2186_v8 = vld [vmem:[%s5245_s0 + $0x271] sm:$0xff] }
  0x18   :  { %2335 = vrot.lane.b32.xlu0 %v2334_v39, %s2607_s27  ;;  %2217 = vmatprep.subr.bf16.mxu0 %v2606_v3  ;;  %v2177_v39 = vld [vmem:[%s5245_s0 + $0x201] sm:$0xff]  ;;  %v946_v48 = vld [vmem:[%s5246_s1 + $0xf8] sm:$0xff]  ;;  %v2166_v59 = vld [vmem:[%s5245_s0 + $0x169] sm:$0xff] }
  0x19   :  { %2340 = vrot.lane.b32.xlu1 %v2339_v40, %s2607_s27  ;;  %2255 = vmatprep.subr.bf16.mxu1 %v2606_v3  ;;  %v2242_v40 = vpack.c.bf16 %v942_v36, %v941_v35  ;;  %v2434_v43 = vpack.i.bf16 %v2177_v39, %v2161_v38  ;;  %v2163_v50 = vld [vmem:[%s5245_s0 + $0x141] sm:$0xff]  ;;  %v2179_v51 = vld [vmem:[%s5245_s0 + $0x219] sm:$0xff]  ;;  %v2183_v63 = vld [vmem:[%s5245_s0 + $0x249] sm:$0xff] }
  0x1a   :  { %v2182_v60 = vld [vmem:[%s5245_s0 + $0x241] sm:$0xff]  ;;  %v2184_v2 = vld [vmem:[%s5245_s0 + $0x259] sm:$0xff]  ;;  %v2169_v5 = vld [vmem:[%s5245_s0 + $0x189] sm:$0xff] }
  0x1b   :  { %2219 = vmatpush1.bf16.msra.mxu0 %v2218_v49  ;;  %2271 = vmatpush1.bf16.msra.mxu1 %v2218_v49  ;;  %v2444_v49 = vpack.i.bf16 %v2178_v45, %v2162_v44  ;;  %v2187_v9 = vld [vmem:[%s5245_s0 + $0x279] sm:$0xff]  ;;  %v2188_v12 = vld [vmem:[%s5245_s0 + $0x289] sm:$0xff]  ;;  %v2193_v21 = vld [vmem:[%s5245_s0 + $0x2c1] sm:$0xff] }
  0x1c   :  { %2345 = vrot.lane.b32.xlu0 %v2344_v46, %s2607_s27  ;;  %2220 = vmatprep.subr.bf16.mxu0 %v2606_v3  ;;  %v2245_v46 = vpack.c.bf16 %v944_v42, %v943_v41  ;;  %v2534_v14 = vpack.i.bf16 %v2186_v8, %v2188_v12  ;;  %v2191_v17 = vld [vmem:[%s5245_s0 + $0x2a9] sm:$0xff]  ;;  %v2192_v20 = vld [vmem:[%s5245_s0 + $0x2b9] sm:$0xff]  ;;  %v2194_v24 = vld [vmem:[%s5245_s0 + $0x2d1] sm:$0xff] }
  0x1d   :  { %2350 = vrot.lane.b32.xlu1 %v2349_v47, %s2607_s27  ;;  %2256 = vmatprep.subr.bf16.mxu1 %v2606_v3  ;;  %v945_v47 = vld [vmem:[%s5246_s1 + $0xf0] sm:$0xff]  ;;  %v2559_v23 = vpack.i.bf16 %v2191_v17, %v2193_v21  ;;  %v2564_v26 = vpack.i.bf16 %v2192_v20, %v2194_v24  ;;  %v2198_v32 = vld [vmem:[%s5245_s0 + $0x301] sm:$0xff]  ;;  %v2200_v45 = vld [vmem:[%s5245_s0 + $0x319] sm:$0xff] }
  0x1e   :  { %v2248_v52 = vpack.c.bf16 %v946_v48, %v945_v47  ;;  %v2197_v29 = vld [vmem:[%s5245_s0 + $0x2f1] sm:$0xff]  ;;  %v17_v35 = vld [vmem:[%s5245_s0] sm:$0xff]  ;;  %v2199_v36 = vld [vmem:[%s5245_s0 + $0x309] sm:$0xff] }
  0x1f   :  { %2222 = vmatpush1.bf16.msra.mxu0 %v2221_v57  ;;  %2272 = vmatpush1.bf16.msra.mxu1 %v2221_v57  ;;  %v2181_v57 = vld [vmem:[%s5245_s0 + $0x231] sm:$0xff]  ;;  %v2589_v44 = vpack.i.bf16 %v2197_v29, %v2199_v36  ;;  %v2075_v48 = vld [vmem:[%s5245_s0 + $0x20] sm:$0xff] }
  0x20   :  { %2355 = vrot.lane.b32.xlu0 %v2354_v53, %s2607_s27  ;;  %2223 = vmatprep.subr.bf16.mxu0 %v2606_v3  ;;  %v2454_v53 = vpack.i.bf16 %v2179_v51, %v2163_v50  ;;  %v2076_v50 = vld [vmem:[%s5245_s0 + $0x30] sm:$0xff] }
  0x21   :  { %2360 = vrot.lane.b32.xlu1 %v2359_v54, %s2607_s27  ;;  %2257 = vmatprep.subr.bf16.mxu1 %v2606_v3  ;;  %v2164_v54 = vld [vmem:[%s5245_s0 + $0x151] sm:$0xff] }
  0x22   :  { %v2464_v56 = vpack.i.bf16 %v2180_v55, %v2164_v54  ;;  %v2594_v55 = vpack.i.bf16 %v2198_v32, %v2200_v45 }
  0x23   :  { %2225 = vmatpush1.bf16.msra.mxu0 %v2224_v1  ;;  %2273 = vmatpush1.bf16.msra.mxu1 %v2224_v1  ;;  %v2168_v1 = vld [vmem:[%s5245_s0 + $0x181] sm:$0xff] }
  0x24   :  { %2365 = vrot.lane.b32.xlu0 %v2364_v61, %s2607_s27  ;;  %2226 = vmatprep.subr.bf16.mxu0 %v2606_v3  ;;  %v2504_v4 = vpack.i.bf16 %v2184_v2, %v2168_v1 }
  0x25   :  { %2370 = vrot.lane.b32.xlu1 %v2369_v62, %s2607_s27  ;;  %2258 = vmatprep.subr.bf16.mxu1 %v2606_v3  ;;  %v2167_v62 = vld [vmem:[%s5245_s0 + $0x171] sm:$0xff] }
  0x26   :  { %v2494_v0 = vpack.i.bf16 %v2183_v63, %v2167_v62 }
  0x27   :  { %2228 = vmatpush1.bf16.msra.mxu0 %v2227_v10  ;;  %2274 = vmatpush1.bf16.msra.mxu1 %v2227_v10  ;;  %v2524_v10 = vpack.i.bf16 %v2184_v2, %v2186_v8 }
  0x28   :  { %2375 = vrot.lane.b32.xlu0 %v2374_v6, %s2607_s27  ;;  %2229 = vmatprep.subr.bf16.mxu0 %v2606_v3 }
  0x29   :  { %2380 = vrot.lane.b32.xlu1 %v2379_v7, %s2607_s27  ;;  %2259 = vmatprep.subr.bf16.mxu1 %v2606_v3 }
  0x2b   :  { %2231 = vmatpush1.bf16.msra.mxu0 %v2230_v16  ;;  %2275 = vmatpush1.bf16.msra.mxu1 %v2230_v16  ;;  %v2190_v16 = vld [vmem:[%s5245_s0 + $0x2a1] sm:$0xff] }
  0x2c   :  { %2385 = vrot.lane.b32.xlu0 %v2384_v13, %s2607_s27  ;;  %2232 = vmatprep.subr.bf16.mxu0 %v2606_v3  ;;  %v2544_v18 = vpack.i.bf16 %v2188_v12, %v2190_v16 }
  0x2d   :  { %2390 = vrot.lane.b32.xlu1 %v2364_v61, %s2607_s27  ;;  %2260 = vmatprep.subr.bf16.mxu1 %v2606_v3  ;;  %v2484_v61 = vpack.i.bf16 %v2182_v60, %v2166_v59 }
  0x2f   :  { %2234 = vmatpush1.bf16.msra.mxu0 %v2233_v22  ;;  %2276 = vmatpush1.bf16.msra.mxu1 %v2233_v22  ;;  %v2554_v22 = vpack.i.bf16 %v2190_v16, %v2192_v20 }
  0x30   :  { %2395 = vrot.lane.b32.xlu0 %v2394_v19, %s2607_s27  ;;  %2235 = vmatprep.subr.bf16.mxu0 %v2606_v3 }
  0x31   :  { %2400 = vrot.lane.b32.xlu1 %v2374_v6, %s2607_s27  ;;  %2261 = vmatprep.subr.bf16.mxu1 %v2606_v3  ;;  %v2185_v6 = vld [vmem:[%s5245_s0 + $0x261] sm:$0xff] }
  0x32   :  { %v2514_v7 = vpack.i.bf16 %v2185_v6, %v2169_v5  ;;  %v2529_v11 = vpack.i.bf16 %v2185_v6, %v2187_v9 }
  0x33   :  { %2237 = vmatpush1.bf16.msra.mxu0 %v2236_v28  ;;  %2277 = vmatpush1.bf16.msra.mxu1 %v2236_v28  ;;  %v2196_v28 = vld [vmem:[%s5245_s0 + $0x2e9] sm:$0xff] }
  0x34   :  { %2405 = vrot.lane.b32.xlu0 %v2404_v25, %s2607_s27  ;;  %2238 = vmatprep.subr.bf16.mxu0 %v2606_v3  ;;  %v2574_v30 = vpack.i.bf16 %v2194_v24, %v2196_v28 }
  0x35   :  { %2410 = vrot.lane.b32.xlu1 %v2384_v13, %s2607_s27  ;;  %2262 = vmatprep.subr.bf16.mxu1 %v2606_v3  ;;  %v2189_v13 = vld [vmem:[%s5245_s0 + $0x291] sm:$0xff] }
  0x36   :  { %v2539_v15 = vpack.i.bf16 %v2187_v9, %v2189_v13 }
  0x37   :  { %2240 = vmatpush1.bf16.msra.mxu0 %v2239_v34  ;;  %2278 = vmatpush1.bf16.msra.mxu1 %v2239_v34  ;;  %v2074_v34 = vld [vmem:[%s5245_s0 + $0x18] sm:$0xff] }
  0x38   :  { %2415 = vrot.lane.b32.xlu0 %v2414_v31, %s2607_s27  ;;  %2241 = vmatprep.subr.bf16.mxu0 %v2606_v3 }
  0x39   :  { %2420 = vrot.lane.b32.xlu1 %v2394_v19, %s2607_s27  ;;  %2263 = vmatprep.subr.bf16.mxu1 %v2606_v3  ;;  %v2549_v19 = vpack.i.bf16 %v2189_v13, %v2191_v17 }
  0x3b   :  { %2243 = vmatpush1.bf16.msra.mxu0 %v2242_v40  ;;  %2279 = vmatpush1.bf16.msra.mxu1 %v2242_v40  ;;  %v2584_v40 = vpack.i.bf16 %v2196_v28, %v2198_v32  ;;  %v2082_v32 = vld [vmem:[%s5245_s0 + $0x78] sm:$0xff] }
  0x3c   :  { %2425 = vrot.lane.b32.xlu0 %v2424_v37, %s2607_s27  ;;  %2244 = vmatprep.subr.bf16.mxu0 %v2606_v3 }
  0x3d   :  { %2430 = vrot.lane.b32.xlu1 %v2404_v25, %s2607_s27  ;;  %2264 = vmatprep.subr.bf16.mxu1 %v2606_v3  ;;  %v2195_v25 = vld [vmem:[%s5245_s0 + $0x2d9] sm:$0xff] }
  0x3e   :  { %v2569_v27 = vpack.i.bf16 %v2193_v21, %v2195_v25 }
  0x3f   :  { %2246 = vmatpush1.bf16.msra.mxu0 %v2245_v46  ;;  %2280 = vmatpush1.bf16.msra.mxu1 %v2245_v46  ;;  %v2201_v46 = vld [vmem:[%s5245_s0 + $0x321] sm:$0xff] }
  0x40   :  { %2435 = vrot.lane.b32.xlu0 %v2434_v43, %s2607_s27  ;;  %2247 = vmatprep.subr.bf16.mxu0 %v2606_v3 }
  0x41   :  { %2440 = vrot.lane.b32.xlu1 %v2414_v31, %s2607_s27  ;;  %2265 = vmatprep.subr.bf16.mxu1 %v2606_v3  ;;  %v2165_v3 = vld [vmem:[%s5245_s0 + $0x159] sm:$0xff]  ;;  %v2579_v31 = vpack.i.bf16 %v2195_v25, %v2197_v29  ;;  %v2081_v25 = vld [vmem:[%s5245_s0 + $0x68] sm:$0xff] }
  0x42   :  { %v2474_v58 = vpack.i.bf16 %v2181_v57, %v2165_v3 }
  0x43   :  { %2249 = vmatpush1.bf16.msra.mxu0 %v2248_v52  ;;  %2281 = vmatpush1.bf16.msra.mxu1 %v2248_v52 }
  0x44   :  { %2445 = vrot.lane.b32.xlu0 %v2444_v49, %s2607_s27 }
  0x45   :  { %2450 = vrot.lane.b32.xlu1 %v2424_v37, %s2607_s27 }
  0x48   :  { %2455 = vrot.lane.b32.xlu0 %v2454_v53, %s2607_s27 }
  0x49   :  { %2460 = vrot.lane.b32.xlu1 %v2434_v43, %s2607_s27 }
  0x4c   :  { %2465 = vrot.lane.b32.xlu0 %v2464_v56, %s2607_s27 }
  0x4d   :  { %2470 = vrot.lane.b32.xlu1 %v2444_v49, %s2607_s27  ;;  %v18_v49 = vld [vmem:[%s5245_s0 + $0x8] sm:$0xff] }
  0x50   :  { %2475 = vrot.lane.b32.xlu0 %v2474_v58, %s2607_s27 }
  0x51   :  { %2480 = vrot.lane.b32.xlu1 %v2454_v53, %s2607_s27 }
  0x54   :  { %2485 = vrot.lane.b32.xlu0 %v2484_v61, %s2607_s27 }
  0x55   :  { %2490 = vrot.lane.b32.xlu1 %v2464_v56, %s2607_s27  ;;  %v2599_v56 = vpack.i.bf16 %v2199_v36, %v2201_v46 }
  0x58   :  { %2495 = vrot.lane.b32.xlu0 %v2494_v0, %s2607_s27 }
  0x59   :  { %2500 = vrot.lane.b32.xlu1 %v2474_v58, %s2607_s27 }
  0x5c   :  { %2505 = vrot.lane.b32.xlu0 %v2504_v4, %s2607_s27  ;;  %v2078_v4 = vld [vmem:[%s5245_s0 + $0x48] sm:$0xff] }
  0x5d   :  { %2510 = vrot.lane.b32.xlu1 %v2484_v61, %s2607_s27  ;;  %v2077_v61 = vld [vmem:[%s5245_s0 + $0x38] sm:$0xff] }
  0x60   :  { %2515 = vrot.lane.b32.xlu0 %v2514_v7, %s2607_s27 }
  0x61   :  { %2520 = vrot.lane.b32.xlu1 %v2494_v0, %s2607_s27 }
  0x64   :  { %2525 = vrot.lane.b32.xlu0 %v2524_v10, %s2607_s27 }
  0x65   :  { %2530 = vrot.lane.b32.xlu1 %v2529_v11, %s2607_s27  ;;  %v2079_v11 = vld [vmem:[%s5245_s0 + $0x50] sm:$0xff] }
  0x68   :  { %2535 = vrot.lane.b32.xlu0 %v2534_v14, %s2607_s27 }
  0x69   :  { %2540 = vrot.lane.b32.xlu1 %v2539_v15, %s2607_s27 }
  0x6c   :  { %2545 = vrot.lane.b32.xlu0 %v2544_v18, %s2607_s27  ;;  %v2080_v18 = vld [vmem:[%s5245_s0 + $0x60] sm:$0xff] }
  0x6d   :  { %2550 = vrot.lane.b32.xlu1 %v2549_v19, %s2607_s27 }
  0x70   :  { %2555 = vrot.lane.b32.xlu0 %v2554_v22, %s2607_s27 }
  0x71   :  { %2560 = vrot.lane.b32.xlu1 %v2559_v23, %s2607_s27 }
  0x74   :  { %2565 = vrot.lane.b32.xlu0 %v2564_v26, %s2607_s27 }
  0x75   :  { %2570 = vrot.lane.b32.xlu1 %v2569_v27, %s2607_s27 }
  0x76   :  { %v2286_v33 = vpop.permute.xlu0 %2285 }
  0x77   :  { %v2288_v37 = vunpack.i.h.bf16 %v2286_v33  ;;  %v2287_v38 = vunpack.i.l.bf16 %v2286_v33  ;;  %v2296_v39 = vpop.permute.xlu1 %2295 }
  0x78   :  { %2575 = vrot.lane.b32.xlu0 %v2574_v30, %s2607_s27  ;;  %v2297_v43 = vunpack.i.l.bf16 %v2296_v39  ;;  %v2298_v54 = vunpack.i.h.bf16 %v2296_v39  ;;  %v2083_v39 = vld [vmem:[%s5245_s0 + $0x80] sm:$0xff] }
  0x79   :  { %v851_v41 = vsel %vm786_vm0, %v2074_v34, %v2287_v38  ;;  %v787_v42 = vsel %vm786_vm0, %v17_v35, %v2288_v37  ;;  %2580 = vrot.lane.b32.xlu1 %v2579_v31, %s2607_s27 }
  0x7a   :  { %v2291_v47 = vpop.permute.xlu0 %2290  ;;  %1011 = vmatprep.mubr.f32.mxu0 %v851_v41  ;;  %v853_v59 = vsel %vm786_vm0, %v2076_v50, %v2297_v43  ;;  %v789_v0 = vsel %vm786_vm0, %v2074_v34, %v2298_v54  ;;  %v2106_v41 = vld [vmem:[%s5245_s0 + $0x1b0] sm:$0xff]  ;;  %v2107_v54 = vld [vmem:[%s5245_s0 + $0x1b8] sm:$0xff] }
  0x7b   :  { %v2293_v51 = vunpack.i.h.bf16 %v2291_v47  ;;  %v2292_v52 = vunpack.i.l.bf16 %v2291_v47  ;;  %1012 = vmatmul.mubr.f32.vlgmr.msra.gmra.mrb[0].mxu0 %v787_v42  ;;  %v2301_v53 = vpop.permute.xlu1 %2300 }
  0x7c   :  { %2585 = vrot.lane.b32.xlu0 %v2584_v40, %s2607_s27  ;;  %v2302_v58 = vunpack.i.l.bf16 %v2301_v53  ;;  %v2303_v63 = vunpack.i.h.bf16 %v2301_v53 }
  0x7d   :  { %v852_v3 = vsel %vm786_vm0, %v2075_v48, %v2292_v52  ;;  %v788_v57 = vsel %vm786_vm0, %v18_v49, %v2293_v51  ;;  %2590 = vrot.lane.b32.xlu1 %v2589_v44, %s2607_s27  ;;  %v49_v44 = vld [vmem:[%s5245_s0 + $0x198] sm:$0xff]  ;;  %v2084_v51 = vld [vmem:[%s5245_s0 + $0x90] sm:$0xff] }
  0x7e   :  { %1016 = vmatprep.mubr.f32.mxu0 %v852_v3  ;;  %v2306_v60 = vpop.permute.xlu0 %2305  ;;  %v854_v2 = vsel %vm786_vm0, %v2077_v61, %v2302_v58  ;;  %v790_v8 = vsel %vm786_vm0, %v2075_v48, %v2303_v63  ;;  %v50_v3 = vld [vmem:[%s5245_s0 + $0x1a0] sm:$0xff]  ;;  %v2085_v63 = vld [vmem:[%s5245_s0 + $0x98] sm:$0xff] }
  0x7f   :  { %1017 = vmatmul.mubr.f32.gmra.mrb[2].mxu0 %v788_v57  ;;  %v2311_v62 = vpop.permute.xlu1 %2310  ;;  %v2307_v1 = vunpack.i.l.bf16 %v2306_v60  ;;  %v2308_v7 = vunpack.i.h.bf16 %v2306_v60 }
  0x80   :  { %1021 = vmatprep.mubr.f32.mxu0 %v853_v59  ;;  %2595 = vrot.lane.b32.xlu0 %v2594_v55, %s2607_s27  ;;  %v2312_v9 = vunpack.i.l.bf16 %v2311_v62  ;;  %v2313_v14 = vunpack.i.h.bf16 %v2311_v62 }
  0x81   :  { %2600 = vrot.lane.b32.xlu1 %v2599_v56, %s2607_s27  ;;  %v855_v10 = vsel %vm786_vm0, %v2078_v4, %v2307_v1  ;;  %v791_v15 = vsel %vm786_vm0, %v2076_v50, %v2308_v7 }
  0x82   :  { %v2316_v5 = vpop.permute.xlu0 %2315  ;;  %v856_v17 = vsel %vm786_vm0, %v2079_v11, %v2312_v9  ;;  %v792_v22 = vsel %vm786_vm0, %v2077_v61, %v2313_v14 }
  0x83   :  { %1022 = vmatmul.mubr.f32.gmra.mrb[4].mxu0 %v789_v0  ;;  %v2321_v6 = vpop.permute.xlu1 %2320  ;;  %v2317_v16 = vunpack.i.l.bf16 %v2316_v5  ;;  %v2318_v21 = vunpack.i.h.bf16 %v2316_v5 }
  0x84   :  { %1026 = vmatprep.mubr.f32.mxu0 %v854_v2  ;;  %v2322_v23 = vunpack.i.l.bf16 %v2321_v6  ;;  %v2323_v28 = vunpack.i.h.bf16 %v2321_v6  ;;  %v2108_v2 = vld [vmem:[%s5245_s0 + $0x1c8] sm:$0xff] }
  0x85   :  { %v857_v24 = vsel %vm786_vm0, %v2080_v18, %v2317_v16  ;;  %v793_v29 = vsel %vm786_vm0, %v2078_v4, %v2318_v21 }
  0x86   :  { %v2326_v12 = vpop.permute.xlu0 %2325  ;;  %v858_v31 = vsel %vm786_vm0, %v2081_v25, %v2322_v23  ;;  %v794_v36 = vsel %vm786_vm0, %v2079_v11, %v2323_v28  ;;  %v2110_v28 = vld [vmem:[%s5245_s0 + $0x1e0] sm:$0xff] }
  0x87   :  { %1027 = vmatmul.mubr.f32.gmra.mrb[6].mxu0 %v790_v8  ;;  %v2331_v13 = vpop.permute.xlu1 %2330  ;;  %v2327_v30 = vunpack.i.l.bf16 %v2326_v12  ;;  %v2328_v35 = vunpack.i.h.bf16 %v2326_v12  ;;  %v2086_v12 = vld [vmem:[%s5245_s0 + $0xa8] sm:$0xff] }
  0x88   :  { %1031 = vmatprep.mubr.f32.mxu0 %v855_v10  ;;  %v2332_v37 = vunpack.i.l.bf16 %v2331_v13  ;;  %v2333_v45 = vunpack.i.h.bf16 %v2331_v13 }
  0x89   :  { %v859_v38 = vsel %vm786_vm0, %v2082_v32, %v2327_v30  ;;  %v795_v46 = vsel %vm786_vm0, %v2080_v18, %v2328_v35 }
  0x8a   :  { %v3067_v19 = vpop.permute.xlu0 %2335  ;;  %v860_v49 = vsel %vm786_vm0, %v2083_v39, %v2332_v37  ;;  %v796_v58 = vsel %vm786_vm0, %v2081_v25, %v2333_v45 }
  0x8b   :  { %1032 = vmatmul.mubr.f32.gmra.mrb[8].mxu0 %v791_v15  ;;  %v3069_v20 = vpop.permute.xlu1 %2340  ;;  %v2337_v48 = vunpack.i.l.bf16 %v3067_v19  ;;  %v2338_v57 = vunpack.i.h.bf16 %v3067_v19  ;;  %v2109_v15 = vld [vmem:[%s5245_s0 + $0x1d0] sm:$0xff] }
  0x8c   :  { %1036 = vmatprep.mubr.f32.mxu0 %v856_v17  ;;  %v2342_v60 = vunpack.i.l.bf16 %v3069_v20  ;;  %v2343_v6 = vunpack.i.h.bf16 %v3069_v20 }
  0x8d   :  { %v861_v61 = vsel %vm786_vm0, %v2084_v51, %v2337_v48  ;;  %v797_v7 = vsel %vm786_vm0, %v2082_v32, %v2338_v57 }
  0x8e   :  { %v3076_v26 = vpop.permute.xlu0 %2345  ;;  %v862_v10 = vsel %vm786_vm0, %v2085_v63, %v2342_v60  ;;  %v798_v19 = vsel %vm786_vm0, %v2083_v39, %v2343_v6  ;;  %v2088_v39 = vld [vmem:[%s5245_s0 + $0xc0] sm:$0xff] }
  0x8f   :  { %1037 = vmatmul.mubr.f32.gmra.mrb[10].mxu0 %v792_v22  ;;  %v3078_v27 = vpop.permute.xlu1 %2350  ;;  %v2347_v9 = vunpack.i.l.bf16 %v3076_v26  ;;  %v2348_v18 = vunpack.i.h.bf16 %v3076_v26 }
  0x90   :  { %1041 = vmatprep.mubr.f32.mxu0 %v857_v24  ;;  %v2352_v21 = vunpack.i.l.bf16 %v3078_v27  ;;  %v2087_v24 = vld [vmem:[%s5245_s0 + $0xb0] sm:$0xff] }
  0x91   :  { %v863_v22 = vsel %vm786_vm0, %v2086_v12, %v2347_v9  ;;  %v799_v32 = vsel %vm786_vm0, %v2084_v51, %v2348_v18 }
  0x92   :  { %v3085_v33 = vpop.permute.xlu0 %2355  ;;  %v864_v37 = vsel %vm786_vm0, %v2087_v24, %v2352_v21 }
  0x93   :  { %1042 = vmatmul.mubr.f32.gmra.mrb[12].mxu0 %v793_v29  ;;  %v3087_v34 = vpop.permute.xlu1 %2360 }
  0x94   :  { %1046 = vmatprep.mubr.f32.mxu0 %v858_v31  ;;  %v2353_v31 = vunpack.i.h.bf16 %v3078_v27 }
  0x96   :  { %v3094_v40 = vpop.permute.xlu0 %2365 }
  0x97   :  { %1047 = vmatmul.mubr.f32.gmra.mrb[14].mxu0 %v794_v36  ;;  %v2368_v42 = vunpack.i.h.bf16 %v3094_v40  ;;  %v3100_v43 = vpop.permute.xlu1 %2370  ;;  %v2357_v36 = vunpack.i.l.bf16 %v3085_v33 }
  0x98   :  { %1051 = vmatprep.mubr.f32.mxu0 %v859_v38  ;;  %v2373_v47 = vunpack.i.h.bf16 %v3100_v43 }
  0x99   :  { %v883_v50 = vsel %vm786_vm0, %v2106_v41, %v2368_v42  ;;  %v2111_v42 = vld [vmem:[%s5245_s0 + $0x1e8] sm:$0xff] }
  0x9a   :  { %v3113_v52 = vpop.permute.xlu0 %2375  ;;  %1171 = vmatprep.mubr.f32.mxu1 %v883_v50  ;;  %v819_v53 = vsel %vm786_vm0, %v49_v44, %v2373_v47  ;;  %v800_v47 = vsel %vm786_vm0, %v2085_v63, %v2353_v31  ;;  %v865_v50 = vsel %vm786_vm0, %v2088_v39, %v2357_v36 }
  0x9b   :  { %1052 = vmatmul.mubr.f32.gmra.mrb[16].mxu0 %v795_v46  ;;  %v2378_v55 = vunpack.i.h.bf16 %v3113_v52  ;;  %v3120_v56 = vpop.permute.xlu1 %2380  ;;  %1172 = vmatmul.mubr.f32.vlgmr.msra.gmra.mrb[0].mxu1 %v819_v53  ;;  %v2358_v46 = vunpack.i.h.bf16 %v3085_v33  ;;  %v2089_v53 = vld [vmem:[%s5245_s0 + $0xc8] sm:$0xff] }
  0x9c   :  { %1056 = vmatprep.mubr.f32.mxu0 %v860_v49  ;;  %v2383_v59 = vunpack.i.h.bf16 %v3120_v56  ;;  %v2362_v49 = vunpack.i.l.bf16 %v3087_v34 }
  0x9d   :  { %v884_v62 = vsel %vm786_vm0, %v2107_v54, %v2378_v55  ;;  %v2112_v55 = vld [vmem:[%s5245_s0 + $0x1f8] sm:$0xff] }
  0x9e   :  { %v3134_v0 = vpop.permute.xlu0 %2385  ;;  %1176 = vmatprep.mubr.f32.mxu1 %v884_v62  ;;  %v820_v1 = vsel %vm786_vm0, %v50_v3, %v2383_v59  ;;  %v801_v59 = vsel %vm786_vm0, %v2086_v12, %v2358_v46  ;;  %v866_v62 = vsel %vm786_vm0, %v2089_v53, %v2362_v49 }
  0x9f   :  { %1057 = vmatmul.mubr.f32.gmra.mrb[18].mxu0 %v796_v58  ;;  %v2388_v4 = vunpack.i.h.bf16 %v3134_v0  ;;  %v3141_v5 = vpop.permute.xlu1 %2390  ;;  %1177 = vmatmul.mubr.f32.gmra.mrb[2].mxu1 %v820_v1  ;;  %v2363_v58 = vunpack.i.h.bf16 %v3087_v34  ;;  %v2090_v1 = vld [vmem:[%s5245_s0 + $0xd8] sm:$0xff] }
  0xa0   :  { %1061 = vmatprep.mubr.f32.mxu0 %v861_v61  ;;  %v2393_v8 = vunpack.i.h.bf16 %v3141_v5  ;;  %v2367_v61 = vunpack.i.l.bf16 %v3094_v40 }
  0xa1   :  { %v885_v11 = vsel %vm786_vm0, %v2108_v2, %v2388_v4  ;;  %v2113_v4 = vld [vmem:[%s5245_s0 + $0x200] sm:$0xff] }
  0xa2   :  { %v3152_v13 = vpop.permute.xlu0 %2395  ;;  %1181 = vmatprep.mubr.f32.mxu1 %v885_v11  ;;  %v821_v14 = vsel %vm786_vm0, %v2106_v41, %v2393_v8  ;;  %v802_v8 = vsel %vm786_vm0, %v2087_v24, %v2363_v58  ;;  %v867_v11 = vsel %vm786_vm0, %v2090_v1, %v2367_v61 }
  0xa3   :  { %1062 = vmatmul.mubr.f32.gmra.mrb[20].mxu0 %v797_v7  ;;  %v2398_v16 = vunpack.i.h.bf16 %v3152_v13  ;;  %v3159_v17 = vpop.permute.xlu1 %2400  ;;  %1182 = vmatmul.mubr.f32.gmra.mrb[4].mxu1 %v821_v14  ;;  %v2372_v7 = vunpack.i.l.bf16 %v3100_v43  ;;  %v2091_v14 = vld [vmem:[%s5245_s0 + $0xe0] sm:$0xff] }
  0xa4   :  { %1066 = vmatprep.mubr.f32.mxu0 %v862_v10  ;;  %v2403_v20 = vunpack.i.h.bf16 %v3159_v17  ;;  %v2377_v10 = vunpack.i.l.bf16 %v3113_v52 }
  0xa5   :  { %v886_v23 = vsel %vm786_vm0, %v2109_v15, %v2398_v16  ;;  %v2114_v16 = vld [vmem:[%s5245_s0 + $0x210] sm:$0xff] }
  0xa6   :  { %v3170_v25 = vpop.permute.xlu0 %2405  ;;  %1186 = vmatprep.mubr.f32.mxu1 %v886_v23  ;;  %v822_v26 = vsel %vm786_vm0, %v2107_v54, %v2403_v20  ;;  %v803_v20 = vsel %vm786_vm0, %v2088_v39, %v2372_v7  ;;  %v868_v23 = vsel %vm786_vm0, %v2091_v14, %v2377_v10 }
  0xa7   :  { %1067 = vmatmul.mubr.f32.gmra.mrb[22].mxu0 %v798_v19  ;;  %v2408_v29 = vunpack.i.h.bf16 %v3170_v25  ;;  %v3177_v30 = vpop.permute.xlu1 %2410  ;;  %1187 = vmatmul.mubr.f32.gmra.mrb[6].mxu1 %v822_v26  ;;  %v2382_v19 = vunpack.i.l.bf16 %v3120_v56  ;;  %v2092_v26 = vld [vmem:[%s5245_s0 + $0xf0] sm:$0xff] }
  0xa8   :  { %1071 = vmatprep.mubr.f32.mxu0 %v863_v22  ;;  %v2413_v35 = vunpack.i.h.bf16 %v3177_v30  ;;  %v2387_v22 = vunpack.i.l.bf16 %v3134_v0 }
  0xa9   :  { %v887_v38 = vsel %vm786_vm0, %v2110_v28, %v2408_v29  ;;  %v2115_v29 = vld [vmem:[%s5245_s0 + $0x218] sm:$0xff] }
  0xaa   :  { %v3188_v41 = vpop.permute.xlu0 %2415  ;;  %1191 = vmatprep.mubr.f32.mxu1 %v887_v38  ;;  %v823_v27 = vsel %vm786_vm0, %v2108_v2, %v2413_v35  ;;  %v804_v35 = vsel %vm786_vm0, %v2089_v53, %v2382_v19  ;;  %v869_v38 = vsel %vm786_vm0, %v2092_v26, %v2387_v22 }
  0xab   :  { %1072 = vmatmul.mubr.f32.gmra.mrb[24].mxu0 %v799_v32  ;;  %v2418_v44 = vunpack.i.h.bf16 %v3188_v41  ;;  %v3195_v45 = vpop.permute.xlu1 %2420  ;;  %1192 = vmatmul.mubr.f32.gmra.mrb[8].mxu1 %v823_v27  ;;  %v2392_v32 = vunpack.i.l.bf16 %v3141_v5  ;;  %v2093_v27 = vld [vmem:[%s5245_s0 + $0xf8] sm:$0xff] }
  0xac   :  { %1076 = vmatprep.mubr.f32.mxu0 %v864_v37  ;;  %v2423_v48 = vunpack.i.h.bf16 %v3195_v45  ;;  %v2397_v37 = vunpack.i.l.bf16 %v3152_v13 }
  0xad   :  { %v888_v51 = vsel %vm786_vm0, %v2111_v42, %v2418_v44  ;;  %v2116_v44 = vld [vmem:[%s5245_s0 + $0x228] sm:$0xff] }
  0xae   :  { %v3206_v54 = vpop.permute.xlu0 %2425  ;;  %1196 = vmatprep.mubr.f32.mxu1 %v888_v51  ;;  %v824_v33 = vsel %vm786_vm0, %v2109_v15, %v2423_v48  ;;  %v805_v48 = vsel %vm786_vm0, %v2090_v1, %v2392_v32  ;;  %v870_v51 = vsel %vm786_vm0, %v2093_v27, %v2397_v37 }
  0xaf   :  { %1077 = vmatmul.mubr.f32.gmra.mrb[26].mxu0 %v800_v47  ;;  %v2428_v3 = vunpack.i.h.bf16 %v3206_v54  ;;  %v3213_v57 = vpop.permute.xlu1 %2430  ;;  %1197 = vmatmul.mubr.f32.gmra.mrb[10].mxu1 %v824_v33  ;;  %v2402_v47 = vunpack.i.l.bf16 %v3159_v17  ;;  %v2094_v33 = vld [vmem:[%s5245_s0 + $0x108] sm:$0xff] }
  0xb0   :  { %1081 = vmatprep.mubr.f32.mxu0 %v865_v50  ;;  %v2433_v60 = vunpack.i.h.bf16 %v3213_v57  ;;  %v2407_v50 = vunpack.i.l.bf16 %v3170_v25 }
  0xb1   :  { %v889_v63 = vsel %vm786_vm0, %v2112_v55, %v2428_v3  ;;  %v2117_v3 = vld [vmem:[%s5245_s0 + $0x230] sm:$0xff] }
  0xb2   :  { %v3224_v2 = vpop.permute.xlu0 %2435  ;;  %1201 = vmatprep.mubr.f32.mxu1 %v889_v63  ;;  %v825_v34 = vsel %vm786_vm0, %v2110_v28, %v2433_v60  ;;  %v806_v60 = vsel %vm786_vm0, %v2091_v14, %v2402_v47  ;;  %v871_v63 = vsel %vm786_vm0, %v2094_v33, %v2407_v50 }
  0xb3   :  { %1082 = vmatmul.mubr.f32.gmra.mrb[28].mxu0 %v801_v59  ;;  %v2438_v40 = vunpack.i.h.bf16 %v3224_v2  ;;  %v3231_v6 = vpop.permute.xlu1 %2440  ;;  %1202 = vmatmul.mubr.f32.gmra.mrb[12].mxu1 %v825_v34  ;;  %v2412_v59 = vunpack.i.l.bf16 %v3177_v30  ;;  %v2095_v34 = vld [vmem:[%s5245_s0 + $0x110] sm:$0xff] }
  0xb4   :  { %1086 = vmatprep.mubr.f32.mxu0 %v866_v62  ;;  %v2443_v9 = vunpack.i.h.bf16 %v3231_v6  ;;  %v2417_v62 = vunpack.i.l.bf16 %v3188_v41 }
  0xb5   :  { %v890_v12 = vsel %vm786_vm0, %v2113_v4, %v2438_v40  ;;  %v2118_v40 = vld [vmem:[%s5245_s0 + $0x240] sm:$0xff] }
  0xb6   :  { %v3242_v15 = vpop.permute.xlu0 %2445  ;;  %1206 = vmatprep.mubr.f32.mxu1 %v890_v12  ;;  %v826_v43 = vsel %vm786_vm0, %v2111_v42, %v2443_v9  ;;  %v807_v9 = vsel %vm786_vm0, %v2092_v26, %v2412_v59  ;;  %v872_v12 = vsel %vm786_vm0, %v2095_v34, %v2417_v62 }
  0xb7   :  { %1087 = vmatmul.mubr.f32.gmra.mrb[30].mxu0 %v802_v8  ;;  %v2448_v52 = vunpack.i.h.bf16 %v3242_v15  ;;  %v3249_v18 = vpop.permute.xlu1 %2450  ;;  %1207 = vmatmul.mubr.f32.gmra.mrb[14].mxu1 %v826_v43  ;;  %v2422_v8 = vunpack.i.l.bf16 %v3195_v45  ;;  %v2096_v43 = vld [vmem:[%s5245_s0 + $0x120] sm:$0xff] }
  0xb8   :  { %1091 = vmatprep.mubr.f32.mxu0 %v867_v11  ;;  %v2453_v21 = vunpack.i.h.bf16 %v3249_v18  ;;  %v2427_v11 = vunpack.i.l.bf16 %v3206_v54 }
  0xb9   :  { %v891_v24 = vsel %vm786_vm0, %v2114_v16, %v2448_v52  ;;  %v2119_v52 = vld [vmem:[%s5245_s0 + $0x248] sm:$0xff] }
  0xba   :  { %v3260_v28 = vpop.permute.xlu0 %2455  ;;  %1211 = vmatprep.mubr.f32.mxu1 %v891_v24  ;;  %v827_v56 = vsel %vm786_vm0, %v2112_v55, %v2453_v21  ;;  %v808_v21 = vsel %vm786_vm0, %v2093_v27, %v2422_v8  ;;  %v873_v24 = vsel %vm786_vm0, %v2096_v43, %v2427_v11  ;;  %v2124_v11 = vld [vmem:[%s5245_s0 + $0x288] sm:$0xff] }
  0xbb   :  { %1092 = vmatmul.mubr.f32.gmra.mrb[32].mxu0 %v803_v20  ;;  %v2458_v0 = vunpack.i.h.bf16 %v3260_v28  ;;  %v3267_v31 = vpop.permute.xlu1 %2460  ;;  %1212 = vmatmul.mubr.f32.gmra.mrb[16].mxu1 %v827_v56  ;;  %v2432_v20 = vunpack.i.l.bf16 %v3213_v57  ;;  %v3350_v56 = vld [vmem:[%s5245_s0 + $0x128] sm:$0xff] }
  0xbc   :  { %1096 = vmatprep.mubr.f32.mxu0 %v868_v23  ;;  %v2463_v36 = vunpack.i.h.bf16 %v3267_v31  ;;  %v2437_v23 = vunpack.i.l.bf16 %v3224_v2  ;;  %v2462_v62 = vunpack.i.l.bf16 %v3267_v31 }
  0xbd   :  { %v892_v39 = vsel %vm786_vm0, %v2115_v29, %v2458_v0  ;;  %v2120_v0 = vld [vmem:[%s5245_s0 + $0x258] sm:$0xff] }
  0xbe   :  { %v3278_v42 = vpop.permute.xlu0 %2465  ;;  %1216 = vmatprep.mubr.f32.mxu1 %v892_v39  ;;  %v828_v5 = vsel %vm786_vm0, %v2113_v4, %v2463_v36  ;;  %v809_v36 = vsel %vm786_vm0, %v2094_v33, %v2432_v20  ;;  %v874_v39 = vsel %vm786_vm0, %v3350_v56, %v2437_v23  ;;  %v2101_v23 = vld [vmem:[%s5245_s0 + $0x158] sm:$0xff] }
  0xbf   :  { %1097 = vmatmul.mubr.f32.gmra.mrb[34].mxu0 %v804_v35  ;;  %v2468_v13 = vunpack.i.h.bf16 %v3278_v42  ;;  %v3285_v46 = vpop.permute.xlu1 %2470  ;;  %1217 = vmatmul.mubr.f32.gmra.mrb[18].mxu1 %v828_v5  ;;  %v2442_v35 = vunpack.i.l.bf16 %v3231_v6  ;;  %v3371_v5 = vld [vmem:[%s5245_s0 + $0x138] sm:$0xff] }
  0xc0   :  { %1101 = vmatprep.mubr.f32.mxu0 %v869_v38  ;;  %v2473_v49 = vunpack.i.h.bf16 %v3285_v46  ;;  %v2447_v38 = vunpack.i.l.bf16 %v3242_v15 }
  0xc1   :  { %v893_v53 = vsel %vm786_vm0, %v2116_v44, %v2468_v13  ;;  %v2121_v13 = vld [vmem:[%s5245_s0 + $0x260] sm:$0xff] }
  0xc2   :  { %v3296_v55 = vpop.permute.xlu0 %2475  ;;  %1221 = vmatprep.mubr.f32.mxu1 %v893_v53  ;;  %v829_v17 = vsel %vm786_vm0, %v2114_v16, %v2473_v49  ;;  %v810_v49 = vsel %vm786_vm0, %v2095_v34, %v2442_v35  ;;  %v875_v53 = vsel %vm786_vm0, %v3371_v5, %v2447_v38  ;;  %v2126_v38 = vld [vmem:[%s5245_s0 + $0x2a0] sm:$0xff] }
  0xc3   :  { %1102 = vmatmul.mubr.f32.gmra.mrb[36].mxu0 %v805_v48  ;;  %v2478_v25 = vunpack.i.h.bf16 %v3296_v55  ;;  %v3303_v58 = vpop.permute.xlu1 %2480  ;;  %1222 = vmatmul.mubr.f32.gmra.mrb[20].mxu1 %v829_v17  ;;  %v2452_v48 = vunpack.i.l.bf16 %v3249_v18  ;;  %v2099_v17 = vld [vmem:[%s5245_s0 + $0x140] sm:$0xff] }
  0xc4   :  { %1106 = vmatprep.mubr.f32.mxu0 %v870_v51  ;;  %v2483_v61 = vunpack.i.h.bf16 %v3303_v58  ;;  %v2457_v51 = vunpack.i.l.bf16 %v3260_v28 }
  0xc5   :  { %v894_v1 = vsel %vm786_vm0, %v2117_v3, %v2478_v25  ;;  %v2122_v25 = vld [vmem:[%s5245_s0 + $0x270] sm:$0xff] }
  0xc6   :  { %v3314_v4 = vpop.permute.xlu0 %2485  ;;  %1226 = vmatprep.mubr.f32.mxu1 %v894_v1  ;;  %v830_v30 = vsel %vm786_vm0, %v2115_v29, %v2483_v61  ;;  %v2123_v61 = vld [vmem:[%s5245_s0 + $0x278] sm:$0xff] }
  0xc7   :  { %1107 = vmatmul.mubr.f32.gmra.mrb[38].mxu0 %v806_v60  ;;  %v2488_v41 = vunpack.i.h.bf16 %v3314_v4  ;;  %v3321_v7 = vpop.permute.xlu1 %2490  ;;  %1227 = vmatmul.mubr.f32.gmra.mrb[22].mxu1 %v830_v30  ;;  %v2467_v30 = vunpack.i.l.bf16 %v3278_v42 }
  0xc8   :  { %1111 = vmatprep.mubr.f32.mxu0 %v871_v63  ;;  %v2493_v10 = vunpack.i.h.bf16 %v3321_v7  ;;  %v811_v63 = vsel %vm786_vm0, %v2096_v43, %v2452_v48  ;;  %v812_v43 = vsel %vm786_vm0, %v3350_v56, %v2462_v62 }
  0xc9   :  { %v895_v14 = vsel %vm786_vm0, %v2118_v40, %v2488_v41 }
  0xca   :  { %v3332_v16 = vpop.permute.xlu0 %2495  ;;  %1231 = vmatprep.mubr.f32.mxu1 %v895_v14  ;;  %v831_v45 = vsel %vm786_vm0, %v2116_v44, %v2493_v10  ;;  %v2472_v14 = vunpack.i.l.bf16 %v3285_v46 }
  0xcb   :  { %1112 = vmatmul.mubr.f32.gmra.mrb[40].mxu0 %v807_v9  ;;  %v2498_v54 = vunpack.i.h.bf16 %v3332_v16  ;;  %v3339_v19 = vpop.permute.xlu1 %2500  ;;  %1232 = vmatmul.mubr.f32.gmra.mrb[24].mxu1 %v831_v45  ;;  %v2100_v9 = vld [vmem:[%s5245_s0 + $0x150] sm:$0xff] }
  0xcc   :  { %1116 = vmatprep.mubr.f32.mxu0 %v872_v12  ;;  %v2503_v22 = vunpack.i.h.bf16 %v3339_v19  ;;  %v877_v20 = vsel %vm786_vm0, %v2100_v9, %v2467_v30 }
  0xcd   :  { %v896_v26 = vsel %vm786_vm0, %v2119_v52, %v2498_v54  ;;  %v2477_v54 = vunpack.i.l.bf16 %v3296_v55  ;;  %v813_v55 = vsel %vm786_vm0, %v3371_v5, %v2472_v14  ;;  %v2130_v14 = vld [vmem:[%s5245_s0 + $0x2d0] sm:$0xff] }
  0xce   :  { %v3352_v29 = vpop.permute.xlu0 %2505  ;;  %1236 = vmatprep.mubr.f32.mxu1 %v896_v26  ;;  %v832_v57 = vsel %vm786_vm0, %v2117_v3, %v2503_v22  ;;  %v2482_v26 = vunpack.i.l.bf16 %v3303_v58 }
  0xcf   :  { %1117 = vmatmul.mubr.f32.gmra.mrb[42].mxu0 %v808_v21  ;;  %v2508_v2 = vunpack.i.h.bf16 %v3352_v29  ;;  %v3359_v32 = vpop.permute.xlu1 %2510  ;;  %1237 = vmatmul.mubr.f32.gmra.mrb[26].mxu1 %v832_v57 }
  0xd0   :  { %1121 = vmatprep.mubr.f32.mxu0 %v873_v24  ;;  %v2513_v37 = vunpack.i.h.bf16 %v3359_v32  ;;  %v2125_v24 = vld [vmem:[%s5245_s0 + $0x290] sm:$0xff] }
  0xd1   :  { %v897_v27 = vsel %vm786_vm0, %v2120_v0, %v2508_v2  ;;  %v878_v2 = vsel %vm786_vm0, %v2101_v23, %v2477_v54 }
  0xd2   :  { %v3373_v44 = vpop.permute.xlu0 %2515  ;;  %1241 = vmatprep.mubr.f32.mxu1 %v897_v27  ;;  %v833_v6 = vsel %vm786_vm0, %v2118_v40, %v2513_v37  ;;  %v876_v40 = vsel %vm786_vm0, %v2099_v17, %v2457_v51  ;;  %v2102_v37 = vld [vmem:[%s5245_s0 + $0x168] sm:$0xff]  ;;  %v2502_v51 = vunpack.i.l.bf16 %v3339_v19  ;;  %v2128_v19 = vld [vmem:[%s5245_s0 + $0x2b8] sm:$0xff] }
  0xd3   :  { %1122 = vmatmul.mubr.f32.gmra.mrb[44].mxu0 %v809_v36  ;;  %v2518_v15 = vunpack.i.h.bf16 %v3373_v44  ;;  %v3380_v47 = vpop.permute.xlu1 %2520  ;;  %1242 = vmatmul.mubr.f32.gmra.mrb[28].mxu1 %v833_v6  ;;  %v2497_v6 = vunpack.i.l.bf16 %v3332_v16 }
  0xd4   :  { %1126 = vmatprep.mubr.f32.mxu0 %v874_v39  ;;  %v2523_v50 = vunpack.i.h.bf16 %v3380_v47  ;;  %v2492_v39 = vunpack.i.l.bf16 %v3321_v7  ;;  %v2127_v7 = vld [vmem:[%s5245_s0 + $0x2a8] sm:$0xff] }
  0xd5   :  { %v898_v33 = vsel %vm786_vm0, %v2121_v13, %v2518_v15 }
  0xd6   :  { %v2526_v3 = vpop.permute.xlu0 %2525  ;;  %1246 = vmatprep.mubr.f32.mxu1 %v898_v33  ;;  %v834_v18 = vsel %vm786_vm0, %v2119_v52, %v2523_v50  ;;  %v815_v16 = vsel %vm786_vm0, %v2100_v9, %v2492_v39 }
  0xd7   :  { %1127 = vmatmul.mubr.f32.gmra.mrb[46].mxu0 %v810_v49  ;;  %v2528_v59 = vunpack.i.h.bf16 %v2526_v3  ;;  %v2527_v28 = vunpack.i.l.bf16 %v2526_v3  ;;  %1247 = vmatmul.mubr.f32.gmra.mrb[30].mxu1 %v834_v18  ;;  %v2531_v60 = vpop.permute.xlu1 %2530  ;;  %v2103_v49 = vld [vmem:[%s5245_s0 + $0x170] sm:$0xff] }
  0xd8   :  { %1131 = vmatprep.mubr.f32.mxu0 %v875_v53  ;;  %v2533_v1 = vunpack.i.h.bf16 %v2531_v60  ;;  %v2532_v34 = vunpack.i.l.bf16 %v2531_v60  ;;  %v880_v3 = vsel %vm786_vm0, %v2103_v49, %v2497_v6  ;;  %v2512_v60 = vunpack.i.l.bf16 %v3359_v32  ;;  %v2129_v32 = vld [vmem:[%s5245_s0 + $0x2c0] sm:$0xff] }
  0xd9   :  { %v899_v41 = vsel %vm786_vm0, %v2122_v25, %v2527_v28  ;;  %v835_v8 = vsel %vm786_vm0, %v2120_v0, %v2528_v59  ;;  %v2487_v0 = vunpack.i.l.bf16 %v3314_v4  ;;  %v814_v4 = vsel %vm786_vm0, %v2099_v17, %v2482_v26  ;;  %v2104_v59 = vld [vmem:[%s5245_s0 + $0x180] sm:$0xff] }
  0xda   :  { %1251 = vmatprep.mubr.f32.mxu1 %v899_v41  ;;  %v2536_v10 = vpop.permute.xlu0 %2535  ;;  %v900_v31 = vsel %vm786_vm0, %v2123_v61, %v2532_v34  ;;  %v836_v52 = vsel %vm786_vm0, %v2121_v13, %v2533_v1  ;;  %v2507_v17 = vunpack.i.l.bf16 %v3352_v29  ;;  %v816_v29 = vsel %vm786_vm0, %v2101_v23, %v2502_v51 }
  0xdb   :  { %1132 = vmatmul.mubr.f32.gmra.mrb[48].mxu0 %v811_v63  ;;  %1252 = vmatmul.mubr.f32.gmra.mrb[32].mxu1 %v835_v8  ;;  %v2537_v42 = vunpack.i.l.bf16 %v2536_v10  ;;  %v2541_v12 = vpop.permute.xlu1 %2540  ;;  %v2538_v45 = vunpack.i.h.bf16 %v2536_v10  ;;  %v879_v13 = vsel %vm786_vm0, %v2102_v37, %v2487_v0  ;;  %v2517_v63 = vunpack.i.l.bf16 %v3373_v44 }
  0xdc   :  { %1136 = vmatprep.mubr.f32.mxu0 %v876_v40  ;;  %1256 = vmatprep.mubr.f32.mxu1 %v900_v31  ;;  %v2542_v21 = vunpack.i.l.bf16 %v2541_v12  ;;  %v2543_v56 = vunpack.i.h.bf16 %v2541_v12  ;;  %v881_v1 = vsel %vm786_vm0, %v2104_v59, %v2507_v17  ;;  %v2105_v40 = vld [vmem:[%s5245_s0 + $0x188] sm:$0xff]  ;;  %v2522_v8 = vunpack.i.l.bf16 %v3380_v47  ;;  %v2137_v59 = vld [vmem:[%s5245_s0 + $0x320] sm:$0xff] }
  0xdd   :  { %v901_v22 = vsel %vm786_vm0, %v2124_v11, %v2537_v42  ;;  %v837_v57 = vsel %vm786_vm0, %v2122_v25, %v2538_v45  ;;  %v817_v44 = vsel %vm786_vm0, %v2102_v37, %v2512_v60  ;;  %v882_v31 = vsel %vm786_vm0, %v2105_v40, %v2517_v63 }
  0xde   :  { %v2546_v46 = vpop.permute.xlu0 %2545  ;;  %v902_v36 = vsel %vm786_vm0, %v2125_v24, %v2542_v21  ;;  %v838_v5 = vsel %vm786_vm0, %v2123_v61, %v2543_v56  ;;  %v818_v47 = vsel %vm786_vm0, %v2103_v49, %v2522_v8  ;;  %v2131_v21 = vld [vmem:[%s5245_s0 + $0x2d8] sm:$0xff]  ;;  %v2135_v49 = vld [vmem:[%s5245_s0 + $0x308] sm:$0xff] }
  0xdf   :  { %1137 = vmatmul.mubr.f32.gmra.mrb[50].mxu0 %v812_v43  ;;  %1257 = vmatmul.mubr.f32.gmra.mrb[34].mxu1 %v836_v52  ;;  %v2547_v35 = vunpack.i.l.bf16 %v2546_v46  ;;  %v2551_v58 = vpop.permute.xlu1 %2550  ;;  %v2548_v27 = vunpack.i.h.bf16 %v2546_v46 }
  0xe0   :  { %1141 = vmatprep.mubr.f32.mxu0 %v877_v20  ;;  %1261 = vmatprep.mubr.f32.mxu1 %v901_v22  ;;  %v2552_v15 = vunpack.i.l.bf16 %v2551_v58  ;;  %v2553_v53 = vunpack.i.h.bf16 %v2551_v58 }
  0xe1   :  { %v903_v48 = vsel %vm786_vm0, %v2126_v38, %v2547_v35  ;;  %v839_v33 = vsel %vm786_vm0, %v2124_v11, %v2548_v27  ;;  %v2134_v27 = vld [vmem:[%s5245_s0 + $0x300] sm:$0xff] }
  0xe2   :  { %v2556_v50 = vpop.permute.xlu0 %2555  ;;  %v904_v25 = vsel %vm786_vm0, %v2127_v7, %v2552_v15  ;;  %v840_v62 = vsel %vm786_vm0, %v2125_v24, %v2553_v53 }
  0xe3   :  { %1142 = vmatmul.mubr.f32.gmra.mrb[52].mxu0 %v813_v55  ;;  %1262 = vmatmul.mubr.f32.gmra.mrb[36].mxu1 %v837_v57  ;;  %v2557_v18 = vunpack.i.l.bf16 %v2556_v50  ;;  %v2561_v28 = vpop.permute.xlu1 %2560  ;;  %v2558_v61 = vunpack.i.h.bf16 %v2556_v50  ;;  %v2132_v55 = vld [vmem:[%s5245_s0 + $0x2e8] sm:$0xff] }
  0xe4   :  { %1146 = vmatprep.mubr.f32.mxu0 %v878_v2  ;;  %1266 = vmatprep.mubr.f32.mxu1 %v902_v36  ;;  %v2562_v34 = vunpack.i.l.bf16 %v2561_v28  ;;  %v2563_v9 = vunpack.i.h.bf16 %v2561_v28  ;;  %v2133_v36 = vld [vmem:[%s5245_s0 + $0x2f0] sm:$0xff] }
  0xe5   :  { %v905_v30 = vsel %vm786_vm0, %v2128_v19, %v2557_v18  ;;  %v841_v10 = vsel %vm786_vm0, %v2126_v38, %v2558_v61 }
  0xe6   :  { %v2566_v41 = vpop.permute.xlu0 %2565  ;;  %v906_v42 = vsel %vm786_vm0, %v2129_v32, %v2562_v34  ;;  %v842_v45 = vsel %vm786_vm0, %v2127_v7, %v2563_v9 }
  0xe7   :  { %1147 = vmatmul.mubr.f32.gmra.mrb[54].mxu0 %v814_v4  ;;  %1267 = vmatmul.mubr.f32.gmra.mrb[38].mxu1 %v838_v5  ;;  %v2567_v11 = vunpack.i.l.bf16 %v2566_v41  ;;  %v2571_v12 = vpop.permute.xlu1 %2570  ;;  %v2568_v43 = vunpack.i.h.bf16 %v2566_v41 }
  0xe8   :  { %1151 = vmatprep.mubr.f32.mxu0 %v879_v13  ;;  %1271 = vmatprep.mubr.f32.mxu1 %v903_v48  ;;  %v2572_v52 = vunpack.i.l.bf16 %v2571_v12  ;;  %v2573_v22 = vunpack.i.h.bf16 %v2571_v12 }
  0xe9   :  { %v907_v54 = vsel %vm786_vm0, %v2130_v14, %v2567_v11  ;;  %v843_v23 = vsel %vm786_vm0, %v2128_v19, %v2568_v43 }
  0xea   :  { %v2576_v20 = vpop.permute.xlu0 %2575  ;;  %v908_v24 = vsel %vm786_vm0, %v2131_v21, %v2572_v52  ;;  %v844_v57 = vsel %vm786_vm0, %v2129_v32, %v2573_v22 }
  0xeb   :  { %1152 = vmatmul.mubr.f32.gmra.mrb[56].mxu0 %v815_v16  ;;  %1272 = vmatmul.mubr.f32.gmra.mrb[40].mxu1 %v839_v33  ;;  %v2577_v46 = vunpack.i.l.bf16 %v2576_v20  ;;  %v2581_v26 = vpop.permute.xlu1 %2580  ;;  %v2578_v56 = vunpack.i.h.bf16 %v2576_v20  ;;  %v2136_v33 = vld [vmem:[%s5245_s0 + $0x318] sm:$0xff] }
  0xec   :  { %1156 = vmatprep.mubr.f32.mxu0 %v880_v3  ;;  %1276 = vmatprep.mubr.f32.mxu1 %v904_v25  ;;  %v2582_v0 = vunpack.i.l.bf16 %v2581_v26  ;;  %v2583_v37 = vunpack.i.h.bf16 %v2581_v26 }
  0xed   :  { %v909_v2 = vsel %vm786_vm0, %v2132_v55, %v2577_v46  ;;  %v845_v58 = vsel %vm786_vm0, %v2130_v14, %v2578_v56 }
  0xee   :  { %v2586_v35 = vpop.permute.xlu0 %2585  ;;  %v910_v39 = vsel %vm786_vm0, %v2133_v36, %v2582_v0  ;;  %v846_v6 = vsel %vm786_vm0, %v2131_v21, %v2583_v37 }
  0xef   :  { %1157 = vmatmul.mubr.f32.gmra.mrb[58].mxu0 %v816_v29  ;;  %1277 = vmatmul.mubr.f32.gmra.mrb[42].mxu1 %v840_v62  ;;  %v2587_v38 = vunpack.i.l.bf16 %v2586_v35  ;;  %v2591_v4 = vpop.permute.xlu1 %2590  ;;  %v2588_v5 = vunpack.i.h.bf16 %v2586_v35 }
  0xf0   :  { %1161 = vmatprep.mubr.f32.mxu0 %v881_v1  ;;  %1281 = vmatprep.mubr.f32.mxu1 %v905_v30  ;;  %v2592_v13 = vunpack.i.l.bf16 %v2591_v4  ;;  %v2593_v50 = vunpack.i.h.bf16 %v2591_v4 }
  0xf1   :  { %v911_v15 = vsel %vm786_vm0, %v2134_v27, %v2587_v38  ;;  %v847_v7 = vsel %vm786_vm0, %v2132_v55, %v2588_v5 }
  0xf2   :  { %v2596_v48 = vpop.permute.xlu0 %2595  ;;  %v912_v16 = vsel %vm786_vm0, %v2135_v49, %v2592_v13  ;;  %v848_v3 = vsel %vm786_vm0, %v2133_v36, %v2593_v50 }
  0xf3   :  { %1162 = vmatmul.mubr.f32.gmra.mrb[60].mxu0 %v817_v44  ;;  %1282 = vmatmul.mubr.f32.gmra.mrb[44].mxu1 %v841_v10  ;;  %v2597_v51 = vunpack.i.l.bf16 %v2596_v48  ;;  %v2601_v53 = vpop.permute.xlu1 %2600  ;;  %v2598_v17 = vunpack.i.h.bf16 %v2596_v48 }
  0xf4   :  { %1166 = vmatprep.mubr.f32.mxu0 %v882_v31  ;;  %1286 = vmatprep.mubr.f32.mxu1 %v906_v42  ;;  %v2602_v18 = vunpack.i.l.bf16 %v2601_v53  ;;  %v2603_v28 = vunpack.i.h.bf16 %v2601_v53 }
  0xf5   :  { %v913_v25 = vsel %vm786_vm0, %v2136_v33, %v2597_v51  ;;  %v849_v19 = vsel %vm786_vm0, %v2134_v27, %v2598_v17 }
  0xf6   :  { %v914_v60 = vsel %vm786_vm0, %v2137_v59, %v2602_v18  ;;  %v850_v29 = vsel %vm786_vm0, %v2135_v49, %v2603_v28 }
  0xf7   :  { %1167 = vmatmul.mubr.f32.gmra.mrb[62].mxu0 %v818_v47  ;;  %1287 = vmatmul.mubr.f32.gmra.mrb[46].mxu1 %v842_v45 }
  0xf8   :  { %1291 = vmatprep.mubr.f32.mxu1 %v907_v54 }
  0xfb   :  { %1292 = vmatmul.mubr.f32.gmra.mrb[48].mxu1 %v843_v23 }
  0xfc   :  { %1296 = vmatprep.mubr.f32.mxu1 %v908_v24 }
  0xff   :  { %1297 = vmatmul.mubr.f32.gmra.mrb[50].mxu1 %v844_v57 }
 0x100   :  { %1301 = vmatprep.mubr.f32.mxu1 %v909_v2 }
 0x103   :  { %1302 = vmatmul.mubr.f32.gmra.mrb[52].mxu1 %v845_v58 }
 0x104   :  { %1306 = vmatprep.mubr.f32.mxu1 %v910_v39 }
 0x107   :  { %1307 = vmatmul.mubr.f32.gmra.mrb[54].mxu1 %v846_v6 }
 0x108   :  { %1311 = vmatprep.mubr.f32.mxu1 %v911_v15 }
 0x10b   :  { %1312 = vmatmul.mubr.f32.gmra.mrb[56].mxu1 %v847_v7 }
 0x10c   :  { %1316 = vmatprep.mubr.f32.mxu1 %v912_v16 }
 0x10f   :  { %1317 = vmatmul.mubr.f32.gmra.mrb[58].mxu1 %v848_v3 }
 0x110   :  { %1321 = vmatprep.mubr.f32.mxu1 %v913_v25 }
 0x113   :  { %1322 = vmatmul.mubr.f32.gmra.mrb[60].mxu1 %v849_v19 }
 0x114   :  { %1326 = vmatprep.mubr.f32.mxu1 %v914_v60 }
 0x117   :  { %1327 = vmatmul.mubr.f32.gmra.mrb[62].mxu1 %v850_v29 }
 0x14e   :  { %v3521_v61 = vpop.f32.mrb[0].mxu0 }
 0x14f   :  { %v1015_v62 = vpop.f32.mrb[1].mxu0  ;;  %v1466_v63 = vmul.f32 %v3521_v61, %v3521_v61  ;;  %v1333_v34 = vsel %vm1332_vm1, %v3521_v61, 0.0 }
 0x151   :  { %v1530_v8 = vsel %vm1332_vm1, %v1466_v63, 0.0 }
 0x152   :  { %v3525_v1 = vpop.f32.mrb[2].mxu0 }
 0x153   :  { %v1334_v30 = vsel %vm1332_vm1, %v3525_v1, 0.0  ;;  %v1467_v40 = vmul.f32 %v3525_v1, %v3525_v1  ;;  %v1020_v41 = vpop.f32.mrb[3].mxu0 }
 0x154   :  { %v1335_v32 = vadd.f32 %v1334_v30, %v1333_v34 }
 0x155   :  { %v1531_v44 = vsel %vm1332_vm1, %v1467_v40, 0.0 }
 0x156   :  { %v1532_v9 = vadd.f32 %v1531_v44, %v1530_v8  ;;  %v3535_v10 = vpop.f32.mrb[4].mxu0 }
 0x157   :  { %v1336_v31 = vsel %vm1332_vm1, %v3535_v10, 0.0  ;;  %v1468_v11 = vmul.f32 %v3535_v10, %v3535_v10  ;;  %v1025_v42 = vpop.f32.mrb[5].mxu0 }
 0x158   :  { %v1337_v12 = vadd.f32 %v1336_v31, %v1335_v32 }
 0x159   :  { %v1533_v14 = vsel %vm1332_vm1, %v1468_v11, 0.0 }
 0x15a   :  { %v1534_v47 = vadd.f32 %v1533_v14, %v1532_v9  ;;  %v3542_v43 = vpop.f32.mrb[6].mxu0 }
 0x15b   :  { %v1338_v45 = vsel %vm1332_vm1, %v3542_v43, 0.0  ;;  %v1469_v52 = vmul.f32 %v3542_v43, %v3542_v43  ;;  %v1030_v54 = vpop.f32.mrb[7].mxu0 }
 0x15c   :  { %v1339_v20 = vadd.f32 %v1338_v45, %v1337_v12 }
 0x15d   :  { %v1535_v21 = vsel %vm1332_vm1, %v1469_v52, 0.0 }
 0x15e   :  { %v1536_v22 = vadd.f32 %v1535_v21, %v1534_v47  ;;  %v3549_v23 = vpop.f32.mrb[8].mxu0 }
 0x15f   :  { %v1340_v46 = vsel %vm1332_vm1, %v3549_v23, 0.0  ;;  %v1470_v24 = vmul.f32 %v3549_v23, %v3549_v23  ;;  %v1035_v26 = vpop.f32.mrb[9].mxu0 }
 0x160   :  { %v1341_v55 = vadd.f32 %v1340_v46, %v1339_v20 }
 0x161   :  { %v1537_v56 = vsel %vm1332_vm1, %v1470_v24, 0.0 }
 0x162   :  { %v1538_v57 = vadd.f32 %v1537_v56, %v1536_v22  ;;  %v3556_v0 = vpop.f32.mrb[10].mxu0 }
 0x163   :  { %v1342_v2 = vsel %vm1332_vm1, %v3556_v0, 0.0  ;;  %v1471_v35 = vmul.f32 %v3556_v0, %v3556_v0  ;;  %v1040_v36 = vpop.f32.mrb[11].mxu0 }
 0x164   :  { %v1343_v37 = vadd.f32 %v1342_v2, %v1341_v55 }
 0x165   :  { %v1539_v58 = vsel %vm1332_vm1, %v1471_v35, 0.0 }
 0x166   :  { %v1540_v38 = vadd.f32 %v1539_v58, %v1538_v57  ;;  %v3563_v39 = vpop.f32.mrb[12].mxu0 }
 0x167   :  { %v1344_v4 = vsel %vm1332_vm1, %v3563_v39, 0.0  ;;  %v1472_v27 = vmul.f32 %v3563_v39, %v3563_v39  ;;  %v1045_v5 = vpop.f32.mrb[13].mxu0 }
 0x168   :  { %v1345_v6 = vadd.f32 %v1344_v4, %v1343_v37 }
 0x169   :  { %v1541_v13 = vsel %vm1332_vm1, %v1472_v27, 0.0 }
 0x16a   :  { %v1542_v15 = vadd.f32 %v1541_v13, %v1540_v38  ;;  %v3570_v48 = vpop.f32.mrb[14].mxu0 }
 0x16b   :  { %v1346_v49 = vsel %vm1332_vm1, %v3570_v48, 0.0  ;;  %v1473_v50 = vmul.f32 %v3570_v48, %v3570_v48  ;;  %v1050_v7 = vpop.f32.mrb[15].mxu0 }
 0x16c   :  { %v1347_v51 = vadd.f32 %v1346_v49, %v1345_v6 }
 0x16d   :  { %v1543_v16 = vsel %vm1332_vm1, %v1473_v50, 0.0 }
 0x16e   :  { %v1544_v53 = vadd.f32 %v1543_v16, %v1542_v15  ;;  %v3577_v33 = vpop.f32.mrb[16].mxu0  ;;  %v3579_v17 = vpop.f32.mrb[0].mxu1 }
 0x16f   :  { %5300 = vst [vmem:[#allocation2_spill] sm:$0xff] %v3579_v17  ;;  %v1348_v3 = vsel %vm1332_vm1, %v3577_v33, 0.0  ;;  %v1474_v18 = vmul.f32 %v3577_v33, %v3577_v33  ;;  %v1055_v25 = vpop.f32.mrb[17].mxu0  ;;  %v1175_v59 = vpop.f32.mrb[1].mxu1 }
 0x170   :  { %v1349_v28 = vadd.f32 %v1348_v3, %v1347_v51 }
 0x171   :  { %v1545_v19 = vsel %vm1332_vm1, %v1474_v18, 0.0 }
 0x172   :  { %v1546_v60 = vadd.f32 %v1545_v19, %v1544_v53  ;;  %v3586_v29 = vpop.f32.mrb[18].mxu0  ;;  %v3588_v62 = vpop.f32.mrb[2].mxu1 }
 0x173   :  { %5301 = vst [vmem:[#allocation3_spill] sm:$0xff] %v3588_v62  ;;  %v1350_v63 = vsel %vm1332_vm1, %v3586_v29, 0.0  ;;  %v1475_v34 = vmul.f32 %v3586_v29, %v3586_v29  ;;  %v1060_v30 = vpop.f32.mrb[19].mxu0  ;;  %v1180_v40 = vpop.f32.mrb[3].mxu1 }
 0x174   :  { %v1351_v41 = vadd.f32 %v1350_v63, %v1349_v28 }
 0x175   :  { %v1547_v32 = vsel %vm1332_vm1, %v1475_v34, 0.0 }
 0x176   :  { %v1548_v8 = vadd.f32 %v1547_v32, %v1546_v60  ;;  %v3595_v44 = vpop.f32.mrb[20].mxu0  ;;  %v3597_v9 = vpop.f32.mrb[4].mxu1 }
 0x177   :  { %v1352_v31 = vsel %vm1332_vm1, %v3595_v44, 0.0  ;;  %v1476_v11 = vmul.f32 %v3595_v44, %v3595_v44  ;;  %v1065_v42 = vpop.f32.mrb[21].mxu0  ;;  %v1185_v12 = vpop.f32.mrb[5].mxu1 }
 0x178   :  { %v1353_v14 = vadd.f32 %v1352_v31, %v1351_v41 }
 0x179   :  { %v1549_v47 = vsel %vm1332_vm1, %v1476_v11, 0.0 }
 0x17a   :  { %v1550_v45 = vadd.f32 %v1549_v47, %v1548_v8  ;;  %v3604_v52 = vpop.f32.mrb[22].mxu0  ;;  %v3606_v54 = vpop.f32.mrb[6].mxu1 }
 0x17b   :  { %5302 = vst [vmem:[#allocation4_spill] sm:$0xff] %v3606_v54  ;;  %v1354_v20 = vsel %vm1332_vm1, %v3604_v52, 0.0  ;;  %v1477_v21 = vmul.f32 %v3604_v52, %v3604_v52  ;;  %v1070_v22 = vpop.f32.mrb[23].mxu0  ;;  %v1190_v46 = vpop.f32.mrb[7].mxu1 }
 0x17c   :  { %v1355_v24 = vadd.f32 %v1354_v20, %v1353_v14 }
 0x17d   :  { %v1551_v26 = vsel %vm1332_vm1, %v1477_v21, 0.0 }
 0x17e   :  { %v1552_v55 = vadd.f32 %v1551_v26, %v1550_v45  ;;  %v3613_v56 = vpop.f32.mrb[24].mxu0  ;;  %v3615_v57 = vpop.f32.mrb[8].mxu1 }
 0x17f   :  { %v1356_v2 = vsel %vm1332_vm1, %v3613_v56, 0.0  ;;  %v1478_v35 = vmul.f32 %v3613_v56, %v3613_v56  ;;  %v1075_v36 = vpop.f32.mrb[25].mxu0  ;;  %v1195_v37 = vpop.f32.mrb[9].mxu1 }
 0x180   :  { %v1357_v58 = vadd.f32 %v1356_v2, %v1355_v24 }
 0x181   :  { %v1553_v38 = vsel %vm1332_vm1, %v1478_v35, 0.0 }
 0x182   :  { %v1554_v4 = vadd.f32 %v1553_v38, %v1552_v55  ;;  %v3622_v27 = vpop.f32.mrb[26].mxu0  ;;  %v3624_v5 = vpop.f32.mrb[10].mxu1 }
 0x183   :  { %5303 = vst [vmem:[#allocation5_spill] sm:$0xff] %v3624_v5  ;;  %v1358_v6 = vsel %vm1332_vm1, %v3622_v27, 0.0  ;;  %v1479_v13 = vmul.f32 %v3622_v27, %v3622_v27  ;;  %v1080_v15 = vpop.f32.mrb[27].mxu0  ;;  %v1200_v49 = vpop.f32.mrb[11].mxu1 }
 0x184   :  { %v1359_v50 = vadd.f32 %v1358_v6, %v1357_v58 }
 0x185   :  { %v1555_v7 = vsel %vm1332_vm1, %v1479_v13, 0.0 }
 0x186   :  { %v1556_v51 = vadd.f32 %v1555_v7, %v1554_v4  ;;  %v3631_v16 = vpop.f32.mrb[28].mxu0  ;;  %v3633_v53 = vpop.f32.mrb[12].mxu1 }
 0x187   :  { %v1360_v3 = vsel %vm1332_vm1, %v3631_v16, 0.0  ;;  %v1480_v18 = vmul.f32 %v3631_v16, %v3631_v16  ;;  %v1085_v25 = vpop.f32.mrb[29].mxu0  ;;  %v1205_v59 = vpop.f32.mrb[13].mxu1 }
 0x188   :  { %v1361_v28 = vadd.f32 %v1360_v3, %v1359_v50 }
 0x189   :  { %v1557_v19 = vsel %vm1332_vm1, %v1480_v18, 0.0 }
 0x18a   :  { %v1558_v60 = vadd.f32 %v1557_v19, %v1556_v51  ;;  %v3640_v63 = vpop.f32.mrb[30].mxu0  ;;  %v3642_v34 = vpop.f32.mrb[14].mxu1 }
 0x18b   :  { %5304 = vst [vmem:[#allocation6_spill] sm:$0xff] %v3642_v34  ;;  %v1362_v30 = vsel %vm1332_vm1, %v3640_v63, 0.0  ;;  %v1481_v40 = vmul.f32 %v3640_v63, %v3640_v63  ;;  %v1090_v41 = vpop.f32.mrb[31].mxu0  ;;  %v1210_v32 = vpop.f32.mrb[15].mxu1 }
 0x18c   :  { %v1363_v8 = vadd.f32 %v1362_v30, %v1361_v28 }
 0x18d   :  { %v1559_v31 = vsel %vm1332_vm1, %v1481_v40, 0.0 }
 0x18e   :  { %v1560_v11 = vadd.f32 %v1559_v31, %v1558_v60  ;;  %v3649_v42 = vpop.f32.mrb[32].mxu0  ;;  %v3651_v12 = vpop.f32.mrb[16].mxu1 }
 0x18f   :  { %v1364_v14 = vsel %vm1332_vm1, %v3649_v42, 0.0  ;;  %v1482_v47 = vmul.f32 %v3649_v42, %v3649_v42  ;;  %v1095_v45 = vpop.f32.mrb[33].mxu0  ;;  %v1215_v20 = vpop.f32.mrb[17].mxu1 }
 0x190   :  { %v1365_v21 = vadd.f32 %v1364_v14, %v1363_v8 }
 0x191   :  { %v1561_v22 = vsel %vm1332_vm1, %v1482_v47, 0.0 }
 0x192   :  { %v1562_v46 = vadd.f32 %v1561_v22, %v1560_v11  ;;  %v3658_v24 = vpop.f32.mrb[34].mxu0  ;;  %v3660_v26 = vpop.f32.mrb[18].mxu1 }
 0x193   :  { %5305 = vst [vmem:[#allocation7_spill] sm:$0xff] %v3660_v26  ;;  %v1366_v55 = vsel %vm1332_vm1, %v3658_v24, 0.0  ;;  %v1483_v2 = vmul.f32 %v3658_v24, %v3658_v24  ;;  %v1100_v35 = vpop.f32.mrb[35].mxu0  ;;  %v1220_v36 = vpop.f32.mrb[19].mxu1 }
 0x194   :  { %v1367_v37 = vadd.f32 %v1366_v55, %v1365_v21 }
 0x195   :  { %v1563_v58 = vsel %vm1332_vm1, %v1483_v2, 0.0 }
 0x196   :  { %v1564_v38 = vadd.f32 %v1563_v58, %v1562_v46  ;;  %v3667_v4 = vpop.f32.mrb[36].mxu0  ;;  %v3669_v6 = vpop.f32.mrb[20].mxu1 }
 0x197   :  { %v1368_v13 = vsel %vm1332_vm1, %v3667_v4, 0.0  ;;  %v1484_v15 = vmul.f32 %v3667_v4, %v3667_v4  ;;  %v1105_v49 = vpop.f32.mrb[37].mxu0  ;;  %v1225_v50 = vpop.f32.mrb[21].mxu1 }
 0x198   :  { %v1369_v7 = vadd.f32 %v1368_v13, %v1367_v37 }
 0x199   :  { %v1565_v51 = vsel %vm1332_vm1, %v1484_v15, 0.0 }
 0x19a   :  { %v1566_v3 = vadd.f32 %v1565_v51, %v1564_v38  ;;  %v3676_v18 = vpop.f32.mrb[38].mxu0  ;;  %v3678_v25 = vpop.f32.mrb[22].mxu1 }
 0x19b   :  { %5306 = vst [vmem:[#allocation8_spill] sm:$0xff] %v3678_v25  ;;  %v1370_v59 = vsel %vm1332_vm1, %v3676_v18, 0.0  ;;  %v1485_v28 = vmul.f32 %v3676_v18, %v3676_v18  ;;  %v1110_v19 = vpop.f32.mrb[39].mxu0  ;;  %v1230_v60 = vpop.f32.mrb[23].mxu1 }
 0x19c   :  { %v1371_v30 = vadd.f32 %v1370_v59, %v1369_v7 }
 0x19d   :  { %v1567_v40 = vsel %vm1332_vm1, %v1485_v28, 0.0 }
 0x19e   :  { %v1568_v41 = vadd.f32 %v1567_v40, %v1566_v3  ;;  %v3685_v32 = vpop.f32.mrb[40].mxu0  ;;  %v3687_v8 = vpop.f32.mrb[24].mxu1 }
 0x19f   :  { %v1372_v31 = vsel %vm1332_vm1, %v3685_v32, 0.0  ;;  %v1486_v11 = vmul.f32 %v3685_v32, %v3685_v32  ;;  %v1115_v14 = vpop.f32.mrb[41].mxu0  ;;  %v1235_v47 = vpop.f32.mrb[25].mxu1 }
 0x1a0   :  { %v1373_v45 = vadd.f32 %v1372_v31, %v1371_v30 }
 0x1a1   :  { %v1569_v20 = vsel %vm1332_vm1, %v1486_v11, 0.0 }
 0x1a2   :  { %v1570_v21 = vadd.f32 %v1569_v20, %v1568_v41  ;;  %v3694_v22 = vpop.f32.mrb[42].mxu0  ;;  %v3696_v46 = vpop.f32.mrb[26].mxu1 }
 0x1a3   :  { %5307 = vst [vmem:[#allocation9_spill] sm:$0xff] %v3696_v46  ;;  %v1374_v55 = vsel %vm1332_vm1, %v3694_v22, 0.0  ;;  %v1487_v2 = vmul.f32 %v3694_v22, %v3694_v22  ;;  %v1120_v35 = vpop.f32.mrb[43].mxu0  ;;  %v1240_v36 = vpop.f32.mrb[27].mxu1 }
 0x1a4   :  { %v1375_v37 = vadd.f32 %v1374_v55, %v1373_v45 }
 0x1a5   :  { %v1571_v58 = vsel %vm1332_vm1, %v1487_v2, 0.0 }
 0x1a6   :  { %v1572_v38 = vadd.f32 %v1571_v58, %v1570_v21  ;;  %v3703_v13 = vpop.f32.mrb[44].mxu0  ;;  %v3705_v15 = vpop.f32.mrb[28].mxu1 }
 0x1a7   :  { %v1376_v49 = vsel %vm1332_vm1, %v3703_v13, 0.0  ;;  %v1488_v50 = vmul.f32 %v3703_v13, %v3703_v13  ;;  %v1125_v7 = vpop.f32.mrb[45].mxu0  ;;  %v1245_v51 = vpop.f32.mrb[29].mxu1 }
 0x1a8   :  { %v1377_v3 = vadd.f32 %v1376_v49, %v1375_v37 }
 0x1a9   :  { %v1573_v59 = vsel %vm1332_vm1, %v1488_v50, 0.0 }
 0x1aa   :  { %v1574_v28 = vadd.f32 %v1573_v59, %v1572_v38  ;;  %v3712_v19 = vpop.f32.mrb[46].mxu0  ;;  %v3714_v60 = vpop.f32.mrb[30].mxu1 }
 0x1ab   :  { %v1378_v30 = vsel %vm1332_vm1, %v3712_v19, 0.0  ;;  %v1489_v40 = vmul.f32 %v3712_v19, %v3712_v19  ;;  %v1130_v41 = vpop.f32.mrb[47].mxu0  ;;  %v1250_v31 = vpop.f32.mrb[31].mxu1 }
 0x1ac   :  { %v1379_v11 = vadd.f32 %v1378_v30, %v1377_v3 }
 0x1ad   :  { %v1575_v14 = vsel %vm1332_vm1, %v1489_v40, 0.0 }
 0x1ae   :  { %v1576_v47 = vadd.f32 %v1575_v14, %v1574_v28  ;;  %v3721_v45 = vpop.f32.mrb[48].mxu0  ;;  %v3723_v20 = vpop.f32.mrb[32].mxu1 }
 0x1af   :  { %5308 = vst [vmem:[#allocation10_spill] sm:$0xff] %v3721_v45  ;;  %v1380_v21 = vsel %vm1332_vm1, %v3721_v45, 0.0  ;;  %v1490_v55 = vmul.f32 %v3721_v45, %v3721_v45  ;;  %v1135_v2 = vpop.f32.mrb[49].mxu0  ;;  %v1255_v35 = vpop.f32.mrb[33].mxu1 }
 0x1b0   :  { %v1381_v36 = vadd.f32 %v1380_v21, %v1379_v11 }
 0x1b1   :  { %v1577_v37 = vsel %vm1332_vm1, %v1490_v55, 0.0 }
 0x1b2   :  { %v1578_v58 = vadd.f32 %v1577_v37, %v1576_v47  ;;  %v3730_v38 = vpop.f32.mrb[50].mxu0  ;;  %v3732_v49 = vpop.f32.mrb[34].mxu1 }
 0x1b3   :  { %5309 = vst [vmem:[#allocation11_spill] sm:$0xff] %v3730_v38  ;;  %v1382_v50 = vsel %vm1332_vm1, %v3730_v38, 0.0  ;;  %v1491_v7 = vmul.f32 %v3730_v38, %v3730_v38  ;;  %v1140_v51 = vpop.f32.mrb[51].mxu0  ;;  %v1260_v3 = vpop.f32.mrb[35].mxu1 }
 0x1b4   :  { %v1383_v59 = vadd.f32 %v1382_v50, %v1381_v36 }
 0x1b5   :  { %v1579_v28 = vsel %vm1332_vm1, %v1491_v7, 0.0 }
 0x1b6   :  { %v1580_v30 = vadd.f32 %v1579_v28, %v1578_v58  ;;  %v3739_v40 = vpop.f32.mrb[52].mxu0  ;;  %v3741_v41 = vpop.f32.mrb[36].mxu1 }
 0x1b7   :  { %5310 = vst [vmem:[#allocation12_spill] sm:$0xff] %v3739_v40  ;;  %v1384_v31 = vsel %vm1332_vm1, %v3739_v40, 0.0  ;;  %v1492_v11 = vmul.f32 %v3739_v40, %v3739_v40  ;;  %v1145_v14 = vpop.f32.mrb[53].mxu0  ;;  %v1265_v47 = vpop.f32.mrb[37].mxu1 }
 0x1b8   :  { %v1385_v21 = vadd.f32 %v1384_v31, %v1383_v59 }
 0x1b9   :  { %v1581_v55 = vsel %vm1332_vm1, %v1492_v11, 0.0 }
 0x1ba   :  { %v1582_v2 = vadd.f32 %v1581_v55, %v1580_v30  ;;  %v3748_v35 = vpop.f32.mrb[54].mxu0  ;;  %v3750_v36 = vpop.f32.mrb[38].mxu1 }
 0x1bb   :  { %5311 = vst [vmem:[#allocation13_spill] sm:$0xff] %v3748_v35  ;;  %v1386_v37 = vsel %vm1332_vm1, %v3748_v35, 0.0  ;;  %v1493_v58 = vmul.f32 %v3748_v35, %v3748_v35  ;;  %v1150_v50 = vpop.f32.mrb[55].mxu0  ;;  %v1270_v7 = vpop.f32.mrb[39].mxu1 }
 0x1bc   :  { %v1387_v51 = vadd.f32 %v1386_v37, %v1385_v21 }
 0x1bd   :  { %v1583_v3 = vsel %vm1332_vm1, %v1493_v58, 0.0 }
 0x1be   :  { %v1584_v28 = vadd.f32 %v1583_v3, %v1582_v2  ;;  %v3757_v59 = vpop.f32.mrb[56].mxu0  ;;  %v3759_v31 = vpop.f32.mrb[40].mxu1 }
 0x1bf   :  { %5312 = vst [vmem:[#allocation14_spill] sm:$0xff] %v3757_v59  ;;  %v1388_v30 = vsel %vm1332_vm1, %v3757_v59, 0.0  ;;  %v1494_v11 = vmul.f32 %v3757_v59, %v3757_v59  ;;  %v1155_v14 = vpop.f32.mrb[57].mxu0  ;;  %v1275_v47 = vpop.f32.mrb[41].mxu1 }
 0x1c0   :  { %v1389_v55 = vadd.f32 %v1388_v30, %v1387_v51 }
 0x1c1   :  { %v1585_v50 = vsel %vm1332_vm1, %v1494_v11, 0.0 }
 0x1c2   :  { %v1586_v7 = vadd.f32 %v1585_v50, %v1584_v28  ;;  %v3766_v21 = vpop.f32.mrb[58].mxu0  ;;  %v3768_v37 = vpop.f32.mrb[42].mxu1 }
 0x1c3   :  { %5313 = vst [vmem:[#allocation15_spill] sm:$0xff] %v3766_v21  ;;  %v1390_v2 = vsel %vm1332_vm1, %v3766_v21, 0.0  ;;  %v1495_v58 = vmul.f32 %v3766_v21, %v3766_v21  ;;  %v1160_v3 = vpop.f32.mrb[59].mxu0  ;;  %v1280_v35 = vpop.f32.mrb[43].mxu1 }
 0x1c4   :  { %v1391_v40 = vadd.f32 %v1390_v2, %v1389_v55 }
 0x1c5   :  { %v1587_v14 = vsel %vm1332_vm1, %v1495_v58, 0.0 }
 0x1c6   :  { %v1588_v47 = vadd.f32 %v1587_v14, %v1586_v7  ;;  %v3775_v51 = vpop.f32.mrb[60].mxu0  ;;  %v3777_v30 = vpop.f32.mrb[44].mxu1  ;;  %v1498_v7 = vmul.f32 %v3579_v17, %v3579_v17 }
 0x1c7   :  { %5314 = vst [vmem:[#allocation16_spill] sm:$0xff] %v3775_v51  ;;  %v1392_v28 = vsel %vm1332_vm1, %v3775_v51, 0.0  ;;  %v1496_v11 = vmul.f32 %v3775_v51, %v3775_v51  ;;  %v1165_v50 = vpop.f32.mrb[61].mxu0  ;;  %v1285_v59 = vpop.f32.mrb[45].mxu1 }
 0x1c8   :  { %v1393_v38 = vadd.f32 %v1392_v28, %v1391_v40  ;;  %v1396_v40 = vsel %vm1332_vm1, %v3579_v17, 0.0  ;;  %v1593_v45 = vsel %vm1332_vm1, %v1498_v7, 0.0 }
 0x1c9   :  { %v1589_v3 = vsel %vm1332_vm1, %v1496_v11, 0.0 }
 0x1ca   :  { %v1590_v35 = vadd.f32 %v1589_v3, %v1588_v47  ;;  %v3784_v55 = vpop.f32.mrb[62].mxu0  ;;  %v3786_v2 = vpop.f32.mrb[46].mxu1  ;;  %v1499_v47 = vmul.f32 %v3588_v62, %v3588_v62 }
 0x1cb   :  { %5315 = vst [vmem:[#allocation17_spill] sm:$0xff] %v3784_v55  ;;  %5316 = vst [vmem:[#allocation18_spill] sm:$0xff] %v3786_v2  ;;  %v1394_v58 = vsel %vm1332_vm1, %v3784_v55, 0.0  ;;  %v1497_v14 = vmul.f32 %v3784_v55, %v3784_v55  ;;  %v1170_v51 = vpop.f32.mrb[63].mxu0  ;;  %v1290_v50 = vpop.f32.mrb[47].mxu1  ;;  %v1398_v55 = vsel %vm1332_vm1, %v3588_v62, 0.0 }
 0x1cc   :  { %v1395_v59 = vadd.f32 %v1394_v58, %v1393_v38  ;;  %v1500_v38 = vmul.f32 %v3597_v9, %v3597_v9  ;;  %v1595_v17 = vsel %vm1332_vm1, %v1499_v47, 0.0  ;;  %v1402_v62 = vsel %vm1332_vm1, %v3606_v54, 0.0 }
 0x1cd   :  { %v1591_v28 = vsel %vm1332_vm1, %v1497_v14, 0.0  ;;  %v1400_v14 = vsel %vm1332_vm1, %v3597_v9, 0.0 }
 0x1ce   :  { %v1397_v11 = vadd.f32 %v1396_v40, %v1395_v59  ;;  %v1592_v3 = vadd.f32 %v1591_v28, %v1590_v35  ;;  %v3799_v21 = vpop.f32.mrb[48].mxu1  ;;  %v1501_v35 = vmul.f32 %v3606_v54, %v3606_v54  ;;  %v1597_v28 = vsel %vm1332_vm1, %v1500_v38, 0.0 }
 0x1cf   :  { %5317 = vst [vmem:[#allocation19_spill] sm:$0xff] %v3799_v21  ;;  %v1295_v51 = vpop.f32.mrb[49].mxu1  ;;  %v1406_v54 = vsel %vm1332_vm1, %v3624_v5, 0.0 }
 0x1d0   :  { %v1399_v58 = vadd.f32 %v1398_v55, %v1397_v11  ;;  %v1594_v50 = vadd.f32 %v1593_v45, %v1592_v3  ;;  %v1502_v45 = vmul.f32 %v3615_v57, %v3615_v57  ;;  %v1599_v3 = vsel %vm1332_vm1, %v1501_v35, 0.0 }
 0x1d1   :  { %v1404_v51 = vsel %vm1332_vm1, %v3615_v57, 0.0 }
 0x1d2   :  { %v1401_v59 = vadd.f32 %v1400_v14, %v1399_v58  ;;  %v1596_v40 = vadd.f32 %v1595_v17, %v1594_v50  ;;  %v3811_v7 = vpop.f32.mrb[50].mxu1  ;;  %v1503_v17 = vmul.f32 %v3624_v5, %v3624_v5  ;;  %v1601_v14 = vsel %vm1332_vm1, %v1502_v45, 0.0 }
 0x1d3   :  { %5318 = vst [vmem:[#allocation20_spill] sm:$0xff] %v3811_v7  ;;  %v1300_v55 = vpop.f32.mrb[51].mxu1  ;;  %v1410_v5 = vsel %vm1332_vm1, %v3642_v34, 0.0 }
 0x1d4   :  { %v1403_v47 = vadd.f32 %v1402_v62, %v1401_v59  ;;  %v1598_v11 = vadd.f32 %v1597_v28, %v1596_v40  ;;  %v1504_v62 = vmul.f32 %v3633_v53, %v3633_v53  ;;  %v1603_v28 = vsel %vm1332_vm1, %v1503_v17, 0.0 }
 0x1d5   :  { %v1408_v55 = vsel %vm1332_vm1, %v3633_v53, 0.0 }
 0x1d6   :  { %v1405_v58 = vadd.f32 %v1404_v51, %v1403_v47  ;;  %v1600_v50 = vadd.f32 %v1599_v3, %v1598_v11  ;;  %v3823_v38 = vpop.f32.mrb[52].mxu1  ;;  %v1505_v47 = vmul.f32 %v3642_v34, %v3642_v34  ;;  %v1605_v51 = vsel %vm1332_vm1, %v1504_v62, 0.0 }
 0x1d7   :  { %5319 = vst [vmem:[#allocation21_spill] sm:$0xff] %v3823_v38  ;;  %v1305_v59 = vpop.f32.mrb[53].mxu1  ;;  %v1414_v34 = vsel %vm1332_vm1, %v3660_v26, 0.0 }
 0x1d8   :  { %v1407_v35 = vadd.f32 %v1406_v54, %v1405_v58  ;;  %v1602_v40 = vadd.f32 %v1601_v14, %v1600_v50  ;;  %v1506_v54 = vmul.f32 %v3651_v12, %v3651_v12  ;;  %v1607_v14 = vsel %vm1332_vm1, %v1505_v47, 0.0 }
 0x1d9   :  { %v1412_v59 = vsel %vm1332_vm1, %v3651_v12, 0.0 }
 0x1da   :  { %v1409_v11 = vadd.f32 %v1408_v55, %v1407_v35  ;;  %v1604_v3 = vadd.f32 %v1603_v28, %v1602_v40  ;;  %v3835_v45 = vpop.f32.mrb[54].mxu1  ;;  %v1507_v35 = vmul.f32 %v3660_v26, %v3660_v26  ;;  %v1609_v55 = vsel %vm1332_vm1, %v1506_v54, 0.0 }
 0x1db   :  { %5320 = vst [vmem:[#allocation22_spill] sm:$0xff] %v3835_v45  ;;  %v1310_v58 = vpop.f32.mrb[55].mxu1  ;;  %v1418_v26 = vsel %vm1332_vm1, %v3678_v25, 0.0 }
 0x1dc   :  { %v1411_v17 = vadd.f32 %v1410_v5, %v1409_v11  ;;  %v1606_v50 = vadd.f32 %v1605_v51, %v1604_v3  ;;  %v1508_v5 = vmul.f32 %v3669_v6, %v3669_v6  ;;  %v1611_v51 = vsel %vm1332_vm1, %v1507_v35, 0.0 }
 0x1dd   :  { %v1416_v58 = vsel %vm1332_vm1, %v3669_v6, 0.0 }
 0x1de   :  { %v1608_v40 = vadd.f32 %v1607_v14, %v1606_v50  ;;  %v1413_v28 = vadd.f32 %v1412_v59, %v1411_v17  ;;  %v3847_v62 = vpop.f32.mrb[56].mxu1  ;;  %v1509_v17 = vmul.f32 %v3678_v25, %v3678_v25  ;;  %v1613_v59 = vsel %vm1332_vm1, %v1508_v5, 0.0 }
 0x1df   :  { %5321 = vst [vmem:[#allocation23_spill] sm:$0xff] %v3847_v62  ;;  %v1315_v11 = vpop.f32.mrb[57].mxu1  ;;  %v1422_v25 = vsel %vm1332_vm1, %v3696_v46, 0.0 }
 0x1e0   :  { %v1415_v47 = vadd.f32 %v1414_v34, %v1413_v28  ;;  %v1610_v3 = vadd.f32 %v1609_v55, %v1608_v40  ;;  %v1510_v34 = vmul.f32 %v3687_v8, %v3687_v8  ;;  %v1615_v55 = vsel %vm1332_vm1, %v1509_v17, 0.0 }
 0x1e1   :  { %v1420_v11 = vsel %vm1332_vm1, %v3687_v8, 0.0 }
 0x1e2   :  { %v1417_v50 = vadd.f32 %v1416_v58, %v1415_v47  ;;  %v1612_v14 = vadd.f32 %v1611_v51, %v1610_v3  ;;  %v3859_v54 = vpop.f32.mrb[58].mxu1  ;;  %v1511_v47 = vmul.f32 %v3696_v46, %v3696_v46  ;;  %v1617_v58 = vsel %vm1332_vm1, %v1510_v34, 0.0 }
 0x1e3   :  { %5322 = vst [vmem:[#allocation24_spill] sm:$0xff] %v3859_v54  ;;  %v1320_v40 = vpop.f32.mrb[59].mxu1  ;;  %v1426_v46 = vsel %vm1332_vm1, %v3714_v60, 0.0 }
 0x1e4   :  { %v1419_v35 = vadd.f32 %v1418_v26, %v1417_v50  ;;  %v1614_v28 = vadd.f32 %v1613_v59, %v1612_v14  ;;  %v1512_v26 = vmul.f32 %v3705_v15, %v3705_v15  ;;  %v1619_v59 = vsel %vm1332_vm1, %v1511_v47, 0.0 }
 0x1e5   :  { %v1424_v40 = vsel %vm1332_vm1, %v3705_v15, 0.0 }
 0x1e6   :  { %v1421_v3 = vadd.f32 %v1420_v11, %v1419_v35  ;;  %v1616_v51 = vadd.f32 %v1615_v55, %v1614_v28  ;;  %v3871_v5 = vpop.f32.mrb[60].mxu1  ;;  %v1513_v35 = vmul.f32 %v3714_v60, %v3714_v60  ;;  %v1621_v11 = vsel %vm1332_vm1, %v1512_v26, 0.0 }
 0x1e7   :  { %5323 = vst [vmem:[#allocation25_spill] sm:$0xff] %v3871_v5  ;;  %v1325_v50 = vpop.f32.mrb[61].mxu1 }
 0x1e8   :  { %v1423_v17 = vadd.f32 %v1422_v25, %v1421_v3  ;;  %v1618_v14 = vadd.f32 %v1617_v58, %v1616_v51  ;;  %v1514_v25 = vmul.f32 %v3723_v20, %v3723_v20  ;;  %v1623_v58 = vsel %vm1332_vm1, %v1513_v35, 0.0 }
 0x1e9   :  { %v1428_v50 = vsel %vm1332_vm1, %v3723_v20, 0.0 }
 0x1ea   :  { %v1425_v28 = vadd.f32 %v1424_v40, %v1423_v17  ;;  %v1620_v55 = vadd.f32 %v1619_v59, %v1618_v14  ;;  %v3883_v34 = vpop.f32.mrb[62].mxu1  ;;  %v1515_v17 = vmul.f32 %v3732_v49, %v3732_v49  ;;  %v1625_v26 = vsel %vm1332_vm1, %v1514_v25, 0.0 }
 0x1eb   :  { %5324 = vst [vmem:[#allocation26_spill] sm:$0xff] %v3883_v34  ;;  %v1330_v3 = vpop.f32.mrb[63].mxu1  ;;  %v1430_v40 = vsel %vm1332_vm1, %v3732_v49, 0.0 }
 0x1ec   :  { %v1427_v47 = vadd.f32 %v1426_v46, %v1425_v28  ;;  %v1622_v51 = vadd.f32 %v1621_v11, %v1620_v55  ;;  %v1516_v3 = vmul.f32 %v3741_v41, %v3741_v41  ;;  %v1627_v35 = vsel %vm1332_vm1, %v1515_v17, 0.0 }
 0x1ed   :  { %v1432_v55 = vsel %vm1332_vm1, %v3741_v41, 0.0  ;;  %v1517_v11 = vmul.f32 %v3750_v36, %v3750_v36 }
 0x1ee   :  { %v1429_v14 = vadd.f32 %v1428_v50, %v1427_v47  ;;  %v1624_v59 = vadd.f32 %v1623_v58, %v1622_v51  ;;  %v1629_v25 = vsel %vm1332_vm1, %v1516_v3, 0.0  ;;  %v1434_v58 = vsel %vm1332_vm1, %v3750_v36, 0.0 }
 0x1ef   :  { %v1518_v50 = vmul.f32 %v3759_v31, %v3759_v31  ;;  %v1631_v17 = vsel %vm1332_vm1, %v1517_v11, 0.0 }
 0x1f0   :  { %v1626_v46 = vadd.f32 %v1625_v26, %v1624_v59  ;;  %v1431_v28 = vadd.f32 %v1430_v40, %v1429_v14  ;;  %v1436_v26 = vsel %vm1332_vm1, %v3759_v31, 0.0  ;;  %v1519_v40 = vmul.f32 %v3768_v37, %v3768_v37 }
 0x1f1   :  { %v1633_v3 = vsel %vm1332_vm1, %v1518_v50, 0.0 }
 0x1f2   :  { %v1628_v47 = vadd.f32 %v1627_v35, %v1626_v46  ;;  %v1433_v51 = vadd.f32 %v1432_v55, %v1431_v28  ;;  %v1438_v35 = vsel %vm1332_vm1, %v3768_v37, 0.0  ;;  %v1520_v55 = vmul.f32 %v3777_v30, %v3777_v30 }
 0x1f3   :  { %v1635_v11 = vsel %vm1332_vm1, %v1519_v40, 0.0 }
 0x1f4   :  { %v1630_v59 = vadd.f32 %v1629_v25, %v1628_v47  ;;  %v1435_v14 = vadd.f32 %v1434_v58, %v1433_v51  ;;  %v1440_v25 = vsel %vm1332_vm1, %v3777_v30, 0.0  ;;  %v1521_v58 = vmul.f32 %v3786_v2, %v3786_v2 }
 0x1f5   :  { %v1637_v50 = vsel %vm1332_vm1, %v1520_v55, 0.0 }
 0x1f6   :  { %v1632_v46 = vadd.f32 %v1631_v17, %v1630_v59  ;;  %v1437_v28 = vadd.f32 %v1436_v26, %v1435_v14  ;;  %v1442_v17 = vsel %vm1332_vm1, %v3786_v2, 0.0  ;;  %v1522_v26 = vmul.f32 %v3799_v21, %v3799_v21 }
 0x1f7   :  { %v1639_v40 = vsel %vm1332_vm1, %v1521_v58, 0.0 }
 0x1f8   :  { %v1634_v47 = vadd.f32 %v1633_v3, %v1632_v46  ;;  %v1439_v51 = vadd.f32 %v1438_v35, %v1437_v28  ;;  %v1444_v3 = vsel %vm1332_vm1, %v3799_v21, 0.0  ;;  %v1523_v35 = vmul.f32 %v3811_v7, %v3811_v7 }
 0x1f9   :  { %v1641_v55 = vsel %vm1332_vm1, %v1522_v26, 0.0 }
 0x1fa   :  { %v1636_v59 = vadd.f32 %v1635_v11, %v1634_v47  ;;  %v1441_v14 = vadd.f32 %v1440_v25, %v1439_v51  ;;  %v1446_v11 = vsel %vm1332_vm1, %v3811_v7, 0.0  ;;  %v1524_v25 = vmul.f32 %v3823_v38, %v3823_v38 }
 0x1fb   :  { %v1643_v58 = vsel %vm1332_vm1, %v1523_v35, 0.0 }
 0x1fc   :  { %v1638_v46 = vadd.f32 %v1637_v50, %v1636_v59  ;;  %v1443_v28 = vadd.f32 %v1442_v17, %v1441_v14  ;;  %v1448_v50 = vsel %vm1332_vm1, %v3823_v38, 0.0  ;;  %v1525_v17 = vmul.f32 %v3835_v45, %v3835_v45 }
 0x1fd   :  { %v1645_v26 = vsel %vm1332_vm1, %v1524_v25, 0.0 }
 0x1fe   :  { %v1640_v47 = vadd.f32 %v1639_v40, %v1638_v46  ;;  %v1445_v51 = vadd.f32 %v1444_v3, %v1443_v28  ;;  %v1450_v40 = vsel %vm1332_vm1, %v3835_v45, 0.0  ;;  %v1526_v3 = vmul.f32 %v3847_v62, %v3847_v62 }
 0x1ff   :  { %v1647_v35 = vsel %vm1332_vm1, %v1525_v17, 0.0 }
 0x200   :  { %v1642_v59 = vadd.f32 %v1641_v55, %v1640_v47  ;;  %v1447_v14 = vadd.f32 %v1446_v11, %v1445_v51  ;;  %v1452_v55 = vsel %vm1332_vm1, %v3847_v62, 0.0  ;;  %v1527_v11 = vmul.f32 %v3859_v54, %v3859_v54 }
 0x201   :  { %v1649_v25 = vsel %vm1332_vm1, %v1526_v3, 0.0 }
 0x202   :  { %v1644_v46 = vadd.f32 %v1643_v58, %v1642_v59  ;;  %v1449_v28 = vadd.f32 %v1448_v50, %v1447_v14  ;;  %v1454_v58 = vsel %vm1332_vm1, %v3859_v54, 0.0  ;;  %v1528_v50 = vmul.f32 %v3871_v5, %v3871_v5 }
 0x204   :  { %v1646_v47 = vadd.f32 %v1645_v26, %v1644_v46  ;;  %v1451_v51 = vadd.f32 %v1450_v40, %v1449_v28  ;;  %v1529_v46 = vmul.f32 %v3883_v34, %v3883_v34  ;;  %v1651_v26 = vsel %vm1332_vm1, %v1527_v11, 0.0 }
 0x205   :  { %v1456_v40 = vsel %vm1332_vm1, %v3871_v5, 0.0 }
 0x206   :  { %v1648_v59 = vadd.f32 %v1647_v35, %v1646_v47  ;;  %v1453_v14 = vadd.f32 %v1452_v55, %v1451_v51  ;;  %v1458_v47 = vsel %vm1332_vm1, %v3883_v34, 0.0  ;;  %v1653_v35 = vsel %vm1332_vm1, %v1528_v50, 0.0 }
 0x207   :  { %v1655_v55 = vsel %vm1332_vm1, %v1529_v46, 0.0 }
 0x208   :  { %v1650_v17 = vadd.f32 %v1649_v25, %v1648_v59  ;;  %v1455_v28 = vadd.f32 %v1454_v58, %v1453_v14 }
 0x20a   :  { %v1652_v3 = vadd.f32 %v1651_v26, %v1650_v17  ;;  %v1457_v51 = vadd.f32 %v1456_v40, %v1455_v28 }
 0x20c   :  { %v1654_v54 = vadd.f32 %v1653_v35, %v1652_v3  ;;  %v1459_v62 = vadd.f32 %v1458_v47, %v1457_v51  ;;  %v1675_v47 = vlaneseq }
 0x20e   :  { %v1460_v45 = vrot.slane %v1459_v62, 4  ;;  %v1656_v38 = vadd.f32 %v1655_v55, %v1654_v54  ;;  %v3969_v3 = vshrl.u32 %v1675_v47, 7 }
 0x210   :  { %v1461_v59 = vadd.f32 %v1460_v45, %v1459_v62  ;;  %v1657_v14 = vrot.slane %v1656_v38, 4  ;;  %v5275_v45 = vsub.s32 0, %v3969_v3 }
 0x212   :  { %v1462_v25 = vrot.slane %v1461_v59, 2  ;;  %v1658_v11 = vadd.f32 %v1657_v14, %v1656_v38  ;;  %v1667_v38 = vld [vmem:[%s5247_s2] sm:$0x1] }
 0x213   :  { %v5325_v14 = vld [vmem:[#allocation10_spill] sm:$0xff] }
 0x214   :  { %v1463_v58 = vadd.f32 %v1462_v25, %v1461_v59  ;;  %v1659_v7 = vrot.slane %v1658_v11, 2  ;;  %v5326_v25 = vld [vmem:[#allocation11_spill] sm:$0xff] }
 0x216   :  { %v1464_v5 = vrot.slane %v1463_v58, 1  ;;  %v1660_v21 = vadd.f32 %v1659_v7, %v1658_v11  ;;  %v5327_v11 = vld [vmem:[#allocation12_spill] sm:$0xff] }
 0x218   :  { %v1465_v2 = vadd.f32 %v1464_v5, %v1463_v58  ;;  %v1661_v34 = vrot.slane %v1660_v21, 1  ;;  %v5328_v58 = vld [vmem:[#allocation13_spill] sm:$0xff]  ;;  %v5339_v5 = vld [vmem:[#allocation8_spill] sm:$0xff] }
 0x21a   :  { %v1662_v17 = vadd.f32 %v1661_v34, %v1660_v21  ;;  %v1663_v28 = vmul.f32 0.001953125, %v1465_v2  ;;  %v3978_v21 = vld [vmem:[%s5248_s3] sm:$0x1] }
 0x21c   :  { %v1664_v26 = vmul.f32 0.001953125, %v1662_v17  ;;  %v1665_v50 = vmul.f32 %v1663_v28, %v1663_v28  ;;  %v5329_v17 = vld [vmem:[#allocation14_spill] sm:$0xff] }
 0x21e   :  { %v1666_v40 = vsub.f32 %v1664_v26, %v1665_v50  ;;  %v5331_v50 = vld [vmem:[#allocation16_spill] sm:$0xff] }
 0x220   :  { %v1668_v46 = vadd.f32 1e-05, %v1666_v40 }
 0x222   :  { %2604 = vrsqrt.f32 %v1668_v46  ;;  %v5332_v46 = vld [vmem:[#allocation17_spill] sm:$0xff] }
 0x22c   :  { %v2605_v62 = vpop.eup %2604 }
 0x22d   :  { %v1670_v7 = vmul.f32 %v2605_v62, %v1667_v38  ;;  %v5333_v38 = vld [vmem:[#allocation2_spill] sm:$0xff] }
 0x22f   :  { %v3980_v2 = vmul.f32 %v1670_v7, %v1663_v28  ;;  %v3984_v54 = vrot.slane %v1670_v7, %v5275_v45  ;;  %v5330_v28 = vld [vmem:[#allocation15_spill] sm:$0xff]  ;;  %v5340_v45 = vld [vmem:[#allocation9_spill] sm:$0xff] }
 0x230   :  { %v5334_v7 = vld [vmem:[#allocation3_spill] sm:$0xff] }
 0x231   :  { %v3990_v34 = vmul.f32 %v3984_v54, %v3521_v61  ;;  %v3994_v51 = vmul.f32 %v3984_v54, %v3525_v1  ;;  %v3998_v35 = vmul.f32 %v3984_v54, %v3535_v10  ;;  %v4002_v55 = vmul.f32 %v3984_v54, %v3542_v43 }
 0x232   :  { %v4006_v59 = vmul.f32 %v3984_v54, %v3549_v23  ;;  %v4010_v61 = vmul.f32 %v3984_v54, %v3556_v0  ;;  %v4014_v1 = vmul.f32 %v3984_v54, %v3563_v39  ;;  %v4018_v10 = vmul.f32 %v3984_v54, %v3570_v48 }
 0x233   :  { %v4022_v43 = vmul.f32 %v3984_v54, %v3577_v33  ;;  %v4026_v23 = vmul.f32 %v3984_v54, %v3586_v29  ;;  %v4030_v0 = vmul.f32 %v3984_v54, %v3595_v44  ;;  %v4034_v39 = vmul.f32 %v3984_v54, %v3604_v52 }
 0x234   :  { %v4038_v48 = vmul.f32 %v3984_v54, %v3613_v56  ;;  %v4042_v33 = vmul.f32 %v3984_v54, %v3622_v27  ;;  %v4046_v29 = vmul.f32 %v3984_v54, %v3631_v16  ;;  %v4050_v44 = vmul.f32 %v3984_v54, %v3640_v63 }
 0x235   :  { %v4054_v52 = vmul.f32 %v3984_v54, %v3649_v42  ;;  %v4058_v56 = vmul.f32 %v3984_v54, %v3658_v24  ;;  %v4062_v27 = vmul.f32 %v3984_v54, %v3667_v4  ;;  %v4066_v16 = vmul.f32 %v3984_v54, %v3676_v18 }
 0x236   :  { %v4070_v63 = vmul.f32 %v3984_v54, %v3685_v32  ;;  %v4074_v42 = vmul.f32 %v3984_v54, %v3694_v22  ;;  %v4078_v24 = vmul.f32 %v3984_v54, %v3703_v13  ;;  %v4082_v4 = vmul.f32 %v3984_v54, %v3712_v19 }
 0x237   :  { %v4086_v18 = vmul.f32 %v3984_v54, %v5325_v14  ;;  %v4090_v32 = vmul.f32 %v3984_v54, %v5326_v25  ;;  %v4094_v22 = vmul.f32 %v3984_v54, %v5327_v11  ;;  %v4098_v13 = vmul.f32 %v3984_v54, %v5328_v58  ;;  %v5335_v11 = vld [vmem:[#allocation4_spill] sm:$0xff] }
 0x238   :  { %v4102_v19 = vmul.f32 %v3984_v54, %v5329_v17  ;;  %v4106_v26 = vmul.f32 %v3984_v54, %v5330_v28  ;;  %v4110_v40 = vmul.f32 %v3984_v54, %v5331_v50  ;;  %v4114_v47 = vmul.f32 %v3984_v54, %v5332_v46  ;;  %v5336_v28 = vld [vmem:[#allocation5_spill] sm:$0xff] }
 0x239   :  { %v4118_v62 = vmul.f32 %v3984_v54, %v5333_v38  ;;  %v4122_v14 = vmul.f32 %v3984_v54, %v5334_v7  ;;  %v4126_v25 = vmul.f32 %v3984_v54, %v3597_v9  ;;  %v4130_v58 = vmul.f32 %v3984_v54, %v5335_v11  ;;  %v5337_v38 = vld [vmem:[#allocation6_spill] sm:$0xff]  ;;  %v5338_v11 = vld [vmem:[#allocation7_spill] sm:$0xff] }
 0x23a   :  { %v4134_v17 = vmul.f32 %v3984_v54, %v3615_v57  ;;  %v4138_v50 = vmul.f32 %v3984_v54, %v5336_v28  ;;  %v4142_v46 = vmul.f32 %v3984_v54, %v3633_v53  ;;  %v4146_v9 = vmul.f32 %v3984_v54, %v5337_v38 }
 0x23b   :  { %v4150_v7 = vmul.f32 %v3984_v54, %v3651_v12  ;;  %v4154_v57 = vmul.f32 %v3984_v54, %v5338_v11  ;;  %v4158_v28 = vmul.f32 %v3984_v54, %v3669_v6  ;;  %v4162_v53 = vmul.f32 %v3984_v54, %v5339_v5 }
 0x23c   :  { %v4166_v38 = vmul.f32 %v3984_v54, %v3687_v8  ;;  %v4170_v12 = vmul.f32 %v3984_v54, %v5340_v45  ;;  %v4174_v11 = vmul.f32 %v3984_v54, %v3705_v15  ;;  %v4178_v6 = vmul.f32 %v3984_v54, %v3714_v60 }
 0x23d   :  { %v4182_v5 = vmul.f32 %v3984_v54, %v3723_v20  ;;  %v4186_v8 = vmul.f32 %v3984_v54, %v3732_v49  ;;  %v4190_v45 = vmul.f32 %v3984_v54, %v3741_v41  ;;  %v4194_v15 = vmul.f32 %v3984_v54, %v3750_v36 }
 0x23e   :  { %v4198_v60 = vmul.f32 %v3984_v54, %v3759_v31  ;;  %v4202_v20 = vmul.f32 %v3984_v54, %v3768_v37  ;;  %v4206_v49 = vmul.f32 %v3984_v54, %v3777_v30 }
 0x23f   :  { %5341 = vst [vmem:[#allocation10_spill] sm:$0xff] %v4186_v8  ;;  %5342 = vst [vmem:[#allocation11_spill] sm:$0xff] %v4190_v45  ;;  %v5347_v8 = vld [vmem:[#allocation18_spill] sm:$0xff]  ;;  %v5349_v45 = vld [vmem:[#allocation19_spill] sm:$0xff] }
 0x240   :  { %5343 = vst [vmem:[#allocation12_spill] sm:$0xff] %v4194_v15  ;;  %5344 = vst [vmem:[#allocation13_spill] sm:$0xff] %v4198_v60  ;;  %v4210_v41 = vmul.f32 %v3984_v54, %v5347_v8  ;;  %v4214_v36 = vmul.f32 %v3984_v54, %v5349_v45  ;;  %v5351_v15 = vld [vmem:[#allocation20_spill] sm:$0xff]  ;;  %v5353_v60 = vld [vmem:[#allocation21_spill] sm:$0xff] }
 0x241   :  { %5345 = vst [vmem:[#allocation14_spill] sm:$0xff] %v4202_v20  ;;  %5346 = vst [vmem:[#allocation15_spill] sm:$0xff] %v4206_v49  ;;  %v4218_v31 = vmul.f32 %v3984_v54, %v5351_v15  ;;  %v4222_v37 = vmul.f32 %v3984_v54, %v5353_v60  ;;  %v5355_v20 = vld [vmem:[#allocation22_spill] sm:$0xff]  ;;  %v5357_v49 = vld [vmem:[#allocation23_spill] sm:$0xff] }
 0x242   :  { %5348 = vst [vmem:[#allocation16_spill] sm:$0xff] %v4210_v41  ;;  %5350 = vst [vmem:[#allocation17_spill] sm:$0xff] %v4214_v36  ;;  %v4226_v30 = vmul.f32 %v3984_v54, %v5355_v20  ;;  %v4230_v8 = vmul.f32 %v3984_v54, %v5357_v49  ;;  %v5358_v41 = vld [vmem:[#allocation24_spill] sm:$0xff]  ;;  %v5359_v36 = vld [vmem:[#allocation25_spill] sm:$0xff]  ;;  %v5362_v20 = vsub.f32 %v3978_v21, %v3980_v2 }
 0x243   :  { %5352 = vst [vmem:[#allocation2_spill] sm:$0xff] %v4218_v31  ;;  %5354 = vst [vmem:[#allocation3_spill] sm:$0xff] %v4222_v37  ;;  %v4234_v45 = vmul.f32 %v3984_v54, %v5358_v41  ;;  %v4238_v15 = vmul.f32 %v3984_v54, %v5359_v36  ;;  %v5360_v31 = vld [vmem:[#allocation26_spill] sm:$0xff]  ;;  %v5361_v37 = vsub.s32 0, %v3969_v3 }
 0x244   :  { %5356 = vst [vmem:[#allocation4_spill] sm:$0xff] %v4226_v30  ;;  %v4242_v60 = vmul.f32 %v3984_v54, %v5360_v31 }
 0x245   :  { %v4249_v30 = vrot.slane %v5362_v20, %v5361_v37 }
 0x247   :  { %v4253_v49 = vadd.f32 %v4249_v30, %v3990_v34  ;;  %v4257_v41 = vadd.f32 %v4249_v30, %v3994_v51  ;;  %v4261_v36 = vadd.f32 %v4249_v30, %v3998_v35  ;;  %v4265_v3 = vadd.f32 %v4249_v30, %v4002_v55  ;;  %v5369_v31 = vld [vmem:[#allocation12_spill] sm:$0xff]  ;;  %v5371_v37 = vld [vmem:[#allocation13_spill] sm:$0xff] }
 0x248   :  { %v4269_v21 = vadd.f32 %v4249_v30, %v4006_v59  ;;  %v4273_v2 = vadd.f32 %v4249_v30, %v4010_v61  ;;  %v4277_v54 = vadd.f32 %v4249_v30, %v4014_v1  ;;  %v4281_v34 = vadd.f32 %v4249_v30, %v4018_v10  ;;  %v5373_v20 = vld [vmem:[#allocation14_spill] sm:$0xff] }
 0x249   :  { %v4285_v51 = vadd.f32 %v4249_v30, %v4022_v43  ;;  %v4289_v35 = vadd.f32 %v4249_v30, %v4026_v23  ;;  %v4293_v55 = vadd.f32 %v4249_v30, %v4030_v0  ;;  %v4297_v59 = vadd.f32 %v4249_v30, %v4034_v39 }
 0x24a   :  { %v4301_v61 = vadd.f32 %v4249_v30, %v4038_v48  ;;  %v4305_v1 = vadd.f32 %v4249_v30, %v4042_v33  ;;  %v4309_v10 = vadd.f32 %v4249_v30, %v4046_v29  ;;  %v4313_v43 = vadd.f32 %v4249_v30, %v4050_v44 }
 0x24b   :  { %v4317_v23 = vadd.f32 %v4249_v30, %v4054_v52  ;;  %v4321_v0 = vadd.f32 %v4249_v30, %v4058_v56  ;;  %v4325_v39 = vadd.f32 %v4249_v30, %v4062_v27  ;;  %v4329_v48 = vadd.f32 %v4249_v30, %v4066_v16 }
 0x24c   :  { %v4333_v33 = vadd.f32 %v4249_v30, %v4070_v63  ;;  %v4337_v29 = vadd.f32 %v4249_v30, %v4074_v42  ;;  %v4341_v44 = vadd.f32 %v4249_v30, %v4078_v24  ;;  %v4345_v52 = vadd.f32 %v4249_v30, %v4082_v4 }
 0x24d   :  { %v4349_v56 = vadd.f32 %v4249_v30, %v4086_v18  ;;  %v4353_v27 = vadd.f32 %v4249_v30, %v4090_v32  ;;  %v4357_v16 = vadd.f32 %v4249_v30, %v4094_v22  ;;  %v4361_v63 = vadd.f32 %v4249_v30, %v4098_v13 }
 0x24e   :  { %v4365_v42 = vadd.f32 %v4249_v30, %v4102_v19  ;;  %v4369_v24 = vadd.f32 %v4249_v30, %v4106_v26  ;;  %v4373_v4 = vadd.f32 %v4249_v30, %v4110_v40  ;;  %v4377_v18 = vadd.f32 %v4249_v30, %v4114_v47 }
 0x24f   :  { %v4381_v32 = vadd.f32 %v4249_v30, %v4118_v62  ;;  %v4385_v22 = vadd.f32 %v4249_v30, %v4122_v14  ;;  %v4389_v13 = vadd.f32 %v4249_v30, %v4126_v25  ;;  %v4393_v19 = vadd.f32 %v4249_v30, %v4130_v58 }
 0x250   :  { %v4397_v26 = vadd.f32 %v4249_v30, %v4134_v17  ;;  %v4401_v40 = vadd.f32 %v4249_v30, %v4138_v50  ;;  %v4405_v47 = vadd.f32 %v4249_v30, %v4142_v46  ;;  %v4409_v62 = vadd.f32 %v4249_v30, %v4146_v9 }
 0x251   :  { %v4413_v14 = vadd.f32 %v4249_v30, %v4150_v7  ;;  %v4417_v25 = vadd.f32 %v4249_v30, %v4154_v57  ;;  %v4421_v58 = vadd.f32 %v4249_v30, %v4158_v28  ;;  %v4425_v17 = vadd.f32 %v4249_v30, %v4162_v53  ;;  %v5365_v28 = vld [vmem:[#allocation10_spill] sm:$0xff] }
 0x252   :  { %v4429_v50 = vadd.f32 %v4249_v30, %v4166_v38  ;;  %v4433_v46 = vadd.f32 %v4249_v30, %v4170_v12  ;;  %v4437_v9 = vadd.f32 %v4249_v30, %v4174_v11  ;;  %v4441_v7 = vadd.f32 %v4249_v30, %v4178_v6  ;;  %v5367_v38 = vld [vmem:[#allocation11_spill] sm:$0xff] }
 0x253   :  { %v4445_v57 = vadd.f32 %v4249_v30, %v4182_v5  ;;  %v4449_v53 = vadd.f32 %v4249_v30, %v5365_v28  ;;  %v4453_v12 = vadd.f32 %v4249_v30, %v5367_v38  ;;  %v4457_v11 = vadd.f32 %v4249_v30, %v5369_v31 }
 0x254   :  { %5363 = vst [vmem:[#allocation5_spill] sm:$0xff] %v4433_v46  ;;  %v4461_v6 = vadd.f32 %v4249_v30, %v5371_v37  ;;  %v4465_v5 = vadd.f32 %v4249_v30, %v5373_v20  ;;  %vm1814_vm2 = vcmp.gt.f32.partialorder %v4253_v49, 0.0  ;;  %vm1815_vm3 = vcmp.gt.f32.partialorder %v4257_v41, 0.0 }
 0x255   :  { %5364 = vst [vmem:[#allocation6_spill] sm:$0xff] %v4445_v57  ;;  %5366 = vst [vmem:[#allocation7_spill] sm:$0xff] %v4449_v53  ;;  %v5375_v57 = vld [vmem:[#allocation15_spill] sm:$0xff]  ;;  %v5377_v53 = vld [vmem:[#allocation16_spill] sm:$0xff]  ;;  %vm1816_vm4 = vcmp.gt.f32.partialorder %v4261_v36, 0.0  ;;  %vm1817_vm5 = vcmp.gt.f32.partialorder %v4265_v3, 0.0 }
 0x256   :  { %5368 = vst [vmem:[#allocation8_spill] sm:$0xff] %v4453_v12  ;;  %5370 = vst [vmem:[#allocation9_spill] sm:$0xff] %v4457_v11  ;;  %v4469_v28 = vadd.f32 %v4249_v30, %v5375_v57  ;;  %v4473_v38 = vadd.f32 %v4249_v30, %v5377_v53  ;;  %v5379_v12 = vld [vmem:[#allocation17_spill] sm:$0xff]  ;;  %v5381_v11 = vld [vmem:[#allocation2_spill] sm:$0xff]  ;;  %v4493_v53 = vadd.f32 %v4249_v30, %v4230_v8  ;;  %vm1818_vm6 = vcmp.gt.f32.partialorder %v4269_v21, 0.0 }
 0x257   :  { %5372 = vst [vmem:[#allocation18_spill] sm:$0xff] %v4461_v6  ;;  %5374 = vst [vmem:[#allocation19_spill] sm:$0xff] %v4465_v5  ;;  %v4477_v31 = vadd.f32 %v4249_v30, %v5379_v12  ;;  %v4481_v37 = vadd.f32 %v4249_v30, %v5381_v11  ;;  %v5383_v6 = vld [vmem:[#allocation3_spill] sm:$0xff]  ;;  %v5385_v5 = vld [vmem:[#allocation4_spill] sm:$0xff]  ;;  %v4497_v12 = vadd.f32 %v4249_v30, %v4234_v45  ;;  %vm1819_vm7 = vcmp.gt.f32.partialorder %v4273_v2, 0.0 }
 0x258   :  { %5376 = vst [vmem:[#allocation20_spill] sm:$0xff] %v4469_v28  ;;  %5378 = vst [vmem:[#allocation21_spill] sm:$0xff] %v4473_v38  ;;  %v4485_v20 = vadd.f32 %v4249_v30, %v5383_v6  ;;  %v4489_v57 = vadd.f32 %v4249_v30, %v5385_v5  ;;  %v4501_v11 = vadd.f32 %v4249_v30, %v4238_v15  ;;  %vm1820_vm8 = vcmp.gt.f32.partialorder %v4277_v54, 0.0 }
 0x259   :  { %5380 = vst [vmem:[#allocation22_spill] sm:$0xff] %v4477_v31  ;;  %5382 = vst [vmem:[#allocation23_spill] sm:$0xff] %v4481_v37  ;;  %v4505_v6 = vadd.f32 %v4249_v30, %v4242_v60  ;;  %vm1821_vm9 = vcmp.gt.f32.partialorder %v4281_v34, 0.0  ;;  %vm1822_vm10 = vcmp.gt.f32.partialorder %v4285_v51, 0.0  ;;  %vm1823_vm11 = vcmp.gt.f32.partialorder %v4289_v35, 0.0 }
 0x25a   :  { %5384 = vst [vmem:[#allocation24_spill] sm:$0xff] %v4485_v20  ;;  %5386 = vst [vmem:[#allocation25_spill] sm:$0xff] %v4489_v57  ;;  %v1878_v30 = vmul.f32 0.2, %v4253_v49  ;;  %v1879_v8 = vmul.f32 0.2, %v4257_v41 }
 0x25b   :  { %5387 = vst [vmem:[#allocation26_spill] sm:$0xff] %v4493_v53  ;;  %5388 = vst [vmem:[#allocation10_spill] sm:$0xff] %v4497_v12  ;;  %v1880_v45 = vmul.f32 0.2, %v4261_v36  ;;  %vm1824_vm12 = vcmp.gt.f32.partialorder %v4293_v55, 0.0  ;;  %vm1825_vm13 = vcmp.gt.f32.partialorder %v4297_v59, 0.0 }
 0x25c   :  { %5389 = vst [vmem:[#allocation11_spill] sm:$0xff] %v4501_v11  ;;  %5390 = vst [vmem:[#allocation12_spill] sm:$0xff] %v4505_v6  ;;  %v1881_v15 = vmul.f32 0.2, %v4265_v3  ;;  %v1882_v60 = vmul.f32 0.2, %v4269_v21  ;;  %v1942_v53 = vsel %vm1814_vm2, %v4253_v49, %v1878_v30  ;;  %v1943_v31 = vsel %vm1815_vm3, %v4257_v41, %v1879_v8 }
 0x25d   :  { %v1883_v5 = vmul.f32 0.2, %v4273_v2  ;;  %v1884_v6 = vmul.f32 0.2, %v4277_v54  ;;  %v1885_v11 = vmul.f32 0.2, %v4281_v34  ;;  %v1944_v41 = vsel %vm1816_vm4, %v4261_v36, %v1880_v45 }
 0x25e   :  { %v1886_v12 = vmul.f32 0.2, %v4285_v51  ;;  %vm1826_vm14 = vcmp.gt.f32.partialorder %v4301_v61, 0.0  ;;  %v1887_v57 = vmul.f32 0.2, %v4289_v35  ;;  %2006 = vst.msk [vmem:[%s5249_s4] sm:$0xff] %vm1332_vm1, %v1942_v53  ;;  %v1945_v36 = vsel %vm1817_vm5, %v4265_v3, %v1881_v15 }
 0x25f   :  { %v4534_v20 = vmul.f32 0.2, %v4293_v55  ;;  %v4537_v37 = vmul.f32 0.2, %v4297_v59  ;;  %vm1827_vm15 = vcmp.gt.f32.partialorder %v4305_v1, 0.0  ;;  %2007 = vst.msk [vmem:[%s5249_s4 + $0x8] sm:$0xff] %vm1332_vm1, %v1943_v31  ;;  %v1946_v3 = vsel %vm1818_vm6, %v4269_v21, %v1882_v60 }
 0x260   :  { %v4548_v49 = vmul.f32 0.2, %v4301_v61  ;;  %v4551_v30 = vmul.f32 0.2, %v4305_v1  ;;  %v4554_v38 = vmul.f32 0.2, %v4309_v10  ;;  %v1947_v21 = vsel %vm1819_vm7, %v4273_v2, %v1883_v5 }
 0x261   :  { %vm1828_vm0 = vcmp.gt.f32.partialorder %v4309_v10, 0.0  ;;  %v4565_v53 = vmul.f32 0.2, %v4313_v43  ;;  %v4568_v8 = vmul.f32 0.2, %v4317_v23  ;;  %2008 = vst.msk [vmem:[%s5249_s4 + $0x10] sm:$0xff] %vm1332_vm1, %v1944_v41  ;;  %v1948_v2 = vsel %vm1820_vm8, %v4277_v54, %v1884_v6 }
 0x262   :  { %v4571_v28 = vmul.f32 0.2, %v4321_v0  ;;  %vm1829_vm2 = vcmp.gt.f32.partialorder %v4313_v43, 0.0  ;;  %v4582_v31 = vmul.f32 0.2, %v4325_v39  ;;  %2009 = vst.msk [vmem:[%s5249_s4 + $0x18] sm:$0xff] %vm1332_vm1, %v1945_v36  ;;  %v1949_v54 = vsel %vm1821_vm9, %v4281_v34, %v1885_v11 }
 0x263   :  { %5391 = vst [vmem:[#allocation13_spill] sm:$0xff] %v4568_v8  ;;  %v4585_v45 = vmul.f32 0.2, %v4329_v48  ;;  %v4588_v8 = vmul.f32 0.2, %v4333_v33  ;;  %vm1830_vm3 = vcmp.gt.f32.partialorder %v4317_v23, 0.0  ;;  %v1950_v34 = vsel %vm1822_vm10, %v4285_v51, %v1886_v12 }
 0x264   :  { %v4599_v15 = vmul.f32 0.2, %v4337_v29  ;;  %v4602_v41 = vmul.f32 0.2, %v4341_v44  ;;  %2010 = vst.msk [vmem:[%s5249_s4 + $0x20] sm:$0xff] %vm1332_vm1, %v1946_v3  ;;  %vm1831_vm4 = vcmp.gt.f32.partialorder %v4321_v0, 0.0  ;;  %v1951_v12 = vsel %vm1823_vm11, %v4289_v35, %v1887_v57 }
 0x265   :  { %5392 = vst [vmem:[#allocation14_spill] sm:$0xff] %v4585_v45  ;;  %v4605_v45 = vmul.f32 0.2, %v4345_v52  ;;  %v4616_v60 = vmul.f32 0.2, %v4349_v56  ;;  %2011 = vst.msk [vmem:[%s5249_s4 + $0x28] sm:$0xff] %vm1332_vm1, %v1947_v21  ;;  %v1952_v57 = vsel %vm1824_vm12, %v4293_v55, %v4534_v20  ;;  %v1953_v20 = vsel %vm1825_vm13, %v4297_v59, %v4537_v37 }
 0x266   :  { %5393 = vst [vmem:[#allocation15_spill] sm:$0xff] %v4602_v41  ;;  %v4619_v36 = vmul.f32 0.2, %v4353_v27  ;;  %v4622_v41 = vmul.f32 0.2, %v4357_v16  ;;  %vm1832_vm5 = vcmp.gt.f32.partialorder %v4325_v39, 0.0  ;;  %v1954_v37 = vsel %vm1826_vm14, %v4301_v61, %v4548_v49 }
 0x267   :  { %v4633_v5 = vmul.f32 0.2, %v4361_v63  ;;  %v4636_v3 = vmul.f32 0.2, %v4365_v42  ;;  %2012 = vst.msk [vmem:[%s5249_s4 + $0x30] sm:$0xff] %vm1332_vm1, %v1948_v2  ;;  %2013 = vst.msk [vmem:[%s5249_s4 + $0x38] sm:$0xff] %vm1332_vm1, %v1949_v54  ;;  %v1955_v49 = vsel %vm1827_vm15, %v4305_v1, %v4551_v30 }
 0x268   :  { %5394 = vst [vmem:[#allocation16_spill] sm:$0xff] %v4619_v36  ;;  %v4639_v36 = vmul.f32 0.2, %v4369_v24  ;;  %v4652_v6 = vmul.f32 0.2, %v4373_v4  ;;  %vm1836_vm9 = vcmp.gt.f32.partialorder %v4341_v44, 0.0 }
 0x269   :  { %v4655_v21 = vmul.f32 0.2, %v4377_v18  ;;  %v4672_v11 = vmul.f32 0.2, %v4385_v22  ;;  %v4675_v2 = vmul.f32 0.2, %v4389_v13 }
 0x26a   :  { %5395 = vst [vmem:[#allocation17_spill] sm:$0xff] %v4639_v36  ;;  %v4658_v36 = vmul.f32 0.2, %v4381_v32  ;;  %v4678_v51 = vmul.f32 0.2, %v4393_v19  ;;  %2014 = vst.msk [vmem:[%s5249_s4 + $0x40] sm:$0xff] %vm1332_vm1, %v1950_v34 }
 0x26b   :  { %vm1840_vm10 = vcmp.gt.f32.partialorder %v4357_v16, 0.0  ;;  %v4692_v54 = vmul.f32 0.2, %v4397_v26  ;;  %v4698_v35 = vmul.f32 0.2, %v4405_v47  ;;  %2015 = vst.msk [vmem:[%s5249_s4 + $0x48] sm:$0xff] %vm1332_vm1, %v1951_v12 }
 0x26c   :  { %5396 = vst [vmem:[#allocation2_spill] sm:$0xff] %v4678_v51  ;;  %v4695_v51 = vmul.f32 0.2, %v4401_v40  ;;  %vm1844_vm11 = vcmp.gt.f32.partialorder %v4373_v4, 0.0  ;;  %v4713_v34 = vmul.f32 0.2, %v4409_v62 }
 0x26d   :  { %5397 = vst [vmem:[#allocation3_spill] sm:$0xff] %v4698_v35  ;;  %v4716_v35 = vmul.f32 0.2, %v4413_v14  ;;  %v4719_v55 = vmul.f32 0.2, %v4417_v25  ;;  %2016 = vst.msk [vmem:[%s5249_s4 + $0x50] sm:$0xff] %vm1332_vm1, %v1952_v57 }
 0x26e   :  { %vm1848_vm12 = vcmp.gt.f32.partialorder %v4389_v13, 0.0  ;;  %v4734_v12 = vmul.f32 0.2, %v4421_v58  ;;  %v4740_v59 = vmul.f32 0.2, %v4429_v50  ;;  %2017 = vst.msk [vmem:[%s5249_s4 + $0x58] sm:$0xff] %vm1332_vm1, %v1953_v20 }
 0x26f   :  { %5398 = vst [vmem:[#allocation4_spill] sm:$0xff] %v4719_v55  ;;  %v4737_v55 = vmul.f32 0.2, %v4425_v17  ;;  %vm1852_vm13 = vcmp.gt.f32.partialorder %v4405_v47, 0.0  ;;  %v4755_v57 = vmul.f32 0.2, %v4433_v46 }
 0x270   :  { %5399 = vst [vmem:[#allocation27_spill] sm:$0xff] %v4740_v59  ;;  %v4758_v59 = vmul.f32 0.2, %v4437_v9  ;;  %v4761_v61 = vmul.f32 0.2, %v4441_v7  ;;  %2018 = vst.msk [vmem:[%s5249_s4 + $0x60] sm:$0xff] %vm1332_vm1, %v1954_v37  ;;  %v1956_v37 = vsel %vm1828_vm0, %v4309_v10, %v4554_v38 }
 0x271   :  { %5400 = vst [vmem:[#allocation28_spill] sm:$0xff] %v4755_v57  ;;  %vm1856_vm14 = vcmp.gt.f32.partialorder %v4421_v58, 0.0  ;;  %v5403_v20 = vld [vmem:[#allocation6_spill] sm:$0xff]  ;;  %v5407_v1 = vld [vmem:[#allocation8_spill] sm:$0xff]  ;;  %2019 = vst.msk [vmem:[%s5249_s4 + $0x68] sm:$0xff] %vm1332_vm1, %v1955_v49  ;;  %vm1860_vm15 = vcmp.gt.f32.partialorder %v4437_v9, 0.0  ;;  %v1957_v49 = vsel %vm1829_vm2, %v4313_v43, %v4565_v53 }
 0x272   :  { %5401 = vst [vmem:[#allocation29_spill] sm:$0xff] %v4758_v59  ;;  %5402 = vst [vmem:[#allocation30_spill] sm:$0xff] %v4761_v61  ;;  %v4776_v61 = vmul.f32 0.2, %v5403_v20  ;;  %v5405_v59 = vld [vmem:[#allocation7_spill] sm:$0xff]  ;;  %vm1864_vm0 = vcmp.gt.f32.partialorder %v5407_v1, 0.0 }
 0x273   :  { %v4779_v57 = vmul.f32 0.2, %v5405_v59  ;;  %v4782_v30 = vmul.f32 0.2, %v5407_v1  ;;  %v5413_v10 = vld [vmem:[#allocation19_spill] sm:$0xff]  ;;  %2020 = vst.msk [vmem:[%s5249_s4 + $0x70] sm:$0xff] %vm1332_vm1, %v1956_v37 }
 0x274   :  { %5404 = vst [vmem:[#allocation31_spill] sm:$0xff] %v4776_v61  ;;  %v5411_v61 = vld [vmem:[#allocation18_spill] sm:$0xff]  ;;  %v4803_v38 = vmul.f32 0.2, %v5413_v10  ;;  %v5421_v20 = vld [vmem:[#allocation13_spill] sm:$0xff]  ;;  %2021 = vst.msk [vmem:[%s5249_s4 + $0x78] sm:$0xff] %vm1332_vm1, %v1957_v49  ;;  %v1959_v49 = vsel %vm1831_vm4, %v4321_v0, %v4571_v28 }
 0x275   :  { %5406 = vst [vmem:[#allocation32_spill] sm:$0xff] %v4779_v57  ;;  %5408 = vst [vmem:[#allocation8_spill] sm:$0xff] %v4782_v30  ;;  %v5409_v57 = vld [vmem:[#allocation9_spill] sm:$0xff]  ;;  %v4800_v46 = vmul.f32 0.2, %v5411_v61  ;;  %v5419_v43 = vld [vmem:[#allocation22_spill] sm:$0xff]  ;;  %v1958_v37 = vsel %vm1830_vm3, %v4317_v23, %v5421_v20 }
 0x276   :  { %v4797_v30 = vmul.f32 0.2, %v5409_v57  ;;  %5414 = vst [vmem:[#allocation33_spill] sm:$0xff] %v4803_v38  ;;  %v4824_v53 = vmul.f32 0.2, %v5419_v43  ;;  %v5426_v23 = vld [vmem:[#allocation25_spill] sm:$0xff] }
 0x277   :  { %5412 = vst [vmem:[#allocation18_spill] sm:$0xff] %v4800_v46  ;;  %v5415_v46 = vld [vmem:[#allocation20_spill] sm:$0xff]  ;;  %v4845_v20 = vmul.f32 0.2, %v5426_v23  ;;  %2022 = vst.msk [vmem:[%s5249_s4 + $0x80] sm:$0xff] %vm1332_vm1, %v1958_v37  ;;  %v5431_v0 = vld [vmem:[#allocation11_spill] sm:$0xff]  ;;  %v1960_v37 = vsel %vm1832_vm5, %v4325_v39, %v4582_v31 }
 0x278   :  { %5410 = vst [vmem:[#allocation9_spill] sm:$0xff] %v4797_v30  ;;  %v4818_v38 = vmul.f32 0.2, %v5415_v46  ;;  %v5417_v30 = vld [vmem:[#allocation21_spill] sm:$0xff]  ;;  %5420 = vst [vmem:[#allocation22_spill] sm:$0xff] %v4824_v53  ;;  %vm1868_vm2 = vcmp.gt.f32.partialorder %v5415_v46, 0.0 }
 0x279   :  { %v4821_v59 = vmul.f32 0.2, %v5417_v30  ;;  %5427 = vst [vmem:[#allocation25_spill] sm:$0xff] %v4845_v20  ;;  %v4866_v28 = vmul.f32 0.2, %v5431_v0  ;;  %2023 = vst.msk [vmem:[%s5249_s4 + $0x88] sm:$0xff] %vm1332_vm1, %v1959_v49 }
 0x27a   :  { %5416 = vst [vmem:[#allocation20_spill] sm:$0xff] %v4818_v38  ;;  %v5424_v38 = vld [vmem:[#allocation24_spill] sm:$0xff]  ;;  %vm1876_vm4 = vcmp.gt.f32.partialorder %v5431_v0, 0.0  ;;  %vm5435_vm7 = vcmp.gt.f32.partialorder %v4329_v48, 0.0  ;;  %vm5436_vm5 = vcmp.gt.f32.partialorder %v4333_v33, 0.0  ;;  %vm5437_vm6 = vcmp.gt.f32.partialorder %v4337_v29, 0.0 }
 0x27b   :  { %5418 = vst [vmem:[#allocation21_spill] sm:$0xff] %v4821_v59  ;;  %v5422_v59 = vld [vmem:[#allocation23_spill] sm:$0xff]  ;;  %v4842_v10 = vmul.f32 0.2, %v5424_v38  ;;  %vm1872_vm3 = vcmp.gt.f32.partialorder %v5424_v38, 0.0  ;;  %5432 = vst [vmem:[#allocation11_spill] sm:$0xff] %v4866_v28  ;;  %v1962_v39 = vsel %vm5436_vm5, %v4333_v33, %v4588_v8  ;;  %v1963_v31 = vsel %vm5437_vm6, %v4337_v29, %v4599_v15 }
 0x27c   :  { %v4839_v53 = vmul.f32 0.2, %v5422_v59  ;;  %v5428_v59 = vld [vmem:[#allocation26_spill] sm:$0xff]  ;;  %2024 = vst.msk [vmem:[%s5249_s4 + $0x90] sm:$0xff] %vm1332_vm1, %v1960_v37  ;;  %v5438_v49 = vld [vmem:[#allocation15_spill] sm:$0xff]  ;;  %vm5440_vm5 = vcmp.gt.f32.partialorder %v4349_v56, 0.0 }
 0x27d   :  { %5425 = vst [vmem:[#allocation24_spill] sm:$0xff] %v4842_v10  ;;  %v5429_v10 = vld [vmem:[#allocation10_spill] sm:$0xff]  ;;  %v4860_v20 = vmul.f32 0.2, %v5428_v59  ;;  %v5433_v59 = vld [vmem:[#allocation12_spill] sm:$0xff]  ;;  %v1966_v29 = vsel %vm5440_vm5, %v4349_v56, %v4616_v60  ;;  %vm5442_vm6 = vcmp.gt.f32.partialorder %v4353_v27, 0.0 }
 0x27e   :  { %5423 = vst [vmem:[#allocation13_spill] sm:$0xff] %v4839_v53  ;;  %v4863_v53 = vmul.f32 0.2, %v5429_v10  ;;  %vm1877_vm8 = vcmp.gt.f32.partialorder %v5433_v59, 0.0  ;;  %v4879_v10 = vmul.f32 0.2, %v5433_v59 }
 0x27f   :  { %v5441_v8 = vld [vmem:[#allocation16_spill] sm:$0xff]  ;;  %2026 = vst.msk [vmem:[%s5249_s4 + $0xa0] sm:$0xff] %vm1332_vm1, %v1962_v39  ;;  %2027 = vst.msk [vmem:[%s5249_s4 + $0xa8] sm:$0xff] %vm1332_vm1, %v1963_v31  ;;  %vm5446_vm5 = vcmp.gt.f32.partialorder %v4369_v24, 0.0  ;;  %v5479_v37 = vld [vmem:[#allocation33_spill] sm:$0xff] }
 0x280   :  { %5430 = vst [vmem:[#allocation34_spill] sm:$0xff] %v4863_v53  ;;  %v5434_v53 = vld [vmem:[#allocation14_spill] sm:$0xff]  ;;  %v1967_v15 = vsel %vm5442_vm6, %v4353_v27, %v5441_v8  ;;  %v5445_v27 = vld [vmem:[#allocation17_spill] sm:$0xff]  ;;  %2030 = vst.msk [vmem:[%s5249_s4 + $0xc0] sm:$0xff] %vm1332_vm1, %v1966_v29  ;;  %vm5448_vm6 = vcmp.gt.f32.partialorder %v4381_v32, 0.0 }
 0x281   :  { %v1961_v28 = vsel %vm5435_vm7, %v4329_v48, %v5434_v53  ;;  %v1964_v48 = vsel %vm1836_vm9, %v4341_v44, %v5438_v49  ;;  %vm5439_vm7 = vcmp.gt.f32.partialorder %v4345_v52, 0.0  ;;  %v1968_v44 = vsel %vm1840_vm10, %v4357_v16, %v4622_v41  ;;  %2031 = vst.msk [vmem:[%s5249_s4 + $0xc8] sm:$0xff] %vm1332_vm1, %v1967_v15  ;;  %v5457_v60 = vld [vmem:[#allocation4_spill] sm:$0xff]  ;;  %v5477_v53 = vld [vmem:[#allocation18_spill] sm:$0xff]  ;;  %v5480_v39 = vld [vmem:[#allocation19_spill] sm:$0xff] }
 0x282   :  { %v1965_v33 = vsel %vm5439_vm7, %v4345_v52, %v4605_v45  ;;  %2025 = vst.msk [vmem:[%s5249_s4 + $0x98] sm:$0xff] %vm1332_vm1, %v1961_v28  ;;  %vm5443_vm9 = vcmp.gt.f32.partialorder %v4361_v63, 0.0  ;;  %vm5444_vm7 = vcmp.gt.f32.partialorder %v4365_v42, 0.0  ;;  %v1971_v45 = vsel %vm5446_vm5, %v4369_v24, %v5445_v27  ;;  %2028 = vst.msk [vmem:[%s5249_s4 + $0xb0] sm:$0xff] %vm1332_vm1, %v1964_v48  ;;  %v5485_v48 = vld [vmem:[#allocation22_spill] sm:$0xff]  ;;  %v5488_v8 = vld [vmem:[#allocation23_spill] sm:$0xff] }
 0x283   :  { %v1969_v52 = vsel %vm5443_vm9, %v4361_v63, %v4633_v5  ;;  %v1970_v56 = vsel %vm5444_vm7, %v4365_v42, %v4636_v3  ;;  %2029 = vst.msk [vmem:[%s5249_s4 + $0xb8] sm:$0xff] %vm1332_vm1, %v1965_v33  ;;  %v1972_v16 = vsel %vm1844_vm11, %v4373_v4, %v4652_v6  ;;  %vm5447_vm10 = vcmp.gt.f32.partialorder %v4377_v18, 0.0  ;;  %2032 = vst.msk [vmem:[%s5249_s4 + $0xd0] sm:$0xff] %vm1332_vm1, %v1968_v44  ;;  %v5462_v5 = vld [vmem:[#allocation28_spill] sm:$0xff]  ;;  %v5463_v3 = vld [vmem:[#allocation5_spill] sm:$0xff] }
 0x284   :  { %v1973_v63 = vsel %vm5447_vm10, %v4377_v18, %v4655_v21  ;;  %v1974_v42 = vsel %vm5448_vm6, %v4381_v32, %v4658_v36  ;;  %vm5449_vm9 = vcmp.gt.f32.partialorder %v4385_v22, 0.0  ;;  %2033 = vst.msk [vmem:[%s5249_s4 + $0xd8] sm:$0xff] %vm1332_vm1, %v1969_v52  ;;  %2034 = vst.msk [vmem:[%s5249_s4 + $0xe0] sm:$0xff] %vm1332_vm1, %v1970_v56  ;;  %v1976_v4 = vsel %vm1848_vm12, %v4389_v13, %v4675_v2  ;;  %v5450_v18 = vld [vmem:[#allocation2_spill] sm:$0xff]  ;;  %v5454_v13 = vld [vmem:[#allocation3_spill] sm:$0xff] }
 0x285   :  { %v1975_v24 = vsel %vm5449_vm9, %v4385_v22, %v4672_v11  ;;  %2035 = vst.msk [vmem:[%s5249_s4 + $0xe8] sm:$0xff] %vm1332_vm1, %v1971_v45  ;;  %vm5451_vm11 = vcmp.gt.f32.partialorder %v4393_v19, 0.0  ;;  %vm5452_vm7 = vcmp.gt.f32.partialorder %v4397_v26, 0.0  ;;  %vm5453_vm5 = vcmp.gt.f32.partialorder %v4401_v40, 0.0  ;;  %2036 = vst.msk [vmem:[%s5249_s4 + $0xf0] sm:$0xff] %vm1332_vm1, %v1972_v16  ;;  %v5468_v11 = vld [vmem:[#allocation31_spill] sm:$0xff] }
 0x286   :  { %v1977_v32 = vsel %vm5451_vm11, %v4393_v19, %v5450_v18  ;;  %v1978_v22 = vsel %vm5452_vm7, %v4397_v26, %v4692_v54  ;;  %v1979_v41 = vsel %vm5453_vm5, %v4401_v40, %v4695_v51  ;;  %2037 = vst.msk [vmem:[%s5249_s4 + $0xf8] sm:$0xff] %vm1332_vm1, %v1973_v63  ;;  %2038 = vst.msk [vmem:[%s5249_s4 + $0x100] sm:$0xff] %vm1332_vm1, %v1974_v42  ;;  %vm5455_vm12 = vcmp.gt.f32.partialorder %v4409_v62, 0.0  ;;  %v5469_v2 = vld [vmem:[#allocation6_spill] sm:$0xff]  ;;  %v5471_v54 = vld [vmem:[#allocation32_spill] sm:$0xff] }
 0x287   :  { %2039 = vst.msk [vmem:[%s5249_s4 + $0x108] sm:$0xff] %vm1332_vm1, %v1975_v24  ;;  %v1980_v19 = vsel %vm1852_vm13, %v4405_v47, %v5454_v13  ;;  %v1981_v26 = vsel %vm5455_vm12, %v4409_v62, %v4713_v34  ;;  %vm5456_vm10 = vcmp.gt.f32.partialorder %v4413_v14, 0.0  ;;  %vm5458_vm6 = vcmp.gt.f32.partialorder %v4417_v25, 0.0  ;;  %2040 = vst.msk [vmem:[%s5249_s4 + $0x110] sm:$0xff] %vm1332_vm1, %v1976_v4  ;;  %v5487_v29 = vld [vmem:[#allocation13_spill] sm:$0xff]  ;;  %v5493_v52 = vld [vmem:[#allocation26_spill] sm:$0xff] }
 0x288   :  { %v1982_v40 = vsel %vm5456_vm10, %v4413_v14, %v4716_v35  ;;  %v1983_v36 = vsel %vm5458_vm6, %v4417_v25, %v5457_v60  ;;  %2041 = vst.msk [vmem:[%s5249_s4 + $0x118] sm:$0xff] %vm1332_vm1, %v1977_v32  ;;  %2042 = vst.msk [vmem:[%s5249_s4 + $0x120] sm:$0xff] %vm1332_vm1, %v1978_v22  ;;  %v1984_v47 = vsel %vm1856_vm14, %v4421_v58, %v4734_v12  ;;  %vm5459_vm13 = vcmp.gt.f32.partialorder %v4425_v17, 0.0  ;;  %v5460_v14 = vld [vmem:[#allocation27_spill] sm:$0xff]  ;;  %v5465_v58 = vld [vmem:[#allocation29_spill] sm:$0xff] }
 0x289   :  { %2043 = vst.msk [vmem:[%s5249_s4 + $0x128] sm:$0xff] %vm1332_vm1, %v1979_v41  ;;  %v1985_v62 = vsel %vm5459_vm13, %v4425_v17, %v4737_v55  ;;  %vm5461_vm9 = vcmp.gt.f32.partialorder %v4429_v50, 0.0  ;;  %vm5464_vm11 = vcmp.gt.f32.partialorder %v5463_v3, 0.0  ;;  %2044 = vst.msk [vmem:[%s5249_s4 + $0x130] sm:$0xff] %vm1332_vm1, %v1980_v19  ;;  %v1988_v17 = vsel %vm1860_vm15, %v4437_v9, %v5465_v58  ;;  %v5472_v35 = vld [vmem:[#allocation7_spill] sm:$0xff]  ;;  %v5474_v9 = vld [vmem:[#allocation8_spill] sm:$0xff] }
 0x28a   :  { %v1986_v25 = vsel %vm5461_vm9, %v4429_v50, %v5460_v14  ;;  %v1987_v6 = vsel %vm5464_vm11, %v5463_v3, %v5462_v5  ;;  %2045 = vst.msk [vmem:[%s5249_s4 + $0x138] sm:$0xff] %vm1332_vm1, %v1981_v26  ;;  %2046 = vst.msk [vmem:[%s5249_s4 + $0x140] sm:$0xff] %vm1332_vm1, %v1982_v40  ;;  %v5466_v50 = vld [vmem:[#allocation30_spill] sm:$0xff]  ;;  %vm5467_vm14 = vcmp.gt.f32.partialorder %v4441_v7, 0.0  ;;  %vm5470_vm7 = vcmp.gt.f32.partialorder %v5469_v2, 0.0  ;;  %v5475_v55 = vld [vmem:[#allocation9_spill] sm:$0xff] }
 0x28b   :  { %2047 = vst.msk [vmem:[%s5249_s4 + $0x148] sm:$0xff] %vm1332_vm1, %v1983_v36  ;;  %v1989_v21 = vsel %vm5467_vm14, %v4441_v7, %v5466_v50  ;;  %v1990_v51 = vsel %vm5470_vm7, %v5469_v2, %v5468_v11  ;;  %vm5473_vm5 = vcmp.gt.f32.partialorder %v5472_v35, 0.0  ;;  %2048 = vst.msk [vmem:[%s5249_s4 + $0x150] sm:$0xff] %vm1332_vm1, %v1984_v47  ;;  %v1992_v7 = vsel %vm1864_vm0, %v5407_v1, %v5474_v9  ;;  %v5483_v1 = vld [vmem:[#allocation21_spill] sm:$0xff]  ;;  %v5495_v27 = vld [vmem:[#allocation34_spill] sm:$0xff] }
 0x28c   :  { %v1991_v34 = vsel %vm5473_vm5, %v5472_v35, %v5471_v54  ;;  %2049 = vst.msk [vmem:[%s5249_s4 + $0x158] sm:$0xff] %vm1332_vm1, %v1985_v62  ;;  %2050 = vst.msk [vmem:[%s5249_s4 + $0x160] sm:$0xff] %vm1332_vm1, %v1986_v25  ;;  %vm5476_vm15 = vcmp.gt.f32.partialorder %v5409_v57, 0.0  ;;  %vm5478_vm12 = vcmp.gt.f32.partialorder %v5411_v61, 0.0  ;;  %vm5481_vm10 = vcmp.gt.f32.partialorder %v5480_v39, 0.0  ;;  %v5496_v45 = vld [vmem:[#allocation10_spill] sm:$0xff] }
 0x28d   :  { %2051 = vst.msk [vmem:[%s5249_s4 + $0x168] sm:$0xff] %vm1332_vm1, %v1987_v6  ;;  %v1993_v12 = vsel %vm5476_vm15, %v5409_v57, %v5475_v55  ;;  %v1994_v28 = vsel %vm5478_vm12, %v5411_v61, %v5477_v53  ;;  %v1995_v31 = vsel %vm5481_vm10, %v5480_v39, %v5479_v37  ;;  %2052 = vst.msk [vmem:[%s5249_s4 + $0x170] sm:$0xff] %vm1332_vm1, %v1988_v17  ;;  %v5482_v57 = vld [vmem:[#allocation20_spill] sm:$0xff]  ;;  %vm5484_vm0 = vcmp.gt.f32.partialorder %v5417_v30, 0.0 }
 0x28e   :  { %2053 = vst.msk [vmem:[%s5249_s4 + $0x178] sm:$0xff] %vm1332_vm1, %v1989_v21  ;;  %2054 = vst.msk [vmem:[%s5249_s4 + $0x180] sm:$0xff] %vm1332_vm1, %v1990_v51  ;;  %v1996_v61 = vsel %vm1868_vm2, %v5415_v46, %v5482_v57  ;;  %v1997_v49 = vsel %vm5484_vm0, %v5417_v30, %v5483_v1  ;;  %vm5486_vm6 = vcmp.gt.f32.partialorder %v5419_v43, 0.0  ;;  %vm5489_vm13 = vcmp.gt.f32.partialorder %v5488_v8, 0.0  ;;  %v5490_v46 = vld [vmem:[#allocation24_spill] sm:$0xff] }
 0x28f   :  { %2055 = vst.msk [vmem:[%s5249_s4 + $0x188] sm:$0xff] %vm1332_vm1, %v1991_v34  ;;  %v1998_v33 = vsel %vm5486_vm6, %v5419_v43, %v5485_v48  ;;  %v1999_v15 = vsel %vm5489_vm13, %v5488_v8, %v5487_v29  ;;  %2056 = vst.msk [vmem:[%s5249_s4 + $0x190] sm:$0xff] %vm1332_vm1, %v1992_v7  ;;  %v2000_v30 = vsel %vm1872_vm3, %v5424_v38, %v5490_v46  ;;  %v5491_v43 = vld [vmem:[#allocation25_spill] sm:$0xff]  ;;  %vm5492_vm2 = vcmp.gt.f32.partialorder %v5426_v23, 0.0  ;;  %v5498_v38 = vld [vmem:[#allocation11_spill] sm:$0xff] }
 0x290   :  { %2057 = vst.msk [vmem:[%s5249_s4 + $0x198] sm:$0xff] %vm1332_vm1, %v1993_v12  ;;  %2058 = vst.msk [vmem:[%s5249_s4 + $0x1a0] sm:$0xff] %vm1332_vm1, %v1994_v28  ;;  %v2001_v44 = vsel %vm5492_vm2, %v5426_v23, %v5491_v43  ;;  %vm5494_vm9 = vcmp.gt.f32.partialorder %v5493_v52, 0.0  ;;  %vm5497_vm11 = vcmp.gt.f32.partialorder %v5496_v45, 0.0  ;;  %v2004_v23 = vsel %vm1876_vm4, %v5431_v0, %v5498_v38 }
 0x291   :  { %2059 = vst.msk [vmem:[%s5249_s4 + $0x1a8] sm:$0xff] %vm1332_vm1, %v1995_v31  ;;  %v2002_v56 = vsel %vm5494_vm9, %v5493_v52, %v4860_v20  ;;  %v2003_v16 = vsel %vm5497_vm11, %v5496_v45, %v5495_v27  ;;  %2060 = vst.msk [vmem:[%s5249_s4 + $0x1b0] sm:$0xff] %vm1332_vm1, %v1996_v61  ;;  %v2005_v20 = vsel %vm1877_vm8, %v5433_v59, %v4879_v10 }
 0x292   :  { %2061 = vst.msk [vmem:[%s5249_s4 + $0x1b8] sm:$0xff] %vm1332_vm1, %v1997_v49  ;;  %2062 = vst.msk [vmem:[%s5249_s4 + $0x1c0] sm:$0xff] %vm1332_vm1, %v1998_v33 }
 0x293   :  { %2063 = vst.msk [vmem:[%s5249_s4 + $0x1c8] sm:$0xff] %vm1332_vm1, %v1999_v15  ;;  %2064 = vst.msk [vmem:[%s5249_s4 + $0x1d0] sm:$0xff] %vm1332_vm1, %v2000_v30 }
 0x294   :  { %2065 = vst.msk [vmem:[%s5249_s4 + $0x1d8] sm:$0xff] %vm1332_vm1, %v2001_v44  ;;  %2066 = vst.msk [vmem:[%s5249_s4 + $0x1e0] sm:$0xff] %vm1332_vm1, %v2002_v56 }
 0x295   :  { %2067 = vst.msk [vmem:[%s5249_s4 + $0x1e8] sm:$0xff] %vm1332_vm1, %v2003_v16  ;;  %2068 = vst.msk [vmem:[%s5249_s4 + $0x1f0] sm:$0xff] %vm1332_vm1, %v2004_v23 }
 0x296   :  { %2069 = vst.msk [vmem:[%s5249_s4 + $0x1f8] sm:$0xff] %vm1332_vm1, %v2005_v20 }

// kernel: wgan_discriminator_forward.6
= control target key start
LH: loop header
LB: loop body
LE: loop exit
PB: predicated region body
PF: predicated region fallthrough
CT: control target
= control target key end

     0   :  { %vm1440_vm0 = vcmask 523264   ;;  %vm1441_vm13 = vcmask 523264   ;;  %s1435_s1 = inlined_call_operand.vmem [shape: f32[512,64], index: 1, kind: input, shape index: {}]   ;;  %s1436_s0 = inlined_call_operand.vmem [shape: f32[2,9,9,128], index: 0, kind: input, shape index: {}]   ;;  %s1437_s2 = inlined_call_operand.vmem [shape: f32[1,64], index: 2, kind: input, shape index: {}]   ;;  %s1438_s3 = inlined_call_operand.vmem [shape: f32[1,64], index: 3, kind: input, shape index: {}]   ;;  %s1439_s4 = inlined_call_operand.vmem [shape: f32[128,64], index: 4, kind: output, shape index: {}]  }
   0x1   :  { %v98_v0 = vld [vmem:[%s1435_s1 + $0x80] sm:$0xff]  ;;  %v99_v1 = vld [vmem:[%s1435_s1 + $0x88] sm:$0xff]  ;;  %v100_v11 = vld [vmem:[%s1435_s1 + $0x90] sm:$0xff] }
   0x2   :  { %v130_v2 = vld [vmem:[%s1435_s1 + $0x180] sm:$0xff]  ;;  %v842_v3 = vpack.c.bf16 %v99_v1, %v98_v0  ;;  %v131_v4 = vld [vmem:[%s1435_s1 + $0x188] sm:$0xff]  ;;  %v101_v13 = vld [vmem:[%s1435_s1 + $0x98] sm:$0xff] }
   0x3   :  { %v82_v5 = vld [vmem:[%s1435_s1] sm:$0xff]  ;;  %v83_v6 = vld [vmem:[%s1435_s1 + $0x8] sm:$0xff]  ;;  %v874_v7 = vpack.c.bf16 %v131_v4, %v130_v2  ;;  %v132_v14 = vld [vmem:[%s1435_s1 + $0x190] sm:$0xff]  ;;  %v846_v16 = vpack.c.bf16 %v101_v13, %v100_v11 }
   0x4   :  { %v844_v8 = vpack.c.bf16 %v83_v6, %v82_v5  ;;  %v114_v9 = vld [vmem:[%s1435_s1 + $0x100] sm:$0xff]  ;;  %v115_v10 = vld [vmem:[%s1435_s1 + $0x108] sm:$0xff]  ;;  %843 = vmatprep.subr.bf16.mxu0 %v842_v3  ;;  %v133_v15 = vld [vmem:[%s1435_s1 + $0x198] sm:$0xff] }
   0x5   :  { %v876_v12 = vpack.c.bf16 %v115_v10, %v114_v9  ;;  %875 = vmatprep.subr.bf16.mxu1 %v874_v7  ;;  %v878_v17 = vpack.c.bf16 %v133_v15, %v132_v14  ;;  %v84_v18 = vld [vmem:[%s1435_s1 + $0x10] sm:$0xff]  ;;  %v85_v19 = vld [vmem:[%s1435_s1 + $0x18] sm:$0xff]  ;;  %v102_v23 = vld [vmem:[%s1435_s1 + $0xa0] sm:$0xff] }
   0x6   :  { %845 = vmatpush3.bf16.msra.mxu0 %v844_v8  ;;  %v116_v20 = vld [vmem:[%s1435_s1 + $0x110] sm:$0xff]  ;;  %v848_v21 = vpack.c.bf16 %v85_v19, %v84_v18  ;;  %v117_v22 = vld [vmem:[%s1435_s1 + $0x118] sm:$0xff]  ;;  %v103_v24 = vld [vmem:[%s1435_s1 + $0xa8] sm:$0xff] }
   0x7   :  { %877 = vmatpush3.bf16.msra.mxu1 %v876_v12  ;;  %847 = vmatprep.subr.bf16.mxu0 %v846_v16  ;;  %v880_v25 = vpack.c.bf16 %v117_v22, %v116_v20  ;;  %v850_v26 = vpack.c.bf16 %v103_v24, %v102_v23  ;;  %v134_v27 = vld [vmem:[%s1435_s1 + $0x1a0] sm:$0xff]  ;;  %v135_v28 = vld [vmem:[%s1435_s1 + $0x1a8] sm:$0xff]  ;;  %v104_v35 = vld [vmem:[%s1435_s1 + $0xb0] sm:$0xff] }
   0x8   :  { %879 = vmatprep.subr.bf16.mxu1 %v878_v17  ;;  %v86_v29 = vld [vmem:[%s1435_s1 + $0x20] sm:$0xff]  ;;  %v882_v30 = vpack.c.bf16 %v135_v28, %v134_v27  ;;  %v87_v31 = vld [vmem:[%s1435_s1 + $0x28] sm:$0xff]  ;;  %v105_v36 = vld [vmem:[%s1435_s1 + $0xb8] sm:$0xff] }
   0x9   :  { %v118_v32 = vld [vmem:[%s1435_s1 + $0x120] sm:$0xff]  ;;  %v119_v33 = vld [vmem:[%s1435_s1 + $0x128] sm:$0xff]  ;;  %v852_v34 = vpack.c.bf16 %v87_v31, %v86_v29  ;;  %v136_v37 = vld [vmem:[%s1435_s1 + $0x1b0] sm:$0xff]  ;;  %v854_v39 = vpack.c.bf16 %v105_v36, %v104_v35 }
   0xa   :  { %849 = vmatpush3.bf16.msra.mxu0 %v848_v21  ;;  %v884_v38 = vpack.c.bf16 %v119_v33, %v118_v32  ;;  %v137_v40 = vld [vmem:[%s1435_s1 + $0x1b8] sm:$0xff]  ;;  %v88_v41 = vld [vmem:[%s1435_s1 + $0x30] sm:$0xff]  ;;  %v106_v46 = vld [vmem:[%s1435_s1 + $0xc0] sm:$0xff] }
   0xb   :  { %881 = vmatpush3.bf16.msra.mxu1 %v880_v25  ;;  %851 = vmatprep.subr.bf16.mxu0 %v850_v26  ;;  %v89_v42 = vld [vmem:[%s1435_s1 + $0x38] sm:$0xff]  ;;  %v886_v43 = vpack.c.bf16 %v137_v40, %v136_v37  ;;  %v120_v44 = vld [vmem:[%s1435_s1 + $0x130] sm:$0xff]  ;;  %v107_v47 = vld [vmem:[%s1435_s1 + $0xc8] sm:$0xff] }
   0xc   :  { %883 = vmatprep.subr.bf16.mxu1 %v882_v30  ;;  %v121_v45 = vld [vmem:[%s1435_s1 + $0x138] sm:$0xff]  ;;  %v138_v48 = vld [vmem:[%s1435_s1 + $0x1c0] sm:$0xff]  ;;  %v139_v49 = vld [vmem:[%s1435_s1 + $0x1c8] sm:$0xff]  ;;  %v856_v50 = vpack.c.bf16 %v89_v42, %v88_v41  ;;  %v858_v52 = vpack.c.bf16 %v107_v47, %v106_v46 }
   0xd   :  { %v888_v51 = vpack.c.bf16 %v121_v45, %v120_v44  ;;  %v90_v53 = vld [vmem:[%s1435_s1 + $0x40] sm:$0xff]  ;;  %v91_v54 = vld [vmem:[%s1435_s1 + $0x48] sm:$0xff]  ;;  %v890_v56 = vpack.c.bf16 %v139_v49, %v138_v48  ;;  %v108_v58 = vld [vmem:[%s1435_s1 + $0xd0] sm:$0xff] }
   0xe   :  { %853 = vmatpush3.bf16.msra.mxu0 %v852_v34  ;;  %v122_v55 = vld [vmem:[%s1435_s1 + $0x140] sm:$0xff]  ;;  %v123_v57 = vld [vmem:[%s1435_s1 + $0x148] sm:$0xff]  ;;  %v109_v59 = vld [vmem:[%s1435_s1 + $0xd8] sm:$0xff]  ;;  %v860_v62 = vpack.c.bf16 %v91_v54, %v90_v53 }
   0xf   :  { %885 = vmatpush3.bf16.msra.mxu1 %v884_v38  ;;  %855 = vmatprep.subr.bf16.mxu0 %v854_v39  ;;  %v140_v60 = vld [vmem:[%s1435_s1 + $0x1d0] sm:$0xff]  ;;  %v141_v61 = vld [vmem:[%s1435_s1 + $0x1d8] sm:$0xff]  ;;  %v892_v63 = vpack.c.bf16 %v123_v57, %v122_v55  ;;  %v862_v0 = vpack.c.bf16 %v109_v59, %v108_v58  ;;  %v110_v6 = vld [vmem:[%s1435_s1 + $0xe0] sm:$0xff] }
  0x10   :  { %887 = vmatprep.subr.bf16.mxu1 %v886_v43  ;;  %v92_v1 = vld [vmem:[%s1435_s1 + $0x50] sm:$0xff]  ;;  %v93_v2 = vld [vmem:[%s1435_s1 + $0x58] sm:$0xff]  ;;  %v894_v4 = vpack.c.bf16 %v141_v61, %v140_v60  ;;  %v111_v7 = vld [vmem:[%s1435_s1 + $0xe8] sm:$0xff] }
  0x11   :  { %v124_v3 = vld [vmem:[%s1435_s1 + $0x150] sm:$0xff]  ;;  %v125_v5 = vld [vmem:[%s1435_s1 + $0x158] sm:$0xff]  ;;  %v142_v8 = vld [vmem:[%s1435_s1 + $0x1e0] sm:$0xff]  ;;  %v864_v10 = vpack.c.bf16 %v93_v2, %v92_v1  ;;  %v866_v14 = vpack.c.bf16 %v111_v7, %v110_v6 }
  0x12   :  { %857 = vmatpush3.bf16.msra.mxu0 %v856_v50  ;;  %v143_v9 = vld [vmem:[%s1435_s1 + $0x1e8] sm:$0xff]  ;;  %v94_v11 = vld [vmem:[%s1435_s1 + $0x60] sm:$0xff]  ;;  %v896_v13 = vpack.c.bf16 %v125_v5, %v124_v3  ;;  %v666_v17 = vld [vmem:[%s1436_s0 + $0x11] sm:$0xff] }
  0x13   :  { %889 = vmatpush3.bf16.msra.mxu1 %v888_v51  ;;  %859 = vmatprep.subr.bf16.mxu0 %v858_v52  ;;  %v95_v12 = vld [vmem:[%s1435_s1 + $0x68] sm:$0xff]  ;;  %v126_v15 = vld [vmem:[%s1435_s1 + $0x160] sm:$0xff]  ;;  %v898_v18 = vpack.c.bf16 %v143_v9, %v142_v8  ;;  %v112_v20 = vld [vmem:[%s1435_s1 + $0xf0] sm:$0xff] }
  0x14   :  { %891 = vmatprep.subr.bf16.mxu1 %v890_v56  ;;  %v33_v16 = vld [vmem:[%s1436_s0 + $0x1] sm:$0xff]  ;;  %v113_v21 = vld [vmem:[%s1435_s1 + $0xf8] sm:$0xff]  ;;  %v144_v22 = vld [vmem:[%s1435_s1 + $0x1f0] sm:$0xff]  ;;  %355 = vmatprep.mubr.f32.mxu1 %v666_v17  ;;  %v868_v24 = vpack.c.bf16 %v95_v12, %v94_v11 }
  0x15   :  { %v127_v19 = vld [vmem:[%s1435_s1 + $0x168] sm:$0xff]  ;;  %210 = vmatprep.mubr.f32.mxu0 %v33_v16  ;;  %v145_v23 = vld [vmem:[%s1435_s1 + $0x1f8] sm:$0xff]  ;;  %v870_v26 = vpack.c.bf16 %v113_v21, %v112_v20  ;;  %v96_v27 = vld [vmem:[%s1435_s1 + $0x70] sm:$0xff] }
  0x16   :  { %861 = vmatpush3.bf16.msra.mxu0 %v860_v62  ;;  %v900_v25 = vpack.c.bf16 %v127_v19, %v126_v15  ;;  %v97_v28 = vld [vmem:[%s1435_s1 + $0x78] sm:$0xff]  ;;  %v902_v29 = vpack.c.bf16 %v145_v23, %v144_v22  ;;  %v128_v30 = vld [vmem:[%s1435_s1 + $0x170] sm:$0xff]  ;;  %v17_v34 = vld [vmem:[%s1436_s0] sm:$0xff] }
  0x17   :  { %893 = vmatpush3.bf16.msra.mxu1 %v892_v63  ;;  %863 = vmatprep.subr.bf16.mxu0 %v862_v0  ;;  %v129_v31 = vld [vmem:[%s1435_s1 + $0x178] sm:$0xff]  ;;  %v872_v32 = vpack.c.bf16 %v97_v28, %v96_v27  ;;  %v650_v35 = vld [vmem:[%s1436_s0 + $0x10] sm:$0xff]  ;;  %v667_v36 = vld [vmem:[%s1436_s0 + $0x21] sm:$0xff] }
  0x18   :  { %895 = vmatprep.subr.bf16.mxu1 %v894_v4  ;;  %v904_v33 = vpack.c.bf16 %v129_v31, %v128_v30  ;;  %v651_v37 = vld [vmem:[%s1436_s0 + $0x20] sm:$0xff]  ;;  %v668_v38 = vld [vmem:[%s1436_s0 + $0x31] sm:$0xff] }
  0x19   :  { %v652_v39 = vld [vmem:[%s1436_s0 + $0x30] sm:$0xff]  ;;  %v669_v40 = vld [vmem:[%s1436_s0 + $0x41] sm:$0xff] }
  0x1a   :  { %865 = vmatpush3.bf16.msra.mxu0 %v864_v10  ;;  %v653_v41 = vld [vmem:[%s1436_s0 + $0x40] sm:$0xff]  ;;  %v670_v42 = vld [vmem:[%s1436_s0 + $0x51] sm:$0xff] }
  0x1b   :  { %897 = vmatpush3.bf16.msra.mxu1 %v896_v13  ;;  %867 = vmatprep.subr.bf16.mxu0 %v866_v14  ;;  %v654_v43 = vld [vmem:[%s1436_s0 + $0x50] sm:$0xff]  ;;  %v671_v44 = vld [vmem:[%s1436_s0 + $0x61] sm:$0xff] }
  0x1c   :  { %899 = vmatprep.subr.bf16.mxu1 %v898_v18  ;;  %v655_v45 = vld [vmem:[%s1436_s0 + $0x60] sm:$0xff]  ;;  %v672_v46 = vld [vmem:[%s1436_s0 + $0x71] sm:$0xff] }
  0x1d   :  { %v656_v47 = vld [vmem:[%s1436_s0 + $0x70] sm:$0xff]  ;;  %v673_v48 = vld [vmem:[%s1436_s0 + $0x81] sm:$0xff] }
  0x1e   :  { %869 = vmatpush3.bf16.msra.mxu0 %v868_v24  ;;  %v657_v49 = vld [vmem:[%s1436_s0 + $0x80] sm:$0xff]  ;;  %v41_v50 = vld [vmem:[%s1436_s0 + $0x91] sm:$0xff] }
  0x1f   :  { %901 = vmatpush3.bf16.msra.mxu1 %v900_v25  ;;  %871 = vmatprep.subr.bf16.mxu0 %v870_v26  ;;  %v674_v51 = vld [vmem:[%s1436_s0 + $0xa1] sm:$0xff]  ;;  %v25_v52 = vld [vmem:[%s1436_s0 + $0x90] sm:$0xff] }
  0x20   :  { %903 = vmatprep.subr.bf16.mxu1 %v902_v29  ;;  %v658_v53 = vld [vmem:[%s1436_s0 + $0xa0] sm:$0xff]  ;;  %v675_v54 = vld [vmem:[%s1436_s0 + $0xb1] sm:$0xff] }
  0x21   :  { %v659_v55 = vld [vmem:[%s1436_s0 + $0xb0] sm:$0xff]  ;;  %v676_v56 = vld [vmem:[%s1436_s0 + $0xc1] sm:$0xff] }
  0x22   :  { %873 = vmatpush3.bf16.msra.mxu0 %v872_v32  ;;  %v660_v57 = vld [vmem:[%s1436_s0 + $0xc0] sm:$0xff]  ;;  %v677_v58 = vld [vmem:[%s1436_s0 + $0xd1] sm:$0xff] }
  0x23   :  { %905 = vmatpush3.bf16.msra.mxu1 %v904_v33  ;;  %v661_v59 = vld [vmem:[%s1436_s0 + $0xd0] sm:$0xff]  ;;  %v678_v60 = vld [vmem:[%s1436_s0 + $0xe1] sm:$0xff] }
  0x24   :  { %v662_v61 = vld [vmem:[%s1436_s0 + $0xe0] sm:$0xff]  ;;  %v679_v62 = vld [vmem:[%s1436_s0 + $0xf1] sm:$0xff] }
  0x25   :  { %211 = vmatmul.mubr.f32.vlgmr.msra.gmra.mrb[0].mxu0 %v17_v34  ;;  %v663_v63 = vld [vmem:[%s1436_s0 + $0xf0] sm:$0xff]  ;;  %v680_v0 = vld [vmem:[%s1436_s0 + $0x101] sm:$0xff] }
  0x26   :  { %356 = vmatmul.mubr.f32.vlgmr.msra.gmra.mrb[0].mxu1 %v650_v35  ;;  %215 = vmatprep.mubr.f32.mxu0 %v666_v17  ;;  %v664_v1 = vld [vmem:[%s1436_s0 + $0x100] sm:$0xff]  ;;  %v681_v2 = vld [vmem:[%s1436_s0 + $0x111] sm:$0xff] }
  0x27   :  { %360 = vmatprep.mubr.f32.mxu1 %v667_v36  ;;  %v665_v3 = vld [vmem:[%s1436_s0 + $0x110] sm:$0xff] }
  0x29   :  { %216 = vmatmul.mubr.f32.gmra.mrb[2].mxu0 %v650_v35 }
  0x2a   :  { %361 = vmatmul.mubr.f32.gmra.mrb[2].mxu1 %v651_v37  ;;  %220 = vmatprep.mubr.f32.mxu0 %v667_v36 }
  0x2b   :  { %365 = vmatprep.mubr.f32.mxu1 %v668_v38 }
  0x2d   :  { %221 = vmatmul.mubr.f32.gmra.mrb[4].mxu0 %v651_v37 }
  0x2e   :  { %366 = vmatmul.mubr.f32.gmra.mrb[4].mxu1 %v652_v39  ;;  %225 = vmatprep.mubr.f32.mxu0 %v668_v38 }
  0x2f   :  { %370 = vmatprep.mubr.f32.mxu1 %v669_v40 }
  0x31   :  { %226 = vmatmul.mubr.f32.gmra.mrb[6].mxu0 %v652_v39 }
  0x32   :  { %371 = vmatmul.mubr.f32.gmra.mrb[6].mxu1 %v653_v41  ;;  %230 = vmatprep.mubr.f32.mxu0 %v669_v40 }
  0x33   :  { %375 = vmatprep.mubr.f32.mxu1 %v670_v42 }
  0x35   :  { %231 = vmatmul.mubr.f32.gmra.mrb[8].mxu0 %v653_v41 }
  0x36   :  { %376 = vmatmul.mubr.f32.gmra.mrb[8].mxu1 %v654_v43  ;;  %235 = vmatprep.mubr.f32.mxu0 %v670_v42 }
  0x37   :  { %380 = vmatprep.mubr.f32.mxu1 %v671_v44 }
  0x39   :  { %236 = vmatmul.mubr.f32.gmra.mrb[10].mxu0 %v654_v43 }
  0x3a   :  { %381 = vmatmul.mubr.f32.gmra.mrb[10].mxu1 %v655_v45  ;;  %240 = vmatprep.mubr.f32.mxu0 %v671_v44 }
  0x3b   :  { %385 = vmatprep.mubr.f32.mxu1 %v672_v46 }
  0x3d   :  { %241 = vmatmul.mubr.f32.gmra.mrb[12].mxu0 %v655_v45 }
  0x3e   :  { %386 = vmatmul.mubr.f32.gmra.mrb[12].mxu1 %v656_v47  ;;  %245 = vmatprep.mubr.f32.mxu0 %v672_v46 }
  0x3f   :  { %390 = vmatprep.mubr.f32.mxu1 %v673_v48 }
  0x41   :  { %246 = vmatmul.mubr.f32.gmra.mrb[14].mxu0 %v656_v47 }
  0x42   :  { %391 = vmatmul.mubr.f32.gmra.mrb[14].mxu1 %v657_v49  ;;  %250 = vmatprep.mubr.f32.mxu0 %v41_v50 }
  0x43   :  { %395 = vmatprep.mubr.f32.mxu1 %v674_v51 }
  0x45   :  { %251 = vmatmul.mubr.f32.gmra.mrb[16].mxu0 %v25_v52 }
  0x46   :  { %396 = vmatmul.mubr.f32.gmra.mrb[16].mxu1 %v658_v53  ;;  %255 = vmatprep.mubr.f32.mxu0 %v674_v51 }
  0x47   :  { %400 = vmatprep.mubr.f32.mxu1 %v675_v54 }
  0x49   :  { %256 = vmatmul.mubr.f32.gmra.mrb[18].mxu0 %v658_v53 }
  0x4a   :  { %401 = vmatmul.mubr.f32.gmra.mrb[18].mxu1 %v659_v55  ;;  %260 = vmatprep.mubr.f32.mxu0 %v675_v54 }
  0x4b   :  { %405 = vmatprep.mubr.f32.mxu1 %v676_v56 }
  0x4d   :  { %261 = vmatmul.mubr.f32.gmra.mrb[20].mxu0 %v659_v55 }
  0x4e   :  { %406 = vmatmul.mubr.f32.gmra.mrb[20].mxu1 %v660_v57  ;;  %265 = vmatprep.mubr.f32.mxu0 %v676_v56 }
  0x4f   :  { %410 = vmatprep.mubr.f32.mxu1 %v677_v58 }
  0x51   :  { %266 = vmatmul.mubr.f32.gmra.mrb[22].mxu0 %v660_v57 }
  0x52   :  { %411 = vmatmul.mubr.f32.gmra.mrb[22].mxu1 %v661_v59  ;;  %270 = vmatprep.mubr.f32.mxu0 %v677_v58 }
  0x53   :  { %415 = vmatprep.mubr.f32.mxu1 %v678_v60 }
  0x55   :  { %271 = vmatmul.mubr.f32.gmra.mrb[24].mxu0 %v661_v59 }
  0x56   :  { %416 = vmatmul.mubr.f32.gmra.mrb[24].mxu1 %v662_v61  ;;  %275 = vmatprep.mubr.f32.mxu0 %v678_v60 }
  0x57   :  { %420 = vmatprep.mubr.f32.mxu1 %v679_v62 }
  0x59   :  { %276 = vmatmul.mubr.f32.gmra.mrb[26].mxu0 %v662_v61 }
  0x5a   :  { %421 = vmatmul.mubr.f32.gmra.mrb[26].mxu1 %v663_v63  ;;  %280 = vmatprep.mubr.f32.mxu0 %v679_v62 }
  0x5b   :  { %425 = vmatprep.mubr.f32.mxu1 %v680_v0 }
  0x5d   :  { %281 = vmatmul.mubr.f32.gmra.mrb[28].mxu0 %v663_v63 }
  0x5e   :  { %426 = vmatmul.mubr.f32.gmra.mrb[28].mxu1 %v664_v1  ;;  %285 = vmatprep.mubr.f32.mxu0 %v680_v0 }
  0x5f   :  { %430 = vmatprep.mubr.f32.mxu1 %v681_v2 }
  0x61   :  { %286 = vmatmul.mubr.f32.gmra.mrb[30].mxu0 %v664_v1 }
  0x62   :  { %431 = vmatmul.mubr.f32.gmra.mrb[30].mxu1 %v665_v3 }
  0xf8   :  { %v714_v4 = vpop.f32.mrb[0].mxu0 }
  0xf9   :  { %v794_v5 = vpop.f32.mrb[0].mxu1  ;;  %v715_v6 = vpop.f32.mrb[1].mxu0 }
  0xfa   :  { %v716_v7 = vadd.f32 %v715_v6, %v714_v4  ;;  %v795_v8 = vpop.f32.mrb[1].mxu1 }
  0xfb   :  { %v796_v9 = vadd.f32 %v795_v8, %v794_v5 }
  0xfc   :  { %v717_v10 = vpop.f32.mrb[2].mxu0 }
  0xfd   :  { %v1233_v11 = vadd.f32 %v796_v9, %v716_v7  ;;  %v797_v12 = vpop.f32.mrb[2].mxu1  ;;  %v718_v13 = vpop.f32.mrb[3].mxu0 }
  0xfe   :  { %v719_v14 = vadd.f32 %v718_v13, %v717_v10  ;;  %v798_v15 = vpop.f32.mrb[3].mxu1 }
  0xff   :  { %v799_v16 = vadd.f32 %v798_v15, %v797_v12  ;;  %v474_v36 = vmul.f32 %v1233_v11, %v1233_v11  ;;  %v437_v42 = vsel %vm1440_vm0, %v1233_v11, 0.0 }
 0x100   :  { %v720_v17 = vpop.f32.mrb[4].mxu0 }
 0x101   :  { %v1235_v18 = vadd.f32 %v799_v16, %v719_v14  ;;  %v800_v19 = vpop.f32.mrb[4].mxu1  ;;  %v721_v20 = vpop.f32.mrb[5].mxu0  ;;  %v490_v50 = vsel %vm1440_vm0, %v474_v36, 0.0 }
 0x102   :  { %v722_v21 = vadd.f32 %v721_v20, %v720_v17  ;;  %v801_v22 = vpop.f32.mrb[5].mxu1 }
 0x103   :  { %v802_v23 = vadd.f32 %v801_v22, %v800_v19  ;;  %v475_v32 = vmul.f32 %v1235_v18, %v1235_v18  ;;  %v438_v39 = vsel %vm1440_vm0, %v1235_v18, 0.0 }
 0x104   :  { %v723_v24 = vpop.f32.mrb[6].mxu0  ;;  %v439_v51 = vadd.f32 %v438_v39, %v437_v42 }
 0x105   :  { %v1237_v25 = vadd.f32 %v802_v23, %v722_v21  ;;  %v803_v26 = vpop.f32.mrb[6].mxu1  ;;  %v724_v27 = vpop.f32.mrb[7].mxu0  ;;  %v491_v44 = vsel %vm1440_vm0, %v475_v32, 0.0 }
 0x106   :  { %v725_v28 = vadd.f32 %v724_v27, %v723_v24  ;;  %v804_v29 = vpop.f32.mrb[7].mxu1  ;;  %v492_v58 = vadd.f32 %v491_v44, %v490_v50 }
 0x107   :  { %v805_v30 = vadd.f32 %v804_v29, %v803_v26  ;;  %v476_v40 = vmul.f32 %v1237_v25, %v1237_v25  ;;  %v440_v45 = vsel %vm1440_vm0, %v1237_v25, 0.0 }
 0x108   :  { %v726_v31 = vpop.f32.mrb[8].mxu0  ;;  %v441_v59 = vadd.f32 %v440_v45, %v439_v51 }
 0x109   :  { %v1241_v33 = vadd.f32 %v805_v30, %v725_v28  ;;  %v806_v34 = vpop.f32.mrb[8].mxu1  ;;  %v727_v35 = vpop.f32.mrb[9].mxu0  ;;  %v493_v54 = vsel %vm1440_vm0, %v476_v40, 0.0 }
 0x10a   :  { %v728_v37 = vadd.f32 %v727_v35, %v726_v31  ;;  %v807_v38 = vpop.f32.mrb[9].mxu1  ;;  %v494_v2 = vadd.f32 %v493_v54, %v492_v58 }
 0x10b   :  { %v808_v41 = vadd.f32 %v807_v38, %v806_v34  ;;  %v477_v46 = vmul.f32 %v1241_v33, %v1241_v33  ;;  %v442_v55 = vsel %vm1440_vm0, %v1241_v33, 0.0 }
 0x10c   :  { %v729_v43 = vpop.f32.mrb[10].mxu0  ;;  %v443_v3 = vadd.f32 %v442_v55, %v441_v59 }
 0x10d   :  { %v1256_v47 = vadd.f32 %v808_v41, %v728_v37  ;;  %v809_v48 = vpop.f32.mrb[10].mxu1  ;;  %v730_v49 = vpop.f32.mrb[11].mxu0  ;;  %v495_v61 = vsel %vm1440_vm0, %v477_v46, 0.0 }
 0x10e   :  { %v731_v52 = vadd.f32 %v730_v49, %v729_v43  ;;  %v810_v53 = vpop.f32.mrb[11].mxu1  ;;  %v496_v10 = vadd.f32 %v495_v61, %v494_v2 }
 0x10f   :  { %v478_v56 = vmul.f32 %v1256_v47, %v1256_v47  ;;  %v811_v57 = vadd.f32 %v810_v53, %v809_v48  ;;  %v444_v62 = vsel %vm1440_vm0, %v1256_v47, 0.0 }
 0x110   :  { %v732_v60 = vpop.f32.mrb[12].mxu0  ;;  %v445_v12 = vadd.f32 %v444_v62, %v443_v3 }
 0x111   :  { %v1267_v63 = vadd.f32 %v811_v57, %v731_v52  ;;  %v812_v0 = vpop.f32.mrb[12].mxu1  ;;  %v733_v1 = vpop.f32.mrb[13].mxu0  ;;  %v497_v6 = vsel %vm1440_vm0, %v478_v56, 0.0 }
 0x112   :  { %v734_v4 = vadd.f32 %v733_v1, %v732_v60  ;;  %v813_v5 = vpop.f32.mrb[13].mxu1  ;;  %v498_v19 = vadd.f32 %v497_v6, %v496_v10 }
 0x113   :  { %v446_v7 = vsel %vm1440_vm0, %v1267_v63, 0.0  ;;  %v479_v8 = vmul.f32 %v1267_v63, %v1267_v63  ;;  %v814_v9 = vadd.f32 %v813_v5, %v812_v0 }
 0x114   :  { %v735_v13 = vpop.f32.mrb[14].mxu0  ;;  %v447_v20 = vadd.f32 %v446_v7, %v445_v12 }
 0x115   :  { %v499_v14 = vsel %vm1440_vm0, %v479_v8, 0.0  ;;  %v1275_v15 = vadd.f32 %v814_v9, %v734_v4  ;;  %v815_v16 = vpop.f32.mrb[14].mxu1  ;;  %v736_v17 = vpop.f32.mrb[15].mxu0 }
 0x116   :  { %v737_v21 = vadd.f32 %v736_v17, %v735_v13  ;;  %v816_v22 = vpop.f32.mrb[15].mxu1  ;;  %v500_v27 = vadd.f32 %v499_v14, %v498_v19 }
 0x117   :  { %v448_v23 = vsel %vm1440_vm0, %v1275_v15, 0.0  ;;  %v480_v24 = vmul.f32 %v1275_v15, %v1275_v15  ;;  %v817_v26 = vadd.f32 %v816_v22, %v815_v16 }
 0x118   :  { %v449_v28 = vadd.f32 %v448_v23, %v447_v20  ;;  %v738_v29 = vpop.f32.mrb[16].mxu0 }
 0x119   :  { %v501_v30 = vsel %vm1440_vm0, %v480_v24, 0.0  ;;  %v1282_v31 = vadd.f32 %v817_v26, %v737_v21  ;;  %v818_v32 = vpop.f32.mrb[16].mxu1  ;;  %v739_v34 = vpop.f32.mrb[17].mxu0 }
 0x11a   :  { %v502_v35 = vadd.f32 %v501_v30, %v500_v27  ;;  %v740_v36 = vadd.f32 %v739_v34, %v738_v29  ;;  %v819_v37 = vpop.f32.mrb[17].mxu1 }
 0x11b   :  { %v450_v38 = vsel %vm1440_vm0, %v1282_v31, 0.0  ;;  %v481_v39 = vmul.f32 %v1282_v31, %v1282_v31  ;;  %v820_v40 = vadd.f32 %v819_v37, %v818_v32 }
 0x11c   :  { %v451_v41 = vadd.f32 %v450_v38, %v449_v28  ;;  %v741_v42 = vpop.f32.mrb[18].mxu0 }
 0x11d   :  { %v503_v43 = vsel %vm1440_vm0, %v481_v39, 0.0  ;;  %v1289_v44 = vadd.f32 %v820_v40, %v740_v36  ;;  %v821_v45 = vpop.f32.mrb[18].mxu1  ;;  %v742_v46 = vpop.f32.mrb[19].mxu0 }
 0x11e   :  { %v504_v48 = vadd.f32 %v503_v43, %v502_v35  ;;  %v743_v49 = vadd.f32 %v742_v46, %v741_v42  ;;  %v822_v50 = vpop.f32.mrb[19].mxu1 }
 0x11f   :  { %v452_v51 = vsel %vm1440_vm0, %v1289_v44, 0.0  ;;  %v482_v52 = vmul.f32 %v1289_v44, %v1289_v44  ;;  %v823_v53 = vadd.f32 %v822_v50, %v821_v45 }
 0x120   :  { %v453_v54 = vadd.f32 %v452_v51, %v451_v41  ;;  %v744_v55 = vpop.f32.mrb[20].mxu0 }
 0x121   :  { %v505_v56 = vsel %vm1440_vm0, %v482_v52, 0.0  ;;  %v1296_v57 = vadd.f32 %v823_v53, %v743_v49  ;;  %v824_v58 = vpop.f32.mrb[20].mxu1  ;;  %v745_v59 = vpop.f32.mrb[21].mxu0 }
 0x122   :  { %v506_v60 = vadd.f32 %v505_v56, %v504_v48  ;;  %v746_v61 = vadd.f32 %v745_v59, %v744_v55  ;;  %v825_v62 = vpop.f32.mrb[21].mxu1 }
 0x123   :  { %v454_v0 = vsel %vm1440_vm0, %v1296_v57, 0.0  ;;  %v483_v1 = vmul.f32 %v1296_v57, %v1296_v57  ;;  %v826_v2 = vadd.f32 %v825_v62, %v824_v58 }
 0x124   :  { %v455_v3 = vadd.f32 %v454_v0, %v453_v54  ;;  %v747_v4 = vpop.f32.mrb[22].mxu0 }
 0x125   :  { %v507_v5 = vsel %vm1440_vm0, %v483_v1, 0.0  ;;  %v1303_v6 = vadd.f32 %v826_v2, %v746_v61  ;;  %v827_v7 = vpop.f32.mrb[22].mxu1  ;;  %v748_v8 = vpop.f32.mrb[23].mxu0 }
 0x126   :  { %v508_v9 = vadd.f32 %v507_v5, %v506_v60  ;;  %v749_v10 = vadd.f32 %v748_v8, %v747_v4  ;;  %v828_v12 = vpop.f32.mrb[23].mxu1 }
 0x127   :  { %v456_v13 = vsel %vm1440_vm0, %v1303_v6, 0.0  ;;  %v484_v14 = vmul.f32 %v1303_v6, %v1303_v6  ;;  %v829_v16 = vadd.f32 %v828_v12, %v827_v7 }
 0x128   :  { %v457_v17 = vadd.f32 %v456_v13, %v455_v3  ;;  %v750_v19 = vpop.f32.mrb[24].mxu0 }
 0x129   :  { %v509_v20 = vsel %vm1440_vm0, %v484_v14, 0.0  ;;  %v1310_v21 = vadd.f32 %v829_v16, %v749_v10  ;;  %v830_v22 = vpop.f32.mrb[24].mxu1  ;;  %v751_v23 = vpop.f32.mrb[25].mxu0 }
 0x12a   :  { %v510_v24 = vadd.f32 %v509_v20, %v508_v9  ;;  %v752_v26 = vadd.f32 %v751_v23, %v750_v19  ;;  %v831_v27 = vpop.f32.mrb[25].mxu1 }
 0x12b   :  { %v458_v28 = vsel %vm1440_vm0, %v1310_v21, 0.0  ;;  %v485_v29 = vmul.f32 %v1310_v21, %v1310_v21  ;;  %v832_v30 = vadd.f32 %v831_v27, %v830_v22 }
 0x12c   :  { %v459_v32 = vadd.f32 %v458_v28, %v457_v17  ;;  %v753_v34 = vpop.f32.mrb[26].mxu0 }
 0x12d   :  { %v511_v35 = vsel %vm1440_vm0, %v485_v29, 0.0  ;;  %v1317_v36 = vadd.f32 %v832_v30, %v752_v26  ;;  %v833_v37 = vpop.f32.mrb[26].mxu1  ;;  %v754_v38 = vpop.f32.mrb[27].mxu0 }
 0x12e   :  { %v512_v39 = vadd.f32 %v511_v35, %v510_v24  ;;  %v755_v40 = vadd.f32 %v754_v38, %v753_v34  ;;  %v834_v41 = vpop.f32.mrb[27].mxu1 }
 0x12f   :  { %v460_v42 = vsel %vm1440_vm0, %v1317_v36, 0.0  ;;  %v486_v43 = vmul.f32 %v1317_v36, %v1317_v36  ;;  %v835_v45 = vadd.f32 %v834_v41, %v833_v37 }
 0x130   :  { %v461_v46 = vadd.f32 %v460_v42, %v459_v32  ;;  %v756_v48 = vpop.f32.mrb[28].mxu0 }
 0x131   :  { %v513_v49 = vsel %vm1440_vm0, %v486_v43, 0.0  ;;  %v1324_v50 = vadd.f32 %v835_v45, %v755_v40  ;;  %v836_v51 = vpop.f32.mrb[28].mxu1  ;;  %v757_v52 = vpop.f32.mrb[29].mxu0  ;;  %v539_v45 = vlaneseq }
 0x132   :  { %v514_v53 = vadd.f32 %v513_v49, %v512_v39  ;;  %v758_v54 = vadd.f32 %v757_v52, %v756_v48  ;;  %v837_v55 = vpop.f32.mrb[29].mxu1  ;;  %v531_v48 = vld [vmem:[%s1437_s2] sm:$0x1] }
 0x133   :  { %v462_v56 = vsel %vm1440_vm0, %v1324_v50, 0.0  ;;  %v487_v58 = vmul.f32 %v1324_v50, %v1324_v50  ;;  %v838_v59 = vadd.f32 %v837_v55, %v836_v51 }
 0x134   :  { %v463_v60 = vadd.f32 %v462_v56, %v461_v46  ;;  %v759_v61 = vpop.f32.mrb[30].mxu0  ;;  %v540_v46 = vshrl.u32 %v539_v45, 7 }
 0x135   :  { %v515_v62 = vsel %vm1440_vm0, %v487_v58, 0.0  ;;  %v428_v0 = vadd.f32 %v838_v59, %v758_v54  ;;  %v839_v1 = vpop.f32.mrb[30].mxu1  ;;  %v760_v2 = vpop.f32.mrb[31].mxu0 }
 0x136   :  { %v516_v3 = vadd.f32 %v515_v62, %v514_v53  ;;  %v761_v4 = vadd.f32 %v760_v2, %v759_v61  ;;  %v840_v5 = vpop.f32.mrb[31].mxu1  ;;  %v541_v49 = vsub.s32 0, %v540_v46  ;;  %v535_v53 = vld [vmem:[%s1438_s3] sm:$0x1] }
 0x137   :  { %v464_v7 = vsel %vm1440_vm0, %v428_v0, 0.0  ;;  %v488_v8 = vmul.f32 %v428_v0, %v428_v0  ;;  %v841_v9 = vadd.f32 %v840_v5, %v839_v1 }
 0x138   :  { %v465_v10 = vadd.f32 %v464_v7, %v463_v60 }
 0x139   :  { %v517_v12 = vsel %vm1440_vm0, %v488_v8, 0.0  ;;  %v433_v13 = vadd.f32 %v841_v9, %v761_v4 }
 0x13a   :  { %v518_v14 = vadd.f32 %v517_v12, %v516_v3 }
 0x13b   :  { %v466_v16 = vsel %vm1440_vm0, %v433_v13, 0.0  ;;  %v489_v17 = vmul.f32 %v433_v13, %v433_v13 }
 0x13c   :  { %v467_v19 = vadd.f32 %v466_v16, %v465_v10 }
 0x13d   :  { %v519_v20 = vsel %vm1440_vm0, %v489_v17, 0.0  ;;  %vm1442_vm0 = vmmov %vm1441_vm13 }
 0x13e   :  { %v468_v22 = vrot.slane %v467_v19, 4  ;;  %v520_v23 = vadd.f32 %v519_v20, %v518_v14 }
 0x140   :  { %v469_v24 = vadd.f32 %v468_v22, %v467_v19  ;;  %v521_v26 = vrot.slane %v520_v23, 4 }
 0x142   :  { %v470_v27 = vrot.slane %v469_v24, 2  ;;  %v522_v28 = vadd.f32 %v521_v26, %v520_v23 }
 0x144   :  { %v471_v29 = vadd.f32 %v470_v27, %v469_v24  ;;  %v523_v30 = vrot.slane %v522_v28, 2 }
 0x146   :  { %v472_v32 = vrot.slane %v471_v29, 1  ;;  %v524_v34 = vadd.f32 %v523_v30, %v522_v28 }
 0x148   :  { %v473_v35 = vadd.f32 %v472_v32, %v471_v29  ;;  %v525_v37 = vrot.slane %v524_v34, 1 }
 0x14a   :  { %v526_v38 = vadd.f32 %v525_v37, %v524_v34  ;;  %v527_v39 = vmul.f32 0.0078125, %v473_v35 }
 0x14c   :  { %v528_v40 = vmul.f32 0.0078125, %v526_v38  ;;  %v529_v41 = vmul.f32 %v527_v39, %v527_v39 }
 0x14e   :  { %v530_v42 = vsub.f32 %v528_v40, %v529_v41 }
 0x150   :  { %v532_v43 = vadd.f32 1e-05, %v530_v42 }
 0x152   :  { %906 = vrsqrt.f32 %v532_v43 }
 0x15c   :  { %v907_v51 = vpop.eup %906 }
 0x15d   :  { %v534_v52 = vmul.f32 %v907_v51, %v531_v48 }
 0x15f   :  { %v536_v54 = vmul.f32 %v534_v52, %v527_v39  ;;  %v542_v55 = vrot.slane %v534_v52, %v541_v49 }
 0x161   :  { %v537_v56 = vsub.f32 %v535_v53, %v536_v54  ;;  %v544_v58 = vmul.f32 %v542_v55, %v1233_v11  ;;  %v545_v59 = vmul.f32 %v542_v55, %v1235_v18  ;;  %v549_v60 = vmul.f32 %v542_v55, %v1267_v63 }
 0x162   :  { %v550_v61 = vmul.f32 %v542_v55, %v1275_v15  ;;  %v551_v62 = vmul.f32 %v542_v55, %v1282_v31  ;;  %v552_v1 = vmul.f32 %v542_v55, %v1289_v44  ;;  %v553_v2 = vmul.f32 %v542_v55, %v1296_v57 }
 0x163   :  { %v554_v3 = vmul.f32 %v542_v55, %v1303_v6  ;;  %v555_v4 = vmul.f32 %v542_v55, %v1310_v21  ;;  %v556_v5 = vmul.f32 %v542_v55, %v1317_v36  ;;  %v557_v11 = vmul.f32 %v542_v55, %v1324_v50 }
 0x164   :  { %v558_v7 = vmul.f32 %v542_v55, %v428_v0  ;;  %v546_v18 = vmul.f32 %v542_v55, %v1237_v25  ;;  %v547_v63 = vmul.f32 %v542_v55, %v1241_v33  ;;  %v559_v15 = vmul.f32 %v542_v55, %v433_v13 }
 0x165   :  { %v564_v8 = vrot.slane %v537_v56, %v541_v49  ;;  %v548_v31 = vmul.f32 %v542_v55, %v1256_v47 }
 0x167   :  { %v566_v44 = vadd.f32 %v564_v8, %v544_v58  ;;  %v567_v9 = vadd.f32 %v564_v8, %v545_v59  ;;  %v568_v57 = vadd.f32 %v564_v8, %v546_v18  ;;  %v569_v10 = vadd.f32 %v564_v8, %v547_v63 }
 0x168   :  { %v570_v6 = vadd.f32 %v564_v8, %v548_v31  ;;  %v571_v12 = vadd.f32 %v564_v8, %v549_v60  ;;  %v572_v21 = vadd.f32 %v564_v8, %v550_v61  ;;  %v573_v14 = vadd.f32 %v564_v8, %v551_v62 }
 0x169   :  { %v574_v36 = vadd.f32 %v564_v8, %v552_v1  ;;  %v575_v16 = vadd.f32 %v564_v8, %v553_v2  ;;  %v576_v50 = vadd.f32 %v564_v8, %v554_v3  ;;  %v577_v0 = vadd.f32 %v564_v8, %v555_v4 }
 0x16a   :  { %v578_v17 = vadd.f32 %v564_v8, %v556_v5  ;;  %v579_v25 = vadd.f32 %v564_v8, %v557_v11  ;;  %v580_v19 = vadd.f32 %v564_v8, %v558_v7  ;;  %v581_v33 = vadd.f32 %v564_v8, %v559_v15 }
 0x16b   :  { %vm582_vm1 = vcmp.gt.f32.partialorder %v566_v44, 0.0  ;;  %vm583_vm2 = vcmp.gt.f32.partialorder %v567_v9, 0.0  ;;  %vm584_vm3 = vcmp.gt.f32.partialorder %v568_v57, 0.0  ;;  %vm585_vm4 = vcmp.gt.f32.partialorder %v569_v10, 0.0 }
 0x16c   :  { %vm586_vm5 = vcmp.gt.f32.partialorder %v570_v6, 0.0  ;;  %vm587_vm6 = vcmp.gt.f32.partialorder %v571_v12, 0.0  ;;  %vm588_vm7 = vcmp.gt.f32.partialorder %v572_v21, 0.0  ;;  %vm589_vm8 = vcmp.gt.f32.partialorder %v573_v14, 0.0 }
 0x16d   :  { %vm590_vm9 = vcmp.gt.f32.partialorder %v574_v36, 0.0  ;;  %vm591_vm10 = vcmp.gt.f32.partialorder %v575_v16, 0.0  ;;  %vm592_vm11 = vcmp.gt.f32.partialorder %v576_v50, 0.0  ;;  %vm593_vm12 = vcmp.gt.f32.partialorder %v577_v0, 0.0 }
 0x16e   :  { %vm595_vm14 = vcmp.gt.f32.partialorder %v579_v25, 0.0  ;;  %vm596_vm15 = vcmp.gt.f32.partialorder %v580_v19, 0.0  ;;  %v598_v47 = vmul.f32 0.2, %v566_v44  ;;  %v599_v13 = vmul.f32 0.2, %v567_v9 }
 0x16f   :  { %v600_v20 = vmul.f32 0.2, %v568_v57  ;;  %v601_v22 = vmul.f32 0.2, %v569_v10  ;;  %v602_v23 = vmul.f32 0.2, %v570_v6 }
 0x170   :  { %v603_v24 = vmul.f32 0.2, %v571_v12  ;;  %v604_v26 = vmul.f32 0.2, %v572_v21  ;;  %v605_v27 = vmul.f32 0.2, %v573_v14  ;;  %v614_v29 = vsel %vm582_vm1, %v566_v44, %v598_v47  ;;  %vm1443_vm1 = vmmov %vm1442_vm0 }
 0x171   :  { %v606_v28 = vmul.f32 0.2, %v574_v36  ;;  %v607_v30 = vmul.f32 0.2, %v575_v16  ;;  %v608_v32 = vmul.f32 0.2, %v576_v50  ;;  %v615_v35 = vsel %vm583_vm2, %v567_v9, %v599_v13  ;;  %vm1444_vm2 = vmmov %vm1442_vm0 }
 0x172   :  { %v609_v34 = vmul.f32 0.2, %v577_v0  ;;  %630 = vst.msk [vmem:[%s1439_s4] sm:$0xff] %vm1441_vm13, %v614_v29  ;;  %v610_v37 = vmul.f32 0.2, %v578_v17  ;;  %v616_v40 = vsel %vm584_vm3, %v568_v57, %v600_v20  ;;  %v617_v42 = vsel %vm585_vm4, %v569_v10, %v601_v22  ;;  %vm1445_vm3 = vmmov %vm1442_vm0 }
 0x173   :  { %v611_v38 = vmul.f32 0.2, %v579_v25  ;;  %v612_v39 = vmul.f32 0.2, %v580_v19  ;;  %631 = vst.msk [vmem:[%s1439_s4 + $0x8] sm:$0xff] %vm1442_vm0, %v615_v35  ;;  %v618_v43 = vsel %vm586_vm5, %v570_v6, %v602_v23  ;;  %v619_v45 = vsel %vm587_vm6, %v571_v12, %v603_v24  ;;  %633 = vst.msk [vmem:[%s1439_s4 + $0x18] sm:$0xff] %vm1442_vm0, %v617_v42 }
 0x174   :  { %v613_v41 = vmul.f32 0.2, %v581_v33  ;;  %632 = vst.msk [vmem:[%s1439_s4 + $0x10] sm:$0xff] %vm1443_vm1, %v616_v40  ;;  %v620_v46 = vsel %vm588_vm7, %v572_v21, %v604_v26  ;;  %v621_v48 = vsel %vm589_vm8, %v573_v14, %v605_v27  ;;  %v622_v49 = vsel %vm590_vm9, %v574_v36, %v606_v28  ;;  %vm1447_vm5 = vmmov %vm1442_vm0 }
 0x175   :  { %v623_v51 = vsel %vm591_vm10, %v575_v16, %v607_v30  ;;  %634 = vst.msk [vmem:[%s1439_s4 + $0x20] sm:$0xff] %vm1444_vm2, %v618_v43  ;;  %v624_v52 = vsel %vm592_vm11, %v576_v50, %v608_v32  ;;  %v625_v53 = vsel %vm593_vm12, %v577_v0, %v609_v34  ;;  %vm1446_vm4 = vcmp.gt.f32.partialorder %v578_v17, 0.0  ;;  %vm1448_vm6 = vmmov %vm1442_vm0 }
 0x176   :  { %635 = vst.msk [vmem:[%s1439_s4 + $0x28] sm:$0xff] %vm1445_vm3, %v619_v45  ;;  %v626_v54 = vsel %vm1446_vm4, %v578_v17, %v610_v37  ;;  %v627_v55 = vsel %vm595_vm14, %v579_v25, %v611_v38  ;;  %vm1449_vm7 = vmmov %vm1442_vm0  ;;  %v628_v56 = vsel %vm596_vm15, %v580_v19, %v612_v39  ;;  %vm1451_vm9 = vcmp.gt.f32.partialorder %v581_v33, 0.0 }
 0x177   :  { %636 = vst.msk [vmem:[%s1439_s4 + $0x30] sm:$0xff] %vm1447_vm5, %v620_v46  ;;  %vm1450_vm8 = vmmov %vm1442_vm0  ;;  %v629_v58 = vsel %vm1451_vm9, %v581_v33, %v613_v41 }
 0x178   :  { %637 = vst.msk [vmem:[%s1439_s4 + $0x38] sm:$0xff] %vm1448_vm6, %v621_v48  ;;  %vm1452_vm10 = vmmov %vm1442_vm0 }
 0x179   :  { %638 = vst.msk [vmem:[%s1439_s4 + $0x40] sm:$0xff] %vm1449_vm7, %v622_v49  ;;  %vm1453_vm11 = vmmov %vm1442_vm0 }
 0x17a   :  { %639 = vst.msk [vmem:[%s1439_s4 + $0x48] sm:$0xff] %vm1450_vm8, %v623_v51  ;;  %vm1454_vm12 = vmmov %vm1442_vm0 }
 0x17b   :  { %640 = vst.msk [vmem:[%s1439_s4 + $0x50] sm:$0xff] %vm1452_vm10, %v624_v52  ;;  %vm1455_vm13 = vmmov %vm1442_vm0 }
 0x17c   :  { %641 = vst.msk [vmem:[%s1439_s4 + $0x58] sm:$0xff] %vm1453_vm11, %v625_v53  ;;  %vm1456_vm14 = vmmov %vm1442_vm0 }
 0x17d   :  { %642 = vst.msk [vmem:[%s1439_s4 + $0x60] sm:$0xff] %vm1454_vm12, %v626_v54  ;;  %vm1457_vm15 = vmmov %vm1442_vm0 }
 0x17e   :  { %643 = vst.msk [vmem:[%s1439_s4 + $0x68] sm:$0xff] %vm1455_vm13, %v627_v55 }
 0x17f   :  { %644 = vst.msk [vmem:[%s1439_s4 + $0x70] sm:$0xff] %vm1456_vm14, %v628_v56 }
 0x180   :  { %645 = vst.msk [vmem:[%s1439_s4 + $0x78] sm:$0xff] %vm1457_vm15, %v629_v58 }

// kernel: wgan_discriminator_forward.7
= control target key start
LH: loop header
LB: loop body
LE: loop exit
PB: predicated region body
PF: predicated region fallthrough
CT: control target
= control target key end

     0   :  { %s1419_s1 = inlined_call_operand.vmem [shape: f32[1024,128], index: 1, kind: input, shape index: {}]   ;;  %s1420_s0 = inlined_call_operand.vmem [shape: f32[32,1024], index: 0, kind: input, shape index: {}]   ;;  %s1421_s2 = inlined_call_operand.vmem [shape: f32[1,128], index: 2, kind: input, shape index: {}]   ;;  %s1422_s3 = inlined_call_operand.vmem [shape: f32[1,128], index: 3, kind: input, shape index: {}]   ;;  %s1423_s4 = inlined_call_operand.vmem [shape: f32[32,128], index: 4, kind: output, shape index: {}]  }
   0x1   :  { %v65_v0 = vld [vmem:[%s1419_s1 + $0x80] sm:$0xff]  ;;  %v66_v1 = vld [vmem:[%s1419_s1 + $0x88] sm:$0xff]  ;;  %v67_v11 = vld [vmem:[%s1419_s1 + $0x90] sm:$0xff] }
   0x2   :  { %v97_v2 = vld [vmem:[%s1419_s1 + $0x180] sm:$0xff]  ;;  %v766_v3 = vpack.c.bf16 %v66_v1, %v65_v0  ;;  %v98_v4 = vld [vmem:[%s1419_s1 + $0x188] sm:$0xff]  ;;  %v68_v13 = vld [vmem:[%s1419_s1 + $0x98] sm:$0xff] }
   0x3   :  { %v49_v5 = vld [vmem:[%s1419_s1] sm:$0xff]  ;;  %v50_v6 = vld [vmem:[%s1419_s1 + $0x8] sm:$0xff]  ;;  %v798_v7 = vpack.c.bf16 %v98_v4, %v97_v2  ;;  %v99_v14 = vld [vmem:[%s1419_s1 + $0x190] sm:$0xff]  ;;  %v770_v16 = vpack.c.bf16 %v68_v13, %v67_v11 }
   0x4   :  { %v768_v8 = vpack.c.bf16 %v50_v6, %v49_v5  ;;  %v81_v9 = vld [vmem:[%s1419_s1 + $0x100] sm:$0xff]  ;;  %v82_v10 = vld [vmem:[%s1419_s1 + $0x108] sm:$0xff]  ;;  %767 = vmatprep.subr.bf16.mxu0 %v766_v3  ;;  %v100_v15 = vld [vmem:[%s1419_s1 + $0x198] sm:$0xff] }
   0x5   :  { %v800_v12 = vpack.c.bf16 %v82_v10, %v81_v9  ;;  %799 = vmatprep.subr.bf16.mxu1 %v798_v7  ;;  %v802_v17 = vpack.c.bf16 %v100_v15, %v99_v14  ;;  %v51_v18 = vld [vmem:[%s1419_s1 + $0x10] sm:$0xff]  ;;  %v52_v19 = vld [vmem:[%s1419_s1 + $0x18] sm:$0xff]  ;;  %v69_v23 = vld [vmem:[%s1419_s1 + $0xa0] sm:$0xff] }
   0x6   :  { %769 = vmatpush3.bf16.msra.mxu0 %v768_v8  ;;  %v83_v20 = vld [vmem:[%s1419_s1 + $0x110] sm:$0xff]  ;;  %v772_v21 = vpack.c.bf16 %v52_v19, %v51_v18  ;;  %v84_v22 = vld [vmem:[%s1419_s1 + $0x118] sm:$0xff]  ;;  %v70_v24 = vld [vmem:[%s1419_s1 + $0xa8] sm:$0xff] }
   0x7   :  { %801 = vmatpush3.bf16.msra.mxu1 %v800_v12  ;;  %771 = vmatprep.subr.bf16.mxu0 %v770_v16  ;;  %v804_v25 = vpack.c.bf16 %v84_v22, %v83_v20  ;;  %v774_v26 = vpack.c.bf16 %v70_v24, %v69_v23  ;;  %v101_v27 = vld [vmem:[%s1419_s1 + $0x1a0] sm:$0xff]  ;;  %v102_v28 = vld [vmem:[%s1419_s1 + $0x1a8] sm:$0xff]  ;;  %v71_v35 = vld [vmem:[%s1419_s1 + $0xb0] sm:$0xff] }
   0x8   :  { %803 = vmatprep.subr.bf16.mxu1 %v802_v17  ;;  %v53_v29 = vld [vmem:[%s1419_s1 + $0x20] sm:$0xff]  ;;  %v806_v30 = vpack.c.bf16 %v102_v28, %v101_v27  ;;  %v54_v31 = vld [vmem:[%s1419_s1 + $0x28] sm:$0xff]  ;;  %v72_v36 = vld [vmem:[%s1419_s1 + $0xb8] sm:$0xff] }
   0x9   :  { %v85_v32 = vld [vmem:[%s1419_s1 + $0x120] sm:$0xff]  ;;  %v86_v33 = vld [vmem:[%s1419_s1 + $0x128] sm:$0xff]  ;;  %v776_v34 = vpack.c.bf16 %v54_v31, %v53_v29  ;;  %v103_v37 = vld [vmem:[%s1419_s1 + $0x1b0] sm:$0xff]  ;;  %v778_v39 = vpack.c.bf16 %v72_v36, %v71_v35 }
   0xa   :  { %773 = vmatpush3.bf16.msra.mxu0 %v772_v21  ;;  %v808_v38 = vpack.c.bf16 %v86_v33, %v85_v32  ;;  %v104_v40 = vld [vmem:[%s1419_s1 + $0x1b8] sm:$0xff]  ;;  %v55_v41 = vld [vmem:[%s1419_s1 + $0x30] sm:$0xff]  ;;  %v73_v46 = vld [vmem:[%s1419_s1 + $0xc0] sm:$0xff] }
   0xb   :  { %805 = vmatpush3.bf16.msra.mxu1 %v804_v25  ;;  %775 = vmatprep.subr.bf16.mxu0 %v774_v26  ;;  %v56_v42 = vld [vmem:[%s1419_s1 + $0x38] sm:$0xff]  ;;  %v810_v43 = vpack.c.bf16 %v104_v40, %v103_v37  ;;  %v87_v44 = vld [vmem:[%s1419_s1 + $0x130] sm:$0xff]  ;;  %v74_v47 = vld [vmem:[%s1419_s1 + $0xc8] sm:$0xff] }
   0xc   :  { %807 = vmatprep.subr.bf16.mxu1 %v806_v30  ;;  %v88_v45 = vld [vmem:[%s1419_s1 + $0x138] sm:$0xff]  ;;  %v105_v48 = vld [vmem:[%s1419_s1 + $0x1c0] sm:$0xff]  ;;  %v106_v49 = vld [vmem:[%s1419_s1 + $0x1c8] sm:$0xff]  ;;  %v780_v50 = vpack.c.bf16 %v56_v42, %v55_v41  ;;  %v782_v52 = vpack.c.bf16 %v74_v47, %v73_v46 }
   0xd   :  { %v812_v51 = vpack.c.bf16 %v88_v45, %v87_v44  ;;  %v57_v53 = vld [vmem:[%s1419_s1 + $0x40] sm:$0xff]  ;;  %v58_v54 = vld [vmem:[%s1419_s1 + $0x48] sm:$0xff]  ;;  %v814_v56 = vpack.c.bf16 %v106_v49, %v105_v48  ;;  %v75_v58 = vld [vmem:[%s1419_s1 + $0xd0] sm:$0xff] }
   0xe   :  { %777 = vmatpush3.bf16.msra.mxu0 %v776_v34  ;;  %v89_v55 = vld [vmem:[%s1419_s1 + $0x140] sm:$0xff]  ;;  %v90_v57 = vld [vmem:[%s1419_s1 + $0x148] sm:$0xff]  ;;  %v76_v59 = vld [vmem:[%s1419_s1 + $0xd8] sm:$0xff]  ;;  %v784_v62 = vpack.c.bf16 %v58_v54, %v57_v53 }
   0xf   :  { %809 = vmatpush3.bf16.msra.mxu1 %v808_v38  ;;  %779 = vmatprep.subr.bf16.mxu0 %v778_v39  ;;  %v107_v60 = vld [vmem:[%s1419_s1 + $0x1d0] sm:$0xff]  ;;  %v108_v61 = vld [vmem:[%s1419_s1 + $0x1d8] sm:$0xff]  ;;  %v816_v63 = vpack.c.bf16 %v90_v57, %v89_v55  ;;  %v786_v0 = vpack.c.bf16 %v76_v59, %v75_v58  ;;  %v77_v6 = vld [vmem:[%s1419_s1 + $0xe0] sm:$0xff] }
  0x10   :  { %811 = vmatprep.subr.bf16.mxu1 %v810_v43  ;;  %v59_v1 = vld [vmem:[%s1419_s1 + $0x50] sm:$0xff]  ;;  %v60_v2 = vld [vmem:[%s1419_s1 + $0x58] sm:$0xff]  ;;  %v818_v4 = vpack.c.bf16 %v108_v61, %v107_v60  ;;  %v78_v7 = vld [vmem:[%s1419_s1 + $0xe8] sm:$0xff] }
  0x11   :  { %v91_v3 = vld [vmem:[%s1419_s1 + $0x150] sm:$0xff]  ;;  %v92_v5 = vld [vmem:[%s1419_s1 + $0x158] sm:$0xff]  ;;  %v109_v8 = vld [vmem:[%s1419_s1 + $0x1e0] sm:$0xff]  ;;  %v788_v10 = vpack.c.bf16 %v60_v2, %v59_v1  ;;  %v790_v14 = vpack.c.bf16 %v78_v7, %v77_v6 }
  0x12   :  { %781 = vmatpush3.bf16.msra.mxu0 %v780_v50  ;;  %v110_v9 = vld [vmem:[%s1419_s1 + $0x1e8] sm:$0xff]  ;;  %v61_v11 = vld [vmem:[%s1419_s1 + $0x60] sm:$0xff]  ;;  %v820_v13 = vpack.c.bf16 %v92_v5, %v91_v3  ;;  %v20_v17 = vld [vmem:[%s1420_s0 + $0x18] sm:$0xff] }
  0x13   :  { %813 = vmatpush3.bf16.msra.mxu1 %v812_v51  ;;  %783 = vmatprep.subr.bf16.mxu0 %v782_v52  ;;  %v62_v12 = vld [vmem:[%s1419_s1 + $0x68] sm:$0xff]  ;;  %v93_v15 = vld [vmem:[%s1419_s1 + $0x160] sm:$0xff]  ;;  %v822_v18 = vpack.c.bf16 %v110_v9, %v109_v8  ;;  %v79_v20 = vld [vmem:[%s1419_s1 + $0xf0] sm:$0xff] }
  0x14   :  { %815 = vmatprep.subr.bf16.mxu1 %v814_v56  ;;  %v18_v16 = vld [vmem:[%s1420_s0 + $0x8] sm:$0xff]  ;;  %v80_v21 = vld [vmem:[%s1419_s1 + $0xf8] sm:$0xff]  ;;  %v111_v22 = vld [vmem:[%s1419_s1 + $0x1f0] sm:$0xff]  ;;  %326 = vmatprep.mubr.f32.mxu1 %v20_v17  ;;  %v792_v24 = vpack.c.bf16 %v62_v12, %v61_v11 }
  0x15   :  { %v94_v19 = vld [vmem:[%s1419_s1 + $0x168] sm:$0xff]  ;;  %241 = vmatprep.mubr.f32.mxu0 %v18_v16  ;;  %v112_v23 = vld [vmem:[%s1419_s1 + $0x1f8] sm:$0xff]  ;;  %v794_v26 = vpack.c.bf16 %v80_v21, %v79_v20  ;;  %v63_v27 = vld [vmem:[%s1419_s1 + $0x70] sm:$0xff] }
  0x16   :  { %785 = vmatpush3.bf16.msra.mxu0 %v784_v62  ;;  %v824_v25 = vpack.c.bf16 %v94_v19, %v93_v15  ;;  %v64_v28 = vld [vmem:[%s1419_s1 + $0x78] sm:$0xff]  ;;  %v95_v29 = vld [vmem:[%s1419_s1 + $0x170] sm:$0xff]  ;;  %v826_v30 = vpack.c.bf16 %v112_v23, %v111_v22  ;;  %v129_v32 = vld [vmem:[%s1419_s1 + $0x280] sm:$0xff] }
  0x17   :  { %817 = vmatpush3.bf16.msra.mxu1 %v816_v63  ;;  %787 = vmatprep.subr.bf16.mxu0 %v786_v0  ;;  %v96_v31 = vld [vmem:[%s1419_s1 + $0x178] sm:$0xff]  ;;  %v130_v33 = vld [vmem:[%s1419_s1 + $0x288] sm:$0xff]  ;;  %v161_v34 = vld [vmem:[%s1419_s1 + $0x380] sm:$0xff]  ;;  %v796_v36 = vpack.c.bf16 %v64_v28, %v63_v27 }
  0x18   :  { %819 = vmatprep.subr.bf16.mxu1 %v818_v4  ;;  %v162_v35 = vld [vmem:[%s1419_s1 + $0x388] sm:$0xff]  ;;  %v828_v37 = vpack.c.bf16 %v96_v31, %v95_v29  ;;  %v830_v38 = vpack.c.bf16 %v130_v33, %v129_v32  ;;  %v113_v39 = vld [vmem:[%s1419_s1 + $0x200] sm:$0xff]  ;;  %v131_v44 = vld [vmem:[%s1419_s1 + $0x290] sm:$0xff] }
  0x19   :  { %v114_v40 = vld [vmem:[%s1419_s1 + $0x208] sm:$0xff]  ;;  %v145_v41 = vld [vmem:[%s1419_s1 + $0x300] sm:$0xff]  ;;  %v862_v42 = vpack.c.bf16 %v162_v35, %v161_v34  ;;  %v132_v45 = vld [vmem:[%s1419_s1 + $0x298] sm:$0xff] }
  0x1a   :  { %789 = vmatpush3.bf16.msra.mxu0 %v788_v10  ;;  %v146_v43 = vld [vmem:[%s1419_s1 + $0x308] sm:$0xff]  ;;  %v163_v46 = vld [vmem:[%s1419_s1 + $0x390] sm:$0xff]  ;;  %v164_v47 = vld [vmem:[%s1419_s1 + $0x398] sm:$0xff]  ;;  %v832_v50 = vpack.c.bf16 %v114_v40, %v113_v39  ;;  %v834_v52 = vpack.c.bf16 %v132_v45, %v131_v44 }
  0x1b   :  { %821 = vmatpush3.bf16.msra.mxu1 %v820_v13  ;;  %791 = vmatprep.subr.bf16.mxu0 %v790_v14  ;;  %v17_v48 = vld [vmem:[%s1420_s0] sm:$0xff]  ;;  %v19_v49 = vld [vmem:[%s1420_s0 + $0x10] sm:$0xff]  ;;  %v864_v51 = vpack.c.bf16 %v146_v43, %v145_v41  ;;  %v116_v54 = vld [vmem:[%s1419_s1 + $0x218] sm:$0xff]  ;;  %v866_v56 = vpack.c.bf16 %v164_v47, %v163_v46 }
  0x1c   :  { %823 = vmatprep.subr.bf16.mxu1 %v822_v18  ;;  %v115_v53 = vld [vmem:[%s1419_s1 + $0x210] sm:$0xff]  ;;  %v148_v57 = vld [vmem:[%s1419_s1 + $0x318] sm:$0xff]  ;;  %v133_v58 = vld [vmem:[%s1419_s1 + $0x2a0] sm:$0xff] }
  0x1d   :  { %v147_v55 = vld [vmem:[%s1419_s1 + $0x310] sm:$0xff]  ;;  %v134_v59 = vld [vmem:[%s1419_s1 + $0x2a8] sm:$0xff]  ;;  %v165_v60 = vld [vmem:[%s1419_s1 + $0x3a0] sm:$0xff]  ;;  %v836_v63 = vpack.c.bf16 %v116_v54, %v115_v53 }
  0x1e   :  { %793 = vmatpush3.bf16.msra.mxu0 %v792_v24  ;;  %v166_v61 = vld [vmem:[%s1419_s1 + $0x3a8] sm:$0xff]  ;;  %v117_v0 = vld [vmem:[%s1419_s1 + $0x220] sm:$0xff]  ;;  %v28_v1 = vld [vmem:[%s1420_s0 + $0x58] sm:$0xff]  ;;  %v868_v3 = vpack.c.bf16 %v148_v57, %v147_v55  ;;  %v838_v4 = vpack.c.bf16 %v134_v59, %v133_v58 }
  0x1f   :  { %825 = vmatpush3.bf16.msra.mxu1 %v824_v25  ;;  %795 = vmatprep.subr.bf16.mxu0 %v794_v26  ;;  %v26_v62 = vld [vmem:[%s1420_s0 + $0x48] sm:$0xff]  ;;  %v25_v2 = vld [vmem:[%s1420_s0 + $0x40] sm:$0xff]  ;;  %v27_v7 = vld [vmem:[%s1420_s0 + $0x50] sm:$0xff]  ;;  %v870_v8 = vpack.c.bf16 %v166_v61, %v165_v60 }
  0x20   :  { %827 = vmatprep.subr.bf16.mxu1 %v826_v30  ;;  %v118_v5 = vld [vmem:[%s1419_s1 + $0x228] sm:$0xff]  ;;  %v149_v6 = vld [vmem:[%s1419_s1 + $0x320] sm:$0xff]  ;;  %v135_v10 = vld [vmem:[%s1419_s1 + $0x2b0] sm:$0xff] }
  0x21   :  { %v150_v9 = vld [vmem:[%s1419_s1 + $0x328] sm:$0xff]  ;;  %v136_v11 = vld [vmem:[%s1419_s1 + $0x2b8] sm:$0xff]  ;;  %v167_v12 = vld [vmem:[%s1419_s1 + $0x3b0] sm:$0xff]  ;;  %v840_v15 = vpack.c.bf16 %v118_v5, %v117_v0 }
  0x22   :  { %797 = vmatpush3.bf16.msra.mxu0 %v796_v36  ;;  %v168_v13 = vld [vmem:[%s1419_s1 + $0x3b8] sm:$0xff]  ;;  %v34_v14 = vld [vmem:[%s1420_s0 + $0x88] sm:$0xff]  ;;  %v119_v16 = vld [vmem:[%s1419_s1 + $0x230] sm:$0xff]  ;;  %v872_v19 = vpack.c.bf16 %v150_v9, %v149_v6  ;;  %v842_v20 = vpack.c.bf16 %v136_v11, %v135_v10 }
  0x23   :  { %829 = vmatpush3.bf16.msra.mxu1 %v828_v37  ;;  %831 = vmatprep.subr.bf16.mxu0 %v830_v38  ;;  %v36_v17 = vld [vmem:[%s1420_s0 + $0x98] sm:$0xff]  ;;  %v33_v18 = vld [vmem:[%s1420_s0 + $0x80] sm:$0xff]  ;;  %v151_v22 = vld [vmem:[%s1419_s1 + $0x330] sm:$0xff]  ;;  %v874_v24 = vpack.c.bf16 %v168_v13, %v167_v12 }
  0x24   :  { %863 = vmatprep.subr.bf16.mxu1 %v862_v42  ;;  %v120_v21 = vld [vmem:[%s1419_s1 + $0x238] sm:$0xff]  ;;  %v35_v23 = vld [vmem:[%s1420_s0 + $0x90] sm:$0xff]  ;;  %v137_v26 = vld [vmem:[%s1419_s1 + $0x2c0] sm:$0xff] }
  0x25   :  { %242 = vmatmul.mubr.f32.vlgmr.msra.gmra.mrb[0].mxu0 %v17_v48  ;;  %v152_v25 = vld [vmem:[%s1419_s1 + $0x338] sm:$0xff]  ;;  %v138_v27 = vld [vmem:[%s1419_s1 + $0x2c8] sm:$0xff]  ;;  %v169_v28 = vld [vmem:[%s1419_s1 + $0x3c0] sm:$0xff]  ;;  %v844_v31 = vpack.c.bf16 %v120_v21, %v119_v16 }
  0x26   :  { %327 = vmatmul.mubr.f32.vlgmr.msra.gmra.mrb[0].mxu1 %v19_v49  ;;  %833 = vmatpush3.bf16.msra.mxu0 %v832_v50  ;;  %v170_v29 = vld [vmem:[%s1419_s1 + $0x3c8] sm:$0xff]  ;;  %v121_v32 = vld [vmem:[%s1419_s1 + $0x240] sm:$0xff]  ;;  %v44_v33 = vld [vmem:[%s1420_s0 + $0xd8] sm:$0xff]  ;;  %v876_v35 = vpack.c.bf16 %v152_v25, %v151_v22  ;;  %v846_v36 = vpack.c.bf16 %v138_v27, %v137_v26 }
  0x27   :  { %865 = vmatpush3.bf16.msra.mxu1 %v864_v51  ;;  %835 = vmatprep.subr.bf16.mxu0 %v834_v52  ;;  %v42_v30 = vld [vmem:[%s1420_s0 + $0xc8] sm:$0xff]  ;;  %v41_v34 = vld [vmem:[%s1420_s0 + $0xc0] sm:$0xff]  ;;  %v43_v39 = vld [vmem:[%s1420_s0 + $0xd0] sm:$0xff]  ;;  %v878_v40 = vpack.c.bf16 %v170_v29, %v169_v28 }
  0x28   :  { %867 = vmatprep.subr.bf16.mxu1 %v866_v56  ;;  %246 = vmatprep.mubr.f32.mxu0 %v26_v62  ;;  %v122_v37 = vld [vmem:[%s1419_s1 + $0x248] sm:$0xff]  ;;  %v153_v38 = vld [vmem:[%s1419_s1 + $0x340] sm:$0xff]  ;;  %v139_v42 = vld [vmem:[%s1419_s1 + $0x2d0] sm:$0xff] }
  0x29   :  { %331 = vmatprep.mubr.f32.mxu1 %v28_v1  ;;  %247 = vmatmul.mubr.f32.gmra.mrb[2].mxu0 %v25_v2  ;;  %v154_v41 = vld [vmem:[%s1419_s1 + $0x348] sm:$0xff]  ;;  %v140_v43 = vld [vmem:[%s1419_s1 + $0x2d8] sm:$0xff]  ;;  %v171_v44 = vld [vmem:[%s1419_s1 + $0x3d0] sm:$0xff]  ;;  %v848_v46 = vpack.c.bf16 %v122_v37, %v121_v32 }
  0x2a   :  { %837 = vmatpush3.bf16.msra.mxu0 %v836_v63  ;;  %332 = vmatmul.mubr.f32.gmra.mrb[2].mxu1 %v27_v7  ;;  %v172_v45 = vld [vmem:[%s1419_s1 + $0x3d8] sm:$0xff]  ;;  %v22_v47 = vld [vmem:[%s1420_s0 + $0x28] sm:$0xff]  ;;  %v880_v49 = vpack.c.bf16 %v154_v41, %v153_v38  ;;  %v850_v50 = vpack.c.bf16 %v140_v43, %v139_v42  ;;  %v123_v51 = vld [vmem:[%s1419_s1 + $0x250] sm:$0xff] }
  0x2b   :  { %869 = vmatpush3.bf16.msra.mxu1 %v868_v3  ;;  %839 = vmatprep.subr.bf16.mxu0 %v838_v4  ;;  %v24_v48 = vld [vmem:[%s1420_s0 + $0x38] sm:$0xff]  ;;  %v155_v53 = vld [vmem:[%s1419_s1 + $0x350] sm:$0xff]  ;;  %v882_v54 = vpack.c.bf16 %v172_v45, %v171_v44  ;;  %v141_v56 = vld [vmem:[%s1419_s1 + $0x2e0] sm:$0xff] }
  0x2c   :  { %871 = vmatprep.subr.bf16.mxu1 %v870_v8  ;;  %251 = vmatprep.mubr.f32.mxu0 %v34_v14  ;;  %v124_v52 = vld [vmem:[%s1419_s1 + $0x258] sm:$0xff]  ;;  %v142_v57 = vld [vmem:[%s1419_s1 + $0x2e8] sm:$0xff]  ;;  %v173_v58 = vld [vmem:[%s1419_s1 + $0x3e0] sm:$0xff] }
  0x2d   :  { %336 = vmatprep.mubr.f32.mxu1 %v36_v17  ;;  %252 = vmatmul.mubr.f32.gmra.mrb[4].mxu0 %v33_v18  ;;  %v156_v55 = vld [vmem:[%s1419_s1 + $0x358] sm:$0xff]  ;;  %v174_v59 = vld [vmem:[%s1419_s1 + $0x3e8] sm:$0xff]  ;;  %v852_v60 = vpack.c.bf16 %v124_v52, %v123_v51  ;;  %v854_v62 = vpack.c.bf16 %v142_v57, %v141_v56  ;;  %v125_v63 = vld [vmem:[%s1419_s1 + $0x260] sm:$0xff] }
  0x2e   :  { %841 = vmatpush3.bf16.msra.mxu0 %v840_v15  ;;  %337 = vmatmul.mubr.f32.gmra.mrb[4].mxu1 %v35_v23  ;;  %v884_v61 = vpack.c.bf16 %v156_v55, %v155_v53  ;;  %v126_v0 = vld [vmem:[%s1419_s1 + $0x268] sm:$0xff]  ;;  %v157_v1 = vld [vmem:[%s1419_s1 + $0x360] sm:$0xff]  ;;  %v886_v2 = vpack.c.bf16 %v174_v59, %v173_v58  ;;  %v143_v4 = vld [vmem:[%s1419_s1 + $0x2f0] sm:$0xff] }
  0x2f   :  { %873 = vmatpush3.bf16.msra.mxu1 %v872_v19  ;;  %843 = vmatprep.subr.bf16.mxu0 %v842_v20  ;;  %v158_v3 = vld [vmem:[%s1419_s1 + $0x368] sm:$0xff]  ;;  %v144_v5 = vld [vmem:[%s1419_s1 + $0x2f8] sm:$0xff]  ;;  %v175_v6 = vld [vmem:[%s1419_s1 + $0x3f0] sm:$0xff]  ;;  %v856_v8 = vpack.c.bf16 %v126_v0, %v125_v63 }
  0x30   :  { %875 = vmatprep.subr.bf16.mxu1 %v874_v24  ;;  %256 = vmatprep.mubr.f32.mxu0 %v42_v30  ;;  %v176_v7 = vld [vmem:[%s1419_s1 + $0x3f8] sm:$0xff]  ;;  %v888_v9 = vpack.c.bf16 %v158_v3, %v157_v1  ;;  %v858_v10 = vpack.c.bf16 %v144_v5, %v143_v4  ;;  %v127_v11 = vld [vmem:[%s1419_s1 + $0x270] sm:$0xff]  ;;  %v21_v18 = vld [vmem:[%s1420_s0 + $0x20] sm:$0xff] }
  0x31   :  { %341 = vmatprep.mubr.f32.mxu1 %v44_v33  ;;  %257 = vmatmul.mubr.f32.gmra.mrb[6].mxu0 %v41_v34  ;;  %v128_v12 = vld [vmem:[%s1419_s1 + $0x278] sm:$0xff]  ;;  %v890_v13 = vpack.c.bf16 %v176_v7, %v175_v6  ;;  %v159_v14 = vld [vmem:[%s1419_s1 + $0x370] sm:$0xff]  ;;  %v30_v20 = vld [vmem:[%s1420_s0 + $0x68] sm:$0xff] }
  0x32   :  { %845 = vmatpush3.bf16.msra.mxu0 %v844_v31  ;;  %342 = vmatmul.mubr.f32.gmra.mrb[6].mxu1 %v43_v39  ;;  %v160_v15 = vld [vmem:[%s1419_s1 + $0x378] sm:$0xff]  ;;  %v860_v16 = vpack.c.bf16 %v128_v12, %v127_v11  ;;  %v23_v19 = vld [vmem:[%s1420_s0 + $0x30] sm:$0xff]  ;;  %v29_v22 = vld [vmem:[%s1420_s0 + $0x60] sm:$0xff] }
  0x33   :  { %877 = vmatpush3.bf16.msra.mxu1 %v876_v35  ;;  %847 = vmatprep.subr.bf16.mxu0 %v846_v36  ;;  %v892_v17 = vpack.c.bf16 %v160_v15, %v159_v14  ;;  %v32_v21 = vld [vmem:[%s1420_s0 + $0x78] sm:$0xff]  ;;  %v31_v23 = vld [vmem:[%s1420_s0 + $0x70] sm:$0xff]  ;;  %v38_v24 = vld [vmem:[%s1420_s0 + $0xa8] sm:$0xff] }
  0x34   :  { %879 = vmatprep.subr.bf16.mxu1 %v878_v40  ;;  %411 = vmatprep.mubr.f32.mxu0 %v22_v47  ;;  %v40_v25 = vld [vmem:[%s1420_s0 + $0xb8] sm:$0xff]  ;;  %v37_v26 = vld [vmem:[%s1420_s0 + $0xa0] sm:$0xff]  ;;  %v39_v27 = vld [vmem:[%s1420_s0 + $0xb0] sm:$0xff] }
  0x35   :  { %496 = vmatprep.mubr.f32.mxu1 %v24_v48  ;;  %v46_v28 = vld [vmem:[%s1420_s0 + $0xe8] sm:$0xff]  ;;  %v48_v29 = vld [vmem:[%s1420_s0 + $0xf8] sm:$0xff]  ;;  %v45_v30 = vld [vmem:[%s1420_s0 + $0xe0] sm:$0xff] }
  0x36   :  { %849 = vmatpush3.bf16.msra.mxu0 %v848_v46  ;;  %v47_v31 = vld [vmem:[%s1420_s0 + $0xf0] sm:$0xff] }
  0x37   :  { %881 = vmatpush3.bf16.msra.mxu1 %v880_v49  ;;  %851 = vmatprep.subr.bf16.mxu0 %v850_v50 }
  0x38   :  { %883 = vmatprep.subr.bf16.mxu1 %v882_v54 }
  0x3a   :  { %853 = vmatpush3.bf16.msra.mxu0 %v852_v60 }
  0x3b   :  { %885 = vmatpush3.bf16.msra.mxu1 %v884_v61  ;;  %855 = vmatprep.subr.bf16.mxu0 %v854_v62 }
  0x3c   :  { %887 = vmatprep.subr.bf16.mxu1 %v886_v2 }
  0x3e   :  { %857 = vmatpush3.bf16.msra.mxu0 %v856_v8 }
  0x3f   :  { %889 = vmatpush3.bf16.msra.mxu1 %v888_v9  ;;  %859 = vmatprep.subr.bf16.mxu0 %v858_v10 }
  0x40   :  { %891 = vmatprep.subr.bf16.mxu1 %v890_v13 }
  0x42   :  { %861 = vmatpush3.bf16.msra.mxu0 %v860_v16 }
  0x43   :  { %893 = vmatpush3.bf16.msra.mxu1 %v892_v17 }
  0x45   :  { %412 = vmatmul.mubr.f32.vlgmr.msra.gmra.mrb[8].mxu0 %v21_v18 }
  0x46   :  { %497 = vmatmul.mubr.f32.vlgmr.msra.gmra.mrb[8].mxu1 %v23_v19  ;;  %416 = vmatprep.mubr.f32.mxu0 %v30_v20 }
  0x47   :  { %501 = vmatprep.mubr.f32.mxu1 %v32_v21 }
  0x49   :  { %417 = vmatmul.mubr.f32.gmra.mrb[10].mxu0 %v29_v22 }
  0x4a   :  { %502 = vmatmul.mubr.f32.gmra.mrb[10].mxu1 %v31_v23  ;;  %421 = vmatprep.mubr.f32.mxu0 %v38_v24 }
  0x4b   :  { %506 = vmatprep.mubr.f32.mxu1 %v40_v25 }
  0x4d   :  { %422 = vmatmul.mubr.f32.gmra.mrb[12].mxu0 %v37_v26 }
  0x4e   :  { %507 = vmatmul.mubr.f32.gmra.mrb[12].mxu1 %v39_v27  ;;  %426 = vmatprep.mubr.f32.mxu0 %v46_v28 }
  0x4f   :  { %511 = vmatprep.mubr.f32.mxu1 %v48_v29 }
  0x51   :  { %427 = vmatmul.mubr.f32.gmra.mrb[14].mxu0 %v45_v30 }
  0x52   :  { %512 = vmatmul.mubr.f32.gmra.mrb[14].mxu1 %v47_v31 }
  0xf8   :  { %v622_v32 = vpop.f32.mrb[0].mxu0 }
  0xf9   :  { %v666_v33 = vpop.f32.mrb[0].mxu1  ;;  %v623_v34 = vpop.f32.mrb[1].mxu0 }
  0xfa   :  { %v624_v35 = vadd.f32 %v623_v34, %v622_v32  ;;  %v667_v36 = vpop.f32.mrb[1].mxu1 }
  0xfb   :  { %v668_v37 = vadd.f32 %v667_v36, %v666_v33 }
  0xfc   :  { %v625_v38 = vpop.f32.mrb[2].mxu0 }
  0xfd   :  { %v329_v39 = vadd.f32 %v668_v37, %v624_v35  ;;  %v669_v40 = vpop.f32.mrb[2].mxu1  ;;  %v626_v41 = vpop.f32.mrb[3].mxu0 }
  0xfe   :  { %v627_v42 = vadd.f32 %v626_v41, %v625_v38  ;;  %v670_v43 = vpop.f32.mrb[3].mxu1 }
  0xff   :  { %v671_v44 = vadd.f32 %v670_v43, %v669_v40 }
 0x100   :  { %v628_v45 = vpop.f32.mrb[4].mxu0 }
 0x101   :  { %v334_v46 = vadd.f32 %v671_v44, %v627_v42  ;;  %v672_v47 = vpop.f32.mrb[4].mxu1  ;;  %v629_v48 = vpop.f32.mrb[5].mxu0 }
 0x102   :  { %v630_v49 = vadd.f32 %v629_v48, %v628_v45  ;;  %v673_v50 = vpop.f32.mrb[5].mxu1 }
 0x103   :  { %v674_v51 = vadd.f32 %v673_v50, %v672_v47 }
 0x104   :  { %v631_v52 = vpop.f32.mrb[6].mxu0 }
 0x105   :  { %v339_v53 = vadd.f32 %v674_v51, %v630_v49  ;;  %v675_v54 = vpop.f32.mrb[6].mxu1  ;;  %v632_v55 = vpop.f32.mrb[7].mxu0 }
 0x106   :  { %v633_v56 = vadd.f32 %v632_v55, %v631_v52  ;;  %v676_v57 = vpop.f32.mrb[7].mxu1  ;;  %v551_v55 = vlaneseq }
 0x107   :  { %v677_v58 = vadd.f32 %v676_v57, %v675_v54  ;;  %v543_v57 = vld [vmem:[%s1421_s2] sm:$0x1] }
 0x109   :  { %v344_v59 = vadd.f32 %v677_v58, %v633_v56  ;;  %v552_v56 = vshrl.u32 %v551_v55, 7 }
 0x10b   :  { %v553_v58 = vsub.s32 0, %v552_v56 }
 0x118   :  { %v710_v60 = vpop.f32.mrb[8].mxu0 }
 0x119   :  { %v711_v61 = vpop.f32.mrb[9].mxu0  ;;  %v754_v62 = vpop.f32.mrb[8].mxu1 }
 0x11a   :  { %v712_v63 = vadd.f32 %v711_v61, %v710_v60  ;;  %v755_v0 = vpop.f32.mrb[9].mxu1  ;;  %v547_v61 = vld [vmem:[%s1422_s3] sm:$0x1] }
 0x11b   :  { %v756_v1 = vadd.f32 %v755_v0, %v754_v62 }
 0x11c   :  { %v414_v2 = vadd.f32 %v712_v63, %v329_v39  ;;  %v713_v3 = vpop.f32.mrb[10].mxu0 }
 0x11d   :  { %v714_v4 = vpop.f32.mrb[11].mxu0  ;;  %v757_v5 = vpop.f32.mrb[10].mxu1 }
 0x11e   :  { %v499_v6 = vadd.f32 %v756_v1, %v414_v2  ;;  %v715_v7 = vadd.f32 %v714_v4, %v713_v3  ;;  %v758_v8 = vpop.f32.mrb[11].mxu1 }
 0x11f   :  { %v759_v9 = vadd.f32 %v758_v8, %v757_v5 }
 0x120   :  { %v419_v10 = vadd.f32 %v715_v7, %v334_v46  ;;  %v716_v11 = vpop.f32.mrb[12].mxu0  ;;  %v526_v18 = vmul.f32 %v499_v6, %v499_v6 }
 0x121   :  { %v717_v12 = vpop.f32.mrb[13].mxu0  ;;  %v760_v13 = vpop.f32.mrb[12].mxu1 }
 0x122   :  { %v504_v14 = vadd.f32 %v759_v9, %v419_v10  ;;  %v718_v15 = vadd.f32 %v717_v12, %v716_v11  ;;  %v761_v16 = vpop.f32.mrb[13].mxu1 }
 0x123   :  { %v762_v17 = vadd.f32 %v761_v16, %v760_v13 }
 0x124   :  { %v517_v19 = vadd.f32 %v504_v14, %v499_v6  ;;  %v527_v20 = vmul.f32 %v504_v14, %v504_v14  ;;  %v424_v21 = vadd.f32 %v718_v15, %v339_v53  ;;  %v719_v22 = vpop.f32.mrb[14].mxu0 }
 0x125   :  { %v720_v23 = vpop.f32.mrb[15].mxu0  ;;  %v763_v24 = vpop.f32.mrb[14].mxu1 }
 0x126   :  { %v530_v25 = vadd.f32 %v527_v20, %v526_v18  ;;  %v509_v26 = vadd.f32 %v762_v17, %v424_v21  ;;  %v721_v27 = vadd.f32 %v720_v23, %v719_v22  ;;  %v764_v28 = vpop.f32.mrb[15].mxu1 }
 0x127   :  { %v765_v29 = vadd.f32 %v764_v28, %v763_v24 }
 0x128   :  { %v518_v30 = vadd.f32 %v517_v19, %v509_v26  ;;  %v528_v31 = vmul.f32 %v509_v26, %v509_v26  ;;  %v429_v32 = vadd.f32 %v721_v27, %v344_v59 }
 0x12a   :  { %v531_v33 = vadd.f32 %v530_v25, %v528_v31  ;;  %v514_v34 = vadd.f32 %v765_v29, %v429_v32 }
 0x12c   :  { %v519_v35 = vadd.f32 %v518_v30, %v514_v34  ;;  %v529_v36 = vmul.f32 %v514_v34, %v514_v34 }
 0x12e   :  { %v520_v37 = vrot.slane %v519_v35, 4  ;;  %v532_v38 = vadd.f32 %v531_v33, %v529_v36 }
 0x130   :  { %v521_v39 = vadd.f32 %v520_v37, %v519_v35  ;;  %v533_v40 = vrot.slane %v532_v38, 4 }
 0x132   :  { %v522_v41 = vrot.slane %v521_v39, 2  ;;  %v534_v42 = vadd.f32 %v533_v40, %v532_v38 }
 0x134   :  { %v523_v43 = vadd.f32 %v522_v41, %v521_v39  ;;  %v535_v44 = vrot.slane %v534_v42, 2 }
 0x136   :  { %v524_v45 = vrot.slane %v523_v43, 1  ;;  %v536_v46 = vadd.f32 %v535_v44, %v534_v42 }
 0x138   :  { %v525_v47 = vadd.f32 %v524_v45, %v523_v43  ;;  %v537_v48 = vrot.slane %v536_v46, 1 }
 0x13a   :  { %v538_v49 = vadd.f32 %v537_v48, %v536_v46  ;;  %v539_v50 = vmul.f32 0.03125, %v525_v47 }
 0x13c   :  { %v540_v51 = vmul.f32 0.03125, %v538_v49  ;;  %v541_v52 = vmul.f32 %v539_v50, %v539_v50 }
 0x13e   :  { %v542_v53 = vsub.f32 %v540_v51, %v541_v52 }
 0x140   :  { %v544_v54 = vadd.f32 1e-05, %v542_v53 }
 0x142   :  { %894 = vrsqrt.f32 %v544_v54 }
 0x14c   :  { %v895_v59 = vpop.eup %894 }
 0x14d   :  { %v546_v60 = vmul.f32 %v895_v59, %v543_v57 }
 0x14f   :  { %v548_v62 = vmul.f32 %v546_v60, %v539_v50  ;;  %v554_v63 = vrot.slane %v546_v60, %v553_v58 }
 0x151   :  { %v549_v0 = vsub.f32 %v547_v61, %v548_v62  ;;  %v556_v1 = vmul.f32 %v554_v63, %v499_v6  ;;  %v557_v2 = vmul.f32 %v554_v63, %v504_v14  ;;  %v558_v3 = vmul.f32 %v554_v63, %v509_v26 }
 0x152   :  { %v559_v4 = vmul.f32 %v554_v63, %v514_v34 }
 0x153   :  { %v564_v5 = vrot.slane %v549_v0, %v553_v58 }
 0x155   :  { %v566_v7 = vadd.f32 %v564_v5, %v556_v1  ;;  %v567_v8 = vadd.f32 %v564_v5, %v557_v2  ;;  %v568_v9 = vadd.f32 %v564_v5, %v558_v3  ;;  %v569_v10 = vadd.f32 %v564_v5, %v559_v4 }
 0x157   :  { %vm570_vm0 = vcmp.gt.f32.partialorder %v566_v7, 0.0  ;;  %vm571_vm1 = vcmp.gt.f32.partialorder %v567_v8, 0.0  ;;  %vm572_vm2 = vcmp.gt.f32.partialorder %v568_v9, 0.0  ;;  %vm573_vm3 = vcmp.gt.f32.partialorder %v569_v10, 0.0 }
 0x158   :  { %v574_v11 = vmul.f32 0.2, %v566_v7  ;;  %v575_v12 = vmul.f32 0.2, %v567_v8  ;;  %v576_v13 = vmul.f32 0.2, %v568_v9 }
 0x159   :  { %v577_v15 = vmul.f32 0.2, %v569_v10 }
 0x15a   :  { %v578_v16 = vsel %vm570_vm0, %v566_v7, %v574_v11  ;;  %v579_v17 = vsel %vm571_vm1, %v567_v8, %v575_v12  ;;  %v580_v18 = vsel %vm572_vm2, %v568_v9, %v576_v13 }
 0x15b   :  { %v581_v6 = vsel %vm573_vm3, %v569_v10, %v577_v15  ;;  %582 = vst [vmem:[%s1423_s4] sm:$0xff] %v578_v16  ;;  %583 = vst [vmem:[%s1423_s4 + $0x8] sm:$0xff] %v579_v17 }
 0x15c   :  { %584 = vst [vmem:[%s1423_s4 + $0x10] sm:$0xff] %v580_v18  ;;  %585 = vst [vmem:[%s1423_s4 + $0x18] sm:$0xff] %v581_v6 }

</bundles_post_ra>
